<compile_context>
chip_gen: v5e
topology: v5e:2x2
jax: 0.10.0
libtpu: 0.0.40
codegen_flags: <defaults>
</compile_context>

<pallas_src>
import jax
import jax.numpy as jnp
from jax import lax
from jax.experimental import pallas as pl
from jax.experimental.pallas import tpu as pltpu

MAX_B_BLOCK = 128      # fills the MXU M dim (v5e 128x128; also fine on v6e/v7x)
T_CHUNK_TARGET = 64    # time-chunk size target (bounds VMEM, keeps DMA overlap)
OUT_LANES = 128        # lane-dense output width (wrapper slices [:, :1])


def _round_up(n, m):
    return ((n + m - 1) // m) * m


def _largest_divisor_leq(n, cap):
    for d in range(min(n, cap), 0, -1):
        if n % d == 0:
            return d
    return 1


def _reorder_gates_ifog(a, H):
    """Permute 4H gate columns from PyTorch order (i,f,g,o) to (i,f,o,g)."""
    return jnp.concatenate(
        [a[..., :2 * H], a[..., 3 * H:4 * H], a[..., 2 * H:3 * H]], axis=-1)


def lstm_kernel(x_ref, w0_ref, b0_ref, w1_ref, b1_ref, wfc_ref, bfc_ref,
                out_ref, xh0_s, xh1_s, c0_s, c1_s):
    ct = pl.program_id(1)                      # time-chunk index (innermost)
    n_tc = pl.num_programs(1)
    T_CHUNK = x_ref.shape[0]
    B = x_ref.shape[1]
    E = x_ref.shape[2]
    H = wfc_ref.shape[1]
    H3 = 3 * H

    # ---- init carried state at the first time chunk of each batch block ----
    @pl.when(ct == 0)
    def _():
        xh0_s[...] = jnp.zeros_like(xh0_s)     # h0(bf16) lives in lanes [E:E+H]
        xh1_s[...] = jnp.zeros_like(xh1_s)     # h1(bf16) lives in lanes [H:2H]
        c0_s[...] = jnp.zeros_like(c0_s)
        c1_s[...] = jnp.zeros_like(c1_s)

    # Hoist weight / bias reads out of the recurrence (no broadcast_to:
    # (1, 4H) rows broadcast for free in the VALU add).
    w0 = w0_ref[...]                           # (E+H, 4H) bf16
    w1 = w1_ref[...]                           # (2H,  4H) bf16
    b0 = b0_ref[...]                           # (1, 4H) f32
    b1 = b1_ref[...]                           # (1, 4H) f32

    def sig(z):                                # sigmoid via one EUP tanh
        return 0.5 * jnp.tanh(0.5 * z) + 0.5

    def step(t, carry):
        c0, c1, _ = carry
        # ---- layer 0: fused [x_t, h0] @ [W_ih; W_hh]  (one MXU pass, K=E+H)
        xh0_s[:, :E] = x_ref[t]                # x_t already bf16
        g0 = jnp.dot(xh0_s[...], w0, preferred_element_type=jnp.float32) + b0
        s0 = sig(g0[:, :H3])                   # gates (i, f, o) in one slab
        gg0 = jnp.tanh(g0[:, H3:])             # gate g
        c0 = s0[:, H:2 * H] * c0 + s0[:, :H] * gg0
        h0 = s0[:, 2 * H:H3] * jnp.tanh(c0)
        h0b = h0.astype(jnp.bfloat16)          # cast once, reuse twice
        xh0_s[:, E:] = h0b                     # layer-0 recurrence feed (t+1)
        xh1_s[:, :H] = h0b                     # layer-1 input (t)
        # ---- layer 1: fused [h0, h1] @ [W_ih; W_hh]
        g1 = jnp.dot(xh1_s[...], w1, preferred_element_type=jnp.float32) + b1
        s1 = sig(g1[:, :H3])
        gg1 = jnp.tanh(g1[:, H3:])
        c1 = s1[:, H:2 * H] * c1 + s1[:, :H] * gg1
        h1 = s1[:, 2 * H:H3] * jnp.tanh(c1)
        xh1_s[:, H:] = h1.astype(jnp.bfloat16)  # layer-1 recurrence feed (t+1)
        return (c0, c1, h1)

    init = (c0_s[...], c1_s[...], jnp.zeros((B, H), jnp.float32))
    unroll = T_CHUNK if T_CHUNK <= 8 else 2
    c0, c1, h1 = lax.fori_loop(0, T_CHUNK, step, init, unroll=unroll)
    c0_s[...] = c0
    c1_s[...] = c1

    # ---- last chunk: dropout(p=0.5) is identity (eval) -> FC (N=1) -> sigmoid
    # TODO(synk): training-mode dropout would need pltpu.prng_seed/random_bits.
    @pl.when(ct == n_tc - 1)
    def _():
        wfc = wfc_ref[...]                                   # (1, H) f32
        logit = jnp.sum(h1 * wfc, axis=-1, keepdims=True) + bfc_ref[...]
        out_ref[...] = jnp.broadcast_to(sig(logit), out_ref.shape)


def lstm_forward(tokens, params):
    emb = params["embedding"]
    B, T = tokens.shape
    E = emb.shape[1]
    H = params["wfc"].shape[1]

    # Embedding lookup + time-major layout (plain-JAX glue); bf16 halves the
    # HBM traffic of the (T, B, E) activation slab.
    # TODO(synk): move the gather in-kernel (scalar-prefetched token ids) to
    # drop this HBM round trip entirely.
    x = jnp.take(emb, tokens, axis=0).astype(jnp.bfloat16)    # (B, T, E)
    x = jnp.transpose(x, (1, 0, 2))                           # (T, B, E)

    # ---- tiling ----
    # Batch block: >=16 (bf16 sublane packing), up to 128 (fills MXU M).
    b_block = min(MAX_B_BLOCK, _round_up(B, 16))
    B_pad = _round_up(B, b_block)
    n_blk = B_pad // b_block
    # Time chunk: largest divisor of T <= target.  Bounds VMEM to
    # O(T_CHUNK*B_BLOCK*E) and restores BlockSpec double-buffering of x.
    t_chunk = _largest_divisor_leq(T, T_CHUNK_TARGET)
    n_tc = T // t_chunk

    if B_pad != B:
        x = jnp.pad(x, ((0, 0), (0, B_pad - B), (0, 0)))

    # Fuse [W_ih; W_hh] per layer, permute gate columns to (i, f, o, g) and
    # pre-cast matmul operands to bf16 (f32 accumulation in-kernel).
    w0 = _reorder_gates_ifog(
        jnp.concatenate([params["wih0"], params["whh0"]], axis=0), H
    ).astype(jnp.bfloat16)                                     # (E+H, 4H)
    w1 = _reorder_gates_ifog(
        jnp.concatenate([params["wih1"], params["whh1"]], axis=0), H
    ).astype(jnp.bfloat16)                                     # (2H, 4H)
    b0 = _reorder_gates_ifog(params["b0"], H)                  # (1, 4H) f32
    b1 = _reorder_gates_ifog(params["b1"], H)

    out = pl.pallas_call(
        lstm_kernel,
        out_shape=jax.ShapeDtypeStruct((B_pad, OUT_LANES), jnp.float32),
        grid_spec=pltpu.PrefetchScalarGridSpec(
            num_scalar_prefetch=0,
            grid=(n_blk, n_tc),             # (batch blocks, time chunks)
            in_specs=[
                pl.BlockSpec((t_chunk, b_block, E), lambda b, ct: (ct, b, 0)),
                pl.BlockSpec((E + H, 4 * H), lambda b, ct: (0, 0)),   # W layer0
                pl.BlockSpec((1, 4 * H), lambda b, ct: (0, 0)),       # b layer0
                pl.BlockSpec((2 * H, 4 * H), lambda b, ct: (0, 0)),   # W layer1
                pl.BlockSpec((1, 4 * H), lambda b, ct: (0, 0)),       # b layer1
                pl.BlockSpec((1, H), lambda b, ct: (0, 0)),           # fc weight
                pl.BlockSpec((1, 1), lambda b, ct: (0, 0)),           # fc bias
            ],
            out_specs=pl.BlockSpec((b_block, OUT_LANES), lambda b, ct: (b, 0)),
            scratch_shapes=[
                pltpu.VMEM((b_block, E + H), jnp.bfloat16),   # [x_t, h0] operand
                pltpu.VMEM((b_block, 2 * H), jnp.bfloat16),   # [h0, h1] operand
                pltpu.VMEM((b_block, H), jnp.float32),        # c0 carry
                pltpu.VMEM((b_block, H), jnp.float32),        # c1 carry
            ],
        ),
        compiler_params=pltpu.CompilerParams(
            # Batch blocks shard across TensorCores (v7x megacore); the time
            # axis is the serial recurrence carried in scratch.
            dimension_semantics=("parallel", "arbitrary"),
            # Explicit budget: > v5e's 16 MiB default scoped limit, and leaves
            # headroom on v7x's 64 MiB physical VMEM.
            vmem_limit_bytes=32 * 1024 * 1024,
        ),
    )(x, w0, b0, w1, b1, params["wfc"], params["bfc"])
    return out[:B, :1]


def ref_forward(tokens, p):
    """Pure-JAX f32 reference (mirrors nn.LSTM semantics, gate order i,f,g,o)."""
    x = jnp.take(p["embedding"], tokens, axis=0).transpose(1, 0, 2)  # (T,B,E)
    B = x.shape[1]
    H = p["wfc"].shape[1]

    def cell(x_in, h, c, wih, whh, b):
        gates = x_in @ wih + h @ whh + b
        i, f, g, o = jnp.split(gates, 4, axis=-1)
        i, f, o = jax.nn.sigmoid(i), jax.nn.sigmoid(f), jax.nn.sigmoid(o)
        g = jnp.tanh(g)
        c_new = f * c + i * g
        return o * jnp.tanh(c_new), c_new

    def step(carry, x_t):
        h0, c0, h1, c1 = carry
        h0, c0 = cell(x_t, h0, c0, p["wih0"], p["whh0"], p["b0"])
        h1, c1 = cell(h0, h1, c1, p["wih1"], p["whh1"], p["b1"])
        return (h0, c0, h1, c1), None

    init = tuple(jnp.zeros((B, H), jnp.float32) for _ in range(4))
    (h0, c0, h1, c1), _ = jax.lax.scan(step, init, x)
    return jax.nn.sigmoid(h1 @ p["wfc"].T + p["bfc"])


def init_params(key, vocab_size, embed_dim, hidden_dim):
    ks = jax.random.split(key, 10)
    k = 1.0 / jnp.sqrt(hidden_dim)

    def u(key, shape):
        return jax.random.uniform(key, shape, jnp.float32, -k, k)

    H4 = 4 * hidden_dim
    return {
        "embedding": jax.random.normal(ks[0], (vocab_size, embed_dim),
                                       jnp.float32) * 0.1,
        # layer 0 (weights stored already transposed: x @ W, columns i,f,g,o)
        "wih0": u(ks[1], (embed_dim, H4)),
        "whh0": u(ks[2], (hidden_dim, H4)),
        "b0": u(ks[3], (1, H4)) + u(ks[4], (1, H4)),   # b_ih + b_hh combined
        # layer 1
        "wih1": u(ks[5], (hidden_dim, H4)),
        "whh1": u(ks[6], (hidden_dim, H4)),
        "b1": u(ks[7], (1, H4)) + u(ks[8], (1, H4)),
        # fc (stored as a (1, H) row for the VPU lane-reduction FC)
        "wfc": u(ks[9], (1, hidden_dim)),
        "bfc": jnp.zeros((1, 1), jnp.float32),
    }


if __name__ == "__main__":
    vocab_size, embed_dim, hidden_dim = 50, 128, 128   # module default H=128
    key = jax.random.PRNGKey(0)
    k_par, k_tok1, k_tok2 = jax.random.split(key, 3)
    params = init_params(k_par, vocab_size, embed_dim, hidden_dim)

    # Small spec-sized check (B=2, T=8): one time chunk, fully unrolled loop.
    tok_small = jax.random.randint(k_tok1, (2, 8), 0, vocab_size,
                                   dtype=jnp.int32)
    out_s = jax.block_until_ready(lstm_forward(tok_small, params))
    ref_s = jax.block_until_ready(ref_forward(tok_small, params))
    assert out_s.shape == (2, 1), out_s.shape
    assert jnp.allclose(out_s, ref_s, atol=5e-3), (out_s, ref_s)

    # Longer sequence (B=4, T=128 -> two 64-step chunks): exercises the
    # cross-chunk h/c scratch carry and compounded bf16 recurrence rounding.
    tok_long = jax.random.randint(k_tok2, (4, 128), 0, vocab_size,
                                  dtype=jnp.int32)
    out_l = jax.block_until_ready(lstm_forward(tok_long, params))
    ref_l = jax.block_until_ready(ref_forward(tok_long, params))
    assert out_l.shape == (4, 1), out_l.shape
    assert jnp.allclose(out_l, ref_l, atol=1e-2), (
        out_l, ref_l, jnp.max(jnp.abs(out_l - ref_l)))

    print("KERNEL_OK")
</pallas_src>

<mosaic_0001>
module attributes {stable_mosaic.version = 11 : i64} {
  func.func @lstm_kernel(%arg0: i32, %arg1: i32, %arg2: memref<8x16x128xbf16, #tpu.memory_space<vmem>>, %arg3: memref<256x512xbf16, #tpu.memory_space<vmem>>, %arg4: memref<1x512xf32, #tpu.memory_space<vmem>>, %arg5: memref<256x512xbf16, #tpu.memory_space<vmem>>, %arg6: memref<1x512xf32, #tpu.memory_space<vmem>>, %arg7: memref<1x128xf32, #tpu.memory_space<vmem>>, %arg8: memref<1x1xf32, #tpu.memory_space<vmem>>, %arg9: memref<16x128xf32, #tpu.memory_space<vmem>>, %arg10: memref<16x256xbf16, #tpu.memory_space<vmem>>, %arg11: memref<16x256xbf16, #tpu.memory_space<vmem>>, %arg12: memref<16x128xf32, #tpu.memory_space<vmem>>, %arg13: memref<16x128xf32, #tpu.memory_space<vmem>>) attributes {dimension_semantics = [#tpu.dimension_semantics<parallel>, #tpu.dimension_semantics<arbitrary>], iteration_bounds = array<i64: 1, 1>, scalar_prefetch = 0 : i64, scratch_operands = 4 : i64, tpu.core_type = #tpu.core_type<tc>, window_params = [{transform_indices = @transform_0, window_bounds = array<i64: 8, 16, 128>}, {pipeline_mode = #tpu.pipeline_mode<synchronous>, transform_indices = @transform_1, window_bounds = array<i64: 256, 512>}, {pipeline_mode = #tpu.pipeline_mode<synchronous>, transform_indices = @transform_2, window_bounds = array<i64: 1, 512>}, {pipeline_mode = #tpu.pipeline_mode<synchronous>, transform_indices = @transform_3, window_bounds = array<i64: 256, 512>}, {pipeline_mode = #tpu.pipeline_mode<synchronous>, transform_indices = @transform_4, window_bounds = array<i64: 1, 512>}, {pipeline_mode = #tpu.pipeline_mode<synchronous>, transform_indices = @transform_5, window_bounds = array<i64: 1, 128>}, {pipeline_mode = #tpu.pipeline_mode<synchronous>, transform_indices = @transform_6, window_bounds = array<i64: 1, 1>}, {transform_indices = @transform_7, window_bounds = array<i64: 16, 128>}]} {
    %c0_i32 = arith.constant 0 : i32
    %0 = arith.cmpi eq, %arg1, %c0_i32 : i32
    %1 = arith.extui %0 : i1 to i32
    %c0_i32_0 = arith.constant 0 : i32
    %2 = arith.cmpi ne, %1, %c0_i32_0 : i32
    scf.if %2 {
      %cst_194 = arith.constant 0.000000e+00 : bf16
      %439 = vector.broadcast %cst_194 : bf16 to vector<16x256xbf16>
      %c0_195 = arith.constant 0 : index
      %c0_196 = arith.constant 0 : index
      %440 = vector.load %arg10[%c0_195, %c0_196] : memref<16x256xbf16, #tpu.memory_space<vmem>>, vector<16x256xbf16>
      tpu.vector_store %arg10[%c0_195, %c0_196], %439 {strides = array<i32>} : memref<16x256xbf16, #tpu.memory_space<vmem>>, vector<16x256xbf16>,
      %cst_197 = arith.constant 0.000000e+00 : bf16
      %441 = vector.broadcast %cst_197 : bf16 to vector<16x256xbf16>
      %c0_198 = arith.constant 0 : index
      %c0_199 = arith.constant 0 : index
      %442 = vector.load %arg11[%c0_198, %c0_199] : memref<16x256xbf16, #tpu.memory_space<vmem>>, vector<16x256xbf16>
      tpu.vector_store %arg11[%c0_198, %c0_199], %441 {strides = array<i32>} : memref<16x256xbf16, #tpu.memory_space<vmem>>, vector<16x256xbf16>,
      %cst_200 = arith.constant 0.000000e+00 : f32
      %443 = vector.broadcast %cst_200 : f32 to vector<16x128xf32>
      %c0_201 = arith.constant 0 : index
      %c0_202 = arith.constant 0 : index
      %444 = vector.load %arg12[%c0_201, %c0_202] : memref<16x128xf32, #tpu.memory_space<vmem>>, vector<16x128xf32>
      tpu.vector_store %arg12[%c0_201, %c0_202], %443 {strides = array<i32>} : memref<16x128xf32, #tpu.memory_space<vmem>>, vector<16x128xf32>,
      %cst_203 = arith.constant 0.000000e+00 : f32
      %445 = vector.broadcast %cst_203 : f32 to vector<16x128xf32>
      %c0_204 = arith.constant 0 : index
      %c0_205 = arith.constant 0 : index
      %446 = vector.load %arg13[%c0_204, %c0_205] : memref<16x128xf32, #tpu.memory_space<vmem>>, vector<16x128xf32>
      tpu.vector_store %arg13[%c0_204, %c0_205], %445 {strides = array<i32>} : memref<16x128xf32, #tpu.memory_space<vmem>>, vector<16x128xf32>,
    } else {
    }
    %c0 = arith.constant 0 : index
    %c0_1 = arith.constant 0 : index
    %3 = vector.load %arg3[%c0, %c0_1] : memref<256x512xbf16, #tpu.memory_space<vmem>>, vector<256x512xbf16>
    %c0_2 = arith.constant 0 : index
    %c0_3 = arith.constant 0 : index
    %4 = vector.load %arg5[%c0_2, %c0_3] : memref<256x512xbf16, #tpu.memory_space<vmem>>, vector<256x512xbf16>
    %c0_4 = arith.constant 0 : index
    %c0_5 = arith.constant 0 : index
    %5 = vector.load %arg4[%c0_4, %c0_5] : memref<1x512xf32, #tpu.memory_space<vmem>>, vector<1x512xf32>
    %c0_6 = arith.constant 0 : index
    %c0_7 = arith.constant 0 : index
    %6 = vector.load %arg6[%c0_6, %c0_7] : memref<1x512xf32, #tpu.memory_space<vmem>>, vector<1x512xf32>
    %c0_8 = arith.constant 0 : index
    %c0_9 = arith.constant 0 : index
    %7 = vector.load %arg12[%c0_8, %c0_9] : memref<16x128xf32, #tpu.memory_space<vmem>>, vector<16x128xf32>
    %c0_10 = arith.constant 0 : index
    %c0_11 = arith.constant 0 : index
    %8 = vector.load %arg13[%c0_10, %c0_11] : memref<16x128xf32, #tpu.memory_space<vmem>>, vector<16x128xf32>
    %cst = arith.constant 0.000000e+00 : f32
    %9 = vector.broadcast %cst : f32 to vector<16x128xf32>
    %c0_i32_12 = arith.constant 0 : i32
    %10 = arith.index_cast %c0_i32_12 : i32 to index
    %c0_13 = arith.constant 0 : index
    %c0_14 = arith.constant 0 : index
    %11 = vector.load %arg2[%10, %c0_13, %c0_14] : memref<8x16x128xbf16, #tpu.memory_space<vmem>>, vector<1x16x128xbf16>
    %12 = vector.shape_cast %11 : vector<1x16x128xbf16> to vector<16x128xbf16>
    %c0_15 = arith.constant 0 : index
    %c0_16 = arith.constant 0 : index
    %13 = vector.load %arg10[%c0_15, %c0_16] : memref<16x256xbf16, #tpu.memory_space<vmem>>, vector<16x128xbf16>
    tpu.vector_store %arg10[%c0_15, %c0_16], %12 {strides = array<i32>} : memref<16x256xbf16, #tpu.memory_space<vmem>>, vector<16x128xbf16>,
    %c0_17 = arith.constant 0 : index
    %c0_18 = arith.constant 0 : index
    %14 = vector.load %arg10[%c0_17, %c0_18] : memref<16x256xbf16, #tpu.memory_space<vmem>>, vector<16x256xbf16>
    %cst_19 = arith.constant dense<0.000000e+00> : vector<16x512xf32>
    %15 = tpu.matmul %14, %3, %cst_19 {dimension_numbers = #tpu.dot_dimension_numbers<[1], [0], [0], [1], [0, 0, 1, 1], [], []>} : vector<16x256xbf16>, vector<256x512xbf16>, vector<16x512xf32> -> vector<16x512xf32>
    %16 = vector.broadcast %5 : vector<1x512xf32> to vector<16x512xf32>
    %17 = arith.addf %15, %16 : vector<16x512xf32>
    %18 = vector.extract_strided_slice %17 {offsets = [0, 0], sizes = [16, 384], strides = [1, 1]} : vector<16x512xf32> to vector<16x384xf32>
    %cst_20 = arith.constant 5.000000e-01 : f32
    %19 = vector.broadcast %cst_20 : f32 to vector<16x384xf32>
    %20 = arith.mulf %19, %18 : vector<16x384xf32>
    %21 = math.tanh %20 : vector<16x384xf32>
    %cst_21 = arith.constant 5.000000e-01 : f32
    %22 = vector.broadcast %cst_21 : f32 to vector<16x384xf32>
    %23 = arith.mulf %22, %21 : vector<16x384xf32>
    %cst_22 = arith.constant 5.000000e-01 : f32
    %24 = vector.broadcast %cst_22 : f32 to vector<16x384xf32>
    %25 = arith.addf %23, %24 : vector<16x384xf32>
    %26 = vector.extract_strided_slice %17 {offsets = [0, 384], sizes = [16, 128], strides = [1, 1]} : vector<16x512xf32> to vector<16x128xf32>
    %27 = math.tanh %26 : vector<16x128xf32>
    %28 = vector.extract_strided_slice %25 {offsets = [0, 128], sizes = [16, 128], strides = [1, 1]} : vector<16x384xf32> to vector<16x128xf32>
    %29 = arith.mulf %28, %7 : vector<16x128xf32>
    %30 = vector.extract_strided_slice %25 {offsets = [0, 0], sizes = [16, 128], strides = [1, 1]} : vector<16x384xf32> to vector<16x128xf32>
    %31 = arith.mulf %30, %27 : vector<16x128xf32>
    %32 = arith.addf %29, %31 : vector<16x128xf32>
    %33 = vector.extract_strided_slice %25 {offsets = [0, 256], sizes = [16, 128], strides = [1, 1]} : vector<16x384xf32> to vector<16x128xf32>
    %34 = math.tanh %32 : vector<16x128xf32>
    %35 = arith.mulf %33, %34 : vector<16x128xf32>
    %36 = arith.truncf %35 : vector<16x128xf32> to vector<16x128xbf16>
    %c0_23 = arith.constant 0 : index
    %c128 = arith.constant 128 : index
    %37 = vector.load %arg10[%c0_23, %c128] : memref<16x256xbf16, #tpu.memory_space<vmem>>, vector<16x128xbf16>
    tpu.vector_store %arg10[%c0_23, %c128], %36 {strides = array<i32>} : memref<16x256xbf16, #tpu.memory_space<vmem>>, vector<16x128xbf16>,
    %c0_24 = arith.constant 0 : index
    %c0_25 = arith.constant 0 : index
    %38 = vector.load %arg11[%c0_24, %c0_25] : memref<16x256xbf16, #tpu.memory_space<vmem>>, vector<16x128xbf16>
    tpu.vector_store %arg11[%c0_24, %c0_25], %36 {strides = array<i32>} : memref<16x256xbf16, #tpu.memory_space<vmem>>, vector<16x128xbf16>,
    %c0_26 = arith.constant 0 : index
    %c0_27 = arith.constant 0 : index
    %39 = vector.load %arg11[%c0_26, %c0_27] : memref<16x256xbf16, #tpu.memory_space<vmem>>, vector<16x256xbf16>
    %cst_28 = arith.constant dense<0.000000e+00> : vector<16x512xf32>
    %40 = tpu.matmul %39, %4, %cst_28 {dimension_numbers = #tpu.dot_dimension_numbers<[1], [0], [0], [1], [0, 0, 1, 1], [], []>} : vector<16x256xbf16>, vector<256x512xbf16>, vector<16x512xf32> -> vector<16x512xf32>
    %41 = vector.broadcast %6 : vector<1x512xf32> to vector<16x512xf32>
    %42 = arith.addf %40, %41 : vector<16x512xf32>
    %43 = vector.extract_strided_slice %42 {offsets = [0, 0], sizes = [16, 384], strides = [1, 1]} : vector<16x512xf32> to vector<16x384xf32>
    %cst_29 = arith.constant 5.000000e-01 : f32
    %44 = vector.broadcast %cst_29 : f32 to vector<16x384xf32>
    %45 = arith.mulf %44, %43 : vector<16x384xf32>
    %46 = math.tanh %45 : vector<16x384xf32>
    %cst_30 = arith.constant 5.000000e-01 : f32
    %47 = vector.broadcast %cst_30 : f32 to vector<16x384xf32>
    %48 = arith.mulf %47, %46 : vector<16x384xf32>
    %cst_31 = arith.constant 5.000000e-01 : f32
    %49 = vector.broadcast %cst_31 : f32 to vector<16x384xf32>
    %50 = arith.addf %48, %49 : vector<16x384xf32>
    %51 = vector.extract_strided_slice %42 {offsets = [0, 384], sizes = [16, 128], strides = [1, 1]} : vector<16x512xf32> to vector<16x128xf32>
    %52 = math.tanh %51 : vector<16x128xf32>
    %53 = vector.extract_strided_slice %50 {offsets = [0, 128], sizes = [16, 128], strides = [1, 1]} : vector<16x384xf32> to vector<16x128xf32>
    %54 = arith.mulf %53, %8 : vector<16x128xf32>
    %55 = vector.extract_strided_slice %50 {offsets = [0, 0], sizes = [16, 128], strides = [1, 1]} : vector<16x384xf32> to vector<16x128xf32>
    %56 = arith.mulf %55, %52 : vector<16x128xf32>
    %57 = arith.addf %54, %56 : vector<16x128xf32>
    %58 = vector.extract_strided_slice %50 {offsets = [0, 256], sizes = [16, 128], strides = [1, 1]} : vector<16x384xf32> to vector<16x128xf32>
    %59 = math.tanh %57 : vector<16x128xf32>
    %60 = arith.mulf %58, %59 : vector<16x128xf32>
    %61 = arith.truncf %60 : vector<16x128xf32> to vector<16x128xbf16>
    %c0_32 = arith.constant 0 : index
    %c128_33 = arith.constant 128 : index
    %62 = vector.load %arg11[%c0_32, %c128_33] : memref<16x256xbf16, #tpu.memory_space<vmem>>, vector<16x128xbf16>
    tpu.vector_store %arg11[%c0_32, %c128_33], %61 {strides = array<i32>} : memref<16x256xbf16, #tpu.memory_space<vmem>>, vector<16x128xbf16>,
    %c1_i32 = arith.constant 1 : i32
    %63 = arith.index_cast %c1_i32 : i32 to index
    %c0_34 = arith.constant 0 : index
    %c0_35 = arith.constant 0 : index
    %64 = vector.load %arg2[%63, %c0_34, %c0_35] : memref<8x16x128xbf16, #tpu.memory_space<vmem>>, vector<1x16x128xbf16>
    %65 = vector.shape_cast %64 : vector<1x16x128xbf16> to vector<16x128xbf16>
    %c0_36 = arith.constant 0 : index
    %c0_37 = arith.constant 0 : index
    %66 = vector.load %arg10[%c0_36, %c0_37] : memref<16x256xbf16, #tpu.memory_space<vmem>>, vector<16x128xbf16>
    tpu.vector_store %arg10[%c0_36, %c0_37], %65 {strides = array<i32>} : memref<16x256xbf16, #tpu.memory_space<vmem>>, vector<16x128xbf16>,
    %c0_38 = arith.constant 0 : index
    %c0_39 = arith.constant 0 : index
    %67 = vector.load %arg10[%c0_38, %c0_39] : memref<16x256xbf16, #tpu.memory_space<vmem>>, vector<16x256xbf16>
    %cst_40 = arith.constant dense<0.000000e+00> : vector<16x512xf32>
    %68 = tpu.matmul %67, %3, %cst_40 {dimension_numbers = #tpu.dot_dimension_numbers<[1], [0], [0], [1], [0, 0, 1, 1], [], []>} : vector<16x256xbf16>, vector<256x512xbf16>, vector<16x512xf32> -> vector<16x512xf32>
    %69 = vector.broadcast %5 : vector<1x512xf32> to vector<16x512xf32>
    %70 = arith.addf %68, %69 : vector<16x512xf32>
    %71 = vector.extract_strided_slice %70 {offsets = [0, 0], sizes = [16, 384], strides = [1, 1]} : vector<16x512xf32> to vector<16x384xf32>
    %cst_41 = arith.constant 5.000000e-01 : f32
    %72 = vector.broadcast %cst_41 : f32 to vector<16x384xf32>
    %73 = arith.mulf %72, %71 : vector<16x384xf32>
    %74 = math.tanh %73 : vector<16x384xf32>
    %cst_42 = arith.constant 5.000000e-01 : f32
    %75 = vector.broadcast %cst_42 : f32 to vector<16x384xf32>
    %76 = arith.mulf %75, %74 : vector<16x384xf32>
    %cst_43 = arith.constant 5.000000e-01 : f32
    %77 = vector.broadcast %cst_43 : f32 to vector<16x384xf32>
    %78 = arith.addf %76, %77 : vector<16x384xf32>
    %79 = vector.extract_strided_slice %70 {offsets = [0, 384], sizes = [16, 128], strides = [1, 1]} : vector<16x512xf32> to vector<16x128xf32>
    %80 = math.tanh %79 : vector<16x128xf32>
    %81 = vector.extract_strided_slice %78 {offsets = [0, 128], sizes = [16, 128], strides = [1, 1]} : vector<16x384xf32> to vector<16x128xf32>
    %82 = arith.mulf %81, %32 : vector<16x128xf32>
    %83 = vector.extract_strided_slice %78 {offsets = [0, 0], sizes = [16, 128], strides = [1, 1]} : vector<16x384xf32> to vector<16x128xf32>
    %84 = arith.mulf %83, %80 : vector<16x128xf32>
    %85 = arith.addf %82, %84 : vector<16x128xf32>
    %86 = vector.extract_strided_slice %78 {offsets = [0, 256], sizes = [16, 128], strides = [1, 1]} : vector<16x384xf32> to vector<16x128xf32>
    %87 = math.tanh %85 : vector<16x128xf32>
    %88 = arith.mulf %86, %87 : vector<16x128xf32>
    %89 = arith.truncf %88 : vector<16x128xf32> to vector<16x128xbf16>
    %c0_44 = arith.constant 0 : index
    %c128_45 = arith.constant 128 : index
    %90 = vector.load %arg10[%c0_44, %c128_45] : memref<16x256xbf16, #tpu.memory_space<vmem>>, vector<16x128xbf16>
    tpu.vector_store %arg10[%c0_44, %c128_45], %89 {strides = array<i32>} : memref<16x256xbf16, #tpu.memory_space<vmem>>, vector<16x128xbf16>,
    %c0_46 = arith.constant 0 : index
    %c0_47 = arith.constant 0 : index
    %91 = vector.load %arg11[%c0_46, %c0_47] : memref<16x256xbf16, #tpu.memory_space<vmem>>, vector<16x128xbf16>
    tpu.vector_store %arg11[%c0_46, %c0_47], %89 {strides = array<i32>} : memref<16x256xbf16, #tpu.memory_space<vmem>>, vector<16x128xbf16>,
    %c0_48 = arith.constant 0 : index
    %c0_49 = arith.constant 0 : index
    %92 = vector.load %arg11[%c0_48, %c0_49] : memref<16x256xbf16, #tpu.memory_space<vmem>>, vector<16x256xbf16>
    %cst_50 = arith.constant dense<0.000000e+00> : vector<16x512xf32>
    %93 = tpu.matmul %92, %4, %cst_50 {dimension_numbers = #tpu.dot_dimension_numbers<[1], [0], [0], [1], [0, 0, 1, 1], [], []>} : vector<16x256xbf16>, vector<256x512xbf16>, vector<16x512xf32> -> vector<16x512xf32>
    %94 = vector.broadcast %6 : vector<1x512xf32> to vector<16x512xf32>
    %95 = arith.addf %93, %94 : vector<16x512xf32>
    %96 = vector.extract_strided_slice %95 {offsets = [0, 0], sizes = [16, 384], strides = [1, 1]} : vector<16x512xf32> to vector<16x384xf32>
    %cst_51 = arith.constant 5.000000e-01 : f32
    %97 = vector.broadcast %cst_51 : f32 to vector<16x384xf32>
    %98 = arith.mulf %97, %96 : vector<16x384xf32>
    %99 = math.tanh %98 : vector<16x384xf32>
    %cst_52 = arith.constant 5.000000e-01 : f32
    %100 = vector.broadcast %cst_52 : f32 to vector<16x384xf32>
    %101 = arith.mulf %100, %99 : vector<16x384xf32>
    %cst_53 = arith.constant 5.000000e-01 : f32
    %102 = vector.broadcast %cst_53 : f32 to vector<16x384xf32>
    %103 = arith.addf %101, %102 : vector<16x384xf32>
    %104 = vector.extract_strided_slice %95 {offsets = [0, 384], sizes = [16, 128], strides = [1, 1]} : vector<16x512xf32> to vector<16x128xf32>
    %105 = math.tanh %104 : vector<16x128xf32>
    %106 = vector.extract_strided_slice %103 {offsets = [0, 128], sizes = [16, 128], strides = [1, 1]} : vector<16x384xf32> to vector<16x128xf32>
    %107 = arith.mulf %106, %57 : vector<16x128xf32>
    %108 = vector.extract_strided_slice %103 {offsets = [0, 0], sizes = [16, 128], strides = [1, 1]} : vector<16x384xf32> to vector<16x128xf32>
    %109 = arith.mulf %108, %105 : vector<16x128xf32>
    %110 = arith.addf %107, %109 : vector<16x128xf32>
    %111 = vector.extract_strided_slice %103 {offsets = [0, 256], sizes = [16, 128], strides = [1, 1]} : vector<16x384xf32> to vector<16x128xf32>
    %112 = math.tanh %110 : vector<16x128xf32>
    %113 = arith.mulf %111, %112 : vector<16x128xf32>
    %114 = arith.truncf %113 : vector<16x128xf32> to vector<16x128xbf16>
    %c0_54 = arith.constant 0 : index
    %c128_55 = arith.constant 128 : index
    %115 = vector.load %arg11[%c0_54, %c128_55] : memref<16x256xbf16, #tpu.memory_space<vmem>>, vector<16x128xbf16>
    tpu.vector_store %arg11[%c0_54, %c128_55], %114 {strides = array<i32>} : memref<16x256xbf16, #tpu.memory_space<vmem>>, vector<16x128xbf16>,
    %c2_i32 = arith.constant 2 : i32
    %116 = arith.index_cast %c2_i32 : i32 to index
    %c0_56 = arith.constant 0 : index
    %c0_57 = arith.constant 0 : index
    %117 = vector.load %arg2[%116, %c0_56, %c0_57] : memref<8x16x128xbf16, #tpu.memory_space<vmem>>, vector<1x16x128xbf16>
    %118 = vector.shape_cast %117 : vector<1x16x128xbf16> to vector<16x128xbf16>
    %c0_58 = arith.constant 0 : index
    %c0_59 = arith.constant 0 : index
    %119 = vector.load %arg10[%c0_58, %c0_59] : memref<16x256xbf16, #tpu.memory_space<vmem>>, vector<16x128xbf16>
    tpu.vector_store %arg10[%c0_58, %c0_59], %118 {strides = array<i32>} : memref<16x256xbf16, #tpu.memory_space<vmem>>, vector<16x128xbf16>,
    %c0_60 = arith.constant 0 : index
    %c0_61 = arith.constant 0 : index
    %120 = vector.load %arg10[%c0_60, %c0_61] : memref<16x256xbf16, #tpu.memory_space<vmem>>, vector<16x256xbf16>
    %cst_62 = arith.constant dense<0.000000e+00> : vector<16x512xf32>
    %121 = tpu.matmul %120, %3, %cst_62 {dimension_numbers = #tpu.dot_dimension_numbers<[1], [0], [0], [1], [0, 0, 1, 1], [], []>} : vector<16x256xbf16>, vector<256x512xbf16>, vector<16x512xf32> -> vector<16x512xf32>
    %122 = vector.broadcast %5 : vector<1x512xf32> to vector<16x512xf32>
    %123 = arith.addf %121, %122 : vector<16x512xf32>
    %124 = vector.extract_strided_slice %123 {offsets = [0, 0], sizes = [16, 384], strides = [1, 1]} : vector<16x512xf32> to vector<16x384xf32>
    %cst_63 = arith.constant 5.000000e-01 : f32
    %125 = vector.broadcast %cst_63 : f32 to vector<16x384xf32>
    %126 = arith.mulf %125, %124 : vector<16x384xf32>
    %127 = math.tanh %126 : vector<16x384xf32>
    %cst_64 = arith.constant 5.000000e-01 : f32
    %128 = vector.broadcast %cst_64 : f32 to vector<16x384xf32>
    %129 = arith.mulf %128, %127 : vector<16x384xf32>
    %cst_65 = arith.constant 5.000000e-01 : f32
    %130 = vector.broadcast %cst_65 : f32 to vector<16x384xf32>
    %131 = arith.addf %129, %130 : vector<16x384xf32>
    %132 = vector.extract_strided_slice %123 {offsets = [0, 384], sizes = [16, 128], strides = [1, 1]} : vector<16x512xf32> to vector<16x128xf32>
    %133 = math.tanh %132 : vector<16x128xf32>
    %134 = vector.extract_strided_slice %131 {offsets = [0, 128], sizes = [16, 128], strides = [1, 1]} : vector<16x384xf32> to vector<16x128xf32>
    %135 = arith.mulf %134, %85 : vector<16x128xf32>
    %136 = vector.extract_strided_slice %131 {offsets = [0, 0], sizes = [16, 128], strides = [1, 1]} : vector<16x384xf32> to vector<16x128xf32>
    %137 = arith.mulf %136, %133 : vector<16x128xf32>
    %138 = arith.addf %135, %137 : vector<16x128xf32>
    %139 = vector.extract_strided_slice %131 {offsets = [0, 256], sizes = [16, 128], strides = [1, 1]} : vector<16x384xf32> to vector<16x128xf32>
    %140 = math.tanh %138 : vector<16x128xf32>
    %141 = arith.mulf %139, %140 : vector<16x128xf32>
    %142 = arith.truncf %141 : vector<16x128xf32> to vector<16x128xbf16>
    %c0_66 = arith.constant 0 : index
    %c128_67 = arith.constant 128 : index
    %143 = vector.load %arg10[%c0_66, %c128_67] : memref<16x256xbf16, #tpu.memory_space<vmem>>, vector<16x128xbf16>
    tpu.vector_store %arg10[%c0_66, %c128_67], %142 {strides = array<i32>} : memref<16x256xbf16, #tpu.memory_space<vmem>>, vector<16x128xbf16>,
    %c0_68 = arith.constant 0 : index
    %c0_69 = arith.constant 0 : index
    %144 = vector.load %arg11[%c0_68, %c0_69] : memref<16x256xbf16, #tpu.memory_space<vmem>>, vector<16x128xbf16>
    tpu.vector_store %arg11[%c0_68, %c0_69], %142 {strides = array<i32>} : memref<16x256xbf16, #tpu.memory_space<vmem>>, vector<16x128xbf16>,
    %c0_70 = arith.constant 0 : index
    %c0_71 = arith.constant 0 : index
    %145 = vector.load %arg11[%c0_70, %c0_71] : memref<16x256xbf16, #tpu.memory_space<vmem>>, vector<16x256xbf16>
    %cst_72 = arith.constant dense<0.000000e+00> : vector<16x512xf32>
    %146 = tpu.matmul %145, %4, %cst_72 {dimension_numbers = #tpu.dot_dimension_numbers<[1], [0], [0], [1], [0, 0, 1, 1], [], []>} : vector<16x256xbf16>, vector<256x512xbf16>, vector<16x512xf32> -> vector<16x512xf32>
    %147 = vector.broadcast %6 : vector<1x512xf32> to vector<16x512xf32>
    %148 = arith.addf %146, %147 : vector<16x512xf32>
    %149 = vector.extract_strided_slice %148 {offsets = [0, 0], sizes = [16, 384], strides = [1, 1]} : vector<16x512xf32> to vector<16x384xf32>
    %cst_73 = arith.constant 5.000000e-01 : f32
    %150 = vector.broadcast %cst_73 : f32 to vector<16x384xf32>
    %151 = arith.mulf %150, %149 : vector<16x384xf32>
    %152 = math.tanh %151 : vector<16x384xf32>
    %cst_74 = arith.constant 5.000000e-01 : f32
    %153 = vector.broadcast %cst_74 : f32 to vector<16x384xf32>
    %154 = arith.mulf %153, %152 : vector<16x384xf32>
    %cst_75 = arith.constant 5.000000e-01 : f32
    %155 = vector.broadcast %cst_75 : f32 to vector<16x384xf32>
    %156 = arith.addf %154, %155 : vector<16x384xf32>
    %157 = vector.extract_strided_slice %148 {offsets = [0, 384], sizes = [16, 128], strides = [1, 1]} : vector<16x512xf32> to vector<16x128xf32>
    %158 = math.tanh %157 : vector<16x128xf32>
    %159 = vector.extract_strided_slice %156 {offsets = [0, 128], sizes = [16, 128], strides = [1, 1]} : vector<16x384xf32> to vector<16x128xf32>
    %160 = arith.mulf %159, %110 : vector<16x128xf32>
    %161 = vector.extract_strided_slice %156 {offsets = [0, 0], sizes = [16, 128], strides = [1, 1]} : vector<16x384xf32> to vector<16x128xf32>
    %162 = arith.mulf %161, %158 : vector<16x128xf32>
    %163 = arith.addf %160, %162 : vector<16x128xf32>
    %164 = vector.extract_strided_slice %156 {offsets = [0, 256], sizes = [16, 128], strides = [1, 1]} : vector<16x384xf32> to vector<16x128xf32>
    %165 = math.tanh %163 : vector<16x128xf32>
    %166 = arith.mulf %164, %165 : vector<16x128xf32>
    %167 = arith.truncf %166 : vector<16x128xf32> to vector<16x128xbf16>
    %c0_76 = arith.constant 0 : index
    %c128_77 = arith.constant 128 : index
    %168 = vector.load %arg11[%c0_76, %c128_77] : memref<16x256xbf16, #tpu.memory_space<vmem>>, vector<16x128xbf16>
    tpu.vector_store %arg11[%c0_76, %c128_77], %167 {strides = array<i32>} : memref<16x256xbf16, #tpu.memory_space<vmem>>, vector<16x128xbf16>,
    %c3_i32 = arith.constant 3 : i32
    %169 = arith.index_cast %c3_i32 : i32 to index
    %c0_78 = arith.constant 0 : index
    %c0_79 = arith.constant 0 : index
    %170 = vector.load %arg2[%169, %c0_78, %c0_79] : memref<8x16x128xbf16, #tpu.memory_space<vmem>>, vector<1x16x128xbf16>
    %171 = vector.shape_cast %170 : vector<1x16x128xbf16> to vector<16x128xbf16>
    %c0_80 = arith.constant 0 : index
    %c0_81 = arith.constant 0 : index
    %172 = vector.load %arg10[%c0_80, %c0_81] : memref<16x256xbf16, #tpu.memory_space<vmem>>, vector<16x128xbf16>
    tpu.vector_store %arg10[%c0_80, %c0_81], %171 {strides = array<i32>} : memref<16x256xbf16, #tpu.memory_space<vmem>>, vector<16x128xbf16>,
    %c0_82 = arith.constant 0 : index
    %c0_83 = arith.constant 0 : index
    %173 = vector.load %arg10[%c0_82, %c0_83] : memref<16x256xbf16, #tpu.memory_space<vmem>>, vector<16x256xbf16>
    %cst_84 = arith.constant dense<0.000000e+00> : vector<16x512xf32>
    %174 = tpu.matmul %173, %3, %cst_84 {dimension_numbers = #tpu.dot_dimension_numbers<[1], [0], [0], [1], [0, 0, 1, 1], [], []>} : vector<16x256xbf16>, vector<256x512xbf16>, vector<16x512xf32> -> vector<16x512xf32>
    %175 = vector.broadcast %5 : vector<1x512xf32> to vector<16x512xf32>
    %176 = arith.addf %174, %175 : vector<16x512xf32>
    %177 = vector.extract_strided_slice %176 {offsets = [0, 0], sizes = [16, 384], strides = [1, 1]} : vector<16x512xf32> to vector<16x384xf32>
    %cst_85 = arith.constant 5.000000e-01 : f32
    %178 = vector.broadcast %cst_85 : f32 to vector<16x384xf32>
    %179 = arith.mulf %178, %177 : vector<16x384xf32>
    %180 = math.tanh %179 : vector<16x384xf32>
    %cst_86 = arith.constant 5.000000e-01 : f32
    %181 = vector.broadcast %cst_86 : f32 to vector<16x384xf32>
    %182 = arith.mulf %181, %180 : vector<16x384xf32>
    %cst_87 = arith.constant 5.000000e-01 : f32
    %183 = vector.broadcast %cst_87 : f32 to vector<16x384xf32>
    %184 = arith.addf %182, %183 : vector<16x384xf32>
    %185 = vector.extract_strided_slice %176 {offsets = [0, 384], sizes = [16, 128], strides = [1, 1]} : vector<16x512xf32> to vector<16x128xf32>
    %186 = math.tanh %185 : vector<16x128xf32>
    %187 = vector.extract_strided_slice %184 {offsets = [0, 128], sizes = [16, 128], strides = [1, 1]} : vector<16x384xf32> to vector<16x128xf32>
    %188 = arith.mulf %187, %138 : vector<16x128xf32>
    %189 = vector.extract_strided_slice %184 {offsets = [0, 0], sizes = [16, 128], strides = [1, 1]} : vector<16x384xf32> to vector<16x128xf32>
    %190 = arith.mulf %189, %186 : vector<16x128xf32>
    %191 = arith.addf %188, %190 : vector<16x128xf32>
    %192 = vector.extract_strided_slice %184 {offsets = [0, 256], sizes = [16, 128], strides = [1, 1]} : vector<16x384xf32> to vector<16x128xf32>
    %193 = math.tanh %191 : vector<16x128xf32>
    %194 = arith.mulf %192, %193 : vector<16x128xf32>
    %195 = arith.truncf %194 : vector<16x128xf32> to vector<16x128xbf16>
    %c0_88 = arith.constant 0 : index
    %c128_89 = arith.constant 128 : index
    %196 = vector.load %arg10[%c0_88, %c128_89] : memref<16x256xbf16, #tpu.memory_space<vmem>>, vector<16x128xbf16>
    tpu.vector_store %arg10[%c0_88, %c128_89], %195 {strides = array<i32>} : memref<16x256xbf16, #tpu.memory_space<vmem>>, vector<16x128xbf16>,
    %c0_90 = arith.constant 0 : index
    %c0_91 = arith.constant 0 : index
    %197 = vector.load %arg11[%c0_90, %c0_91] : memref<16x256xbf16, #tpu.memory_space<vmem>>, vector<16x128xbf16>
    tpu.vector_store %arg11[%c0_90, %c0_91], %195 {strides = array<i32>} : memref<16x256xbf16, #tpu.memory_space<vmem>>, vector<16x128xbf16>,
    %c0_92 = arith.constant 0 : index
    %c0_93 = arith.constant 0 : index
    %198 = vector.load %arg11[%c0_92, %c0_93] : memref<16x256xbf16, #tpu.memory_space<vmem>>, vector<16x256xbf16>
    %cst_94 = arith.constant dense<0.000000e+00> : vector<16x512xf32>
    %199 = tpu.matmul %198, %4, %cst_94 {dimension_numbers = #tpu.dot_dimension_numbers<[1], [0], [0], [1], [0, 0, 1, 1], [], []>} : vector<16x256xbf16>, vector<256x512xbf16>, vector<16x512xf32> -> vector<16x512xf32>
    %200 = vector.broadcast %6 : vector<1x512xf32> to vector<16x512xf32>
    %201 = arith.addf %199, %200 : vector<16x512xf32>
    %202 = vector.extract_strided_slice %201 {offsets = [0, 0], sizes = [16, 384], strides = [1, 1]} : vector<16x512xf32> to vector<16x384xf32>
    %cst_95 = arith.constant 5.000000e-01 : f32
    %203 = vector.broadcast %cst_95 : f32 to vector<16x384xf32>
    %204 = arith.mulf %203, %202 : vector<16x384xf32>
    %205 = math.tanh %204 : vector<16x384xf32>
    %cst_96 = arith.constant 5.000000e-01 : f32
    %206 = vector.broadcast %cst_96 : f32 to vector<16x384xf32>
    %207 = arith.mulf %206, %205 : vector<16x384xf32>
    %cst_97 = arith.constant 5.000000e-01 : f32
    %208 = vector.broadcast %cst_97 : f32 to vector<16x384xf32>
    %209 = arith.addf %207, %208 : vector<16x384xf32>
    %210 = vector.extract_strided_slice %201 {offsets = [0, 384], sizes = [16, 128], strides = [1, 1]} : vector<16x512xf32> to vector<16x128xf32>
    %211 = math.tanh %210 : vector<16x128xf32>
    %212 = vector.extract_strided_slice %209 {offsets = [0, 128], sizes = [16, 128], strides = [1, 1]} : vector<16x384xf32> to vector<16x128xf32>
    %213 = arith.mulf %212, %163 : vector<16x128xf32>
    %214 = vector.extract_strided_slice %209 {offsets = [0, 0], sizes = [16, 128], strides = [1, 1]} : vector<16x384xf32> to vector<16x128xf32>
    %215 = arith.mulf %214, %211 : vector<16x128xf32>
    %216 = arith.addf %213, %215 : vector<16x128xf32>
    %217 = vector.extract_strided_slice %209 {offsets = [0, 256], sizes = [16, 128], strides = [1, 1]} : vector<16x384xf32> to vector<16x128xf32>
    %218 = math.tanh %216 : vector<16x128xf32>
    %219 = arith.mulf %217, %218 : vector<16x128xf32>
    %220 = arith.truncf %219 : vector<16x128xf32> to vector<16x128xbf16>
    %c0_98 = arith.constant 0 : index
    %c128_99 = arith.constant 128 : index
    %221 = vector.load %arg11[%c0_98, %c128_99] : memref<16x256xbf16, #tpu.memory_space<vmem>>, vector<16x128xbf16>
    tpu.vector_store %arg11[%c0_98, %c128_99], %220 {strides = array<i32>} : memref<16x256xbf16, #tpu.memory_space<vmem>>, vector<16x128xbf16>,
    %c4_i32 = arith.constant 4 : i32
    %222 = arith.index_cast %c4_i32 : i32 to index
    %c0_100 = arith.constant 0 : index
    %c0_101 = arith.constant 0 : index
    %223 = vector.load %arg2[%222, %c0_100, %c0_101] : memref<8x16x128xbf16, #tpu.memory_space<vmem>>, vector<1x16x128xbf16>
    %224 = vector.shape_cast %223 : vector<1x16x128xbf16> to vector<16x128xbf16>
    %c0_102 = arith.constant 0 : index
    %c0_103 = arith.constant 0 : index
    %225 = vector.load %arg10[%c0_102, %c0_103] : memref<16x256xbf16, #tpu.memory_space<vmem>>, vector<16x128xbf16>
    tpu.vector_store %arg10[%c0_102, %c0_103], %224 {strides = array<i32>} : memref<16x256xbf16, #tpu.memory_space<vmem>>, vector<16x128xbf16>,
    %c0_104 = arith.constant 0 : index
    %c0_105 = arith.constant 0 : index
    %226 = vector.load %arg10[%c0_104, %c0_105] : memref<16x256xbf16, #tpu.memory_space<vmem>>, vector<16x256xbf16>
    %cst_106 = arith.constant dense<0.000000e+00> : vector<16x512xf32>
    %227 = tpu.matmul %226, %3, %cst_106 {dimension_numbers = #tpu.dot_dimension_numbers<[1], [0], [0], [1], [0, 0, 1, 1], [], []>} : vector<16x256xbf16>, vector<256x512xbf16>, vector<16x512xf32> -> vector<16x512xf32>
    %228 = vector.broadcast %5 : vector<1x512xf32> to vector<16x512xf32>
    %229 = arith.addf %227, %228 : vector<16x512xf32>
    %230 = vector.extract_strided_slice %229 {offsets = [0, 0], sizes = [16, 384], strides = [1, 1]} : vector<16x512xf32> to vector<16x384xf32>
    %cst_107 = arith.constant 5.000000e-01 : f32
    %231 = vector.broadcast %cst_107 : f32 to vector<16x384xf32>
    %232 = arith.mulf %231, %230 : vector<16x384xf32>
    %233 = math.tanh %232 : vector<16x384xf32>
    %cst_108 = arith.constant 5.000000e-01 : f32
    %234 = vector.broadcast %cst_108 : f32 to vector<16x384xf32>
    %235 = arith.mulf %234, %233 : vector<16x384xf32>
    %cst_109 = arith.constant 5.000000e-01 : f32
    %236 = vector.broadcast %cst_109 : f32 to vector<16x384xf32>
    %237 = arith.addf %235, %236 : vector<16x384xf32>
    %238 = vector.extract_strided_slice %229 {offsets = [0, 384], sizes = [16, 128], strides = [1, 1]} : vector<16x512xf32> to vector<16x128xf32>
    %239 = math.tanh %238 : vector<16x128xf32>
    %240 = vector.extract_strided_slice %237 {offsets = [0, 128], sizes = [16, 128], strides = [1, 1]} : vector<16x384xf32> to vector<16x128xf32>
    %241 = arith.mulf %240, %191 : vector<16x128xf32>
    %242 = vector.extract_strided_slice %237 {offsets = [0, 0], sizes = [16, 128], strides = [1, 1]} : vector<16x384xf32> to vector<16x128xf32>
    %243 = arith.mulf %242, %239 : vector<16x128xf32>
    %244 = arith.addf %241, %243 : vector<16x128xf32>
    %245 = vector.extract_strided_slice %237 {offsets = [0, 256], sizes = [16, 128], strides = [1, 1]} : vector<16x384xf32> to vector<16x128xf32>
    %246 = math.tanh %244 : vector<16x128xf32>
    %247 = arith.mulf %245, %246 : vector<16x128xf32>
    %248 = arith.truncf %247 : vector<16x128xf32> to vector<16x128xbf16>
    %c0_110 = arith.constant 0 : index
    %c128_111 = arith.constant 128 : index
    %249 = vector.load %arg10[%c0_110, %c128_111] : memref<16x256xbf16, #tpu.memory_space<vmem>>, vector<16x128xbf16>
    tpu.vector_store %arg10[%c0_110, %c128_111], %248 {strides = array<i32>} : memref<16x256xbf16, #tpu.memory_space<vmem>>, vector<16x128xbf16>,
    %c0_112 = arith.constant 0 : index
    %c0_113 = arith.constant 0 : index
    %250 = vector.load %arg11[%c0_112, %c0_113] : memref<16x256xbf16, #tpu.memory_space<vmem>>, vector<16x128xbf16>
    tpu.vector_store %arg11[%c0_112, %c0_113], %248 {strides = array<i32>} : memref<16x256xbf16, #tpu.memory_space<vmem>>, vector<16x128xbf16>,
    %c0_114 = arith.constant 0 : index
    %c0_115 = arith.constant 0 : index
    %251 = vector.load %arg11[%c0_114, %c0_115] : memref<16x256xbf16, #tpu.memory_space<vmem>>, vector<16x256xbf16>
    %cst_116 = arith.constant dense<0.000000e+00> : vector<16x512xf32>
    %252 = tpu.matmul %251, %4, %cst_116 {dimension_numbers = #tpu.dot_dimension_numbers<[1], [0], [0], [1], [0, 0, 1, 1], [], []>} : vector<16x256xbf16>, vector<256x512xbf16>, vector<16x512xf32> -> vector<16x512xf32>
    %253 = vector.broadcast %6 : vector<1x512xf32> to vector<16x512xf32>
    %254 = arith.addf %252, %253 : vector<16x512xf32>
    %255 = vector.extract_strided_slice %254 {offsets = [0, 0], sizes = [16, 384], strides = [1, 1]} : vector<16x512xf32> to vector<16x384xf32>
    %cst_117 = arith.constant 5.000000e-01 : f32
    %256 = vector.broadcast %cst_117 : f32 to vector<16x384xf32>
    %257 = arith.mulf %256, %255 : vector<16x384xf32>
    %258 = math.tanh %257 : vector<16x384xf32>
    %cst_118 = arith.constant 5.000000e-01 : f32
    %259 = vector.broadcast %cst_118 : f32 to vector<16x384xf32>
    %260 = arith.mulf %259, %258 : vector<16x384xf32>
    %cst_119 = arith.constant 5.000000e-01 : f32
    %261 = vector.broadcast %cst_119 : f32 to vector<16x384xf32>
    %262 = arith.addf %260, %261 : vector<16x384xf32>
    %263 = vector.extract_strided_slice %254 {offsets = [0, 384], sizes = [16, 128], strides = [1, 1]} : vector<16x512xf32> to vector<16x128xf32>
    %264 = math.tanh %263 : vector<16x128xf32>
    %265 = vector.extract_strided_slice %262 {offsets = [0, 128], sizes = [16, 128], strides = [1, 1]} : vector<16x384xf32> to vector<16x128xf32>
    %266 = arith.mulf %265, %216 : vector<16x128xf32>
    %267 = vector.extract_strided_slice %262 {offsets = [0, 0], sizes = [16, 128], strides = [1, 1]} : vector<16x384xf32> to vector<16x128xf32>
    %268 = arith.mulf %267, %264 : vector<16x128xf32>
    %269 = arith.addf %266, %268 : vector<16x128xf32>
    %270 = vector.extract_strided_slice %262 {offsets = [0, 256], sizes = [16, 128], strides = [1, 1]} : vector<16x384xf32> to vector<16x128xf32>
    %271 = math.tanh %269 : vector<16x128xf32>
    %272 = arith.mulf %270, %271 : vector<16x128xf32>
    %273 = arith.truncf %272 : vector<16x128xf32> to vector<16x128xbf16>
    %c0_120 = arith.constant 0 : index
    %c128_121 = arith.constant 128 : index
    %274 = vector.load %arg11[%c0_120, %c128_121] : memref<16x256xbf16, #tpu.memory_space<vmem>>, vector<16x128xbf16>
    tpu.vector_store %arg11[%c0_120, %c128_121], %273 {strides = array<i32>} : memref<16x256xbf16, #tpu.memory_space<vmem>>, vector<16x128xbf16>,
    %c5_i32 = arith.constant 5 : i32
    %275 = arith.index_cast %c5_i32 : i32 to index
    %c0_122 = arith.constant 0 : index
    %c0_123 = arith.constant 0 : index
    %276 = vector.load %arg2[%275, %c0_122, %c0_123] : memref<8x16x128xbf16, #tpu.memory_space<vmem>>, vector<1x16x128xbf16>
    %277 = vector.shape_cast %276 : vector<1x16x128xbf16> to vector<16x128xbf16>
    %c0_124 = arith.constant 0 : index
    %c0_125 = arith.constant 0 : index
    %278 = vector.load %arg10[%c0_124, %c0_125] : memref<16x256xbf16, #tpu.memory_space<vmem>>, vector<16x128xbf16>
    tpu.vector_store %arg10[%c0_124, %c0_125], %277 {strides = array<i32>} : memref<16x256xbf16, #tpu.memory_space<vmem>>, vector<16x128xbf16>,
    %c0_126 = arith.constant 0 : index
    %c0_127 = arith.constant 0 : index
    %279 = vector.load %arg10[%c0_126, %c0_127] : memref<16x256xbf16, #tpu.memory_space<vmem>>, vector<16x256xbf16>
    %cst_128 = arith.constant dense<0.000000e+00> : vector<16x512xf32>
    %280 = tpu.matmul %279, %3, %cst_128 {dimension_numbers = #tpu.dot_dimension_numbers<[1], [0], [0], [1], [0, 0, 1, 1], [], []>} : vector<16x256xbf16>, vector<256x512xbf16>, vector<16x512xf32> -> vector<16x512xf32>
    %281 = vector.broadcast %5 : vector<1x512xf32> to vector<16x512xf32>
    %282 = arith.addf %280, %281 : vector<16x512xf32>
    %283 = vector.extract_strided_slice %282 {offsets = [0, 0], sizes = [16, 384], strides = [1, 1]} : vector<16x512xf32> to vector<16x384xf32>
    %cst_129 = arith.constant 5.000000e-01 : f32
    %284 = vector.broadcast %cst_129 : f32 to vector<16x384xf32>
    %285 = arith.mulf %284, %283 : vector<16x384xf32>
    %286 = math.tanh %285 : vector<16x384xf32>
    %cst_130 = arith.constant 5.000000e-01 : f32
    %287 = vector.broadcast %cst_130 : f32 to vector<16x384xf32>
    %288 = arith.mulf %287, %286 : vector<16x384xf32>
    %cst_131 = arith.constant 5.000000e-01 : f32
    %289 = vector.broadcast %cst_131 : f32 to vector<16x384xf32>
    %290 = arith.addf %288, %289 : vector<16x384xf32>
    %291 = vector.extract_strided_slice %282 {offsets = [0, 384], sizes = [16, 128], strides = [1, 1]} : vector<16x512xf32> to vector<16x128xf32>
    %292 = math.tanh %291 : vector<16x128xf32>
    %293 = vector.extract_strided_slice %290 {offsets = [0, 128], sizes = [16, 128], strides = [1, 1]} : vector<16x384xf32> to vector<16x128xf32>
    %294 = arith.mulf %293, %244 : vector<16x128xf32>
    %295 = vector.extract_strided_slice %290 {offsets = [0, 0], sizes = [16, 128], strides = [1, 1]} : vector<16x384xf32> to vector<16x128xf32>
    %296 = arith.mulf %295, %292 : vector<16x128xf32>
    %297 = arith.addf %294, %296 : vector<16x128xf32>
    %298 = vector.extract_strided_slice %290 {offsets = [0, 256], sizes = [16, 128], strides = [1, 1]} : vector<16x384xf32> to vector<16x128xf32>
    %299 = math.tanh %297 : vector<16x128xf32>
    %300 = arith.mulf %298, %299 : vector<16x128xf32>
    %301 = arith.truncf %300 : vector<16x128xf32> to vector<16x128xbf16>
    %c0_132 = arith.constant 0 : index
    %c128_133 = arith.constant 128 : index
    %302 = vector.load %arg10[%c0_132, %c128_133] : memref<16x256xbf16, #tpu.memory_space<vmem>>, vector<16x128xbf16>
    tpu.vector_store %arg10[%c0_132, %c128_133], %301 {strides = array<i32>} : memref<16x256xbf16, #tpu.memory_space<vmem>>, vector<16x128xbf16>,
    %c0_134 = arith.constant 0 : index
    %c0_135 = arith.constant 0 : index
    %303 = vector.load %arg11[%c0_134, %c0_135] : memref<16x256xbf16, #tpu.memory_space<vmem>>, vector<16x128xbf16>
    tpu.vector_store %arg11[%c0_134, %c0_135], %301 {strides = array<i32>} : memref<16x256xbf16, #tpu.memory_space<vmem>>, vector<16x128xbf16>,
    %c0_136 = arith.constant 0 : index
    %c0_137 = arith.constant 0 : index
    %304 = vector.load %arg11[%c0_136, %c0_137] : memref<16x256xbf16, #tpu.memory_space<vmem>>, vector<16x256xbf16>
    %cst_138 = arith.constant dense<0.000000e+00> : vector<16x512xf32>
    %305 = tpu.matmul %304, %4, %cst_138 {dimension_numbers = #tpu.dot_dimension_numbers<[1], [0], [0], [1], [0, 0, 1, 1], [], []>} : vector<16x256xbf16>, vector<256x512xbf16>, vector<16x512xf32> -> vector<16x512xf32>
    %306 = vector.broadcast %6 : vector<1x512xf32> to vector<16x512xf32>
    %307 = arith.addf %305, %306 : vector<16x512xf32>
    %308 = vector.extract_strided_slice %307 {offsets = [0, 0], sizes = [16, 384], strides = [1, 1]} : vector<16x512xf32> to vector<16x384xf32>
    %cst_139 = arith.constant 5.000000e-01 : f32
    %309 = vector.broadcast %cst_139 : f32 to vector<16x384xf32>
    %310 = arith.mulf %309, %308 : vector<16x384xf32>
    %311 = math.tanh %310 : vector<16x384xf32>
    %cst_140 = arith.constant 5.000000e-01 : f32
    %312 = vector.broadcast %cst_140 : f32 to vector<16x384xf32>
    %313 = arith.mulf %312, %311 : vector<16x384xf32>
    %cst_141 = arith.constant 5.000000e-01 : f32
    %314 = vector.broadcast %cst_141 : f32 to vector<16x384xf32>
    %315 = arith.addf %313, %314 : vector<16x384xf32>
    %316 = vector.extract_strided_slice %307 {offsets = [0, 384], sizes = [16, 128], strides = [1, 1]} : vector<16x512xf32> to vector<16x128xf32>
    %317 = math.tanh %316 : vector<16x128xf32>
    %318 = vector.extract_strided_slice %315 {offsets = [0, 128], sizes = [16, 128], strides = [1, 1]} : vector<16x384xf32> to vector<16x128xf32>
    %319 = arith.mulf %318, %269 : vector<16x128xf32>
    %320 = vector.extract_strided_slice %315 {offsets = [0, 0], sizes = [16, 128], strides = [1, 1]} : vector<16x384xf32> to vector<16x128xf32>
    %321 = arith.mulf %320, %317 : vector<16x128xf32>
    %322 = arith.addf %319, %321 : vector<16x128xf32>
    %323 = vector.extract_strided_slice %315 {offsets = [0, 256], sizes = [16, 128], strides = [1, 1]} : vector<16x384xf32> to vector<16x128xf32>
    %324 = math.tanh %322 : vector<16x128xf32>
    %325 = arith.mulf %323, %324 : vector<16x128xf32>
    %326 = arith.truncf %325 : vector<16x128xf32> to vector<16x128xbf16>
    %c0_142 = arith.constant 0 : index
    %c128_143 = arith.constant 128 : index
    %327 = vector.load %arg11[%c0_142, %c128_143] : memref<16x256xbf16, #tpu.memory_space<vmem>>, vector<16x128xbf16>
    tpu.vector_store %arg11[%c0_142, %c128_143], %326 {strides = array<i32>} : memref<16x256xbf16, #tpu.memory_space<vmem>>, vector<16x128xbf16>,
    %c6_i32 = arith.constant 6 : i32
    %328 = arith.index_cast %c6_i32 : i32 to index
    %c0_144 = arith.constant 0 : index
    %c0_145 = arith.constant 0 : index
    %329 = vector.load %arg2[%328, %c0_144, %c0_145] : memref<8x16x128xbf16, #tpu.memory_space<vmem>>, vector<1x16x128xbf16>
    %330 = vector.shape_cast %329 : vector<1x16x128xbf16> to vector<16x128xbf16>
    %c0_146 = arith.constant 0 : index
    %c0_147 = arith.constant 0 : index
    %331 = vector.load %arg10[%c0_146, %c0_147] : memref<16x256xbf16, #tpu.memory_space<vmem>>, vector<16x128xbf16>
    tpu.vector_store %arg10[%c0_146, %c0_147], %330 {strides = array<i32>} : memref<16x256xbf16, #tpu.memory_space<vmem>>, vector<16x128xbf16>,
    %c0_148 = arith.constant 0 : index
    %c0_149 = arith.constant 0 : index
    %332 = vector.load %arg10[%c0_148, %c0_149] : memref<16x256xbf16, #tpu.memory_space<vmem>>, vector<16x256xbf16>
    %cst_150 = arith.constant dense<0.000000e+00> : vector<16x512xf32>
    %333 = tpu.matmul %332, %3, %cst_150 {dimension_numbers = #tpu.dot_dimension_numbers<[1], [0], [0], [1], [0, 0, 1, 1], [], []>} : vector<16x256xbf16>, vector<256x512xbf16>, vector<16x512xf32> -> vector<16x512xf32>
    %334 = vector.broadcast %5 : vector<1x512xf32> to vector<16x512xf32>
    %335 = arith.addf %333, %334 : vector<16x512xf32>
    %336 = vector.extract_strided_slice %335 {offsets = [0, 0], sizes = [16, 384], strides = [1, 1]} : vector<16x512xf32> to vector<16x384xf32>
    %cst_151 = arith.constant 5.000000e-01 : f32
    %337 = vector.broadcast %cst_151 : f32 to vector<16x384xf32>
    %338 = arith.mulf %337, %336 : vector<16x384xf32>
    %339 = math.tanh %338 : vector<16x384xf32>
    %cst_152 = arith.constant 5.000000e-01 : f32
    %340 = vector.broadcast %cst_152 : f32 to vector<16x384xf32>
    %341 = arith.mulf %340, %339 : vector<16x384xf32>
    %cst_153 = arith.constant 5.000000e-01 : f32
    %342 = vector.broadcast %cst_153 : f32 to vector<16x384xf32>
    %343 = arith.addf %341, %342 : vector<16x384xf32>
    %344 = vector.extract_strided_slice %335 {offsets = [0, 384], sizes = [16, 128], strides = [1, 1]} : vector<16x512xf32> to vector<16x128xf32>
    %345 = math.tanh %344 : vector<16x128xf32>
    %346 = vector.extract_strided_slice %343 {offsets = [0, 128], sizes = [16, 128], strides = [1, 1]} : vector<16x384xf32> to vector<16x128xf32>
    %347 = arith.mulf %346, %297 : vector<16x128xf32>
    %348 = vector.extract_strided_slice %343 {offsets = [0, 0], sizes = [16, 128], strides = [1, 1]} : vector<16x384xf32> to vector<16x128xf32>
    %349 = arith.mulf %348, %345 : vector<16x128xf32>
    %350 = arith.addf %347, %349 : vector<16x128xf32>
    %351 = vector.extract_strided_slice %343 {offsets = [0, 256], sizes = [16, 128], strides = [1, 1]} : vector<16x384xf32> to vector<16x128xf32>
    %352 = math.tanh %350 : vector<16x128xf32>
    %353 = arith.mulf %351, %352 : vector<16x128xf32>
    %354 = arith.truncf %353 : vector<16x128xf32> to vector<16x128xbf16>
    %c0_154 = arith.constant 0 : index
    %c128_155 = arith.constant 128 : index
    %355 = vector.load %arg10[%c0_154, %c128_155] : memref<16x256xbf16, #tpu.memory_space<vmem>>, vector<16x128xbf16>
    tpu.vector_store %arg10[%c0_154, %c128_155], %354 {strides = array<i32>} : memref<16x256xbf16, #tpu.memory_space<vmem>>, vector<16x128xbf16>,
    %c0_156 = arith.constant 0 : index
    %c0_157 = arith.constant 0 : index
    %356 = vector.load %arg11[%c0_156, %c0_157] : memref<16x256xbf16, #tpu.memory_space<vmem>>, vector<16x128xbf16>
    tpu.vector_store %arg11[%c0_156, %c0_157], %354 {strides = array<i32>} : memref<16x256xbf16, #tpu.memory_space<vmem>>, vector<16x128xbf16>,
    %c0_158 = arith.constant 0 : index
    %c0_159 = arith.constant 0 : index
    %357 = vector.load %arg11[%c0_158, %c0_159] : memref<16x256xbf16, #tpu.memory_space<vmem>>, vector<16x256xbf16>
    %cst_160 = arith.constant dense<0.000000e+00> : vector<16x512xf32>
    %358 = tpu.matmul %357, %4, %cst_160 {dimension_numbers = #tpu.dot_dimension_numbers<[1], [0], [0], [1], [0, 0, 1, 1], [], []>} : vector<16x256xbf16>, vector<256x512xbf16>, vector<16x512xf32> -> vector<16x512xf32>
    %359 = vector.broadcast %6 : vector<1x512xf32> to vector<16x512xf32>
    %360 = arith.addf %358, %359 : vector<16x512xf32>
    %361 = vector.extract_strided_slice %360 {offsets = [0, 0], sizes = [16, 384], strides = [1, 1]} : vector<16x512xf32> to vector<16x384xf32>
    %cst_161 = arith.constant 5.000000e-01 : f32
    %362 = vector.broadcast %cst_161 : f32 to vector<16x384xf32>
    %363 = arith.mulf %362, %361 : vector<16x384xf32>
    %364 = math.tanh %363 : vector<16x384xf32>
    %cst_162 = arith.constant 5.000000e-01 : f32
    %365 = vector.broadcast %cst_162 : f32 to vector<16x384xf32>
    %366 = arith.mulf %365, %364 : vector<16x384xf32>
    %cst_163 = arith.constant 5.000000e-01 : f32
    %367 = vector.broadcast %cst_163 : f32 to vector<16x384xf32>
    %368 = arith.addf %366, %367 : vector<16x384xf32>
    %369 = vector.extract_strided_slice %360 {offsets = [0, 384], sizes = [16, 128], strides = [1, 1]} : vector<16x512xf32> to vector<16x128xf32>
    %370 = math.tanh %369 : vector<16x128xf32>
    %371 = vector.extract_strided_slice %368 {offsets = [0, 128], sizes = [16, 128], strides = [1, 1]} : vector<16x384xf32> to vector<16x128xf32>
    %372 = arith.mulf %371, %322 : vector<16x128xf32>
    %373 = vector.extract_strided_slice %368 {offsets = [0, 0], sizes = [16, 128], strides = [1, 1]} : vector<16x384xf32> to vector<16x128xf32>
    %374 = arith.mulf %373, %370 : vector<16x128xf32>
    %375 = arith.addf %372, %374 : vector<16x128xf32>
    %376 = vector.extract_strided_slice %368 {offsets = [0, 256], sizes = [16, 128], strides = [1, 1]} : vector<16x384xf32> to vector<16x128xf32>
    %377 = math.tanh %375 : vector<16x128xf32>
    %378 = arith.mulf %376, %377 : vector<16x128xf32>
    %379 = arith.truncf %378 : vector<16x128xf32> to vector<16x128xbf16>
    %c0_164 = arith.constant 0 : index
    %c128_165 = arith.constant 128 : index
    %380 = vector.load %arg11[%c0_164, %c128_165] : memref<16x256xbf16, #tpu.memory_space<vmem>>, vector<16x128xbf16>
    tpu.vector_store %arg11[%c0_164, %c128_165], %379 {strides = array<i32>} : memref<16x256xbf16, #tpu.memory_space<vmem>>, vector<16x128xbf16>,
    %c7_i32 = arith.constant 7 : i32
    %381 = arith.index_cast %c7_i32 : i32 to index
    %c0_166 = arith.constant 0 : index
    %c0_167 = arith.constant 0 : index
    %382 = vector.load %arg2[%381, %c0_166, %c0_167] : memref<8x16x128xbf16, #tpu.memory_space<vmem>>, vector<1x16x128xbf16>
    %383 = vector.shape_cast %382 : vector<1x16x128xbf16> to vector<16x128xbf16>
    %c0_168 = arith.constant 0 : index
    %c0_169 = arith.constant 0 : index
    %384 = vector.load %arg10[%c0_168, %c0_169] : memref<16x256xbf16, #tpu.memory_space<vmem>>, vector<16x128xbf16>
    tpu.vector_store %arg10[%c0_168, %c0_169], %383 {strides = array<i32>} : memref<16x256xbf16, #tpu.memory_space<vmem>>, vector<16x128xbf16>,
    %c0_170 = arith.constant 0 : index
    %c0_171 = arith.constant 0 : index
    %385 = vector.load %arg10[%c0_170, %c0_171] : memref<16x256xbf16, #tpu.memory_space<vmem>>, vector<16x256xbf16>
    %cst_172 = arith.constant dense<0.000000e+00> : vector<16x512xf32>
    %386 = tpu.matmul %385, %3, %cst_172 {dimension_numbers = #tpu.dot_dimension_numbers<[1], [0], [0], [1], [0, 0, 1, 1], [], []>} : vector<16x256xbf16>, vector<256x512xbf16>, vector<16x512xf32> -> vector<16x512xf32>
    %387 = vector.broadcast %5 : vector<1x512xf32> to vector<16x512xf32>
    %388 = arith.addf %386, %387 : vector<16x512xf32>
    %389 = vector.extract_strided_slice %388 {offsets = [0, 0], sizes = [16, 384], strides = [1, 1]} : vector<16x512xf32> to vector<16x384xf32>
    %cst_173 = arith.constant 5.000000e-01 : f32
    %390 = vector.broadcast %cst_173 : f32 to vector<16x384xf32>
    %391 = arith.mulf %390, %389 : vector<16x384xf32>
    %392 = math.tanh %391 : vector<16x384xf32>
    %cst_174 = arith.constant 5.000000e-01 : f32
    %393 = vector.broadcast %cst_174 : f32 to vector<16x384xf32>
    %394 = arith.mulf %393, %392 : vector<16x384xf32>
    %cst_175 = arith.constant 5.000000e-01 : f32
    %395 = vector.broadcast %cst_175 : f32 to vector<16x384xf32>
    %396 = arith.addf %394, %395 : vector<16x384xf32>
    %397 = vector.extract_strided_slice %388 {offsets = [0, 384], sizes = [16, 128], strides = [1, 1]} : vector<16x512xf32> to vector<16x128xf32>
    %398 = math.tanh %397 : vector<16x128xf32>
    %399 = vector.extract_strided_slice %396 {offsets = [0, 128], sizes = [16, 128], strides = [1, 1]} : vector<16x384xf32> to vector<16x128xf32>
    %400 = arith.mulf %399, %350 : vector<16x128xf32>
    %401 = vector.extract_strided_slice %396 {offsets = [0, 0], sizes = [16, 128], strides = [1, 1]} : vector<16x384xf32> to vector<16x128xf32>
    %402 = arith.mulf %401, %398 : vector<16x128xf32>
    %403 = arith.addf %400, %402 : vector<16x128xf32>
    %404 = vector.extract_strided_slice %396 {offsets = [0, 256], sizes = [16, 128], strides = [1, 1]} : vector<16x384xf32> to vector<16x128xf32>
    %405 = math.tanh %403 : vector<16x128xf32>
    %406 = arith.mulf %404, %405 : vector<16x128xf32>
    %407 = arith.truncf %406 : vector<16x128xf32> to vector<16x128xbf16>
    %c0_176 = arith.constant 0 : index
    %c128_177 = arith.constant 128 : index
    %408 = vector.load %arg10[%c0_176, %c128_177] : memref<16x256xbf16, #tpu.memory_space<vmem>>, vector<16x128xbf16>
    tpu.vector_store %arg10[%c0_176, %c128_177], %407 {strides = array<i32>} : memref<16x256xbf16, #tpu.memory_space<vmem>>, vector<16x128xbf16>,
    %c0_178 = arith.constant 0 : index
    %c0_179 = arith.constant 0 : index
    %409 = vector.load %arg11[%c0_178, %c0_179] : memref<16x256xbf16, #tpu.memory_space<vmem>>, vector<16x128xbf16>
    tpu.vector_store %arg11[%c0_178, %c0_179], %407 {strides = array<i32>} : memref<16x256xbf16, #tpu.memory_space<vmem>>, vector<16x128xbf16>,
    %c0_180 = arith.constant 0 : index
    %c0_181 = arith.constant 0 : index
    %410 = vector.load %arg11[%c0_180, %c0_181] : memref<16x256xbf16, #tpu.memory_space<vmem>>, vector<16x256xbf16>
    %cst_182 = arith.constant dense<0.000000e+00> : vector<16x512xf32>
    %411 = tpu.matmul %410, %4, %cst_182 {dimension_numbers = #tpu.dot_dimension_numbers<[1], [0], [0], [1], [0, 0, 1, 1], [], []>} : vector<16x256xbf16>, vector<256x512xbf16>, vector<16x512xf32> -> vector<16x512xf32>
    %412 = vector.broadcast %6 : vector<1x512xf32> to vector<16x512xf32>
    %413 = arith.addf %411, %412 : vector<16x512xf32>
    %414 = vector.extract_strided_slice %413 {offsets = [0, 0], sizes = [16, 384], strides = [1, 1]} : vector<16x512xf32> to vector<16x384xf32>
    %cst_183 = arith.constant 5.000000e-01 : f32
    %415 = vector.broadcast %cst_183 : f32 to vector<16x384xf32>
    %416 = arith.mulf %415, %414 : vector<16x384xf32>
    %417 = math.tanh %416 : vector<16x384xf32>
    %cst_184 = arith.constant 5.000000e-01 : f32
    %418 = vector.broadcast %cst_184 : f32 to vector<16x384xf32>
    %419 = arith.mulf %418, %417 : vector<16x384xf32>
    %cst_185 = arith.constant 5.000000e-01 : f32
    %420 = vector.broadcast %cst_185 : f32 to vector<16x384xf32>
    %421 = arith.addf %419, %420 : vector<16x384xf32>
    %422 = vector.extract_strided_slice %413 {offsets = [0, 384], sizes = [16, 128], strides = [1, 1]} : vector<16x512xf32> to vector<16x128xf32>
    %423 = math.tanh %422 : vector<16x128xf32>
    %424 = vector.extract_strided_slice %421 {offsets = [0, 128], sizes = [16, 128], strides = [1, 1]} : vector<16x384xf32> to vector<16x128xf32>
    %425 = arith.mulf %424, %375 : vector<16x128xf32>
    %426 = vector.extract_strided_slice %421 {offsets = [0, 0], sizes = [16, 128], strides = [1, 1]} : vector<16x384xf32> to vector<16x128xf32>
    %427 = arith.mulf %426, %423 : vector<16x128xf32>
    %428 = arith.addf %425, %427 : vector<16x128xf32>
    %429 = vector.extract_strided_slice %421 {offsets = [0, 256], sizes = [16, 128], strides = [1, 1]} : vector<16x384xf32> to vector<16x128xf32>
    %430 = math.tanh %428 : vector<16x128xf32>
    %431 = arith.mulf %429, %430 : vector<16x128xf32>
    %432 = arith.truncf %431 : vector<16x128xf32> to vector<16x128xbf16>
    %c0_186 = arith.constant 0 : index
    %c128_187 = arith.constant 128 : index
    %433 = vector.load %arg11[%c0_186, %c128_187] : memref<16x256xbf16, #tpu.memory_space<vmem>>, vector<16x128xbf16>
    tpu.vector_store %arg11[%c0_186, %c128_187], %432 {strides = array<i32>} : memref<16x256xbf16, #tpu.memory_space<vmem>>, vector<16x128xbf16>,
    %c8_i32 = arith.constant 8 : i32
    %c0_188 = arith.constant 0 : index
    %c0_189 = arith.constant 0 : index
    %434 = vector.load %arg12[%c0_188, %c0_189] : memref<16x128xf32, #tpu.memory_space<vmem>>, vector<16x128xf32>
    tpu.vector_store %arg12[%c0_188, %c0_189], %403 {strides = array<i32>} : memref<16x128xf32, #tpu.memory_space<vmem>>, vector<16x128xf32>,
    %c0_190 = arith.constant 0 : index
    %c0_191 = arith.constant 0 : index
    %435 = vector.load %arg13[%c0_190, %c0_191] : memref<16x128xf32, #tpu.memory_space<vmem>>, vector<16x128xf32>
    tpu.vector_store %arg13[%c0_190, %c0_191], %428 {strides = array<i32>} : memref<16x128xf32, #tpu.memory_space<vmem>>, vector<16x128xf32>,
    %c0_i32_192 = arith.constant 0 : i32
    %436 = arith.cmpi eq, %arg1, %c0_i32_192 : i32
    %437 = arith.extui %436 : i1 to i32
    %c0_i32_193 = arith.constant 0 : i32
    %438 = arith.cmpi ne, %437, %c0_i32_193 : i32
    scf.if %438 {
      %c0_194 = arith.constant 0 : index
      %c0_195 = arith.constant 0 : index
      %439 = vector.load %arg7[%c0_194, %c0_195] : memref<1x128xf32, #tpu.memory_space<vmem>>, vector<1x128xf32>
      %440 = vector.broadcast %439 : vector<1x128xf32> to vector<16x128xf32>
      %441 = arith.mulf %431, %440 : vector<16x128xf32>
      %cst_196 = arith.constant dense<0.000000e+00> : vector<16xf32>
      %442 = vector.multi_reduction <add>, %441, %cst_196 [1] : vector<16x128xf32> to vector<16xf32>
      %443 = vector.shape_cast %442 : vector<16xf32> to vector<16x1xf32>
      %c0_197 = arith.constant 0 : index
      %c0_198 = arith.constant 0 : index
      %444 = vector.load %arg8[%c0_197, %c0_198] : memref<1x1xf32, #tpu.memory_space<vmem>>, vector<1x1xf32>
      %445 = vector.broadcast %444 : vector<1x1xf32> to vector<16x1xf32>
      %446 = arith.addf %443, %445 : vector<16x1xf32>
      %cst_199 = arith.constant 5.000000e-01 : f32
      %447 = vector.broadcast %cst_199 : f32 to vector<16x1xf32>
      %448 = arith.mulf %447, %446 : vector<16x1xf32>
      %449 = math.tanh %448 : vector<16x1xf32>
      %cst_200 = arith.constant 5.000000e-01 : f32
      %450 = vector.broadcast %cst_200 : f32 to vector<16x1xf32>
      %451 = arith.mulf %450, %449 : vector<16x1xf32>
      %cst_201 = arith.constant 5.000000e-01 : f32
      %452 = vector.broadcast %cst_201 : f32 to vector<16x1xf32>
      %453 = arith.addf %451, %452 : vector<16x1xf32>
      %454 = vector.shape_cast %453 : vector<16x1xf32> to vector<16x1xf32>
      %455 = vector.broadcast %454 : vector<16x1xf32> to vector<16x128xf32>
      %c0_202 = arith.constant 0 : index
      %c0_203 = arith.constant 0 : index
      %456 = vector.load %arg9[%c0_202, %c0_203] : memref<16x128xf32, #tpu.memory_space<vmem>>, vector<16x128xf32>
      tpu.vector_store %arg9[%c0_202, %c0_203], %455 {strides = array<i32>} : memref<16x128xf32, #tpu.memory_space<vmem>>, vector<16x128xf32>,
    } else {
    }
    return
  }
  func.func @transform_0(%arg0: i32, %arg1: i32) -> (i32, i32, i32) {
    %c0_i32 = arith.constant 0 : i32
    %c0_i32_0 = arith.constant 0 : i32
    return %arg1, %arg0, %c0_i32 : i32, i32, i32
  }
  func.func @transform_1(%arg0: i32, %arg1: i32) -> (i32, i32) {
    %c0_i32 = arith.constant 0 : i32
    %c0_i32_0 = arith.constant 0 : i32
    %c0_i32_1 = arith.constant 0 : i32
    return %c0_i32, %c0_i32_0 : i32, i32
  }
  func.func @transform_2(%arg0: i32, %arg1: i32) -> (i32, i32) {
    %c0_i32 = arith.constant 0 : i32
    %c0_i32_0 = arith.constant 0 : i32
    %c0_i32_1 = arith.constant 0 : i32
    return %c0_i32, %c0_i32_0 : i32, i32
  }
  func.func @transform_3(%arg0: i32, %arg1: i32) -> (i32, i32) {
    %c0_i32 = arith.constant 0 : i32
    %c0_i32_0 = arith.constant 0 : i32
    %c0_i32_1 = arith.constant 0 : i32
    return %c0_i32, %c0_i32_0 : i32, i32
  }
  func.func @transform_4(%arg0: i32, %arg1: i32) -> (i32, i32) {
    %c0_i32 = arith.constant 0 : i32
    %c0_i32_0 = arith.constant 0 : i32
    %c0_i32_1 = arith.constant 0 : i32
    return %c0_i32, %c0_i32_0 : i32, i32
  }
  func.func @transform_5(%arg0: i32, %arg1: i32) -> (i32, i32) {
    %c0_i32 = arith.constant 0 : i32
    %c0_i32_0 = arith.constant 0 : i32
    %c0_i32_1 = arith.constant 0 : i32
    return %c0_i32, %c0_i32_0 : i32, i32
  }
  func.func @transform_6(%arg0: i32, %arg1: i32) -> (i32, i32) {
    %c0_i32 = arith.constant 0 : i32
    %c0_i32_0 = arith.constant 0 : i32
    %c0_i32_1 = arith.constant 0 : i32
    return %c0_i32, %c0_i32_0 : i32, i32
  }
  func.func @transform_7(%arg0: i32, %arg1: i32) -> (i32, i32) {
    %c0_i32 = arith.constant 0 : i32
    %c0_i32_0 = arith.constant 0 : i32
    return %arg0, %c0_i32 : i32, i32
  }
}

</mosaic_0001>

<bundles_post_ra>
// kernel: tpu_custom_call.1
= control target key start
LH: loop header
LB: loop body
LE: loop exit
PB: predicated region body
PF: predicated region fallthrough
CT: control target
= control target key end

     0   :  { %s6548_s0 = inlined_call_operand.hbm [shape: bf16[8,16,128], index: 0, kind: input, shape index: {}]   ;;  %s6549_s1 = inlined_call_operand.hbm [shape: bf16[256,512], index: 1, kind: input, shape index: {}]   ;;  %s6550_s2 = inlined_call_operand.hbm [shape: f32[1,512], index: 2, kind: input, shape index: {}]   ;;  %s6551_s3 = inlined_call_operand.hbm [shape: bf16[256,512], index: 3, kind: input, shape index: {}]   ;;  %s6552_s4 = inlined_call_operand.vmem [shape: f32[1,512], index: 4, kind: input, shape index: {}]   ;;  %s6553_s5 = inlined_call_operand.vmem [shape: f32[1,128], index: 5, kind: input, shape index: {}]   ;;  %s6554_s6 = inlined_call_operand.<no memory space> [shape: f32[1,1], index: 6, kind: input, shape index: {}]   ;;  %s6555_s7 = inlined_call_operand.hbm [shape: f32[16,128], index: 7, kind: output, shape index: {}]  }
   0x1   :  { %v12_v0 = vstv %s6554_s6 }
   0x2   :  { %13 = vst [vmem:[#allocation6] sm:$0x1] %v12_v0 }
   0x3   :  { %14 = vsyncpa [#allocation8], 0 }
   0x4   :  { %15 = vsyncpa [#allocation11], 0 }
   0x5   :  { %16 = vsyncpa [#allocation14], 0  ;;  %s35_s28 = sshll.u32 %s6549_s1, 4  ;;  %s36_s28 = int_to_ptr.hbm [resolvable:$true] %s35_s28 }
   0x6   :  { %17 = vsyncpa [#allocation9], 0  ;;  %s4906_s29 = smov [#allocation10]   ;;  %s22_s10 = sshll.u32 %s6548_s0, 4  ;;  %s23_s10 = int_to_ptr.hbm [resolvable:$true] %s22_s10 }
   0x7   :  { %s37_s30 = sshll.u32 %s4906_s29, 4  ;;  %s4907_s11 = smov 256   ;;  %s38_s30 = int_to_ptr.vmem [resolvable:$true] %s37_s30 }
   0x8   :  { %s4908_s12 = smov 16   ;;  %s4909_s6 = smov [#allocation7]  }
   0x9   :  { %43 = dma.hbm_to_vmem [thread:$0]  %s36_s28, 8192, %s38_s30, [#allocation11], %s4907_s11, %s4907_s11, %s4908_s12  }
   0xa   :  { %s24_s13 = sshll.u32 %s4909_s6, 4  ;;  %s4910_s14 = smov 64   ;;  %s25_s13 = int_to_ptr.vmem [resolvable:$true] %s24_s13 }
   0xb   :  { %s4911_s15 = smov 4   ;;  %s49_s17 = sshll.u32 %s6550_s2, 4  ;;  %s50_s17 = int_to_ptr.hbm [resolvable:$true] %s49_s17 }
   0xc   :  { %30 = dma.hbm_to_vmem [thread:$0]  %s23_s10, 1024, %s25_s13, [#allocation8], %s4910_s14, %s4910_s14, %s4911_s15  }
   0xd   :  { %s4912_s18 = smov [#allocation12]   ;;  %s59_s21 = sshll.u32 %s6551_s3, 4  ;;  %s60_s21 = int_to_ptr.hbm [resolvable:$true] %s59_s21 }
   0xe   :  { %s51_s19 = sshll.u32 %s4912_s18, 4  ;;  %s4913_s22 = smov [#allocation13]   ;;  %s52_s19 = int_to_ptr.vmem [resolvable:$true] %s51_s19 }
   0xf   :  { %54 = dma.hbm_to_vmem [thread:$0]  %s50_s17, 64, %s52_s19, [#allocation11]  }
  0x10   :  { %s61_s23 = sshll.u32 %s4913_s22, 4  ;;  %s62_s23 = int_to_ptr.vmem [resolvable:$true] %s61_s23 }
  0x11   :  { %67 = dma.hbm_to_vmem [thread:$0]  %s60_s21, 8192, %s62_s23, [#allocation14], %s4907_s11, %s4907_s11, %s4908_s12  }
  0x12   :  { %4898 = dma.done.wait [#allocation8], 1024  }
  0x13   :  { %4899 = vsyncadd [#allocation8], 4294966272 }
  0x14   :  { %4900 = dma.done.wait [#allocation11], 8256  }
  0x15   :  { %4901 = vsyncadd [#allocation11], 4294959040 }
  0x16   :  { %4902 = dma.done.wait [#allocation14], 8192  }
  0x17   :  { %4903 = vsyncadd [#allocation14], 4294959104  ;;  %v4914_v1 = vmov 0   ;;  %v4306_v2 = vld [vmem:[#allocation10 + $0xe4] sm:$0xf]  ;;  %s3623_s28 = sshll.u32 %s6555_s7, 4  ;;  %s3624_s28 = int_to_ptr.hbm [resolvable:$true] %s3623_s28 }
  0x18   :  { %95 = vst [vmem:[#allocation2] sm:$0xff] %v4914_v1  ;;  %4450 = vset.pattern.permute.xlu1 %v4914_v1  ;;  %4451 = vset.pattern.permute.xlu0 %v4914_v1  ;;  %v3762_v3 = vld [vmem:[#allocation10 + $0xf0] sm:$0xf0]  ;;  %v4338_v4 = vld [vmem:[#allocation10 + $0x1e4] sm:$0xf]  ;;  %s4916_s29 = smov 128  }
  0x19   :  { %96 = vst [vmem:[#allocation2 + $0x8] sm:$0xff] %v4914_v1  ;;  %v4978_v5 = vor.u32 %v4306_v2, %v3762_v3  ;;  %v3890_v6 = vld [vmem:[#allocation10 + $0x1f0] sm:$0xf0]  ;;  %v3760_v7 = vld [vmem:[#allocation10 + $0xe0] sm:$0xf]  ;;  %s4917_s30 = smov 8  }
  0x1a   :  { %97 = vst [vmem:[#allocation3] sm:$0xff] %v4914_v1  ;;  %v4308_v8 = vld [vmem:[#allocation10 + $0xec] sm:$0xf0]  ;;  %v4980_v9 = vor.u32 %v4338_v4, %v3890_v6  ;;  %v4302_v11 = vld [vmem:[#allocation10 + $0xc4] sm:$0xf] }
  0x1b   :  { %v4982_v10 = vor.u32 %v4308_v8, %v3760_v7  ;;  %v3746_v12 = vld [vmem:[#allocation10 + $0xd0] sm:$0xf0]  ;;  %v4334_v13 = vld [vmem:[#allocation10 + $0x1c4] sm:$0xf]  ;;  %610 = vmatpush.bf16.msra.mxu2 %v4978_v5  ;;  %v3888_v16 = vld [vmem:[#allocation10 + $0x1e0] sm:$0xf] }
  0x1c   :  { %6831 = vst [vmem:[#allocation20_spill] sm:$0xff] %v4980_v9  ;;  %v4985_v14 = vor.u32 %v4302_v11, %v3746_v12  ;;  %v3874_v15 = vld [vmem:[#allocation10 + $0x1d0] sm:$0xf0]  ;;  %v4340_v17 = vld [vmem:[#allocation10 + $0x1ec] sm:$0xf0]  ;;  %624 = vmatpush.bf16.msra.mxu3 %v4980_v9 }
  0x1d   :  { %582 = vmatpush.bf16.msra.mxu0 %v4982_v10  ;;  %v4989_v18 = vor.u32 %v4334_v13, %v3874_v15  ;;  %v4991_v19 = vor.u32 %v4340_v17, %v3888_v16  ;;  %v3744_v20 = vld [vmem:[#allocation10 + $0xc0] sm:$0xf]  ;;  %v4304_v21 = vld [vmem:[#allocation10 + $0xcc] sm:$0xf0]  ;;  %v4298_v22 = vld [vmem:[#allocation10 + $0xa4] sm:$0xf] }
  0x1e   :  { %v4993_v23 = vor.u32 %v4304_v21, %v3744_v20  ;;  %v3730_v24 = vld [vmem:[#allocation10 + $0xb0] sm:$0xf0]  ;;  %v4330_v25 = vld [vmem:[#allocation10 + $0x1a4] sm:$0xf]  ;;  %v3872_v27 = vld [vmem:[#allocation10 + $0x1c0] sm:$0xf] }
  0x1f   :  { %6832 = vst [vmem:[#allocation21_spill] sm:$0xff] %v4989_v18  ;;  %v3858_v26 = vld [vmem:[#allocation10 + $0x1b0] sm:$0xf0]  ;;  %596 = vmatpush.bf16.msra.mxu1 %v4991_v19  ;;  %v4336_v28 = vld [vmem:[#allocation10 + $0x1cc] sm:$0xf0]  ;;  %611 = vmatpush.bf16.msra.mxu2 %v4985_v14  ;;  %v4997_v30 = vor.u32 %v4298_v22, %v3730_v24 }
  0x20   :  { %6833 = vst [vmem:[#allocation22_spill] sm:$0xff] %v4991_v19  ;;  %v3728_v29 = vld [vmem:[#allocation10 + $0xa0] sm:$0xf]  ;;  %v4999_v31 = vor.u32 %v4336_v28, %v3872_v27  ;;  %v4300_v32 = vld [vmem:[#allocation10 + $0xac] sm:$0xf0]  ;;  %625 = vmatpush.bf16.msra.mxu3 %v4989_v18  ;;  %v5003_v35 = vor.u32 %v4330_v25, %v3858_v26 }
  0x21   :  { %6834 = vst [vmem:[#allocation23_spill] sm:$0xff] %v4997_v30  ;;  %v4294_v33 = vld [vmem:[#allocation10 + $0x84] sm:$0xf]  ;;  %v3714_v34 = vld [vmem:[#allocation10 + $0x90] sm:$0xf0]  ;;  %583 = vmatpush.bf16.msra.mxu0 %v4993_v23  ;;  %v5005_v36 = vor.u32 %v4300_v32, %v3728_v29 }
  0x22   :  { %6835 = vst [vmem:[#allocation24_spill] sm:$0xff] %v4999_v31  ;;  %v4326_v37 = vld [vmem:[#allocation10 + $0x184] sm:$0xf]  ;;  %v3842_v38 = vld [vmem:[#allocation10 + $0x190] sm:$0xf0]  ;;  %v5011_v44 = vor.u32 %v4294_v33, %v3714_v34 }
  0x23   :  { %6836 = vst [vmem:[#allocation25_spill] sm:$0xff] %v5003_v35  ;;  %v3856_v39 = vld [vmem:[#allocation10 + $0x1a0] sm:$0xf]  ;;  %v4332_v40 = vld [vmem:[#allocation10 + $0x1ac] sm:$0xf0]  ;;  %597 = vmatpush.bf16.msra.mxu1 %v4999_v31  ;;  %612 = vmatpush.bf16.msra.mxu2 %v4997_v30  ;;  %v5015_v47 = vor.u32 %v4326_v37, %v3842_v38 }
  0x24   :  { %6837 = vst [vmem:[#allocation26_spill] sm:$0xff] %v5005_v36  ;;  %v3712_v41 = vld [vmem:[#allocation10 + $0x80] sm:$0xf]  ;;  %v4296_v42 = vld [vmem:[#allocation10 + $0x8c] sm:$0xf0]  ;;  %v5008_v43 = vor.u32 %v4332_v40, %v3856_v39  ;;  %626 = vmatpush.bf16.msra.mxu3 %v5003_v35 }
  0x25   :  { %6839 = vst [vmem:[#allocation28_spill] sm:$0xff] %v5011_v44  ;;  %v3840_v45 = vld [vmem:[#allocation10 + $0x180] sm:$0xf]  ;;  %v4328_v46 = vld [vmem:[#allocation10 + $0x18c] sm:$0xf0]  ;;  %584 = vmatpush.bf16.msra.mxu0 %v5005_v36  ;;  %v5017_v48 = vor.u32 %v4296_v42, %v3712_v41 }
  0x26   :  { %6838 = vst [vmem:[#allocation27_spill] sm:$0xff] %v5008_v43  ;;  %v4290_v49 = vld [vmem:[#allocation10 + $0x64] sm:$0xf]  ;;  %v3698_v50 = vld [vmem:[#allocation10 + $0x70] sm:$0xf0]  ;;  %v5020_v55 = vor.u32 %v4328_v46, %v3840_v45 }
  0x27   :  { %6840 = vst [vmem:[#allocation29_spill] sm:$0xff] %v5015_v47  ;;  %v4322_v51 = vld [vmem:[#allocation10 + $0x164] sm:$0xf]  ;;  %v3826_v52 = vld [vmem:[#allocation10 + $0x170] sm:$0xf0]  ;;  %598 = vmatpush.bf16.msra.mxu1 %v5008_v43  ;;  %613 = vmatpush.bf16.msra.mxu2 %v5011_v44  ;;  %v5023_v56 = vor.u32 %v4290_v49, %v3698_v50 }
  0x28   :  { %6841 = vst [vmem:[#allocation30_spill] sm:$0xff] %v5017_v48  ;;  %v3696_v53 = vld [vmem:[#allocation10 + $0x60] sm:$0xf]  ;;  %v4292_v54 = vld [vmem:[#allocation10 + $0x6c] sm:$0xf0]  ;;  %627 = vmatpush.bf16.msra.mxu3 %v5015_v47  ;;  %v5027_v59 = vor.u32 %v4322_v51, %v3826_v52 }
  0x29   :  { %6842 = vst [vmem:[#allocation31_spill] sm:$0xff] %v5020_v55  ;;  %v3824_v57 = vld [vmem:[#allocation10 + $0x160] sm:$0xf]  ;;  %v4324_v58 = vld [vmem:[#allocation10 + $0x16c] sm:$0xf0]  ;;  %585 = vmatpush.bf16.msra.mxu0 %v5017_v48  ;;  %v5029_v60 = vor.u32 %v4292_v54, %v3696_v53 }
  0x2a   :  { %6843 = vst [vmem:[#allocation32_spill] sm:$0xff] %v5023_v56  ;;  %v4286_v61 = vld [vmem:[#allocation10 + $0x44] sm:$0xf]  ;;  %v3682_v62 = vld [vmem:[#allocation10 + $0x50] sm:$0xf0]  ;;  %v5032_v4 = vor.u32 %v4324_v58, %v3824_v57 }
  0x2b   :  { %6844 = vst [vmem:[#allocation33_spill] sm:$0xff] %v5027_v59  ;;  %v4318_v63 = vld [vmem:[#allocation10 + $0x144] sm:$0xf]  ;;  %v3810_v0 = vld [vmem:[#allocation10 + $0x150] sm:$0xf0]  ;;  %599 = vmatpush.bf16.msra.mxu1 %v5020_v55  ;;  %614 = vmatpush.bf16.msra.mxu2 %v5023_v56  ;;  %v5035_v6 = vor.u32 %v4286_v61, %v3682_v62 }
  0x2c   :  { %6845 = vst [vmem:[#allocation34_spill] sm:$0xff] %v5029_v60  ;;  %v3680_v2 = vld [vmem:[#allocation10 + $0x40] sm:$0xf]  ;;  %v4288_v3 = vld [vmem:[#allocation10 + $0x4c] sm:$0xf0]  ;;  %628 = vmatpush.bf16.msra.mxu3 %v5027_v59  ;;  %v5039_v11 = vor.u32 %v4318_v63, %v3810_v0 }
  0x2d   :  { %6846 = vst [vmem:[#allocation35_spill] sm:$0xff] %v5032_v4  ;;  %v3808_v7 = vld [vmem:[#allocation10 + $0x140] sm:$0xf]  ;;  %v4320_v8 = vld [vmem:[#allocation10 + $0x14c] sm:$0xf0]  ;;  %586 = vmatpush.bf16.msra.mxu0 %v5029_v60  ;;  %v5041_v12 = vor.u32 %v4288_v3, %v3680_v2 }
  0x2e   :  { %6847 = vst [vmem:[#allocation36_spill] sm:$0xff] %v5035_v6  ;;  %v4282_v13 = vld [vmem:[#allocation10 + $0x24] sm:$0xf]  ;;  %v3666_v15 = vld [vmem:[#allocation10 + $0x30] sm:$0xf0]  ;;  %v5044_v22 = vor.u32 %v4320_v8, %v3808_v7 }
  0x2f   :  { %6848 = vst [vmem:[#allocation37_spill] sm:$0xff] %v5039_v11  ;;  %v4314_v16 = vld [vmem:[#allocation10 + $0x124] sm:$0xf]  ;;  %v3794_v17 = vld [vmem:[#allocation10 + $0x130] sm:$0xf0]  ;;  %600 = vmatpush.bf16.msra.mxu1 %v5032_v4  ;;  %615 = vmatpush.bf16.msra.mxu2 %v5035_v6  ;;  %v5047_v27 = vor.u32 %v4282_v13, %v3666_v15 }
  0x30   :  { %6849 = vst [vmem:[#allocation38_spill] sm:$0xff] %v5041_v12  ;;  %v3664_v20 = vld [vmem:[#allocation10 + $0x20] sm:$0xf]  ;;  %v4284_v21 = vld [vmem:[#allocation10 + $0x2c] sm:$0xf0]  ;;  %629 = vmatpush.bf16.msra.mxu3 %v5039_v11  ;;  %v5051_v37 = vor.u32 %v4314_v16, %v3794_v17 }
  0x31   :  { %6850 = vst [vmem:[#allocation39_spill] sm:$0xff] %v5044_v22  ;;  %v4278_v24 = vld [vmem:[#allocation10 + $0x4] sm:$0xf]  ;;  %v3650_v25 = vld [vmem:[#allocation10 + $0x10] sm:$0xf0]  ;;  %587 = vmatpush.bf16.msra.mxu0 %v5041_v12  ;;  %v5053_v38 = vor.u32 %v4284_v21, %v3664_v20 }
  0x32   :  { %v3792_v26 = vld [vmem:[#allocation10 + $0x120] sm:$0xf]  ;;  %6851 = vst [vmem:[#allocation40_spill] sm:$0xff] %v5047_v27  ;;  %v4310_v28 = vld [vmem:[#allocation10 + $0x104] sm:$0xf]  ;;  %v5059_v53 = vor.u32 %v4278_v24, %v3650_v25 }
  0x33   :  { %v3778_v29 = vld [vmem:[#allocation10 + $0x110] sm:$0xf0]  ;;  %v4316_v32 = vld [vmem:[#allocation10 + $0x12c] sm:$0xf0]  ;;  %v4307_v33 = vld [vmem:[#allocation10 + $0xec] sm:$0xf]  ;;  %601 = vmatpush.bf16.msra.mxu1 %v5044_v22  ;;  %616 = vmatpush.bf16.msra.mxu2 %v5047_v27 }
  0x34   :  { %v3770_v34 = vld [vmem:[#allocation10 + $0xf8] sm:$0xf0]  ;;  %6852 = vst [vmem:[#allocation41_spill] sm:$0xff] %v5051_v37  ;;  %v4339_v39 = vld [vmem:[#allocation10 + $0x1ec] sm:$0xf]  ;;  %v5056_v50 = vor.u32 %v4316_v32, %v3792_v26  ;;  %630 = vmatpush.bf16.msra.mxu3 %v5051_v37  ;;  %v5063_v58 = vor.u32 %v4310_v28, %v3778_v29 }
  0x35   :  { %6853 = vst [vmem:[#allocation42_spill] sm:$0xff] %v5053_v38  ;;  %v3898_v40 = vld [vmem:[#allocation10 + $0x1f8] sm:$0xf0]  ;;  %v3648_v41 = vld [vmem:[#allocation10] sm:$0xf]  ;;  %588 = vmatpush.bf16.msra.mxu0 %v5053_v38  ;;  %v5065_v61 = vor.u32 %v4307_v33, %v3770_v34 }
  0x36   :  { %v4280_v42 = vld [vmem:[#allocation10 + $0xc] sm:$0xf0]  ;;  %v3768_v45 = vld [vmem:[#allocation10 + $0xe8] sm:$0xf]  ;;  %v237_v46 = vld [vmem:[#allocation7] sm:$0xf]  ;;  %v5068_v0 = vor.u32 %v4339_v39, %v3898_v40 }
  0x37   :  { %v238_v49 = vld [vmem:[#allocation7 + $0x4] sm:$0xf]  ;;  %6854 = vst [vmem:[#allocation43_spill] sm:$0xff] %v5056_v50  ;;  %v4309_v51 = vld [vmem:[#allocation10 + $0xf4] sm:$0xf0]  ;;  %v5070_v2 = vor.u32 %v4280_v42, %v3648_v41  ;;  %602 = vmatpush.bf16.msra.mxu1 %v5056_v50  ;;  %617 = vmatpush.bf16.msra.mxu2 %v5059_v53 }
  0x38   :  { %v3776_v52 = vld [vmem:[#allocation10 + $0x100] sm:$0xf]  ;;  %239 = vst [vmem:[#allocation2] sm:$0xf] %v237_v46  ;;  %v4312_v54 = vld [vmem:[#allocation10 + $0x10c] sm:$0xf0]  ;;  %v5073_v13 = vor.u32 %v4309_v51, %v3768_v45  ;;  %631 = vmatpush.bf16.msra.mxu3 %v5063_v58 }
  0x39   :  { %6855 = vst [vmem:[#allocation44_spill] sm:$0xff] %v5059_v53  ;;  %v4303_v57 = vld [vmem:[#allocation10 + $0xcc] sm:$0xf]  ;;  %v3896_v62 = vld [vmem:[#allocation10 + $0x1e8] sm:$0xf]  ;;  %v5075_v15 = vor.u32 %v4312_v54, %v3776_v52  ;;  %589 = vmatpush.bf16.msra.mxu0 %v5070_v2 }
  0x3a   :  { %240 = vst [vmem:[#allocation2 + $0x8] sm:$0xf] %v238_v49  ;;  %v4341_v63 = vld [vmem:[#allocation10 + $0x1f4] sm:$0xf0]  ;;  %v3754_v3 = vld [vmem:[#allocation10 + $0xd8] sm:$0xf0] }
  0x3b   :  { %6856 = vst [vmem:[#allocation45_spill] sm:$0xff] %v5063_v58  ;;  %v4406_v7 = vld [vmem:[#allocation2 + $0x4] sm:$0xf]  ;;  %v3642_v8 = vld [vmem:[#allocation2 + $0x8] sm:$0xf0]  ;;  %v5078_v20 = vor.u32 %v4341_v63, %v3896_v62  ;;  %666 = vmatpush.bf16.msrb.mxu2 %v5065_v61  ;;  %v5084_v25 = vor.u32 %v4303_v57, %v3754_v3  ;;  %603 = vmatpush.bf16.msra.mxu1 %v5075_v15 }
  0x3c   :  { %6857 = vst [vmem:[#allocation46_spill] sm:$0xff] %v5065_v61  ;;  %v4335_v16 = vld [vmem:[#allocation10 + $0x1cc] sm:$0xf]  ;;  %v3882_v17 = vld [vmem:[#allocation10 + $0x1d8] sm:$0xf0]  ;;  %v5080_v24 = vor.u32 %v4406_v7, %v3642_v8  ;;  %680 = vmatpush.bf16.msrb.mxu3 %v5068_v0 }
  0x3d   :  { %98 = vst [vmem:[#allocation3 + $0x8] sm:$0xff] %v4914_v1  ;;  %v3752_v1 = vld [vmem:[#allocation10 + $0xc8] sm:$0xf]  ;;  %v4305_v21 = vld [vmem:[#allocation10 + $0xd4] sm:$0xf0]  ;;  %v5088_v29 = vor.u32 %v4335_v16, %v3882_v17  ;;  %638 = vmatpush.bf16.msrb.mxu0 %v5073_v13 }
  0x3e   :  { %6858 = vst [vmem:[#allocation47_spill] sm:$0xff] %v5068_v0  ;;  %v3880_v26 = vld [vmem:[#allocation10 + $0x1c8] sm:$0xf]  ;;  %v4337_v28 = vld [vmem:[#allocation10 + $0x1d4] sm:$0xf0]  ;;  %v5092_v40 = vor.u32 %v4305_v21, %v3752_v1  ;;  %632 = vmatmul.bf16.vlgmr.msra.gmra.mxu3 %v5080_v24  ;;  %604 = vmatmul.bf16.vlgmr.msra.gmra.mxu1 %v5080_v24 }
  0x3f   :  { %6859 = vst [vmem:[#allocation48_spill] sm:$0xff] %v5070_v2  ;;  %v3640_v32 = vld [vmem:[#allocation2] sm:$0xf]  ;;  %v4299_v33 = vld [vmem:[#allocation10 + $0xac] sm:$0xf]  ;;  %652 = vmatpush.bf16.msrb.mxu1 %v5078_v20  ;;  %v5098_v46 = vor.u32 %v4337_v28, %v3880_v26  ;;  %667 = vmatpush.bf16.msrb.mxu2 %v5084_v25 }
  0x40   :  { %6860 = vst [vmem:[#allocation49_spill] sm:$0xff] %v5073_v13  ;;  %v3738_v34 = vld [vmem:[#allocation10 + $0xb8] sm:$0xf0]  ;;  %v4331_v41 = vld [vmem:[#allocation10 + $0x1ac] sm:$0xf]  ;;  %681 = vmatpush.bf16.msrb.mxu3 %v5088_v29 }
  0x41   :  { %6861 = vst [vmem:[#allocation50_spill] sm:$0xff] %v5075_v15  ;;  %v4407_v39 = vld [vmem:[#allocation2 + $0x4] sm:$0xf0]  ;;  %v3866_v42 = vld [vmem:[#allocation10 + $0x1b8] sm:$0xf0]  ;;  %v5101_v52 = vor.u32 %v4299_v33, %v3738_v34  ;;  %639 = vmatpush.bf16.msrb.mxu0 %v5092_v40 }
  0x42   :  { %6862 = vst [vmem:[#allocation51_spill] sm:$0xff] %v5078_v20  ;;  %v5095_v45 = vor.u32 %v4407_v39, %v3640_v32  ;;  %v3736_v49 = vld [vmem:[#allocation10 + $0xa8] sm:$0xf]  ;;  %v4301_v51 = vld [vmem:[#allocation10 + $0xb4] sm:$0xf0]  ;;  %v5105_v62 = vor.u32 %v4331_v41, %v3866_v42 }
  0x43   :  { %6863 = vst [vmem:[#allocation52_spill] sm:$0xff] %v5084_v25  ;;  %v3864_v54 = vld [vmem:[#allocation10 + $0x1a8] sm:$0xf]  ;;  %v4333_v57 = vld [vmem:[#allocation10 + $0x1b4] sm:$0xf0]  ;;  %v5108_v7 = vor.u32 %v4301_v51, %v3736_v49  ;;  %653 = vmatpush.bf16.msrb.mxu1 %v5098_v46  ;;  %668 = vmatpush.bf16.msrb.mxu2 %v5101_v52 }
  0x44   :  { %6864 = vst [vmem:[#allocation53_spill] sm:$0xff] %v5088_v29  ;;  %618 = vmatmul.bf16.vlgmr.msra.gmra.mxu2 %v5095_v45  ;;  %v4295_v63 = vld [vmem:[#allocation10 + $0x8c] sm:$0xf]  ;;  %v3722_v3 = vld [vmem:[#allocation10 + $0x98] sm:$0xf0]  ;;  %v5112_v17 = vor.u32 %v4333_v57, %v3864_v54  ;;  %590 = vmatmul.bf16.vlgmr.msra.gmra.mxu0 %v5095_v45 }
  0x45   :  { %6865 = vst [vmem:[#allocation54_spill] sm:$0xff] %v5092_v40  ;;  %v4327_v8 = vld [vmem:[#allocation10 + $0x18c] sm:$0xf]  ;;  %v3850_v16 = vld [vmem:[#allocation10 + $0x198] sm:$0xf0]  ;;  %v5116_v26 = vor.u32 %v4295_v63, %v3722_v3  ;;  %682 = vmatpush.bf16.msrb.mxu3 %v5105_v62  ;;  %640 = vmatpush.bf16.msrb.mxu0 %v5108_v7 }
  0x46   :  { %6866 = vst [vmem:[#allocation55_spill] sm:$0xff] %v5098_v46  ;;  %v3720_v1 = vld [vmem:[#allocation10 + $0x88] sm:$0xf]  ;;  %v4297_v21 = vld [vmem:[#allocation10 + $0x94] sm:$0xf0]  ;;  %v5119_v33 = vor.u32 %v4327_v8, %v3850_v16 }
  0x47   :  { %6867 = vst [vmem:[#allocation56_spill] sm:$0xff] %v5101_v52  ;;  %v3848_v28 = vld [vmem:[#allocation10 + $0x188] sm:$0xf]  ;;  %v4329_v32 = vld [vmem:[#allocation10 + $0x194] sm:$0xf0]  ;;  %v5122_v41 = vor.u32 %v4297_v21, %v3720_v1  ;;  %654 = vmatpush.bf16.msrb.mxu1 %v5112_v17  ;;  %669 = vmatpush.bf16.msrb.mxu2 %v5116_v26 }
  0x48   :  { %6868 = vst [vmem:[#allocation57_spill] sm:$0xff] %v5105_v62  ;;  %v4291_v34 = vld [vmem:[#allocation10 + $0x6c] sm:$0xf]  ;;  %v3706_v39 = vld [vmem:[#allocation10 + $0x78] sm:$0xf0]  ;;  %v5125_v51 = vor.u32 %v4329_v32, %v3848_v28 }
  0x49   :  { %6869 = vst [vmem:[#allocation58_spill] sm:$0xff] %v5108_v7  ;;  %v4323_v42 = vld [vmem:[#allocation10 + $0x16c] sm:$0xf]  ;;  %v3834_v49 = vld [vmem:[#allocation10 + $0x178] sm:$0xf0]  ;;  %v5128_v63 = vor.u32 %v4291_v34, %v3706_v39  ;;  %683 = vmatpush.bf16.msrb.mxu3 %v5119_v33  ;;  %641 = vmatpush.bf16.msrb.mxu0 %v5122_v41 }
  0x4a   :  { %6870 = vst [vmem:[#allocation59_spill] sm:$0xff] %v5112_v17  ;;  %v3704_v54 = vld [vmem:[#allocation10 + $0x68] sm:$0xf]  ;;  %v4293_v57 = vld [vmem:[#allocation10 + $0x74] sm:$0xf0]  ;;  %v5131_v16 = vor.u32 %v4323_v42, %v3834_v49 }
  0x4b   :  { %6871 = vst [vmem:[#allocation60_spill] sm:$0xff] %v5116_v26  ;;  %v3832_v3 = vld [vmem:[#allocation10 + $0x168] sm:$0xf]  ;;  %v4325_v8 = vld [vmem:[#allocation10 + $0x174] sm:$0xf0]  ;;  %v5134_v52 = vor.u32 %v4293_v57, %v3704_v54  ;;  %655 = vmatpush.bf16.msrb.mxu1 %v5125_v51  ;;  %670 = vmatpush.bf16.msrb.mxu2 %v5128_v63 }
  0x4c   :  { %6872 = vst [vmem:[#allocation61_spill] sm:$0xff] %v5122_v41  ;;  %v4287_v1 = vld [vmem:[#allocation10 + $0x4c] sm:$0xf]  ;;  %v3690_v21 = vld [vmem:[#allocation10 + $0x58] sm:$0xf0]  ;;  %v5137_v7 = vor.u32 %v4325_v8, %v3832_v3 }
  0x4d   :  { %6873 = vst [vmem:[#allocation62_spill] sm:$0xff] %v5125_v51  ;;  %v4319_v28 = vld [vmem:[#allocation10 + $0x14c] sm:$0xf]  ;;  %v3818_v32 = vld [vmem:[#allocation10 + $0x158] sm:$0xf0]  ;;  %v5140_v26 = vor.u32 %v4287_v1, %v3690_v21  ;;  %684 = vmatpush.bf16.msrb.mxu3 %v5131_v16  ;;  %642 = vmatpush.bf16.msrb.mxu0 %v5134_v52 }
  0x4e   :  { %6874 = vst [vmem:[#allocation63_spill] sm:$0xff] %v5128_v63  ;;  %v3688_v34 = vld [vmem:[#allocation10 + $0x48] sm:$0xf]  ;;  %v4289_v39 = vld [vmem:[#allocation10 + $0x54] sm:$0xf0]  ;;  %v5143_v25 = vor.u32 %v4319_v28, %v3818_v32 }
  0x4f   :  { %6875 = vst [vmem:[#allocation64_spill] sm:$0xff] %v5134_v52  ;;  %v3816_v42 = vld [vmem:[#allocation10 + $0x148] sm:$0xf]  ;;  %v4321_v49 = vld [vmem:[#allocation10 + $0x154] sm:$0xf0]  ;;  %v5146_v41 = vor.u32 %v4289_v39, %v3688_v34  ;;  %656 = vmatpush.bf16.msrb.mxu1 %v5137_v7  ;;  %671 = vmatpush.bf16.msrb.mxu2 %v5140_v26 }
  0x50   :  { %6876 = vst [vmem:[#allocation65_spill] sm:$0xff] %v5140_v26  ;;  %v4283_v54 = vld [vmem:[#allocation10 + $0x2c] sm:$0xf]  ;;  %v3674_v57 = vld [vmem:[#allocation10 + $0x38] sm:$0xf0]  ;;  %v5149_v40 = vor.u32 %v4321_v49, %v3816_v42 }
  0x51   :  { %6877 = vst [vmem:[#allocation66_spill] sm:$0xff] %v5146_v41  ;;  %v4315_v3 = vld [vmem:[#allocation10 + $0x12c] sm:$0xf]  ;;  %v3802_v8 = vld [vmem:[#allocation10 + $0x138] sm:$0xf0]  ;;  %v5152_v63 = vor.u32 %v4283_v54, %v3674_v57  ;;  %685 = vmatpush.bf16.msrb.mxu3 %v5143_v25  ;;  %643 = vmatpush.bf16.msrb.mxu0 %v5146_v41 }
  0x52   :  { %v3672_v1 = vld [vmem:[#allocation10 + $0x28] sm:$0xf]  ;;  %v4285_v21 = vld [vmem:[#allocation10 + $0x34] sm:$0xf0]  ;;  %v4279_v28 = vld [vmem:[#allocation10 + $0xc] sm:$0xf]  ;;  %v5155_v52 = vor.u32 %v4315_v3, %v3802_v8 }
  0x53   :  { %6878 = vst [vmem:[#allocation67_spill] sm:$0xff] %v5152_v63  ;;  %v3800_v32 = vld [vmem:[#allocation10 + $0x128] sm:$0xf]  ;;  %v4317_v61 = vld [vmem:[#allocation10 + $0x134] sm:$0xf0]  ;;  %v5158_v42 = vor.u32 %v4285_v21, %v3672_v1  ;;  %657 = vmatpush.bf16.msrb.mxu1 %v5149_v40  ;;  %672 = vmatpush.bf16.msrb.mxu2 %v5152_v63 }
  0x54   :  { %6879 = vst [vmem:[#allocation68_spill] sm:$0xff] %v5155_v52  ;;  %v3658_v34 = vld [vmem:[#allocation10 + $0x18] sm:$0xf0]  ;;  %v4311_v39 = vld [vmem:[#allocation10 + $0x10c] sm:$0xf]  ;;  %v5161_v26 = vor.u32 %v4317_v61, %v3800_v32 }
  0x55   :  { %v3786_v13 = vld [vmem:[#allocation10 + $0x118] sm:$0xf0]  ;;  %6880 = vst [vmem:[#allocation69_spill] sm:$0xff] %v5158_v42  ;;  %v3656_v49 = vld [vmem:[#allocation10 + $0x8] sm:$0xf]  ;;  %v5164_v2 = vor.u32 %v4279_v28, %v3658_v34  ;;  %686 = vmatpush.bf16.msrb.mxu3 %v5155_v52  ;;  %644 = vmatpush.bf16.msrb.mxu0 %v5158_v42 }
  0x56   :  { %6881 = vst [vmem:[#allocation70_spill] sm:$0xff] %v5161_v26  ;;  %v4281_v54 = vld [vmem:[#allocation10 + $0x14] sm:$0xf0]  ;;  %v4402_v57 = vld [vmem:[#allocation13 + $0x1e4] sm:$0xf]  ;;  %v5167_v27 = vor.u32 %v4311_v39, %v3786_v13 }
  0x57   :  { %v4154_v53 = vld [vmem:[#allocation13 + $0x1f0] sm:$0xf0]  ;;  %6882 = vst [vmem:[#allocation71_spill] sm:$0xff] %v5164_v2  ;;  %v3784_v3 = vld [vmem:[#allocation10 + $0x108] sm:$0xf]  ;;  %v5170_v41 = vor.u32 %v4281_v54, %v3656_v49  ;;  %658 = vmatpush.bf16.msrb.mxu1 %v5161_v26  ;;  %673 = vmatpush.bf16.msrb.mxu2 %v5164_v2 }
  0x58   :  { %v4313_v8 = vld [vmem:[#allocation10 + $0x114] sm:$0xf0]  ;;  %6883 = vst [vmem:[#allocation72_spill] sm:$0xff] %v5167_v27  ;;  %v4152_v1 = vld [vmem:[#allocation13 + $0x1e0] sm:$0xf]  ;;  %v5172_v61 = vor.u32 %v4402_v57, %v4154_v53 }
  0x59   :  { %v4404_v21 = vld [vmem:[#allocation13 + $0x1ec] sm:$0xf0]  ;;  %6884 = vst [vmem:[#allocation73_spill] sm:$0xff] %v5170_v41  ;;  %v5175_v32 = vor.u32 %v4313_v8, %v3784_v3  ;;  %v4398_v28 = vld [vmem:[#allocation13 + $0x1c4] sm:$0xf]  ;;  %687 = vmatpush.bf16.msrb.mxu3 %v5167_v27  ;;  %645 = vmatpush.bf16.msrb.mxu0 %v5170_v41 }
  0x5a   :  { %6885 = vst [vmem:[#allocation74_spill] sm:$0xff] %v5172_v61  ;;  %v4138_v34 = vld [vmem:[#allocation13 + $0x1d0] sm:$0xf0]  ;;  %v5178_v63 = vor.u32 %v4404_v21, %v4152_v1  ;;  %v4136_v13 = vld [vmem:[#allocation13 + $0x1c0] sm:$0xf]  ;;  %674 = vmatmul.bf16.vlgmr.msrb.gmra.mxu2 %v5095_v45 }
  0x5b   :  { %6886 = vst [vmem:[#allocation75_spill] sm:$0xff] %v5175_v32  ;;  %v4400_v39 = vld [vmem:[#allocation13 + $0x1cc] sm:$0xf0]  ;;  %v5183_v53 = vor.u32 %v4398_v28, %v4138_v34  ;;  %659 = vmatpush.bf16.msrb.mxu1 %v5175_v32  ;;  %v4394_v49 = vld [vmem:[#allocation13 + $0x1a4] sm:$0xf] }
  0x5c   :  { %6887 = vst [vmem:[#allocation76_spill] sm:$0xff] %v5178_v63  ;;  %v4122_v54 = vld [vmem:[#allocation13 + $0x1b0] sm:$0xf0]  ;;  %688 = vmatmul.bf16.vlgmr.msrb.gmra.mxu3 %v5080_v24  ;;  %v5189_v57 = vor.u32 %v4400_v39, %v4136_v13  ;;  %646 = vmatmul.bf16.vlgmr.msrb.gmra.mxu0 %v5095_v45  ;;  %v4120_v3 = vld [vmem:[#allocation13 + $0x1a0] sm:$0xf] }
  0x5d   :  { %1119 = vmatpush.bf16.msra.mxu3 %v5172_v61  ;;  %6888 = vst [vmem:[#allocation77_spill] sm:$0xff] %v5183_v53  ;;  %v4396_v8 = vld [vmem:[#allocation13 + $0x1ac] sm:$0xf0]  ;;  %v5194_v1 = vor.u32 %v4394_v49, %v4122_v54  ;;  %v4390_v21 = vld [vmem:[#allocation13 + $0x184] sm:$0xf] }
  0x5e   :  { %6889 = vst [vmem:[#allocation78_spill] sm:$0xff] %v5189_v57  ;;  %660 = vmatmul.bf16.vlgmr.msrb.gmra.mxu1 %v5080_v24  ;;  %v4106_v28 = vld [vmem:[#allocation13 + $0x190] sm:$0xf0]  ;;  %v5197_v34 = vor.u32 %v4396_v8, %v4120_v3  ;;  %v4104_v2 = vld [vmem:[#allocation13 + $0x180] sm:$0xf] }
  0x5f   :  { %1091 = vmatpush.bf16.msra.mxu1 %v5178_v63  ;;  %6890 = vst [vmem:[#allocation79_spill] sm:$0xff] %v5194_v1  ;;  %v4392_v41 = vld [vmem:[#allocation13 + $0x18c] sm:$0xf0]  ;;  %v5200_v13 = vor.u32 %v4390_v21, %v4106_v28  ;;  %v4386_v45 = vld [vmem:[#allocation13 + $0x164] sm:$0xf] }
  0x60   :  { %6891 = vst [vmem:[#allocation80_spill] sm:$0xff] %v5197_v34  ;;  %v4090_v39 = vld [vmem:[#allocation13 + $0x170] sm:$0xf0]  ;;  %v5203_v24 = vor.u32 %v4392_v41, %v4104_v2  ;;  %v4088_v49 = vld [vmem:[#allocation13 + $0x160] sm:$0xf] }
  0x61   :  { %1120 = vmatpush.bf16.msra.mxu3 %v5183_v53  ;;  %6892 = vst [vmem:[#allocation81_spill] sm:$0xff] %v5200_v13  ;;  %v4388_v54 = vld [vmem:[#allocation13 + $0x16c] sm:$0xf0]  ;;  %v5206_v42 = vor.u32 %v4386_v45, %v4090_v39  ;;  %v4382_v3 = vld [vmem:[#allocation13 + $0x144] sm:$0xf] }
  0x62   :  { %6893 = vst [vmem:[#allocation82_spill] sm:$0xff] %v5203_v24  ;;  %v4074_v8 = vld [vmem:[#allocation13 + $0x150] sm:$0xf0]  ;;  %v5209_v38 = vor.u32 %v4388_v54, %v4088_v49  ;;  %v4072_v21 = vld [vmem:[#allocation13 + $0x140] sm:$0xf] }
  0x63   :  { %1092 = vmatpush.bf16.msra.mxu1 %v5189_v57  ;;  %6894 = vst [vmem:[#allocation83_spill] sm:$0xff] %v5206_v42  ;;  %v4384_v28 = vld [vmem:[#allocation13 + $0x14c] sm:$0xf0]  ;;  %v5212_v6 = vor.u32 %v4382_v3, %v4074_v8  ;;  %v4378_v2 = vld [vmem:[#allocation13 + $0x124] sm:$0xf] }
  0x64   :  { %6895 = vst [vmem:[#allocation84_spill] sm:$0xff] %v5209_v38  ;;  %v4058_v41 = vld [vmem:[#allocation13 + $0x130] sm:$0xf0]  ;;  %v5215_v12 = vor.u32 %v4384_v28, %v4072_v21  ;;  %v4056_v45 = vld [vmem:[#allocation13 + $0x120] sm:$0xf] }
  0x65   :  { %1121 = vmatpush.bf16.msra.mxu3 %v5194_v1  ;;  %6896 = vst [vmem:[#allocation85_spill] sm:$0xff] %v5212_v6  ;;  %v4380_v39 = vld [vmem:[#allocation13 + $0x12c] sm:$0xf0]  ;;  %v5218_v56 = vor.u32 %v4378_v2, %v4058_v41  ;;  %v4374_v49 = vld [vmem:[#allocation13 + $0x104] sm:$0xf] }
  0x66   :  { %6897 = vst [vmem:[#allocation86_spill] sm:$0xff] %v5215_v12  ;;  %v4042_v54 = vld [vmem:[#allocation13 + $0x110] sm:$0xf0]  ;;  %v5221_v60 = vor.u32 %v4380_v39, %v4056_v45  ;;  %v4403_v3 = vld [vmem:[#allocation13 + $0x1ec] sm:$0xf] }
  0x67   :  { %1093 = vmatpush.bf16.msra.mxu1 %v5197_v34  ;;  %6898 = vst [vmem:[#allocation87_spill] sm:$0xff] %v5218_v56  ;;  %v4162_v8 = vld [vmem:[#allocation13 + $0x1f8] sm:$0xf0]  ;;  %v5224_v21 = vor.u32 %v4374_v49, %v4042_v54  ;;  %v4160_v28 = vld [vmem:[#allocation13 + $0x1e8] sm:$0xf] }
  0x68   :  { %6899 = vst [vmem:[#allocation88_spill] sm:$0xff] %v5221_v60  ;;  %v4144_v45 = vld [vmem:[#allocation13 + $0x1c8] sm:$0xf]  ;;  %v4401_v39 = vld [vmem:[#allocation13 + $0x1d4] sm:$0xf0] }
  0x69   :  { %1122 = vmatpush.bf16.msra.mxu3 %v5200_v13  ;;  %v4376_v13 = vld [vmem:[#allocation13 + $0x10c] sm:$0xf0]  ;;  %6900 = vst [vmem:[#allocation89_spill] sm:$0xff] %v5224_v21  ;;  %v4399_v49 = vld [vmem:[#allocation13 + $0x1cc] sm:$0xf]  ;;  %v5237_v54 = vor.u32 %v4401_v39, %v4144_v45 }
  0x6a   :  { %v4112_v45 = vld [vmem:[#allocation13 + $0x188] sm:$0xf]  ;;  %v4393_v39 = vld [vmem:[#allocation13 + $0x194] sm:$0xf0] }
  0x6b   :  { %1094 = vmatpush.bf16.msra.mxu1 %v5203_v24  ;;  %v5226_v24 = vor.u32 %v4403_v3, %v4162_v8  ;;  %6904 = vst [vmem:[#allocation93_spill] sm:$0xff] %v5237_v54  ;;  %v4146_v3 = vld [vmem:[#allocation13 + $0x1d8] sm:$0xf0] }
  0x6c   :  { %v5239_v8 = vor.u32 %v4399_v49, %v4146_v3  ;;  %v4391_v49 = vld [vmem:[#allocation13 + $0x18c] sm:$0xf]  ;;  %v5249_v3 = vor.u32 %v4393_v39, %v4112_v45  ;;  %v4098_v39 = vld [vmem:[#allocation13 + $0x178] sm:$0xf0] }
  0x6d   :  { %1123 = vmatpush.bf16.msra.mxu3 %v5206_v42  ;;  %v4040_v42 = vld [vmem:[#allocation13 + $0x100] sm:$0xf]  ;;  %6901 = vst [vmem:[#allocation90_spill] sm:$0xff] %v5226_v24  ;;  %v4387_v45 = vld [vmem:[#allocation13 + $0x16c] sm:$0xf] }
  0x6e   :  { %v5229_v2 = vor.u32 %v4376_v13, %v4040_v42  ;;  %6905 = vst [vmem:[#allocation94_spill] sm:$0xff] %v5239_v8  ;;  %v4397_v42 = vld [vmem:[#allocation13 + $0x1b4] sm:$0xf0]  ;;  %v4395_v13 = vld [vmem:[#allocation13 + $0x1ac] sm:$0xf] }
  0x6f   :  { %1095 = vmatpush.bf16.msra.mxu1 %v5209_v38  ;;  %v4405_v38 = vld [vmem:[#allocation13 + $0x1f4] sm:$0xf0]  ;;  %6908 = vst [vmem:[#allocation97_spill] sm:$0xff] %v5249_v3 }
  0x70   :  { %6902 = vst [vmem:[#allocation91_spill] sm:$0xff] %v5229_v2  ;;  %v5231_v41 = vor.u32 %v4405_v38, %v4160_v28  ;;  %v4128_v38 = vld [vmem:[#allocation13 + $0x1a8] sm:$0xf] }
  0x71   :  { %1124 = vmatpush.bf16.msra.mxu3 %v5212_v6  ;;  %v5243_v28 = vor.u32 %v4397_v42, %v4128_v38  ;;  %v4372_v38 = vld [vmem:[#allocation13 + $0xec] sm:$0xf0]  ;;  %v4370_v42 = vld [vmem:[#allocation13 + $0xe4] sm:$0xf] }
  0x72   :  { %6903 = vst [vmem:[#allocation92_spill] sm:$0xff] %v5231_v41 }
  0x73   :  { %1096 = vmatpush.bf16.msra.mxu1 %v5215_v12  ;;  %6906 = vst [vmem:[#allocation95_spill] sm:$0xff] %v5243_v28 }
  0x75   :  { %1125 = vmatpush.bf16.msra.mxu3 %v5218_v56 }
  0x77   :  { %1097 = vmatpush.bf16.msra.mxu1 %v5221_v60 }
  0x79   :  { %1126 = vmatpush.bf16.msra.mxu3 %v5224_v21 }
  0x7b   :  { %1098 = vmatpush.bf16.msra.mxu1 %v5229_v2 }
  0x7d   :  { %1175 = vmatpush.bf16.msrb.mxu3 %v5226_v24  ;;  %v4130_v24 = vld [vmem:[#allocation13 + $0x1b8] sm:$0xf0] }
  0x7e   :  { %v5245_v21 = vor.u32 %v4395_v13, %v4130_v24  ;;  %v4026_v13 = vld [vmem:[#allocation13 + $0xf0] sm:$0xf0] }
  0x7f   :  { %1147 = vmatpush.bf16.msrb.mxu1 %v5231_v41  ;;  %v5257_v2 = vor.u32 %v4370_v42, %v4026_v13  ;;  %v4366_v42 = vld [vmem:[#allocation13 + $0xc4] sm:$0xf]  ;;  %v4010_v13 = vld [vmem:[#allocation13 + $0xd0] sm:$0xf0] }
  0x80   :  { %6907 = vst [vmem:[#allocation96_spill] sm:$0xff] %v5245_v21 }
  0x81   :  { %1176 = vmatpush.bf16.msrb.mxu3 %v5239_v8  ;;  %v4024_v8 = vld [vmem:[#allocation13 + $0xe0] sm:$0xf]  ;;  %6911 = vst [vmem:[#allocation100_spill] sm:$0xff] %v5257_v2  ;;  %1105 = vmatpush.bf16.msra.mxu2 %v5257_v2 }
  0x82   :  { %v5255_v24 = vor.u32 %v4372_v38, %v4024_v8  ;;  %v4368_v8 = vld [vmem:[#allocation13 + $0xcc] sm:$0xf0]  ;;  %v3992_v2 = vld [vmem:[#allocation13 + $0xa0] sm:$0xf] }
  0x83   :  { %1148 = vmatpush.bf16.msrb.mxu1 %v5237_v54  ;;  %v4114_v54 = vld [vmem:[#allocation13 + $0x198] sm:$0xf0] }
  0x84   :  { %v5251_v41 = vor.u32 %v4391_v49, %v4114_v54  ;;  %6910 = vst [vmem:[#allocation99_spill] sm:$0xff] %v5255_v24  ;;  %1077 = vmatpush.bf16.msra.mxu0 %v5255_v24  ;;  %v5262_v54 = vor.u32 %v4387_v45, %v4098_v39  ;;  %v4008_v49 = vld [vmem:[#allocation13 + $0xc0] sm:$0xf]  ;;  %v4082_v24 = vld [vmem:[#allocation13 + $0x158] sm:$0xf0] }
  0x85   :  { %1177 = vmatpush.bf16.msrb.mxu3 %v5245_v21  ;;  %v4389_v21 = vld [vmem:[#allocation13 + $0x174] sm:$0xf0]  ;;  %v5267_v38 = vor.u32 %v4368_v8, %v4008_v49  ;;  %v4362_v49 = vld [vmem:[#allocation13 + $0xa4] sm:$0xf] }
  0x86   :  { %6909 = vst [vmem:[#allocation98_spill] sm:$0xff] %v5251_v41 }
  0x87   :  { %1149 = vmatpush.bf16.msrb.mxu1 %v5243_v28  ;;  %v4096_v28 = vld [vmem:[#allocation13 + $0x168] sm:$0xf]  ;;  %6913 = vst [vmem:[#allocation102_spill] sm:$0xff] %v5262_v54 }
  0x88   :  { %v5259_v56 = vor.u32 %v4389_v21, %v4096_v28  ;;  %6914 = vst [vmem:[#allocation103_spill] sm:$0xff] %v5267_v38  ;;  %v4080_v21 = vld [vmem:[#allocation13 + $0x148] sm:$0xf]  ;;  %v5269_v28 = vor.u32 %v4366_v42, %v4010_v13  ;;  %1078 = vmatpush.bf16.msra.mxu0 %v5267_v38  ;;  %v3994_v42 = vld [vmem:[#allocation13 + $0xb0] sm:$0xf0] }
  0x89   :  { %1178 = vmatpush.bf16.msrb.mxu3 %v5251_v41  ;;  %v4385_v41 = vld [vmem:[#allocation13 + $0x154] sm:$0xf0]  ;;  %v4064_v13 = vld [vmem:[#allocation13 + $0x128] sm:$0xf]  ;;  %v5281_v60 = vor.u32 %v4362_v49, %v3994_v42  ;;  %v4360_v38 = vld [vmem:[#allocation13 + $0x8c] sm:$0xf0] }
  0x8a   :  { %6912 = vst [vmem:[#allocation101_spill] sm:$0xff] %v5259_v56  ;;  %v5272_v45 = vor.u32 %v4385_v41, %v4080_v21  ;;  %1106 = vmatpush.bf16.msra.mxu2 %v5269_v28  ;;  %v4377_v49 = vld [vmem:[#allocation13 + $0x114] sm:$0xf0] }
  0x8b   :  { %1150 = vmatpush.bf16.msrb.mxu1 %v5249_v3  ;;  %6915 = vst [vmem:[#allocation104_spill] sm:$0xff] %v5269_v28  ;;  %v4383_v3 = vld [vmem:[#allocation13 + $0x14c] sm:$0xf]  ;;  %v3976_v28 = vld [vmem:[#allocation13 + $0x80] sm:$0xf] }
  0x8c   :  { %6916 = vst [vmem:[#allocation105_spill] sm:$0xff] %v5272_v45  ;;  %v5274_v39 = vor.u32 %v4383_v3, %v4082_v24  ;;  %v4379_v3 = vld [vmem:[#allocation13 + $0x12c] sm:$0xf]  ;;  %v4066_v24 = vld [vmem:[#allocation13 + $0x138] sm:$0xf0] }
  0x8d   :  { %1179 = vmatpush.bf16.msrb.mxu3 %v5262_v54  ;;  %v4364_v54 = vld [vmem:[#allocation13 + $0xac] sm:$0xf0]  ;;  %6919 = vst [vmem:[#allocation108_spill] sm:$0xff] %v5281_v60  ;;  %v5286_v21 = vor.u32 %v4379_v3, %v4066_v24  ;;  %v4375_v3 = vld [vmem:[#allocation13 + $0x10c] sm:$0xf] }
  0x8e   :  { %6917 = vst [vmem:[#allocation106_spill] sm:$0xff] %v5274_v39  ;;  %v5279_v8 = vor.u32 %v4364_v54, %v3992_v2  ;;  %1107 = vmatpush.bf16.msra.mxu2 %v5281_v60  ;;  %v5291_v2 = vor.u32 %v4360_v38, %v3976_v28  ;;  %v3978_v54 = vld [vmem:[#allocation13 + $0x90] sm:$0xf0]  ;;  %v4050_v24 = vld [vmem:[#allocation13 + $0x118] sm:$0xf0] }
  0x8f   :  { %1151 = vmatpush.bf16.msrb.mxu1 %v5259_v56  ;;  %v4381_v56 = vld [vmem:[#allocation13 + $0x134] sm:$0xf0]  ;;  %6921 = vst [vmem:[#allocation110_spill] sm:$0xff] %v5286_v21  ;;  %v5298_v60 = vor.u32 %v4375_v3, %v4050_v24  ;;  %v3960_v38 = vld [vmem:[#allocation13 + $0x60] sm:$0xf] }
  0x90   :  { %6918 = vst [vmem:[#allocation107_spill] sm:$0xff] %v5279_v8  ;;  %v5283_v41 = vor.u32 %v4381_v56, %v4064_v13  ;;  %1079 = vmatpush.bf16.msra.mxu0 %v5279_v8  ;;  %v4048_v56 = vld [vmem:[#allocation13 + $0x108] sm:$0xf]  ;;  %v4408_v8 = vld [vmem:[#allocation3 + $0x4] sm:$0xf] }
  0x91   :  { %1180 = vmatpush.bf16.msrb.mxu3 %v5274_v39  ;;  %v4358_v39 = vld [vmem:[#allocation13 + $0x84] sm:$0xf]  ;;  %6922 = vst [vmem:[#allocation111_spill] sm:$0xff] %v5291_v2  ;;  %v5295_v13 = vor.u32 %v4377_v49, %v4048_v56  ;;  %v4356_v28 = vld [vmem:[#allocation13 + $0x6c] sm:$0xf0] }
  0x92   :  { %6920 = vst [vmem:[#allocation109_spill] sm:$0xff] %v5283_v41  ;;  %v5293_v42 = vor.u32 %v4358_v39, %v3978_v54  ;;  %v5305_v39 = vor.u32 %v4356_v28, %v3960_v38  ;;  %v3962_v54 = vld [vmem:[#allocation13 + $0x70] sm:$0xf0]  ;;  %v4350_v49 = vld [vmem:[#allocation13 + $0x44] sm:$0xf] }
  0x93   :  { %1152 = vmatpush.bf16.msrb.mxu1 %v5272_v45  ;;  %6924 = vst [vmem:[#allocation113_spill] sm:$0xff] %v5295_v13  ;;  %v3906_v45 = vld [vmem:[#allocation3 + $0x8] sm:$0xf0]  ;;  %v5317_v38 = vld [vmem:[#allocation12] sm:$0xf] }
  0x94   :  { %6923 = vst [vmem:[#allocation112_spill] sm:$0xff] %v5293_v42  ;;  %1080 = vmatpush.bf16.msra.mxu0 %v5291_v2  ;;  %1108 = vmatpush.bf16.msra.mxu2 %v5293_v42  ;;  %v3946_v24 = vld [vmem:[#allocation13 + $0x50] sm:$0xf0]  ;;  %v4373_v2 = vld [vmem:[#allocation13 + $0xf4] sm:$0xf0] }
  0x95   :  { %1181 = vmatpush.bf16.msrb.mxu3 %v5286_v21  ;;  %6925 = vst [vmem:[#allocation114_spill] sm:$0xff] %v5298_v60  ;;  %v5301_v21 = vor.u32 %v4408_v8, %v3906_v45  ;;  %v3944_v45 = vld [vmem:[#allocation13 + $0x40] sm:$0xf]  ;;  %v4352_v8 = vld [vmem:[#allocation13 + $0x4c] sm:$0xf0]  ;;  %v5319_v28 = vor.u32 %v4350_v49, %v3946_v24 }
  0x96   :  { %6926 = vst [vmem:[#allocation115_spill] sm:$0xff] %v5305_v39  ;;  %v5315_v3 = vor.u32 %v4352_v8, %v3944_v45  ;;  %v5326_v45 = vperm.slane %v5317_v38, 1  ;;  %v3930_v49 = vld [vmem:[#allocation13 + $0x30] sm:$0xf0] }
  0x97   :  { %1153 = vmatpush.bf16.msrb.mxu1 %v5283_v41  ;;  %v4354_v41 = vld [vmem:[#allocation13 + $0x64] sm:$0xf]  ;;  %1127 = vmatmul.bf16.vlgmr.msra.gmra.mxu3 %v5301_v21  ;;  %6929 = vst [vmem:[#allocation118_spill] sm:$0xff] %v5319_v28 }
  0x98   :  { %1099 = vmatmul.bf16.vlgmr.msra.gmra.mxu1 %v5301_v21  ;;  %v5309_v56 = vor.u32 %v4354_v41, %v3962_v54  ;;  %1081 = vmatpush.bf16.msra.mxu0 %v5305_v39  ;;  %6928 = vst [vmem:[#allocation117_spill] sm:$0xff] %v5315_v3 }
  0x99   :  { %1182 = vmatpush.bf16.msrb.mxu3 %v5298_v60 }
  0x9a   :  { %6927 = vst [vmem:[#allocation116_spill] sm:$0xff] %v5309_v56  ;;  %1109 = vmatpush.bf16.msra.mxu2 %v5309_v56  ;;  %v4346_v56 = vld [vmem:[#allocation13 + $0x24] sm:$0xf] }
  0x9b   :  { %1154 = vmatpush.bf16.msrb.mxu1 %v5295_v13  ;;  %v5330_v24 = vor.u32 %v4346_v56, %v3930_v49  ;;  %v3914_v56 = vld [vmem:[#allocation13 + $0x10] sm:$0xf0]  ;;  %v4032_v49 = vld [vmem:[#allocation13 + $0xe8] sm:$0xf]  ;;  %v4034_v13 = vld [vmem:[#allocation13 + $0xf8] sm:$0xf0] }
  0x9c   :  { %1082 = vmatpush.bf16.msra.mxu0 %v5315_v3  ;;  %v4342_v3 = vld [vmem:[#allocation13 + $0x4] sm:$0xf] }
  0x9d   :  { %1288 = vmatpush.bf16.msra.mxu3 %v4980_v9  ;;  %v3928_v9 = vld [vmem:[#allocation13 + $0x20] sm:$0xf]  ;;  %6931 = vst [vmem:[#allocation120_spill] sm:$0xff] %v5330_v24  ;;  %v5342_v60 = vor.u32 %v4342_v3, %v3914_v56  ;;  %v4369_v3 = vld [vmem:[#allocation13 + $0xd4] sm:$0xf0] }
  0x9e   :  { %1110 = vmatpush.bf16.msra.mxu2 %v5319_v28  ;;  %v4344_v28 = vld [vmem:[#allocation13 + $0xc] sm:$0xf0] }
  0x9f   :  { %1260 = vmatpush.bf16.msra.mxu1 %v4991_v19  ;;  %v4348_v19 = vld [vmem:[#allocation13 + $0x2c] sm:$0xf0]  ;;  %6934 = vst [vmem:[#allocation123_spill] sm:$0xff] %v5342_v60 }
  0xa0   :  { %v5328_v39 = vor.u32 %v4348_v19, %v3928_v9 }
  0xa1   :  { %1289 = vmatpush.bf16.msra.mxu3 %v4989_v18  ;;  %v3912_v18 = vld [vmem:[#allocation13] sm:$0xf] }
  0xa2   :  { %6930 = vst [vmem:[#allocation119_spill] sm:$0xff] %v5328_v39  ;;  %1083 = vmatpush.bf16.msra.mxu0 %v5328_v39  ;;  %1111 = vmatpush.bf16.msra.mxu2 %v5330_v24  ;;  %v5340_v42 = vor.u32 %v4344_v28, %v3912_v18 }
  0xa3   :  { %1261 = vmatpush.bf16.msra.mxu1 %v4999_v31  ;;  %v5333_v31 = vperm.slane %v5317_v38, 0 }
  0xa4   :  { %6933 = vst [vmem:[#allocation122_spill] sm:$0xff] %v5340_v42 }
  0xa5   :  { %6932 = vst [vmem:[#allocation121_spill] sm:$0xff] %v5333_v31  ;;  %1290 = vmatpush.bf16.msra.mxu3 %v5003_v35  ;;  %v4371_v35 = vld [vmem:[#allocation13 + $0xec] sm:$0xf] }
  0xa6   :  { %v5348_v24 = vor.u32 %v4371_v35, %v4034_v13  ;;  %1084 = vmatpush.bf16.msra.mxu0 %v5340_v42  ;;  %1112 = vmatpush.bf16.msra.mxu2 %v5342_v60  ;;  %v4018_v35 = vld [vmem:[#allocation13 + $0xd8] sm:$0xf0] }
  0xa7   :  { %1262 = vmatpush.bf16.msra.mxu1 %v5008_v43  ;;  %v5344_v43 = vor.u32 %v4373_v2, %v4032_v49  ;;  %v4016_v2 = vld [vmem:[#allocation13 + $0xc8] sm:$0xf]  ;;  %1183 = vmatmul.bf16.vlgmr.msrb.gmra.mxu3 %v5301_v21 }
  0xa8   :  { %6936 = vst [vmem:[#allocation125_spill] sm:$0xff] %v5348_v24  ;;  %v5355_v49 = vor.u32 %v4369_v3, %v4016_v2  ;;  %1155 = vmatmul.bf16.vlgmr.msrb.gmra.mxu1 %v5301_v21  ;;  %v4000_v2 = vld [vmem:[#allocation13 + $0xa8] sm:$0xf]  ;;  %v4365_v3 = vld [vmem:[#allocation13 + $0xb4] sm:$0xf0] }
  0xa9   :  { %6935 = vst [vmem:[#allocation124_spill] sm:$0xff] %v5344_v43  ;;  %1291 = vmatpush.bf16.msra.mxu3 %v5015_v47  ;;  %v4367_v47 = vld [vmem:[#allocation13 + $0xcc] sm:$0xf] }
  0xaa   :  { %1133 = vmatpush.bf16.msrb.mxu0 %v5344_v43  ;;  %1161 = vmatpush.bf16.msrb.mxu2 %v5348_v24  ;;  %6937 = vst [vmem:[#allocation126_spill] sm:$0xff] %v5355_v49  ;;  %v5366_v24 = vor.u32 %v4365_v3, %v4000_v2  ;;  %v4363_v21 = vld [vmem:[#allocation13 + $0xac] sm:$0xf]  ;;  %v4002_v43 = vld [vmem:[#allocation13 + $0xb8] sm:$0xf0] }
  0xab   :  { %1263 = vmatpush.bf16.msra.mxu1 %v5020_v55  ;;  %v3986_v3 = vld [vmem:[#allocation13 + $0x98] sm:$0xf0] }
  0xac   :  { %6939 = vst [vmem:[#allocation128_spill] sm:$0xff] %v5366_v24 }
  0xad   :  { %1292 = vmatpush.bf16.msra.mxu3 %v5027_v59 }
  0xae   :  { %1134 = vmatpush.bf16.msrb.mxu0 %v5355_v49 }
  0xaf   :  { %1264 = vmatpush.bf16.msra.mxu1 %v5032_v4 }
  0xb1   :  { %1293 = vmatpush.bf16.msra.mxu3 %v5039_v11 }
  0xb2   :  { %1135 = vmatpush.bf16.msrb.mxu0 %v5366_v24 }
  0xb3   :  { %1265 = vmatpush.bf16.msra.mxu1 %v5044_v22 }
  0xb5   :  { %1294 = vmatpush.bf16.msra.mxu3 %v5051_v37 }
  0xb7   :  { %1266 = vmatpush.bf16.msra.mxu1 %v5056_v50 }
  0xb9   :  { %1295 = vmatpush.bf16.msra.mxu3 %v5063_v58  ;;  %v4347_v58 = vld [vmem:[#allocation13 + $0x2c] sm:$0xf] }
  0xbb   :  { %v605_v54 = vpop.f32.mrf.mxu1  ;;  %1267 = vmatpush.bf16.msra.mxu1 %v5075_v15 }
  0xbd   :  { %1344 = vmatpush.bf16.msrb.mxu3 %v5068_v0  ;;  %v4349_v0 = vld [vmem:[#allocation13 + $0x34] sm:$0xf0] }
  0xbf   :  { %1316 = vmatpush.bf16.msrb.mxu1 %v5078_v20  ;;  %v3936_v20 = vld [vmem:[#allocation13 + $0x28] sm:$0xf] }
  0xc1   :  { %v591_v41 = vpop.f32.mrf.mxu0  ;;  %v633_v19 = vpop.f32.mrf.mxu3  ;;  %1345 = vmatpush.bf16.msrb.mxu3 %v5088_v29 }
  0xc3   :  { %v607_v56 = vpop.f32.mrf.mxu1  ;;  %1317 = vmatpush.bf16.msrb.mxu1 %v5098_v46 }
  0xc5   :  { %1346 = vmatpush.bf16.msrb.mxu3 %v5105_v62 }
  0xc7   :  { %v619_v8 = vpop.f32.mrf.mxu2  ;;  %1318 = vmatpush.bf16.msrb.mxu1 %v5112_v17 }
  0xc8   :  { %v620_v9 = vadd.f32 %v619_v8, %v5326_v45  ;;  %v592_v8 = vadd.f32 %v591_v41, %v5333_v31  ;;  %v5361_v41 = vor.u32 %v4367_v47, %v4018_v35  ;;  %v5371_v47 = vor.u32 %v4363_v21, %v4002_v43  ;;  %v4361_v35 = vld [vmem:[#allocation13 + $0x94] sm:$0xf0] }
  0xc9   :  { %v593_v28 = vpop.f32.mrf.mxu0  ;;  %v635_v60 = vpop.f32.mrf.mxu3  ;;  %v5386_v21 = vperm.slane %v5317_v38, 3  ;;  %1347 = vmatpush.bf16.msrb.mxu3 %v5119_v33 }
  0xca   :  { %v634_v18 = vadd.f32 %v633_v19, %v620_v9  ;;  %6938 = vst [vmem:[#allocation127_spill] sm:$0xff] %v5361_v41  ;;  %v606_v9 = vadd.f32 %v605_v54, %v592_v8  ;;  %1162 = vmatpush.bf16.msrb.mxu2 %v5361_v41  ;;  %v594_v4 = vadd.f32 %v593_v28, %v5333_v31  ;;  %v5374_v8 = vperm.slane %v5317_v38, 2  ;;  %v4359_v28 = vld [vmem:[#allocation13 + $0x8c] sm:$0xf] }
  0xcb   :  { %6940 = vst [vmem:[#allocation129_spill] sm:$0xff] %v5371_v47  ;;  %v5382_v43 = vor.u32 %v4359_v28, %v3986_v3  ;;  %v3970_v28 = vld [vmem:[#allocation13 + $0x78] sm:$0xf0]  ;;  %1319 = vmatpush.bf16.msrb.mxu1 %v5125_v51 }
  0xcc   :  { %v695_v19 = vmul.f32 0.5, %v634_v18  ;;  %v694_v54 = vmul.f32 0.5, %v606_v9  ;;  %v3984_v18 = vld [vmem:[#allocation13 + $0x88] sm:$0xf]  ;;  %v608_v22 = vadd.f32 %v607_v56, %v594_v4  ;;  %6943 = vst [vmem:[#allocation132_spill] sm:$0xff] %v5386_v21 }
  0xcd   :  { %v5378_v2 = vor.u32 %v4361_v35, %v3984_v18  ;;  %6942 = vst [vmem:[#allocation131_spill] sm:$0xff] %v5382_v43  ;;  %v4355_v35 = vld [vmem:[#allocation13 + $0x6c] sm:$0xf]  ;;  %1348 = vmatpush.bf16.msrb.mxu3 %v5131_v16 }
  0xce   :  { %4454 = vtanh.f32 %v695_v19  ;;  %1163 = vmatpush.bf16.msrb.mxu2 %v5371_v47 }
  0xcf   :  { %v621_v13 = vpop.f32.mrf.mxu2  ;;  %6941 = vst [vmem:[#allocation130_spill] sm:$0xff] %v5378_v2  ;;  %4456 = vtanh.f32 %v694_v54  ;;  %1136 = vmatpush.bf16.msrb.mxu0 %v5378_v2  ;;  %v697_v54 = vmul.f32 0.5, %v608_v22  ;;  %v3952_v22 = vld [vmem:[#allocation13 + $0x48] sm:$0xf]  ;;  %1320 = vmatpush.bf16.msrb.mxu1 %v5137_v7 }
  0xd0   :  { %v622_v55 = vadd.f32 %v621_v13, %v5326_v45 }
  0xd1   :  { %1349 = vmatpush.bf16.msrb.mxu3 %v5143_v25 }
  0xd2   :  { %v636_v13 = vadd.f32 %v635_v60, %v622_v55  ;;  %1164 = vmatpush.bf16.msrb.mxu2 %v5382_v43  ;;  %v3968_v55 = vld [vmem:[#allocation13 + $0x68] sm:$0xf]  ;;  %v4357_v60 = vld [vmem:[#allocation13 + $0x74] sm:$0xf0] }
  0xd3   :  { %v5390_v18 = vor.u32 %v4357_v60, %v3968_v55  ;;  %1321 = vmatpush.bf16.msrb.mxu1 %v5149_v40 }
  0xd4   :  { %v698_v4 = vmul.f32 0.5, %v636_v13  ;;  %v4455_v3 = vpop.eup %4454  ;;  %v4353_v13 = vld [vmem:[#allocation13 + $0x54] sm:$0xf0] }
  0xd5   :  { %6944 = vst [vmem:[#allocation133_spill] sm:$0xff] %v5390_v18  ;;  %1137 = vmatpush.bf16.msrb.mxu0 %v5390_v18  ;;  %v707_v55 = vmul.f32 0.5, %v4455_v3  ;;  %1350 = vmatpush.bf16.msrb.mxu3 %v5155_v52 }
  0xd6   :  { %4458 = vtanh.f32 %v698_v4  ;;  %v3938_v4 = vld [vmem:[#allocation13 + $0x38] sm:$0xf0] }
  0xd7   :  { %4460 = vtanh.f32 %v697_v54  ;;  %v5412_v3 = vor.u32 %v4347_v58, %v3938_v4  ;;  %v3920_v54 = vld [vmem:[#allocation13 + $0x8] sm:$0xf]  ;;  %1322 = vmatpush.bf16.msrb.mxu1 %v5161_v26 }
  0xd9   :  { %v647_v11 = vpop.f32.mrf.mxu0  ;;  %6949 = vst [vmem:[#allocation138_spill] sm:$0xff] %v5412_v3  ;;  %1351 = vmatpush.bf16.msrb.mxu3 %v5167_v27 }
  0xda   :  { %v648_v9 = vadd.f32 %v647_v11, %v5374_v8  ;;  %v5394_v11 = vor.u32 %v4355_v35, %v3970_v28  ;;  %v5401_v35 = vor.u32 %v4353_v13, %v3952_v22  ;;  %v4345_v13 = vld [vmem:[#allocation13 + $0x14] sm:$0xf0] }
  0xdb   :  { %v661_v19 = vpop.f32.mrf.mxu1  ;;  %1323 = vmatpush.bf16.msrb.mxu1 %v5175_v32 }
  0xdc   :  { %v662_v56 = vadd.f32 %v661_v19, %v648_v9  ;;  %6945 = vst [vmem:[#allocation134_spill] sm:$0xff] %v5394_v11  ;;  %1165 = vmatpush.bf16.msrb.mxu2 %v5394_v11  ;;  %v4351_v9 = vld [vmem:[#allocation13 + $0x4c] sm:$0xf]  ;;  %v4457_v19 = vpop.eup %4456  ;;  %1138 = vmatpush.bf16.msrb.mxu0 %v5401_v35 }
  0xdd   :  { %v675_v37 = vpop.f32.mrf.mxu2  ;;  %6946 = vst [vmem:[#allocation135_spill] sm:$0xff] %v5401_v35  ;;  %v4459_v46 = vpop.eup %4458 }
  0xde   :  { %v696_v38 = vmul.f32 0.5, %v662_v56  ;;  %v676_v50 = vadd.f32 %v675_v37, %v5386_v21  ;;  %v3954_v56 = vld [vmem:[#allocation13 + $0x58] sm:$0xf0] }
  0xdf   :  { %v689_v59 = vpop.f32.mrf.mxu3  ;;  %v5403_v28 = vor.u32 %v4351_v9, %v3954_v56  ;;  %v4343_v9 = vld [vmem:[#allocation13 + $0xc] sm:$0xf]  ;;  %v713_v56 = vadd.f32 0.5, %v707_v55 }
  0xe0   :  { %v690_v60 = vadd.f32 %v689_v59, %v676_v50  ;;  %v706_v59 = vmul.f32 0.5, %v4457_v19  ;;  %v5410_v50 = vor.u32 %v4349_v0, %v3936_v20 }
  0xe1   :  { %v649_v37 = vpop.f32.mrf.mxu0  ;;  %6947 = vst [vmem:[#allocation136_spill] sm:$0xff] %v5403_v28  ;;  %1166 = vmatpush.bf16.msrb.mxu2 %v5403_v28 }
  0xe2   :  { %4462 = vtanh.f32 %v690_v60  ;;  %v650_v15 = vadd.f32 %v649_v37, %v5374_v8  ;;  %6948 = vst [vmem:[#allocation137_spill] sm:$0xff] %v5410_v50  ;;  %v3922_v60 = vld [vmem:[#allocation13 + $0x18] sm:$0xf0]  ;;  %v712_v19 = vadd.f32 0.5, %v706_v59  ;;  %1139 = vmatpush.bf16.msrb.mxu0 %v5410_v50 }
  0xe3   :  { %v663_v31 = vpop.f32.mrf.mxu1  ;;  %4464 = vtanh.f32 %v696_v38  ;;  %v4461_v38 = vpop.eup %4460  ;;  %v5421_v58 = vor.u32 %v4343_v9, %v3922_v60 }
  0xe4   :  { %v664_v22 = vadd.f32 %v663_v31, %v650_v15  ;;  %v5419_v31 = vor.u32 %v4345_v13, %v3920_v54  ;;  %v709_v59 = vmul.f32 0.5, %v4461_v38 }
  0xe5   :  { %v677_v37 = vpop.f32.mrf.mxu2  ;;  %1167 = vmatpush.bf16.msrb.mxu2 %v5412_v3  ;;  %6951 = vst [vmem:[#allocation140_spill] sm:$0xff] %v5421_v58 }
  0xe6   :  { %v678_v29 = vadd.f32 %v677_v37, %v5386_v21  ;;  %6950 = vst [vmem:[#allocation139_spill] sm:$0xff] %v5419_v31  ;;  %v699_v20 = vmul.f32 0.5, %v664_v22  ;;  %v720_v37 = vmul.f32 0.0, %v713_v56  ;;  %v710_v21 = vmul.f32 0.5, %v4459_v46  ;;  %1140 = vmatpush.bf16.msrb.mxu0 %v5419_v31 }
  0xe7   :  { %v691_v0 = vpop.f32.mrf.mxu3 }
  0xe8   :  { %v4463_v15 = vpop.eup %4462  ;;  %v692_v55 = vadd.f32 %v691_v0, %v678_v29  ;;  %v716_v22 = vadd.f32 0.5, %v710_v21  ;;  %v715_v29 = vadd.f32 0.5, %v709_v59  ;;  %v1231_v59 = vld [vmem:[#allocation7 + $0xc] sm:$0xf] }
  0xe9   :  { %v4465_v4 = vpop.eup %4464  ;;  %v722_v17 = vmul.f32 %v4463_v15, %v712_v19  ;;  %1168 = vmatpush.bf16.msrb.mxu2 %v5421_v58  ;;  %1233 = vst [vmem:[#allocation2 + $0x8] sm:$0xf] %v1231_v59  ;;  %v6959_v59 = vld [vmem:[#allocation36_spill] sm:$0xff] }
  0xea   :  { %4466 = vtanh.f32 %v692_v55  ;;  %v708_v54 = vmul.f32 0.5, %v4465_v4  ;;  %v721_v9 = vmul.f32 0.0, %v716_v22 }
  0xeb   :  { %v5425_v62 = vadd.f32 %v722_v17, %v720_v37  ;;  %4468 = vtanh.f32 %v699_v20  ;;  %v1230_v37 = vld [vmem:[#allocation7 + $0x8] sm:$0xf] }
  0xec   :  { %v714_v13 = vadd.f32 0.5, %v708_v54  ;;  %1232 = vst [vmem:[#allocation2] sm:$0xf] %v1230_v37  ;;  %v6958_v37 = vld [vmem:[#allocation38_spill] sm:$0xff] }
  0xed   :  { %4470 = vtanh.f32 %v5425_v62 }
  0xf0   :  { %v4467_v46 = vpop.eup %4466 }
  0xf1   :  { %v723_v60 = vmul.f32 %v4467_v46, %v715_v29  ;;  %v4469_v17 = vpop.eup %4468 }
  0xf2   :  { %v711_v0 = vmul.f32 0.5, %v4469_v17  ;;  %v1565_v17 = vld [vmem:[#allocation7 + $0x10] sm:$0xf] }
  0xf3   :  { %v4471_v56 = vpop.eup %4470  ;;  %v5434_v38 = vadd.f32 %v723_v60, %v721_v9  ;;  %v4168_v60 = vld [vmem:[#allocation2] sm:$0xf] }
  0xf4   :  { %v728_v21 = vmul.f32 %v4471_v56, %v714_v13  ;;  %v717_v15 = vadd.f32 0.5, %v711_v0  ;;  %v1566_v56 = vld [vmem:[#allocation7 + $0x14] sm:$0xf]  ;;  %1567 = vst [vmem:[#allocation2] sm:$0xf] %v1565_v17  ;;  %v6953_v0 = vld [vmem:[#allocation81_spill] sm:$0xff] }
  0xf5   :  { %4472 = vtanh.f32 %v5434_v38  ;;  %v6965_v17 = vld [vmem:[#allocation44_spill] sm:$0xff] }
  0xf6   :  { %v730_v19 = vpack.c.bf16 %v728_v21, %v728_v21  ;;  %v4411_v21 = vld [vmem:[#allocation2 + $0x4] sm:$0xf0] }
  0xf7   :  { %1568 = vst [vmem:[#allocation2 + $0x8] sm:$0xf] %v1566_v56  ;;  %v6966_v56 = vld [vmem:[#allocation49_spill] sm:$0xff] }
  0xf8   :  { %732 = vst [vmem:[#allocation2 + $0x4] sm:$0xf] %v730_v19 }
  0xf9   :  { %734 = vst [vmem:[#allocation3] sm:$0xf] %v730_v19  ;;  %v6952_v19 = vld [vmem:[#allocation82_spill] sm:$0xff] }
  0xfb   :  { %v4473_v20 = vpop.eup %4472 }
  0xfc   :  { %v729_v55 = vmul.f32 %v4473_v20, %v717_v15  ;;  %v6954_v15 = vld [vmem:[#allocation34_spill] sm:$0xff]  ;;  %v6955_v20 = vld [vmem:[#allocation32_spill] sm:$0xff] }
  0xfe   :  { %v731_v4 = vpack.c.bf16 %v729_v55, %v729_v55  ;;  %v6956_v55 = vld [vmem:[#allocation84_spill] sm:$0xff] }
  0xff   :  { %v4410_v54 = vld [vmem:[#allocation2 + $0x4] sm:$0xf] }
 0x100   :  { %733 = vst [vmem:[#allocation2 + $0xc] sm:$0xf] %v731_v4  ;;  %v3904_v29 = vld [vmem:[#allocation3] sm:$0xf] }
 0x101   :  { %735 = vst [vmem:[#allocation3 + $0x8] sm:$0xf] %v731_v4  ;;  %v6957_v4 = vld [vmem:[#allocation83_spill] sm:$0xff] }
 0x107   :  { %v4170_v22 = vld [vmem:[#allocation2 + $0x8] sm:$0xf0] }
 0x108   :  { %v4409_v46 = vld [vmem:[#allocation3 + $0x4] sm:$0xf0]  ;;  %v4173_v13 = vor.u32 %v4410_v54, %v4170_v22  ;;  %v6960_v54 = vld [vmem:[#allocation42_spill] sm:$0xff] }
 0x109   :  { %v3905_v9 = vor.u32 %v4409_v46, %v3904_v29  ;;  %v6961_v22 = vld [vmem:[#allocation40_spill] sm:$0xff]  ;;  %v6963_v46 = vld [vmem:[#allocation87_spill] sm:$0xff] }
 0x10a   :  { %1268 = vmatmul.bf16.vlgmr.msra.gmra.mxu1 %v4173_v13  ;;  %1296 = vmatmul.bf16.vlgmr.msra.gmra.mxu3 %v4173_v13  ;;  %v6962_v29 = vld [vmem:[#allocation88_spill] sm:$0xff] }
 0x10b   :  { %1085 = vmatmul.bf16.vlgmr.msra.gmra.mxu0 %v3905_v9  ;;  %1113 = vmatmul.bf16.vlgmr.msra.gmra.mxu2 %v3905_v9 }
 0x10c   :  { %1246 = vmatpush.bf16.msra.mxu0 %v4982_v10  ;;  %1274 = vmatpush.bf16.msra.mxu2 %v4978_v5 }
 0x10d   :  { %1426 = vmatpush.bf16.msra.mxu1 %v5178_v63  ;;  %1454 = vmatpush.bf16.msra.mxu3 %v5172_v61 }
 0x110   :  { %1247 = vmatpush.bf16.msra.mxu0 %v4993_v23  ;;  %1275 = vmatpush.bf16.msra.mxu2 %v4985_v14 }
 0x111   :  { %1427 = vmatpush.bf16.msra.mxu1 %v5189_v57  ;;  %1455 = vmatpush.bf16.msra.mxu3 %v5183_v53 }
 0x114   :  { %1248 = vmatpush.bf16.msra.mxu0 %v5005_v36  ;;  %1276 = vmatpush.bf16.msra.mxu2 %v4997_v30 }
 0x115   :  { %1428 = vmatpush.bf16.msra.mxu1 %v5197_v34  ;;  %1456 = vmatpush.bf16.msra.mxu3 %v5194_v1 }
 0x118   :  { %1249 = vmatpush.bf16.msra.mxu0 %v5017_v48  ;;  %1277 = vmatpush.bf16.msra.mxu2 %v5011_v44 }
 0x119   :  { %1429 = vmatpush.bf16.msra.mxu1 %v6952_v19  ;;  %1457 = vmatpush.bf16.msra.mxu3 %v6953_v0 }
 0x11a   :  { %1324 = vmatmul.bf16.vlgmr.msrb.gmra.mxu1 %v4173_v13  ;;  %1352 = vmatmul.bf16.vlgmr.msrb.gmra.mxu3 %v4173_v13  ;;  %v4169_v13 = vor.u32 %v4411_v21, %v4168_v60  ;;  %v6973_v60 = vld [vmem:[#allocation52_spill] sm:$0xff]  ;;  %v6974_v21 = vld [vmem:[#allocation93_spill] sm:$0xff] }
 0x11b   :  { %1141 = vmatmul.bf16.vlgmr.msrb.gmra.mxu0 %v3905_v9  ;;  %1169 = vmatmul.bf16.vlgmr.msrb.gmra.mxu2 %v3905_v9  ;;  %v6964_v9 = vld [vmem:[#allocation48_spill] sm:$0xff] }
 0x11c   :  { %1250 = vmatpush.bf16.msra.mxu0 %v6954_v15  ;;  %1278 = vmatpush.bf16.msra.mxu2 %v6955_v20 }
 0x11d   :  { %1430 = vmatpush.bf16.msra.mxu1 %v6956_v55  ;;  %1458 = vmatpush.bf16.msra.mxu3 %v6957_v4  ;;  %v6967_v4 = vld [vmem:[#allocation46_spill] sm:$0xff]  ;;  %v6970_v55 = vld [vmem:[#allocation92_spill] sm:$0xff] }
 0x120   :  { %1251 = vmatpush.bf16.msra.mxu0 %v6958_v37  ;;  %1279 = vmatpush.bf16.msra.mxu2 %v6959_v59 }
 0x121   :  { %1431 = vmatpush.bf16.msra.mxu1 %v5215_v12  ;;  %1459 = vmatpush.bf16.msra.mxu3 %v5212_v6  ;;  %v6968_v12 = vld [vmem:[#allocation91_spill] sm:$0xff]  ;;  %v6969_v6 = vld [vmem:[#allocation89_spill] sm:$0xff] }
 0x124   :  { %1252 = vmatpush.bf16.msra.mxu0 %v6960_v54  ;;  %1280 = vmatpush.bf16.msra.mxu2 %v6961_v22 }
 0x125   :  { %1432 = vmatpush.bf16.msra.mxu1 %v6962_v29  ;;  %1460 = vmatpush.bf16.msra.mxu3 %v6963_v46  ;;  %v6971_v29 = vld [vmem:[#allocation90_spill] sm:$0xff] }
 0x126   :  { %v6972_v46 = vld [vmem:[#allocation54_spill] sm:$0xff] }
 0x128   :  { %1253 = vmatpush.bf16.msra.mxu0 %v6964_v9  ;;  %1281 = vmatpush.bf16.msra.mxu2 %v6965_v17  ;;  %v6975_v17 = vld [vmem:[#allocation94_spill] sm:$0xff]  ;;  %v6980_v9 = vld [vmem:[#allocation61_spill] sm:$0xff] }
 0x129   :  { %1433 = vmatpush.bf16.msra.mxu1 %v6968_v12  ;;  %1461 = vmatpush.bf16.msra.mxu3 %v6969_v6  ;;  %v6978_v12 = vld [vmem:[#allocation95_spill] sm:$0xff]  ;;  %v6979_v6 = vld [vmem:[#allocation96_spill] sm:$0xff] }
 0x12b   :  { %1254 = vmatmul.bf16.vlgmr.msra.gmra.mxu0 %v4169_v13  ;;  %1282 = vmatmul.bf16.vlgmr.msra.gmra.mxu2 %v4169_v13 }
 0x12c   :  { %1302 = vmatpush.bf16.msrb.mxu0 %v6966_v56  ;;  %1330 = vmatpush.bf16.msrb.mxu2 %v6967_v4  ;;  %v6976_v56 = vld [vmem:[#allocation58_spill] sm:$0xff]  ;;  %v6977_v4 = vld [vmem:[#allocation56_spill] sm:$0xff] }
 0x12d   :  { %1482 = vmatpush.bf16.msrb.mxu1 %v6970_v55  ;;  %1510 = vmatpush.bf16.msrb.mxu3 %v6971_v29  ;;  %v6981_v55 = vld [vmem:[#allocation60_spill] sm:$0xff]  ;;  %v6982_v29 = vld [vmem:[#allocation97_spill] sm:$0xff] }
 0x130   :  { %1303 = vmatpush.bf16.msrb.mxu0 %v6972_v46  ;;  %1331 = vmatpush.bf16.msrb.mxu2 %v6973_v60  ;;  %v6983_v46 = vld [vmem:[#allocation98_spill] sm:$0xff]  ;;  %v6984_v60 = vld [vmem:[#allocation64_spill] sm:$0xff] }
 0x131   :  { %1483 = vmatpush.bf16.msrb.mxu1 %v6974_v21  ;;  %1511 = vmatpush.bf16.msrb.mxu3 %v6975_v17  ;;  %v6985_v21 = vld [vmem:[#allocation63_spill] sm:$0xff]  ;;  %v6986_v17 = vld [vmem:[#allocation101_spill] sm:$0xff] }
 0x134   :  { %1304 = vmatpush.bf16.msrb.mxu0 %v6976_v56  ;;  %1332 = vmatpush.bf16.msrb.mxu2 %v6977_v4  ;;  %v6987_v56 = vld [vmem:[#allocation102_spill] sm:$0xff] }
 0x135   :  { %1484 = vmatpush.bf16.msrb.mxu1 %v6978_v12  ;;  %1512 = vmatpush.bf16.msrb.mxu3 %v6979_v6  ;;  %v6988_v4 = vld [vmem:[#allocation66_spill] sm:$0xff]  ;;  %v6989_v12 = vld [vmem:[#allocation65_spill] sm:$0xff] }
 0x136   :  { %v6990_v6 = vld [vmem:[#allocation105_spill] sm:$0xff] }
 0x138   :  { %1305 = vmatpush.bf16.msrb.mxu0 %v6980_v9  ;;  %1333 = vmatpush.bf16.msrb.mxu2 %v6981_v55  ;;  %v6991_v9 = vld [vmem:[#allocation106_spill] sm:$0xff]  ;;  %v6992_v55 = vld [vmem:[#allocation69_spill] sm:$0xff] }
 0x139   :  { %1485 = vmatpush.bf16.msrb.mxu1 %v6982_v29  ;;  %1513 = vmatpush.bf16.msrb.mxu3 %v6983_v46  ;;  %v6993_v29 = vld [vmem:[#allocation67_spill] sm:$0xff]  ;;  %v6994_v46 = vld [vmem:[#allocation109_spill] sm:$0xff] }
 0x13c   :  { %1306 = vmatpush.bf16.msrb.mxu0 %v6984_v60  ;;  %1334 = vmatpush.bf16.msrb.mxu2 %v6985_v21  ;;  %v6995_v60 = vld [vmem:[#allocation110_spill] sm:$0xff]  ;;  %v6996_v21 = vld [vmem:[#allocation73_spill] sm:$0xff] }
 0x13d   :  { %1486 = vmatpush.bf16.msrb.mxu1 %v6986_v17  ;;  %1514 = vmatpush.bf16.msrb.mxu3 %v6987_v56  ;;  %v6997_v17 = vld [vmem:[#allocation71_spill] sm:$0xff] }
 0x13e   :  { %v6998_v56 = vld [vmem:[#allocation99_spill] sm:$0xff] }
 0x140   :  { %1307 = vmatpush.bf16.msrb.mxu0 %v6988_v4  ;;  %1335 = vmatpush.bf16.msrb.mxu2 %v6989_v12  ;;  %v6999_v4 = vld [vmem:[#allocation100_spill] sm:$0xff] }
 0x141   :  { %1487 = vmatpush.bf16.msrb.mxu1 %v6990_v6  ;;  %1515 = vmatpush.bf16.msrb.mxu3 %v6991_v9  ;;  %v7000_v6 = vld [vmem:[#allocation113_spill] sm:$0xff]  ;;  %v7001_v9 = vld [vmem:[#allocation114_spill] sm:$0xff] }
 0x144   :  { %1308 = vmatpush.bf16.msrb.mxu0 %v6992_v55  ;;  %1336 = vmatpush.bf16.msrb.mxu2 %v6993_v29  ;;  %v7002_v55 = vld [vmem:[#allocation103_spill] sm:$0xff]  ;;  %v7003_v29 = vld [vmem:[#allocation104_spill] sm:$0xff] }
 0x145   :  { %1488 = vmatpush.bf16.msrb.mxu1 %v6994_v46  ;;  %1516 = vmatpush.bf16.msrb.mxu3 %v6995_v60  ;;  %v7004_v46 = vld [vmem:[#allocation107_spill] sm:$0xff]  ;;  %v7005_v60 = vld [vmem:[#allocation108_spill] sm:$0xff] }
 0x148   :  { %1309 = vmatpush.bf16.msrb.mxu0 %v6996_v21  ;;  %1337 = vmatpush.bf16.msrb.mxu2 %v6997_v17  ;;  %v7006_v21 = vld [vmem:[#allocation111_spill] sm:$0xff]  ;;  %v7007_v17 = vld [vmem:[#allocation112_spill] sm:$0xff] }
 0x149   :  { %1489 = vmatpush.bf16.msrb.mxu1 %v7000_v6  ;;  %1517 = vmatpush.bf16.msrb.mxu3 %v7001_v9  ;;  %v7011_v6 = vld [vmem:[#allocation118_spill] sm:$0xff]  ;;  %v7012_v9 = vld [vmem:[#allocation120_spill] sm:$0xff] }
 0x14b   :  { %1310 = vmatmul.bf16.vlgmr.msrb.gmra.mxu0 %v4169_v13  ;;  %1338 = vmatmul.bf16.vlgmr.msrb.gmra.mxu2 %v4169_v13  ;;  %v7010_v13 = vld [vmem:[#allocation117_spill] sm:$0xff] }
 0x14c   :  { %1412 = vmatpush.bf16.msra.mxu0 %v6998_v56  ;;  %1440 = vmatpush.bf16.msra.mxu2 %v6999_v4  ;;  %v7008_v56 = vld [vmem:[#allocation115_spill] sm:$0xff]  ;;  %v7009_v4 = vld [vmem:[#allocation116_spill] sm:$0xff] }
 0x150   :  { %1413 = vmatpush.bf16.msra.mxu0 %v7002_v55  ;;  %1441 = vmatpush.bf16.msra.mxu2 %v7003_v29 }
 0x154   :  { %1414 = vmatpush.bf16.msra.mxu0 %v7004_v46  ;;  %1442 = vmatpush.bf16.msra.mxu2 %v7005_v60  ;;  %v7013_v46 = vld [vmem:[#allocation123_spill] sm:$0xff]  ;;  %v7014_v60 = vld [vmem:[#allocation124_spill] sm:$0xff] }
 0x158   :  { %1415 = vmatpush.bf16.msra.mxu0 %v7006_v21  ;;  %1443 = vmatpush.bf16.msra.mxu2 %v7007_v17  ;;  %v7015_v21 = vld [vmem:[#allocation125_spill] sm:$0xff] }
 0x15c   :  { %1416 = vmatpush.bf16.msra.mxu0 %v7008_v56  ;;  %1444 = vmatpush.bf16.msra.mxu2 %v7009_v4 }
 0x160   :  { %1417 = vmatpush.bf16.msra.mxu0 %v7010_v13  ;;  %1445 = vmatpush.bf16.msra.mxu2 %v7011_v6 }
 0x164   :  { %1418 = vmatpush.bf16.msra.mxu0 %v5328_v39  ;;  %1446 = vmatpush.bf16.msra.mxu2 %v7012_v9 }
 0x168   :  { %1419 = vmatpush.bf16.msra.mxu0 %v5340_v42  ;;  %1447 = vmatpush.bf16.msra.mxu2 %v7013_v46 }
 0x16c   :  { %1468 = vmatpush.bf16.msrb.mxu0 %v7014_v60  ;;  %1496 = vmatpush.bf16.msrb.mxu2 %v7015_v21 }
 0x170   :  { %1469 = vmatpush.bf16.msrb.mxu0 %v5355_v49  ;;  %1497 = vmatpush.bf16.msrb.mxu2 %v5361_v41 }
 0x174   :  { %1470 = vmatpush.bf16.msrb.mxu0 %v5366_v24  ;;  %1498 = vmatpush.bf16.msrb.mxu2 %v5371_v47  ;;  %v1100_v47 = vpop.f32.mrf.mxu1 }
 0x178   :  { %1471 = vmatpush.bf16.msrb.mxu0 %v5378_v2  ;;  %1499 = vmatpush.bf16.msrb.mxu2 %v5382_v43  ;;  %v232_v43 = vld [vmem:[%s6552_s4] sm:$0xf]  ;;  %v1128_v2 = vpop.f32.mrf.mxu3 }
 0x179   :  { %v5547_v42 = vperm.slane %v232_v43, 2 }
 0x17c   :  { %1472 = vmatpush.bf16.msrb.mxu0 %v5390_v18  ;;  %1500 = vmatpush.bf16.msrb.mxu2 %v5394_v11  ;;  %v5540_v11 = vperm.slane %v232_v43, 0  ;;  %v1102_v24 = vpop.f32.mrf.mxu1 }
 0x17e   :  { %7016 = vst [vmem:[#allocation141_spill] sm:$0xff] %v5540_v11 }
 0x180   :  { %1473 = vmatpush.bf16.msrb.mxu0 %v5401_v35  ;;  %1501 = vmatpush.bf16.msrb.mxu2 %v5403_v28  ;;  %v5542_v35 = vperm.slane %v232_v43, 1  ;;  %v1130_v49 = vpop.f32.mrf.mxu3 }
 0x182   :  { %7017 = vst [vmem:[#allocation142_spill] sm:$0xff] %v5542_v35 }
 0x184   :  { %1474 = vmatpush.bf16.msrb.mxu0 %v5410_v50  ;;  %1502 = vmatpush.bf16.msrb.mxu2 %v5412_v3 }
 0x188   :  { %1475 = vmatpush.bf16.msrb.mxu0 %v5419_v31  ;;  %1503 = vmatpush.bf16.msrb.mxu2 %v5421_v58  ;;  %v1086_v18 = vpop.f32.mrf.mxu0 }
 0x189   :  { %v1087_v50 = vadd.f32 %v1086_v18, %v5540_v11  ;;  %v1156_v18 = vpop.f32.mrf.mxu1 }
 0x18b   :  { %v1101_v58 = vadd.f32 %v1100_v47, %v1087_v50 }
 0x18d   :  { %v1189_v9 = vmul.f32 0.5, %v1101_v58 }
 0x18e   :  { %v1114_v28 = vpop.f32.mrf.mxu2 }
 0x18f   :  { %v1115_v3 = vadd.f32 %v1114_v28, %v5542_v35 }
 0x190   :  { %v1088_v31 = vpop.f32.mrf.mxu0 }
 0x191   :  { %v1129_v41 = vadd.f32 %v1128_v2, %v1115_v3  ;;  %v1089_v60 = vadd.f32 %v1088_v31, %v5540_v11  ;;  %v5551_v2 = vperm.slane %v232_v43, 3 }
 0x193   :  { %v1190_v21 = vmul.f32 0.5, %v1129_v41  ;;  %v1103_v4 = vadd.f32 %v1102_v24, %v1089_v60  ;;  %7018 = vst [vmem:[#allocation143_spill] sm:$0xff] %v5551_v2  ;;  %v1184_v41 = vpop.f32.mrf.mxu3 }
 0x195   :  { %4474 = vtanh.f32 %v1190_v21  ;;  %v1192_v50 = vmul.f32 0.5, %v1103_v4 }
 0x196   :  { %v1116_v46 = vpop.f32.mrf.mxu2  ;;  %4476 = vtanh.f32 %v1189_v9 }
 0x197   :  { %v1117_v39 = vadd.f32 %v1116_v46, %v5542_v35 }
 0x198   :  { %v1142_v6 = vpop.f32.mrf.mxu0 }
 0x199   :  { %v1131_v13 = vadd.f32 %v1130_v49, %v1117_v39  ;;  %v1143_v28 = vadd.f32 %v1142_v6, %v5547_v42  ;;  %v1158_v49 = vpop.f32.mrf.mxu1 }
 0x19b   :  { %v1193_v47 = vmul.f32 0.5, %v1131_v13  ;;  %v1157_v3 = vadd.f32 %v1156_v18, %v1143_v28  ;;  %v4475_v11 = vpop.eup %4474 }
 0x19c   :  { %v4477_v46 = vpop.eup %4476  ;;  %v1202_v24 = vmul.f32 0.5, %v4475_v11 }
 0x19d   :  { %4478 = vtanh.f32 %v1193_v47  ;;  %v1191_v6 = vmul.f32 0.5, %v1157_v3  ;;  %v1201_v43 = vmul.f32 0.5, %v4477_v46 }
 0x19e   :  { %v1170_v31 = vpop.f32.mrf.mxu2  ;;  %4480 = vtanh.f32 %v1192_v50  ;;  %v1208_v60 = vadd.f32 0.5, %v1202_v24 }
 0x19f   :  { %v1171_v58 = vadd.f32 %v1170_v31, %v5551_v2  ;;  %v1186_v31 = vpop.f32.mrf.mxu3  ;;  %v1207_v35 = vadd.f32 0.5, %v1201_v43 }
 0x1a0   :  { %v1144_v56 = vpop.f32.mrf.mxu0 }
 0x1a1   :  { %v1185_v21 = vadd.f32 %v1184_v41, %v1171_v58  ;;  %v1145_v39 = vadd.f32 %v1144_v56, %v5547_v42  ;;  %v1215_v56 = vmul.f32 0.0, %v1208_v60 }
 0x1a3   :  { %4482 = vtanh.f32 %v1185_v21  ;;  %v1159_v9 = vadd.f32 %v1158_v49, %v1145_v39  ;;  %v4479_v13 = vpop.eup %4478 }
 0x1a4   :  { %4484 = vtanh.f32 %v1191_v6  ;;  %v4481_v28 = vpop.eup %4480  ;;  %v1205_v11 = vmul.f32 0.5, %v4479_v13 }
 0x1a5   :  { %v1194_v41 = vmul.f32 0.5, %v1159_v9  ;;  %v1204_v21 = vmul.f32 0.5, %v4481_v28  ;;  %v1269_v9 = vpop.f32.mrf.mxu1 }
 0x1a6   :  { %v1172_v4 = vpop.f32.mrf.mxu2  ;;  %v1211_v39 = vadd.f32 0.5, %v1205_v11 }
 0x1a7   :  { %v1173_v18 = vadd.f32 %v1172_v4, %v5551_v2  ;;  %v1210_v6 = vadd.f32 0.5, %v1204_v21 }
 0x1a8   :  { %v1216_v4 = vmul.f32 0.0, %v1211_v39  ;;  %v1255_v60 = vpop.f32.mrf.mxu0 }
 0x1a9   :  { %v4483_v47 = vpop.eup %4482  ;;  %v1187_v58 = vadd.f32 %v1186_v31, %v1173_v18 }
 0x1aa   :  { %v1217_v50 = vmul.f32 %v4483_v47, %v1207_v35  ;;  %v4485_v3 = vpop.eup %4484  ;;  %v1297_v47 = vpop.f32.mrf.mxu3 }
 0x1ab   :  { %4486 = vtanh.f32 %v1187_v58  ;;  %v1203_v24 = vmul.f32 0.5, %v4485_v3  ;;  %v7021_v3 = vld [vmem:[#allocation121_spill] sm:$0xff] }
 0x1ac   :  { %v5556_v46 = vadd.f32 %v1217_v50, %v1215_v56  ;;  %4488 = vtanh.f32 %v1194_v41  ;;  %v1256_v21 = vadd.f32 %v1255_v60, %v7021_v3 }
 0x1ad   :  { %v1209_v18 = vadd.f32 0.5, %v1203_v24  ;;  %v1271_v39 = vpop.f32.mrf.mxu1 }
 0x1ae   :  { %7019 = vst [vmem:[#allocation144_spill] sm:$0xff] %v5556_v46  ;;  %4490 = vtanh.f32 %v5556_v46  ;;  %v1283_v28 = vpop.f32.mrf.mxu2 }
 0x1af   :  { %v1284_v56 = vadd.f32 %v1283_v28, %v5326_v45 }
 0x1b1   :  { %v4487_v49 = vpop.eup %4486 }
 0x1b2   :  { %v1218_v43 = vmul.f32 %v4487_v49, %v1210_v6  ;;  %v4489_v2 = vpop.eup %4488  ;;  %v1257_v6 = vpop.f32.mrf.mxu0  ;;  %v1298_v49 = vadd.f32 %v1297_v47, %v1284_v56 }
 0x1b3   :  { %v1206_v58 = vmul.f32 0.5, %v4489_v2  ;;  %v1258_v2 = vadd.f32 %v1257_v6, %v7021_v3 }
 0x1b4   :  { %v4491_v13 = vpop.eup %4490  ;;  %v5559_v35 = vadd.f32 %v1218_v43, %v1216_v4 }
 0x1b5   :  { %v1223_v31 = vmul.f32 %v4491_v13, %v1209_v18  ;;  %v1212_v11 = vadd.f32 0.5, %v1206_v58  ;;  %v1270_v18 = vadd.f32 %v1269_v9, %v1256_v21  ;;  %v1299_v13 = vpop.f32.mrf.mxu3  ;;  %v1325_v46 = vpop.f32.mrf.mxu1  ;;  %v1272_v60 = vadd.f32 %v1271_v39, %v1258_v2 }
 0x1b6   :  { %7020 = vst [vmem:[#allocation145_spill] sm:$0xff] %v5559_v35  ;;  %4492 = vtanh.f32 %v5559_v35  ;;  %v1285_v43 = vpop.f32.mrf.mxu2  ;;  %v1359_v35 = vmul.f32 0.5, %v1298_v49 }
 0x1b7   :  { %v1225_v41 = vpack.c.bf16 %v1223_v31, %v1223_v31  ;;  %v1286_v31 = vadd.f32 %v1285_v43, %v5326_v45  ;;  %v7022_v43 = vld [vmem:[#allocation132_spill] sm:$0xff] }
 0x1b8   :  { %4494 = vtanh.f32 %v1359_v35  ;;  %v7023_v35 = vld [vmem:[#allocation22_spill] sm:$0xff] }
 0x1b9   :  { %1227 = vst [vmem:[#allocation3 + $0x4] sm:$0xf] %v1225_v41  ;;  %v1358_v41 = vmul.f32 0.5, %v1270_v18  ;;  %v1300_v58 = vadd.f32 %v1299_v13, %v1286_v31  ;;  %v7024_v13 = vld [vmem:[#allocation20_spill] sm:$0xff] }
 0x1bb   :  { %4496 = vtanh.f32 %v1358_v41  ;;  %v1362_v9 = vmul.f32 0.5, %v1300_v58 }
 0x1bc   :  { %v4493_v50 = vpop.eup %4492 }
 0x1bd   :  { %v1224_v24 = vmul.f32 %v4493_v50, %v1212_v11  ;;  %v1353_v21 = vpop.f32.mrf.mxu3  ;;  %4498 = vtanh.f32 %v1362_v9 }
 0x1be   :  { %v4495_v6 = vpop.eup %4494 }
 0x1bf   :  { %v1226_v4 = vpack.c.bf16 %v1224_v24, %v1224_v24  ;;  %v1361_v24 = vmul.f32 0.5, %v1272_v60  ;;  %v7026_v60 = vld [vmem:[#allocation21_spill] sm:$0xff] }
 0x1c0   :  { %v4412_v47 = vld [vmem:[#allocation3 + $0x4] sm:$0xf] }
 0x1c1   :  { %1228 = vst [vmem:[#allocation3 + $0xc] sm:$0xf] %v1226_v4  ;;  %v4497_v31 = vpop.eup %4496  ;;  %4500 = vtanh.f32 %v1361_v24 }
 0x1c8   :  { %v1311_v28 = vpop.f32.mrf.mxu0  ;;  %v4178_v56 = vld [vmem:[#allocation3 + $0x8] sm:$0xf0] }
 0x1c9   :  { %v1312_v11 = vadd.f32 %v1311_v28, %v5374_v8  ;;  %v4181_v50 = vor.u32 %v4412_v47, %v4178_v56  ;;  %v1371_v28 = vmul.f32 0.5, %v4495_v6  ;;  %v1370_v47 = vmul.f32 0.5, %v4497_v31 }
 0x1cb   :  { %v1326_v49 = vadd.f32 %v1325_v46, %v1312_v11  ;;  %1434 = vmatmul.bf16.vlgmr.msra.gmra.mxu1 %v4181_v50  ;;  %1462 = vmatmul.bf16.vlgmr.msra.gmra.mxu3 %v4181_v50  ;;  %v7025_v46 = vld [vmem:[#allocation24_spill] sm:$0xff]  ;;  %v1327_v11 = vpop.f32.mrf.mxu1  ;;  %v1376_v6 = vadd.f32 0.5, %v1370_v47 }
 0x1cc   :  { %1595 = vmatpush.bf16.msra.mxu1 %v7023_v35  ;;  %1623 = vmatpush.bf16.msra.mxu3 %v7024_v13  ;;  %v4499_v35 = vpop.eup %4498 }
 0x1cd   :  { %v1360_v58 = vmul.f32 0.5, %v1326_v49  ;;  %v4501_v24 = vpop.eup %4500  ;;  %v1355_v49 = vpop.f32.mrf.mxu3  ;;  %v1374_v31 = vmul.f32 0.5, %v4499_v35 }
 0x1ce   :  { %v1339_v4 = vpop.f32.mrf.mxu2 }
 0x1cf   :  { %v1340_v18 = vadd.f32 %v1339_v4, %v7022_v43  ;;  %v1377_v4 = vadd.f32 0.5, %v1371_v28  ;;  %v7029_v28 = vld [vmem:[#allocation31_spill] sm:$0xff] }
 0x1d0   :  { %v1313_v39 = vpop.f32.mrf.mxu0  ;;  %1596 = vmatpush.bf16.msra.mxu1 %v7025_v46  ;;  %1624 = vmatpush.bf16.msra.mxu3 %v7026_v60 }
 0x1d1   :  { %v1354_v2 = vadd.f32 %v1353_v21, %v1340_v18  ;;  %v1314_v41 = vadd.f32 %v1313_v39, %v5374_v8  ;;  %v7027_v21 = vld [vmem:[#allocation27_spill] sm:$0xff]  ;;  %v7028_v18 = vld [vmem:[#allocation25_spill] sm:$0xff]  ;;  %v1384_v60 = vmul.f32 %v1377_v4, %v5425_v62 }
 0x1d2   :  { %v7032_v62 = vld [vmem:[#allocation33_spill] sm:$0xff] }
 0x1d3   :  { %4502 = vtanh.f32 %v1354_v2  ;;  %v1328_v56 = vadd.f32 %v1327_v11, %v1314_v41  ;;  %v1373_v11 = vmul.f32 0.5, %v4501_v24 }
 0x1d4   :  { %4504 = vtanh.f32 %v1360_v58  ;;  %1597 = vmatpush.bf16.msra.mxu1 %v7027_v21  ;;  %1625 = vmatpush.bf16.msra.mxu3 %v7028_v18  ;;  %v7030_v58 = vld [vmem:[#allocation29_spill] sm:$0xff]  ;;  %v1380_v18 = vadd.f32 0.5, %v1374_v31 }
 0x1d5   :  { %v1363_v2 = vmul.f32 0.5, %v1328_v56  ;;  %v7031_v56 = vld [vmem:[#allocation35_spill] sm:$0xff]  ;;  %v1379_v35 = vadd.f32 0.5, %v1373_v11  ;;  %v7036_v11 = vld [vmem:[#allocation41_spill] sm:$0xff] }
 0x1d6   :  { %v1341_v13 = vpop.f32.mrf.mxu2  ;;  %v1385_v4 = vmul.f32 %v1380_v18, %v5434_v38  ;;  %v7037_v18 = vld [vmem:[#allocation50_spill] sm:$0xff] }
 0x1d7   :  { %v1342_v9 = vadd.f32 %v1341_v13, %v7022_v43 }
 0x1d8   :  { %1598 = vmatpush.bf16.msra.mxu1 %v7029_v28  ;;  %1626 = vmatpush.bf16.msra.mxu3 %v7030_v58 }
 0x1d9   :  { %v4503_v39 = vpop.eup %4502  ;;  %v1356_v46 = vadd.f32 %v1355_v49, %v1342_v9 }
 0x1da   :  { %v1386_v41 = vmul.f32 %v4503_v39, %v1376_v6  ;;  %v4505_v13 = vpop.eup %4504  ;;  %v7034_v6 = vld [vmem:[#allocation37_spill] sm:$0xff] }
 0x1db   :  { %4506 = vtanh.f32 %v1356_v46  ;;  %1490 = vmatmul.bf16.vlgmr.msrb.gmra.mxu1 %v4181_v50  ;;  %1518 = vmatmul.bf16.vlgmr.msrb.gmra.mxu3 %v4181_v50  ;;  %v1372_v47 = vmul.f32 0.5, %v4505_v13  ;;  %v7035_v13 = vld [vmem:[#allocation43_spill] sm:$0xff] }
 0x1dc   :  { %v5579_v21 = vadd.f32 %v1386_v41, %v1384_v60  ;;  %4508 = vtanh.f32 %v1363_v2  ;;  %1599 = vmatpush.bf16.msra.mxu1 %v7031_v56  ;;  %1627 = vmatpush.bf16.msra.mxu3 %v7032_v62  ;;  %v7033_v60 = vld [vmem:[#allocation39_spill] sm:$0xff] }
 0x1dd   :  { %v1378_v24 = vadd.f32 0.5, %v1372_v47  ;;  %v7038_v47 = vld [vmem:[#allocation45_spill] sm:$0xff] }
 0x1de   :  { %4510 = vtanh.f32 %v5579_v21 }
 0x1e0   :  { %1600 = vmatpush.bf16.msra.mxu1 %v7033_v60  ;;  %1628 = vmatpush.bf16.msra.mxu3 %v7034_v6 }
 0x1e1   :  { %v4507_v46 = vpop.eup %4506 }
 0x1e2   :  { %v1387_v9 = vmul.f32 %v4507_v46, %v1379_v35  ;;  %v4509_v49 = vpop.eup %4508  ;;  %v7039_v46 = vld [vmem:[#allocation51_spill] sm:$0xff] }
 0x1e3   :  { %v1375_v41 = vmul.f32 0.5, %v4509_v49  ;;  %v7042_v49 = vld [vmem:[#allocation53_spill] sm:$0xff] }
 0x1e4   :  { %v4511_v39 = vpop.eup %4510  ;;  %v5587_v2 = vadd.f32 %v1387_v9, %v1385_v4  ;;  %1601 = vmatpush.bf16.msra.mxu1 %v7035_v13  ;;  %1629 = vmatpush.bf16.msra.mxu3 %v7036_v11  ;;  %v7040_v4 = vld [vmem:[#allocation47_spill] sm:$0xff] }
 0x1e5   :  { %v1392_v50 = vmul.f32 %v4511_v39, %v1378_v24  ;;  %v1381_v38 = vadd.f32 0.5, %v1375_v41  ;;  %v7041_v39 = vld [vmem:[#allocation55_spill] sm:$0xff] }
 0x1e6   :  { %4512 = vtanh.f32 %v5587_v2 }
 0x1e7   :  { %v1394_v31 = vpack.c.bf16 %v1392_v50, %v1392_v50  ;;  %v7043_v50 = vld [vmem:[#allocation59_spill] sm:$0xff] }
 0x1e8   :  { %1602 = vmatpush.bf16.msra.mxu1 %v7037_v18  ;;  %1630 = vmatpush.bf16.msra.mxu3 %v7038_v47 }
 0x1e9   :  { %1396 = vst [vmem:[#allocation2 + $0x4] sm:$0xf] %v1394_v31 }
 0x1ea   :  { %1398 = vst [vmem:[#allocation3] sm:$0xf] %v1394_v31  ;;  %v7044_v31 = vld [vmem:[#allocation57_spill] sm:$0xff] }
 0x1ec   :  { %v4513_v35 = vpop.eup %4512  ;;  %1651 = vmatpush.bf16.msrb.mxu1 %v7039_v46  ;;  %1679 = vmatpush.bf16.msrb.mxu3 %v7040_v4 }
 0x1ed   :  { %v1393_v9 = vmul.f32 %v4513_v35, %v1381_v38 }
 0x1ef   :  { %v1395_v24 = vpack.c.bf16 %v1393_v9, %v1393_v9  ;;  %v4184_v9 = vld [vmem:[#allocation2] sm:$0xf] }
 0x1f0   :  { %1652 = vmatpush.bf16.msrb.mxu1 %v7041_v39  ;;  %1680 = vmatpush.bf16.msrb.mxu3 %v7042_v49  ;;  %v4414_v41 = vld [vmem:[#allocation2 + $0x4] sm:$0xf]  ;;  %v1901_v49 = vld [vmem:[#allocation7 + $0x1c] sm:$0xf] }
 0x1f1   :  { %1397 = vst [vmem:[#allocation2 + $0xc] sm:$0xf] %v1395_v24  ;;  %v4176_v47 = vld [vmem:[#allocation3] sm:$0xf] }
 0x1f2   :  { %1399 = vst [vmem:[#allocation3 + $0x8] sm:$0xf] %v1395_v24  ;;  %v1900_v24 = vld [vmem:[#allocation7 + $0x18] sm:$0xf] }
 0x1f3   :  { %1902 = vst [vmem:[#allocation2] sm:$0xf] %v1900_v24  ;;  %v7051_v24 = vld [vmem:[#allocation54_spill] sm:$0xff] }
 0x1f4   :  { %1653 = vmatpush.bf16.msrb.mxu1 %v7043_v50  ;;  %1681 = vmatpush.bf16.msrb.mxu3 %v7044_v31 }
 0x1f8   :  { %1654 = vmatpush.bf16.msrb.mxu1 %v5125_v51  ;;  %1682 = vmatpush.bf16.msrb.mxu3 %v5119_v33  ;;  %v4186_v46 = vld [vmem:[#allocation2 + $0x8] sm:$0xf0]  ;;  %v4415_v51 = vld [vmem:[#allocation2 + $0x4] sm:$0xf0] }
 0x1f9   :  { %v4413_v4 = vld [vmem:[#allocation3 + $0x4] sm:$0xf0]  ;;  %v4189_v38 = vor.u32 %v4414_v41, %v4186_v46  ;;  %1903 = vst [vmem:[#allocation2 + $0x8] sm:$0xf] %v1901_v49  ;;  %v7047_v49 = vld [vmem:[#allocation49_spill] sm:$0xff]  ;;  %v7048_v41 = vld [vmem:[#allocation46_spill] sm:$0xff] }
 0x1fa   :  { %v4177_v35 = vor.u32 %v4413_v4, %v4176_v47  ;;  %v4185_v47 = vor.u32 %v4415_v51, %v4184_v9  ;;  %v7045_v46 = vld [vmem:[#allocation48_spill] sm:$0xff]  ;;  %v7054_v51 = vld [vmem:[#allocation85_spill] sm:$0xff]  ;;  %v7055_v9 = vld [vmem:[#allocation58_spill] sm:$0xff] }
 0x1fb   :  { %1603 = vmatmul.bf16.vlgmr.msra.gmra.mxu1 %v4189_v38  ;;  %1631 = vmatmul.bf16.vlgmr.msra.gmra.mxu3 %v4189_v38  ;;  %v7046_v4 = vld [vmem:[#allocation44_spill] sm:$0xff] }
 0x1fc   :  { %1420 = vmatmul.bf16.vlgmr.msra.gmra.mxu0 %v4177_v35  ;;  %1448 = vmatmul.bf16.vlgmr.msra.gmra.mxu2 %v4177_v35 }
 0x1fd   :  { %1581 = vmatpush.bf16.msra.mxu0 %v4982_v10  ;;  %1609 = vmatpush.bf16.msra.mxu2 %v4978_v5 }
 0x1fe   :  { %1655 = vmatpush.bf16.msrb.mxu1 %v5137_v7  ;;  %1683 = vmatpush.bf16.msrb.mxu3 %v5131_v16 }
 0x201   :  { %1582 = vmatpush.bf16.msra.mxu0 %v4993_v23  ;;  %1610 = vmatpush.bf16.msra.mxu2 %v4985_v14 }
 0x202   :  { %1656 = vmatpush.bf16.msrb.mxu1 %v5149_v40  ;;  %1684 = vmatpush.bf16.msrb.mxu3 %v5143_v25 }
 0x205   :  { %1583 = vmatpush.bf16.msra.mxu0 %v5005_v36  ;;  %1611 = vmatpush.bf16.msra.mxu2 %v4997_v30 }
 0x206   :  { %1657 = vmatpush.bf16.msrb.mxu1 %v5161_v26  ;;  %1685 = vmatpush.bf16.msrb.mxu3 %v5155_v52 }
 0x209   :  { %1584 = vmatpush.bf16.msra.mxu0 %v5017_v48  ;;  %1612 = vmatpush.bf16.msra.mxu2 %v5011_v44 }
 0x20a   :  { %1658 = vmatpush.bf16.msrb.mxu1 %v5175_v32  ;;  %1686 = vmatpush.bf16.msrb.mxu3 %v5167_v27 }
 0x20c   :  { %1476 = vmatmul.bf16.vlgmr.msrb.gmra.mxu0 %v4177_v35  ;;  %1504 = vmatmul.bf16.vlgmr.msrb.gmra.mxu2 %v4177_v35  ;;  %v7050_v35 = vld [vmem:[#allocation83_spill] sm:$0xff] }
 0x20d   :  { %1585 = vmatpush.bf16.msra.mxu0 %v6954_v15  ;;  %1613 = vmatpush.bf16.msra.mxu2 %v6955_v20 }
 0x20e   :  { %1761 = vmatpush.bf16.msra.mxu1 %v5178_v63  ;;  %1789 = vmatpush.bf16.msra.mxu3 %v5172_v61 }
 0x20f   :  { %1659 = vmatmul.bf16.vlgmr.msrb.gmra.mxu1 %v4189_v38  ;;  %1687 = vmatmul.bf16.vlgmr.msrb.gmra.mxu3 %v4189_v38  ;;  %v7049_v38 = vld [vmem:[#allocation84_spill] sm:$0xff] }
 0x211   :  { %1586 = vmatpush.bf16.msra.mxu0 %v6958_v37  ;;  %1614 = vmatpush.bf16.msra.mxu2 %v6959_v59 }
 0x212   :  { %1762 = vmatpush.bf16.msra.mxu1 %v5189_v57  ;;  %1790 = vmatpush.bf16.msra.mxu3 %v5183_v53 }
 0x215   :  { %1587 = vmatpush.bf16.msra.mxu0 %v6960_v54  ;;  %1615 = vmatpush.bf16.msra.mxu2 %v6961_v22 }
 0x216   :  { %1763 = vmatpush.bf16.msra.mxu1 %v5197_v34  ;;  %1791 = vmatpush.bf16.msra.mxu3 %v5194_v1 }
 0x219   :  { %1588 = vmatpush.bf16.msra.mxu0 %v7045_v46  ;;  %1616 = vmatpush.bf16.msra.mxu2 %v7046_v4  ;;  %v7056_v4 = vld [vmem:[#allocation56_spill] sm:$0xff]  ;;  %v7061_v46 = vld [vmem:[#allocation91_spill] sm:$0xff] }
 0x21a   :  { %1764 = vmatpush.bf16.msra.mxu1 %v6952_v19  ;;  %1792 = vmatpush.bf16.msra.mxu3 %v6953_v0  ;;  %v7052_v19 = vld [vmem:[#allocation52_spill] sm:$0xff]  ;;  %v7053_v0 = vld [vmem:[#allocation86_spill] sm:$0xff] }
 0x21c   :  { %1589 = vmatmul.bf16.vlgmr.msra.gmra.mxu0 %v4185_v47  ;;  %1617 = vmatmul.bf16.vlgmr.msra.gmra.mxu2 %v4185_v47 }
 0x21d   :  { %1637 = vmatpush.bf16.msrb.mxu0 %v7047_v49  ;;  %1665 = vmatpush.bf16.msrb.mxu2 %v7048_v41  ;;  %v7057_v49 = vld [vmem:[#allocation88_spill] sm:$0xff]  ;;  %v7058_v41 = vld [vmem:[#allocation87_spill] sm:$0xff] }
 0x21e   :  { %1765 = vmatpush.bf16.msra.mxu1 %v7049_v38  ;;  %1793 = vmatpush.bf16.msra.mxu3 %v7050_v35  ;;  %v7059_v38 = vld [vmem:[#allocation61_spill] sm:$0xff]  ;;  %v7060_v35 = vld [vmem:[#allocation60_spill] sm:$0xff] }
 0x221   :  { %1638 = vmatpush.bf16.msrb.mxu0 %v7051_v24  ;;  %1666 = vmatpush.bf16.msrb.mxu2 %v7052_v19  ;;  %v7062_v24 = vld [vmem:[#allocation89_spill] sm:$0xff]  ;;  %v7063_v19 = vld [vmem:[#allocation92_spill] sm:$0xff] }
 0x222   :  { %1766 = vmatpush.bf16.msra.mxu1 %v7053_v0  ;;  %1794 = vmatpush.bf16.msra.mxu3 %v7054_v51  ;;  %v7064_v0 = vld [vmem:[#allocation90_spill] sm:$0xff]  ;;  %v7065_v51 = vld [vmem:[#allocation64_spill] sm:$0xff] }
 0x225   :  { %1639 = vmatpush.bf16.msrb.mxu0 %v7055_v9  ;;  %1667 = vmatpush.bf16.msrb.mxu2 %v7056_v4  ;;  %v7066_v9 = vld [vmem:[#allocation63_spill] sm:$0xff]  ;;  %v7067_v4 = vld [vmem:[#allocation93_spill] sm:$0xff] }
 0x226   :  { %1767 = vmatpush.bf16.msra.mxu1 %v7057_v49  ;;  %1795 = vmatpush.bf16.msra.mxu3 %v7058_v41  ;;  %v7068_v49 = vld [vmem:[#allocation94_spill] sm:$0xff] }
 0x227   :  { %v7069_v41 = vld [vmem:[#allocation66_spill] sm:$0xff] }
 0x229   :  { %1640 = vmatpush.bf16.msrb.mxu0 %v7059_v38  ;;  %1668 = vmatpush.bf16.msrb.mxu2 %v7060_v35  ;;  %v7070_v35 = vld [vmem:[#allocation95_spill] sm:$0xff] }
 0x22a   :  { %1768 = vmatpush.bf16.msra.mxu1 %v7061_v46  ;;  %1796 = vmatpush.bf16.msra.mxu3 %v7062_v24  ;;  %v7071_v46 = vld [vmem:[#allocation96_spill] sm:$0xff]  ;;  %v7072_v24 = vld [vmem:[#allocation69_spill] sm:$0xff] }
 0x22d   :  { %1641 = vmatpush.bf16.msrb.mxu0 %v7065_v51  ;;  %1669 = vmatpush.bf16.msrb.mxu2 %v7066_v9  ;;  %v7075_v51 = vld [vmem:[#allocation98_spill] sm:$0xff]  ;;  %v7076_v9 = vld [vmem:[#allocation73_spill] sm:$0xff] }
 0x22e   :  { %1817 = vmatpush.bf16.msrb.mxu1 %v7063_v19  ;;  %1845 = vmatpush.bf16.msrb.mxu3 %v7064_v0  ;;  %v7073_v19 = vld [vmem:[#allocation67_spill] sm:$0xff]  ;;  %v7074_v0 = vld [vmem:[#allocation97_spill] sm:$0xff] }
 0x231   :  { %1642 = vmatpush.bf16.msrb.mxu0 %v7069_v41  ;;  %1670 = vmatpush.bf16.msrb.mxu2 %v6989_v12  ;;  %v7079_v41 = vld [vmem:[#allocation100_spill] sm:$0xff]  ;;  %v7080_v12 = vld [vmem:[#allocation101_spill] sm:$0xff] }
 0x232   :  { %1818 = vmatpush.bf16.msrb.mxu1 %v7067_v4  ;;  %1846 = vmatpush.bf16.msrb.mxu3 %v7068_v49  ;;  %v7077_v4 = vld [vmem:[#allocation71_spill] sm:$0xff] }
 0x233   :  { %v7078_v49 = vld [vmem:[#allocation99_spill] sm:$0xff] }
 0x235   :  { %1643 = vmatpush.bf16.msrb.mxu0 %v7072_v24  ;;  %1671 = vmatpush.bf16.msrb.mxu2 %v7073_v19  ;;  %v7115_v19 = vld [vmem:[#allocation141_spill] sm:$0xff]  ;;  %v7116_v24 = vld [vmem:[#allocation142_spill] sm:$0xff] }
 0x236   :  { %1819 = vmatpush.bf16.msrb.mxu1 %v7070_v35  ;;  %1847 = vmatpush.bf16.msrb.mxu3 %v7071_v46  ;;  %v7081_v35 = vld [vmem:[#allocation102_spill] sm:$0xff] }
 0x239   :  { %1644 = vmatpush.bf16.msrb.mxu0 %v7076_v9  ;;  %1672 = vmatpush.bf16.msrb.mxu2 %v7077_v4  ;;  %v7084_v9 = vld [vmem:[#allocation107_spill] sm:$0xff]  ;;  %v7085_v4 = vld [vmem:[#allocation108_spill] sm:$0xff] }
 0x23a   :  { %1820 = vmatpush.bf16.msrb.mxu1 %v7074_v0  ;;  %1848 = vmatpush.bf16.msrb.mxu3 %v7075_v51  ;;  %v7082_v0 = vld [vmem:[#allocation105_spill] sm:$0xff]  ;;  %v7083_v51 = vld [vmem:[#allocation106_spill] sm:$0xff] }
 0x23c   :  { %1645 = vmatmul.bf16.vlgmr.msrb.gmra.mxu0 %v4185_v47  ;;  %1673 = vmatmul.bf16.vlgmr.msrb.gmra.mxu2 %v4185_v47  ;;  %v7089_v47 = vld [vmem:[#allocation113_spill] sm:$0xff] }
 0x23d   :  { %1747 = vmatpush.bf16.msra.mxu0 %v7078_v49  ;;  %1775 = vmatpush.bf16.msra.mxu2 %v7079_v41  ;;  %v7086_v49 = vld [vmem:[#allocation109_spill] sm:$0xff]  ;;  %v7087_v41 = vld [vmem:[#allocation110_spill] sm:$0xff] }
 0x23e   :  { %1821 = vmatpush.bf16.msrb.mxu1 %v7080_v12  ;;  %1849 = vmatpush.bf16.msrb.mxu3 %v7081_v35  ;;  %v7088_v12 = vld [vmem:[#allocation111_spill] sm:$0xff] }
 0x241   :  { %1748 = vmatpush.bf16.msra.mxu0 %v7002_v55  ;;  %1776 = vmatpush.bf16.msra.mxu2 %v7003_v29  ;;  %v7090_v55 = vld [vmem:[#allocation114_spill] sm:$0xff]  ;;  %v7091_v29 = vld [vmem:[#allocation115_spill] sm:$0xff] }
 0x242   :  { %1822 = vmatpush.bf16.msrb.mxu1 %v7082_v0  ;;  %1850 = vmatpush.bf16.msrb.mxu3 %v7083_v51  ;;  %v7092_v0 = vld [vmem:[#allocation116_spill] sm:$0xff]  ;;  %v7093_v51 = vld [vmem:[#allocation117_spill] sm:$0xff] }
 0x245   :  { %1749 = vmatpush.bf16.msra.mxu0 %v7084_v9  ;;  %1777 = vmatpush.bf16.msra.mxu2 %v7085_v4  ;;  %v7094_v9 = vld [vmem:[#allocation118_spill] sm:$0xff]  ;;  %v7095_v4 = vld [vmem:[#allocation119_spill] sm:$0xff] }
 0x246   :  { %1823 = vmatpush.bf16.msrb.mxu1 %v7086_v49  ;;  %1851 = vmatpush.bf16.msrb.mxu3 %v7087_v41  ;;  %v7096_v49 = vld [vmem:[#allocation120_spill] sm:$0xff]  ;;  %v7097_v41 = vld [vmem:[#allocation122_spill] sm:$0xff] }
 0x249   :  { %1750 = vmatpush.bf16.msra.mxu0 %v7088_v12  ;;  %1778 = vmatpush.bf16.msra.mxu2 %v7007_v17  ;;  %v7098_v12 = vld [vmem:[#allocation123_spill] sm:$0xff]  ;;  %v7099_v17 = vld [vmem:[#allocation124_spill] sm:$0xff] }
 0x24a   :  { %1824 = vmatpush.bf16.msrb.mxu1 %v7089_v47  ;;  %1852 = vmatpush.bf16.msrb.mxu3 %v7090_v55  ;;  %v7100_v47 = vld [vmem:[#allocation125_spill] sm:$0xff]  ;;  %v7101_v55 = vld [vmem:[#allocation126_spill] sm:$0xff] }
 0x24d   :  { %1751 = vmatpush.bf16.msra.mxu0 %v7091_v29  ;;  %1779 = vmatpush.bf16.msra.mxu2 %v7092_v0  ;;  %v7102_v29 = vld [vmem:[#allocation127_spill] sm:$0xff]  ;;  %v7103_v0 = vld [vmem:[#allocation128_spill] sm:$0xff] }
 0x24e   :  { %v1463_v35 = vpop.f32.mrf.mxu3 }
 0x251   :  { %1752 = vmatpush.bf16.msra.mxu0 %v7093_v51  ;;  %1780 = vmatpush.bf16.msra.mxu2 %v7094_v9  ;;  %v7104_v51 = vld [vmem:[#allocation129_spill] sm:$0xff]  ;;  %v7105_v9 = vld [vmem:[#allocation130_spill] sm:$0xff] }
 0x255   :  { %1753 = vmatpush.bf16.msra.mxu0 %v7095_v4  ;;  %1781 = vmatpush.bf16.msra.mxu2 %v7096_v49  ;;  %v7106_v4 = vld [vmem:[#allocation131_spill] sm:$0xff]  ;;  %v7107_v49 = vld [vmem:[#allocation133_spill] sm:$0xff] }
 0x256   :  { %v1465_v22 = vpop.f32.mrf.mxu3 }
 0x259   :  { %1754 = vmatpush.bf16.msra.mxu0 %v7097_v41  ;;  %1782 = vmatpush.bf16.msra.mxu2 %v7098_v12  ;;  %v7108_v41 = vld [vmem:[#allocation134_spill] sm:$0xff]  ;;  %v7109_v12 = vld [vmem:[#allocation135_spill] sm:$0xff] }
 0x25d   :  { %1803 = vmatpush.bf16.msrb.mxu0 %v7099_v17  ;;  %1831 = vmatpush.bf16.msrb.mxu2 %v7100_v47  ;;  %v7110_v17 = vld [vmem:[#allocation136_spill] sm:$0xff]  ;;  %v7111_v47 = vld [vmem:[#allocation137_spill] sm:$0xff] }
 0x25e   :  { %v1519_v53 = vpop.f32.mrf.mxu3 }
 0x261   :  { %1804 = vmatpush.bf16.msrb.mxu0 %v7101_v55  ;;  %1832 = vmatpush.bf16.msrb.mxu2 %v7102_v29  ;;  %v7112_v55 = vld [vmem:[#allocation138_spill] sm:$0xff]  ;;  %v7113_v29 = vld [vmem:[#allocation139_spill] sm:$0xff] }
 0x265   :  { %1805 = vmatpush.bf16.msrb.mxu0 %v7103_v0  ;;  %1833 = vmatpush.bf16.msrb.mxu2 %v7104_v51  ;;  %v7114_v0 = vld [vmem:[#allocation140_spill] sm:$0xff]  ;;  %v1435_v51 = vpop.f32.mrf.mxu1 }
 0x269   :  { %1806 = vmatpush.bf16.msrb.mxu0 %v7105_v9  ;;  %1834 = vmatpush.bf16.msrb.mxu2 %v7106_v4 }
 0x26d   :  { %1807 = vmatpush.bf16.msrb.mxu0 %v7107_v49  ;;  %1835 = vmatpush.bf16.msrb.mxu2 %v7108_v41  ;;  %v1437_v46 = vpop.f32.mrf.mxu1 }
 0x271   :  { %1808 = vmatpush.bf16.msrb.mxu0 %v7109_v12  ;;  %1836 = vmatpush.bf16.msrb.mxu2 %v7110_v17 }
 0x275   :  { %1809 = vmatpush.bf16.msrb.mxu0 %v7111_v47  ;;  %1837 = vmatpush.bf16.msrb.mxu2 %v7112_v55  ;;  %v1491_v59 = vpop.f32.mrf.mxu1 }
 0x279   :  { %1810 = vmatpush.bf16.msrb.mxu0 %v7113_v29  ;;  %1838 = vmatpush.bf16.msrb.mxu2 %v7114_v0  ;;  %v1421_v9 = vpop.f32.mrf.mxu0 }
 0x27a   :  { %v1422_v49 = vadd.f32 %v1421_v9, %v7115_v19 }
 0x27c   :  { %v1436_v17 = vadd.f32 %v1435_v51, %v1422_v49  ;;  %v7117_v51 = vld [vmem:[#allocation143_spill] sm:$0xff] }
 0x27e   :  { %v1524_v29 = vmul.f32 0.5, %v1436_v17 }
 0x27f   :  { %v1449_v4 = vpop.f32.mrf.mxu2 }
 0x280   :  { %v1450_v41 = vadd.f32 %v1449_v4, %v7116_v24 }
 0x281   :  { %v1423_v12 = vpop.f32.mrf.mxu0 }
 0x282   :  { %v1464_v38 = vadd.f32 %v1463_v35, %v1450_v41  ;;  %v1424_v55 = vadd.f32 %v1423_v12, %v7115_v19 }
 0x284   :  { %v1525_v47 = vmul.f32 0.5, %v1464_v38  ;;  %v1438_v37 = vadd.f32 %v1437_v46, %v1424_v55 }
 0x286   :  { %4514 = vtanh.f32 %v1525_v47  ;;  %v1527_v41 = vmul.f32 0.5, %v1438_v37 }
 0x287   :  { %v1451_v54 = vpop.f32.mrf.mxu2  ;;  %4516 = vtanh.f32 %v1524_v29 }
 0x288   :  { %v1452_v0 = vadd.f32 %v1451_v54, %v7116_v24 }
 0x289   :  { %v1477_v1 = vpop.f32.mrf.mxu0 }
 0x28a   :  { %v1466_v34 = vadd.f32 %v1465_v22, %v1452_v0  ;;  %v1478_v9 = vadd.f32 %v1477_v1, %v5547_v42  ;;  %v1493_v1 = vpop.f32.mrf.mxu1 }
 0x28c   :  { %v1528_v4 = vmul.f32 0.5, %v1466_v34  ;;  %v1492_v49 = vadd.f32 %v1491_v59, %v1478_v9  ;;  %v4515_v38 = vpop.eup %4514 }
 0x28d   :  { %v4517_v17 = vpop.eup %4516  ;;  %v1537_v0 = vmul.f32 0.5, %v4515_v38 }
 0x28e   :  { %4518 = vtanh.f32 %v1528_v4  ;;  %v1526_v55 = vmul.f32 0.5, %v1492_v49  ;;  %v1536_v22 = vmul.f32 0.5, %v4517_v17 }
 0x28f   :  { %v1505_v35 = vpop.f32.mrf.mxu2  ;;  %4520 = vtanh.f32 %v1527_v41  ;;  %v1543_v29 = vadd.f32 0.5, %v1537_v0 }
 0x290   :  { %v1506_v12 = vadd.f32 %v1505_v35, %v7117_v51  ;;  %v1521_v35 = vpop.f32.mrf.mxu3  ;;  %v1542_v24 = vadd.f32 0.5, %v1536_v22  ;;  %v7119_v22 = vld [vmem:[#allocation145_spill] sm:$0xff] }
 0x291   :  { %v1479_v19 = vpop.f32.mrf.mxu0 }
 0x292   :  { %v1520_v54 = vadd.f32 %v1519_v53, %v1506_v12  ;;  %v1480_v47 = vadd.f32 %v1479_v19, %v5547_v42  ;;  %v7118_v19 = vld [vmem:[#allocation144_spill] sm:$0xff] }
 0x293   :  { %v1550_v38 = vmul.f32 %v1543_v29, %v7118_v19 }
 0x294   :  { %4522 = vtanh.f32 %v1520_v54  ;;  %v1494_v34 = vadd.f32 %v1493_v1, %v1480_v47  ;;  %v4519_v59 = vpop.eup %4518 }
 0x295   :  { %4524 = vtanh.f32 %v1526_v55  ;;  %v4521_v9 = vpop.eup %4520  ;;  %v1540_v41 = vmul.f32 0.5, %v4519_v59 }
 0x296   :  { %v1529_v53 = vmul.f32 0.5, %v1494_v34  ;;  %v1539_v17 = vmul.f32 0.5, %v4521_v9 }
 0x297   :  { %v1507_v37 = vpop.f32.mrf.mxu2  ;;  %v1546_v0 = vadd.f32 0.5, %v1540_v41 }
 0x298   :  { %v1508_v46 = vadd.f32 %v1507_v37, %v7117_v51  ;;  %v1545_v1 = vadd.f32 0.5, %v1539_v17 }
 0x299   :  { %v1551_v51 = vmul.f32 %v1546_v0, %v7119_v22  ;;  %v1590_v59 = vpop.f32.mrf.mxu0 }
 0x29a   :  { %v4523_v4 = vpop.eup %4522  ;;  %v1522_v12 = vadd.f32 %v1521_v35, %v1508_v46  ;;  %v1604_v35 = vpop.f32.mrf.mxu1  ;;  %v1591_v17 = vadd.f32 %v1590_v59, %v7021_v3 }
 0x29b   :  { %v1552_v49 = vmul.f32 %v4523_v4, %v1542_v24  ;;  %v4525_v54 = vpop.eup %4524 }
 0x29c   :  { %4526 = vtanh.f32 %v1522_v12  ;;  %v1538_v55 = vmul.f32 0.5, %v4525_v54 }
 0x29d   :  { %v5715_v47 = vadd.f32 %v1552_v49, %v1550_v38  ;;  %4528 = vtanh.f32 %v1529_v53  ;;  %v1632_v53 = vpop.f32.mrf.mxu3 }
 0x29e   :  { %v1544_v29 = vadd.f32 0.5, %v1538_v55 }
 0x29f   :  { %4530 = vtanh.f32 %v5715_v47  ;;  %v1618_v12 = vpop.f32.mrf.mxu2 }
 0x2a0   :  { %v1619_v41 = vadd.f32 %v1618_v12, %v5326_v45 }
 0x2a2   :  { %v4527_v37 = vpop.eup %4526  ;;  %v1606_v0 = vpop.f32.mrf.mxu1 }
 0x2a3   :  { %v1553_v34 = vmul.f32 %v4527_v37, %v1545_v1  ;;  %v4529_v46 = vpop.eup %4528  ;;  %v1592_v1 = vpop.f32.mrf.mxu0  ;;  %v1633_v37 = vadd.f32 %v1632_v53, %v1619_v41 }
 0x2a4   :  { %v1541_v38 = vmul.f32 0.5, %v4529_v46  ;;  %v1593_v46 = vadd.f32 %v1592_v1, %v7021_v3 }
 0x2a5   :  { %v4531_v24 = vpop.eup %4530  ;;  %v5719_v4 = vadd.f32 %v1553_v34, %v1551_v51  ;;  %v1605_v34 = vadd.f32 %v1604_v35, %v1591_v17 }
 0x2a6   :  { %v1558_v9 = vmul.f32 %v4531_v24, %v1544_v29  ;;  %v1547_v49 = vadd.f32 0.5, %v1541_v38  ;;  %v1634_v29 = vpop.f32.mrf.mxu3  ;;  %v1694_v24 = vmul.f32 0.5, %v1633_v37  ;;  %v1607_v59 = vadd.f32 %v1606_v0, %v1593_v46 }
 0x2a7   :  { %7120 = vst [vmem:[#allocation121_spill] sm:$0xff] %v5719_v4  ;;  %4532 = vtanh.f32 %v5719_v4  ;;  %v1620_v22 = vpop.f32.mrf.mxu2 }
 0x2a8   :  { %v1560_v19 = vpack.c.bf16 %v1558_v9, %v1558_v9  ;;  %v1621_v9 = vadd.f32 %v1620_v22, %v5326_v45  ;;  %4534 = vtanh.f32 %v1694_v24 }
 0x2aa   :  { %1562 = vst [vmem:[#allocation3 + $0x4] sm:$0xf] %v1560_v19  ;;  %v1693_v19 = vmul.f32 0.5, %v1605_v34  ;;  %v1635_v38 = vadd.f32 %v1634_v29, %v1621_v9  ;;  %v1660_v4 = vpop.f32.mrf.mxu1  ;;  %v7121_v34 = vld [vmem:[#allocation22_spill] sm:$0xff]  ;;  %v7122_v29 = vld [vmem:[#allocation20_spill] sm:$0xff] }
 0x2ac   :  { %4536 = vtanh.f32 %v1693_v19  ;;  %v1697_v35 = vmul.f32 0.5, %v1635_v38  ;;  %v7124_v38 = vld [vmem:[#allocation21_spill] sm:$0xff] }
 0x2ad   :  { %v4533_v54 = vpop.eup %4532 }
 0x2ae   :  { %v1559_v55 = vmul.f32 %v4533_v54, %v1547_v49  ;;  %v1688_v17 = vpop.f32.mrf.mxu3  ;;  %v4535_v1 = vpop.eup %4534  ;;  %4538 = vtanh.f32 %v1697_v35 }
 0x2af   :  { %v1706_v19 = vmul.f32 0.5, %v4535_v1 }
 0x2b0   :  { %v1561_v51 = vpack.c.bf16 %v1559_v55, %v1559_v55  ;;  %v1696_v55 = vmul.f32 0.5, %v1607_v59 }
 0x2b1   :  { %v4416_v53 = vld [vmem:[#allocation3 + $0x4] sm:$0xf] }
 0x2b2   :  { %1563 = vst [vmem:[#allocation3 + $0xc] sm:$0xf] %v1561_v51  ;;  %v4537_v24 = vpop.eup %4536  ;;  %4540 = vtanh.f32 %v1696_v55  ;;  %v1662_v59 = vpop.f32.mrf.mxu1 }
 0x2b9   :  { %v1646_v12 = vpop.f32.mrf.mxu0  ;;  %v4194_v41 = vld [vmem:[#allocation3 + $0x8] sm:$0xf0] }
 0x2ba   :  { %v1647_v49 = vadd.f32 %v1646_v12, %v5374_v8  ;;  %v4197_v54 = vor.u32 %v4416_v53, %v4194_v41  ;;  %v1712_v41 = vadd.f32 0.5, %v1706_v19 }
 0x2bc   :  { %v1661_v37 = vadd.f32 %v1660_v4, %v1647_v49  ;;  %1769 = vmatmul.bf16.vlgmr.msra.gmra.mxu1 %v4197_v54  ;;  %1797 = vmatmul.bf16.vlgmr.msra.gmra.mxu3 %v4197_v54  ;;  %v7123_v4 = vld [vmem:[#allocation24_spill] sm:$0xff]  ;;  %v1705_v49 = vmul.f32 0.5, %v4537_v24 }
 0x2bd   :  { %1930 = vmatpush.bf16.msra.mxu1 %v7121_v34  ;;  %1958 = vmatpush.bf16.msra.mxu3 %v7122_v29  ;;  %v4539_v29 = vpop.eup %4538 }
 0x2be   :  { %v1695_v12 = vmul.f32 0.5, %v1661_v37  ;;  %v4541_v55 = vpop.eup %4540  ;;  %v1690_v37 = vpop.f32.mrf.mxu3  ;;  %v1711_v1 = vadd.f32 0.5, %v1705_v49  ;;  %v1709_v24 = vmul.f32 0.5, %v4539_v29 }
 0x2bf   :  { %v1674_v51 = vpop.f32.mrf.mxu2 }
 0x2c0   :  { %v1675_v22 = vadd.f32 %v1674_v51, %v7022_v43 }
 0x2c1   :  { %v1648_v0 = vpop.f32.mrf.mxu0  ;;  %1931 = vmatpush.bf16.msra.mxu1 %v7123_v4  ;;  %1959 = vmatpush.bf16.msra.mxu3 %v7124_v38  ;;  %v1719_v38 = vmul.f32 %v1712_v41, %v5579_v21 }
 0x2c2   :  { %v1689_v9 = vadd.f32 %v1688_v17, %v1675_v22  ;;  %v1649_v46 = vadd.f32 %v1648_v0, %v5374_v8  ;;  %v7125_v17 = vld [vmem:[#allocation27_spill] sm:$0xff]  ;;  %v7126_v22 = vld [vmem:[#allocation25_spill] sm:$0xff] }
 0x2c4   :  { %4542 = vtanh.f32 %v1689_v9  ;;  %v1663_v53 = vadd.f32 %v1662_v59, %v1649_v46 }
 0x2c5   :  { %4544 = vtanh.f32 %v1695_v12  ;;  %1932 = vmatpush.bf16.msra.mxu1 %v7125_v17  ;;  %1960 = vmatpush.bf16.msra.mxu3 %v7126_v22  ;;  %v1708_v12 = vmul.f32 0.5, %v4541_v55 }
 0x2c6   :  { %v1698_v9 = vmul.f32 0.5, %v1663_v53 }
 0x2c7   :  { %v1676_v51 = vpop.f32.mrf.mxu2  ;;  %v1714_v21 = vadd.f32 0.5, %v1708_v12 }
 0x2c8   :  { %v1677_v35 = vadd.f32 %v1676_v51, %v7022_v43  ;;  %v1715_v51 = vadd.f32 0.5, %v1709_v24  ;;  %v7128_v24 = vld [vmem:[#allocation51_spill] sm:$0xff] }
 0x2c9   :  { %1933 = vmatpush.bf16.msra.mxu1 %v7029_v28  ;;  %1961 = vmatpush.bf16.msra.mxu3 %v7030_v58 }
 0x2ca   :  { %v4543_v0 = vpop.eup %4542  ;;  %v1691_v4 = vadd.f32 %v1690_v37, %v1677_v35 }
 0x2cb   :  { %v1721_v46 = vmul.f32 %v4543_v0, %v1711_v1  ;;  %v4545_v19 = vpop.eup %4544  ;;  %v7127_v0 = vld [vmem:[#allocation45_spill] sm:$0xff] }
 0x2cc   :  { %4546 = vtanh.f32 %v1691_v4  ;;  %1825 = vmatmul.bf16.vlgmr.msrb.gmra.mxu1 %v4197_v54  ;;  %1853 = vmatmul.bf16.vlgmr.msrb.gmra.mxu3 %v4197_v54  ;;  %v1707_v49 = vmul.f32 0.5, %v4545_v19  ;;  %v1720_v4 = vmul.f32 %v1715_v51, %v5587_v2  ;;  %v7130_v51 = vld [vmem:[#allocation53_spill] sm:$0xff] }
 0x2cd   :  { %v5739_v59 = vadd.f32 %v1721_v46, %v1719_v38  ;;  %4548 = vtanh.f32 %v1698_v9  ;;  %1934 = vmatpush.bf16.msra.mxu1 %v7031_v56  ;;  %1962 = vmatpush.bf16.msra.mxu3 %v7032_v62  ;;  %v7129_v46 = vld [vmem:[#allocation47_spill] sm:$0xff] }
 0x2ce   :  { %v1713_v35 = vadd.f32 0.5, %v1707_v49  ;;  %v7131_v49 = vld [vmem:[#allocation62_spill] sm:$0xff] }
 0x2cf   :  { %4550 = vtanh.f32 %v5739_v59 }
 0x2d1   :  { %1935 = vmatpush.bf16.msra.mxu1 %v7033_v60  ;;  %1963 = vmatpush.bf16.msra.mxu3 %v7034_v6 }
 0x2d2   :  { %v4547_v29 = vpop.eup %4546 }
 0x2d3   :  { %v1722_v53 = vmul.f32 %v4547_v29, %v1714_v21  ;;  %v4549_v41 = vpop.eup %4548 }
 0x2d4   :  { %v1710_v1 = vmul.f32 0.5, %v4549_v41 }
 0x2d5   :  { %v4551_v38 = vpop.eup %4550  ;;  %v5747_v55 = vadd.f32 %v1722_v53, %v1720_v4  ;;  %1936 = vmatpush.bf16.msra.mxu1 %v7035_v13  ;;  %1964 = vmatpush.bf16.msra.mxu3 %v7036_v11 }
 0x2d6   :  { %v1727_v54 = vmul.f32 %v4551_v38, %v1713_v35  ;;  %v1716_v2 = vadd.f32 0.5, %v1710_v1  ;;  %v4200_v38 = vld [vmem:[#allocation2] sm:$0xf]  ;;  %v4419_v1 = vld [vmem:[#allocation2 + $0x4] sm:$0xf0] }
 0x2d7   :  { %4552 = vtanh.f32 %v5747_v55 }
 0x2d8   :  { %v1729_v37 = vpack.c.bf16 %v1727_v54, %v1727_v54  ;;  %v2235_v54 = vld [vmem:[#allocation7 + $0x20] sm:$0xf] }
 0x2d9   :  { %1937 = vmatpush.bf16.msra.mxu1 %v7037_v18  ;;  %1965 = vmatpush.bf16.msra.mxu3 %v7127_v0  ;;  %2237 = vst [vmem:[#allocation2] sm:$0xf] %v2235_v54  ;;  %v7141_v54 = vld [vmem:[#allocation48_spill] sm:$0xff] }
 0x2da   :  { %1731 = vst [vmem:[#allocation2 + $0x4] sm:$0xf] %v1729_v37 }
 0x2db   :  { %1733 = vst [vmem:[#allocation3] sm:$0xf] %v1729_v37  ;;  %v2236_v37 = vld [vmem:[#allocation7 + $0x24] sm:$0xf] }
 0x2dc   :  { %2238 = vst [vmem:[#allocation2 + $0x8] sm:$0xf] %v2236_v37  ;;  %v7142_v37 = vld [vmem:[#allocation44_spill] sm:$0xff] }
 0x2dd   :  { %v4553_v9 = vpop.eup %4552  ;;  %1986 = vmatpush.bf16.msrb.mxu1 %v7128_v24  ;;  %2014 = vmatpush.bf16.msrb.mxu3 %v7129_v46 }
 0x2de   :  { %v1728_v19 = vmul.f32 %v4553_v9, %v1716_v2  ;;  %v7132_v2 = vld [vmem:[#allocation77_spill] sm:$0xff]  ;;  %v7133_v9 = vld [vmem:[#allocation38_spill] sm:$0xff] }
 0x2e0   :  { %v1730_v12 = vpack.c.bf16 %v1728_v19, %v1728_v19  ;;  %v7134_v19 = vld [vmem:[#allocation36_spill] sm:$0xff] }
 0x2e1   :  { %1987 = vmatpush.bf16.msrb.mxu1 %v7041_v39  ;;  %2015 = vmatpush.bf16.msrb.mxu3 %v7130_v51  ;;  %v4418_v21 = vld [vmem:[#allocation2 + $0x4] sm:$0xf] }
 0x2e2   :  { %1732 = vst [vmem:[#allocation2 + $0xc] sm:$0xf] %v1730_v12  ;;  %v4192_v4 = vld [vmem:[#allocation3] sm:$0xf] }
 0x2e3   :  { %1734 = vst [vmem:[#allocation3 + $0x8] sm:$0xf] %v1730_v12  ;;  %v7135_v12 = vld [vmem:[#allocation80_spill] sm:$0xff] }
 0x2e5   :  { %1988 = vmatpush.bf16.msrb.mxu1 %v7043_v50  ;;  %2016 = vmatpush.bf16.msrb.mxu3 %v7044_v31 }
 0x2e9   :  { %1989 = vmatpush.bf16.msrb.mxu1 %v7131_v49  ;;  %2017 = vmatpush.bf16.msrb.mxu3 %v5119_v33  ;;  %v4202_v29 = vld [vmem:[#allocation2 + $0x8] sm:$0xf0] }
 0x2ea   :  { %v4417_v53 = vld [vmem:[#allocation3 + $0x4] sm:$0xf0]  ;;  %v4205_v41 = vor.u32 %v4418_v21, %v4202_v29  ;;  %v7136_v21 = vld [vmem:[#allocation79_spill] sm:$0xff]  ;;  %v7137_v29 = vld [vmem:[#allocation42_spill] sm:$0xff] }
 0x2eb   :  { %v4193_v35 = vor.u32 %v4417_v53, %v4192_v4  ;;  %v7138_v4 = vld [vmem:[#allocation40_spill] sm:$0xff]  ;;  %v7139_v53 = vld [vmem:[#allocation82_spill] sm:$0xff] }
 0x2ec   :  { %1938 = vmatmul.bf16.vlgmr.msra.gmra.mxu1 %v4205_v41  ;;  %1966 = vmatmul.bf16.vlgmr.msra.gmra.mxu3 %v4205_v41 }
 0x2ed   :  { %1755 = vmatmul.bf16.vlgmr.msra.gmra.mxu0 %v4193_v35  ;;  %1783 = vmatmul.bf16.vlgmr.msra.gmra.mxu2 %v4193_v35 }
 0x2ee   :  { %1916 = vmatpush.bf16.msra.mxu0 %v4982_v10  ;;  %1944 = vmatpush.bf16.msra.mxu2 %v4978_v5 }
 0x2ef   :  { %1990 = vmatpush.bf16.msrb.mxu1 %v5137_v7  ;;  %2018 = vmatpush.bf16.msrb.mxu3 %v5131_v16 }
 0x2f2   :  { %1917 = vmatpush.bf16.msra.mxu0 %v4993_v23  ;;  %1945 = vmatpush.bf16.msra.mxu2 %v4985_v14 }
 0x2f3   :  { %1991 = vmatpush.bf16.msrb.mxu1 %v5149_v40  ;;  %2019 = vmatpush.bf16.msrb.mxu3 %v5143_v25 }
 0x2f6   :  { %1918 = vmatpush.bf16.msra.mxu0 %v5005_v36  ;;  %1946 = vmatpush.bf16.msra.mxu2 %v4997_v30 }
 0x2f7   :  { %1992 = vmatpush.bf16.msrb.mxu1 %v5161_v26  ;;  %2020 = vmatpush.bf16.msrb.mxu3 %v5155_v52 }
 0x2fa   :  { %1919 = vmatpush.bf16.msra.mxu0 %v5017_v48  ;;  %1947 = vmatpush.bf16.msra.mxu2 %v5011_v44 }
 0x2fb   :  { %1993 = vmatpush.bf16.msrb.mxu1 %v5175_v32  ;;  %2021 = vmatpush.bf16.msrb.mxu3 %v5167_v27 }
 0x2fd   :  { %1811 = vmatmul.bf16.vlgmr.msrb.gmra.mxu0 %v4193_v35  ;;  %1839 = vmatmul.bf16.vlgmr.msrb.gmra.mxu2 %v4193_v35  ;;  %v7140_v35 = vld [vmem:[#allocation81_spill] sm:$0xff] }
 0x2fe   :  { %1920 = vmatpush.bf16.msra.mxu0 %v6954_v15  ;;  %1948 = vmatpush.bf16.msra.mxu2 %v6955_v20 }
 0x2ff   :  { %2096 = vmatpush.bf16.msra.mxu1 %v5178_v63  ;;  %2124 = vmatpush.bf16.msra.mxu3 %v5172_v61 }
 0x300   :  { %1994 = vmatmul.bf16.vlgmr.msrb.gmra.mxu1 %v4205_v41  ;;  %2022 = vmatmul.bf16.vlgmr.msrb.gmra.mxu3 %v4205_v41  ;;  %v4201_v41 = vor.u32 %v4419_v1, %v4200_v38  ;;  %v7150_v38 = vld [vmem:[#allocation85_spill] sm:$0xff]  ;;  %v7151_v1 = vld [vmem:[#allocation58_spill] sm:$0xff] }
 0x302   :  { %1921 = vmatpush.bf16.msra.mxu0 %v7133_v9  ;;  %1949 = vmatpush.bf16.msra.mxu2 %v7134_v19  ;;  %v7143_v9 = vld [vmem:[#allocation49_spill] sm:$0xff]  ;;  %v7144_v19 = vld [vmem:[#allocation46_spill] sm:$0xff] }
 0x303   :  { %2097 = vmatpush.bf16.msra.mxu1 %v5189_v57  ;;  %2125 = vmatpush.bf16.msra.mxu3 %v7132_v2  ;;  %v7216_v2 = vld [vmem:[#allocation142_spill] sm:$0xff] }
 0x306   :  { %1922 = vmatpush.bf16.msra.mxu0 %v7137_v29  ;;  %1950 = vmatpush.bf16.msra.mxu2 %v7138_v4  ;;  %v7147_v4 = vld [vmem:[#allocation54_spill] sm:$0xff]  ;;  %v7215_v29 = vld [vmem:[#allocation141_spill] sm:$0xff] }
 0x307   :  { %2098 = vmatpush.bf16.msra.mxu1 %v7135_v12  ;;  %2126 = vmatpush.bf16.msra.mxu3 %v7136_v21  ;;  %v7145_v12 = vld [vmem:[#allocation84_spill] sm:$0xff]  ;;  %v7146_v21 = vld [vmem:[#allocation83_spill] sm:$0xff] }
 0x30a   :  { %1923 = vmatpush.bf16.msra.mxu0 %v7141_v54  ;;  %1951 = vmatpush.bf16.msra.mxu2 %v7142_v37  ;;  %v7152_v37 = vld [vmem:[#allocation56_spill] sm:$0xff]  ;;  %v7157_v54 = vld [vmem:[#allocation91_spill] sm:$0xff] }
 0x30b   :  { %2099 = vmatpush.bf16.msra.mxu1 %v7139_v53  ;;  %2127 = vmatpush.bf16.msra.mxu3 %v7140_v35  ;;  %v7148_v53 = vld [vmem:[#allocation52_spill] sm:$0xff]  ;;  %v7149_v35 = vld [vmem:[#allocation86_spill] sm:$0xff] }
 0x30d   :  { %1924 = vmatmul.bf16.vlgmr.msra.gmra.mxu0 %v4201_v41  ;;  %1952 = vmatmul.bf16.vlgmr.msra.gmra.mxu2 %v4201_v41 }
 0x30e   :  { %1972 = vmatpush.bf16.msrb.mxu0 %v7143_v9  ;;  %2000 = vmatpush.bf16.msrb.mxu2 %v7144_v19  ;;  %v7153_v9 = vld [vmem:[#allocation88_spill] sm:$0xff]  ;;  %v7154_v19 = vld [vmem:[#allocation87_spill] sm:$0xff] }
 0x30f   :  { %2100 = vmatpush.bf16.msra.mxu1 %v7145_v12  ;;  %2128 = vmatpush.bf16.msra.mxu3 %v7146_v21  ;;  %v7155_v12 = vld [vmem:[#allocation61_spill] sm:$0xff]  ;;  %v7156_v21 = vld [vmem:[#allocation60_spill] sm:$0xff] }
 0x312   :  { %1973 = vmatpush.bf16.msrb.mxu0 %v7147_v4  ;;  %2001 = vmatpush.bf16.msrb.mxu2 %v7148_v53  ;;  %v7158_v4 = vld [vmem:[#allocation89_spill] sm:$0xff]  ;;  %v7159_v53 = vld [vmem:[#allocation92_spill] sm:$0xff] }
 0x313   :  { %2101 = vmatpush.bf16.msra.mxu1 %v7149_v35  ;;  %2129 = vmatpush.bf16.msra.mxu3 %v7150_v38  ;;  %v7160_v35 = vld [vmem:[#allocation90_spill] sm:$0xff]  ;;  %v7161_v38 = vld [vmem:[#allocation64_spill] sm:$0xff] }
 0x316   :  { %1974 = vmatpush.bf16.msrb.mxu0 %v7151_v1  ;;  %2002 = vmatpush.bf16.msrb.mxu2 %v7152_v37  ;;  %v7162_v1 = vld [vmem:[#allocation63_spill] sm:$0xff]  ;;  %v7163_v37 = vld [vmem:[#allocation93_spill] sm:$0xff] }
 0x317   :  { %2102 = vmatpush.bf16.msra.mxu1 %v7153_v9  ;;  %2130 = vmatpush.bf16.msra.mxu3 %v7154_v19  ;;  %v7164_v9 = vld [vmem:[#allocation94_spill] sm:$0xff] }
 0x318   :  { %v7165_v19 = vld [vmem:[#allocation66_spill] sm:$0xff] }
 0x31a   :  { %1975 = vmatpush.bf16.msrb.mxu0 %v7155_v12  ;;  %2003 = vmatpush.bf16.msrb.mxu2 %v7156_v21  ;;  %v7166_v12 = vld [vmem:[#allocation65_spill] sm:$0xff]  ;;  %v7167_v21 = vld [vmem:[#allocation95_spill] sm:$0xff] }
 0x31b   :  { %2103 = vmatpush.bf16.msra.mxu1 %v7157_v54  ;;  %2131 = vmatpush.bf16.msra.mxu3 %v7158_v4  ;;  %v7168_v54 = vld [vmem:[#allocation96_spill] sm:$0xff]  ;;  %v7169_v4 = vld [vmem:[#allocation69_spill] sm:$0xff] }
 0x31e   :  { %1976 = vmatpush.bf16.msrb.mxu0 %v7161_v38  ;;  %2004 = vmatpush.bf16.msrb.mxu2 %v7162_v1  ;;  %v7172_v38 = vld [vmem:[#allocation98_spill] sm:$0xff]  ;;  %v7173_v1 = vld [vmem:[#allocation73_spill] sm:$0xff] }
 0x31f   :  { %2152 = vmatpush.bf16.msrb.mxu1 %v7159_v53  ;;  %2180 = vmatpush.bf16.msrb.mxu3 %v7160_v35  ;;  %v7170_v53 = vld [vmem:[#allocation67_spill] sm:$0xff]  ;;  %v7171_v35 = vld [vmem:[#allocation97_spill] sm:$0xff] }
 0x322   :  { %1977 = vmatpush.bf16.msrb.mxu0 %v7165_v19  ;;  %2005 = vmatpush.bf16.msrb.mxu2 %v7166_v12  ;;  %v7176_v19 = vld [vmem:[#allocation100_spill] sm:$0xff]  ;;  %v7177_v12 = vld [vmem:[#allocation101_spill] sm:$0xff] }
 0x323   :  { %2153 = vmatpush.bf16.msrb.mxu1 %v7163_v37  ;;  %2181 = vmatpush.bf16.msrb.mxu3 %v7164_v9  ;;  %v7174_v37 = vld [vmem:[#allocation71_spill] sm:$0xff] }
 0x324   :  { %v7175_v9 = vld [vmem:[#allocation99_spill] sm:$0xff] }
 0x326   :  { %1978 = vmatpush.bf16.msrb.mxu0 %v7169_v4  ;;  %2006 = vmatpush.bf16.msrb.mxu2 %v7170_v53  ;;  %v7179_v4 = vld [vmem:[#allocation103_spill] sm:$0xff]  ;;  %v7180_v53 = vld [vmem:[#allocation104_spill] sm:$0xff] }
 0x327   :  { %2154 = vmatpush.bf16.msrb.mxu1 %v7167_v21  ;;  %2182 = vmatpush.bf16.msrb.mxu3 %v7168_v54  ;;  %v7178_v21 = vld [vmem:[#allocation102_spill] sm:$0xff] }
 0x32a   :  { %1979 = vmatpush.bf16.msrb.mxu0 %v7173_v1  ;;  %2007 = vmatpush.bf16.msrb.mxu2 %v7174_v37  ;;  %v7183_v1 = vld [vmem:[#allocation107_spill] sm:$0xff]  ;;  %v7184_v37 = vld [vmem:[#allocation108_spill] sm:$0xff] }
 0x32b   :  { %2155 = vmatpush.bf16.msrb.mxu1 %v7171_v35  ;;  %2183 = vmatpush.bf16.msrb.mxu3 %v7172_v38  ;;  %v7181_v35 = vld [vmem:[#allocation105_spill] sm:$0xff]  ;;  %v7182_v38 = vld [vmem:[#allocation106_spill] sm:$0xff] }
 0x32d   :  { %1980 = vmatmul.bf16.vlgmr.msrb.gmra.mxu0 %v4201_v41  ;;  %2008 = vmatmul.bf16.vlgmr.msrb.gmra.mxu2 %v4201_v41  ;;  %v7189_v41 = vld [vmem:[#allocation113_spill] sm:$0xff] }
 0x32e   :  { %2082 = vmatpush.bf16.msra.mxu0 %v7175_v9  ;;  %2110 = vmatpush.bf16.msra.mxu2 %v7176_v19  ;;  %v7185_v9 = vld [vmem:[#allocation109_spill] sm:$0xff]  ;;  %v7186_v19 = vld [vmem:[#allocation110_spill] sm:$0xff] }
 0x32f   :  { %2156 = vmatpush.bf16.msrb.mxu1 %v7177_v12  ;;  %2184 = vmatpush.bf16.msrb.mxu3 %v7178_v21  ;;  %v7187_v12 = vld [vmem:[#allocation111_spill] sm:$0xff]  ;;  %v7188_v21 = vld [vmem:[#allocation112_spill] sm:$0xff] }
 0x332   :  { %2083 = vmatpush.bf16.msra.mxu0 %v7179_v4  ;;  %2111 = vmatpush.bf16.msra.mxu2 %v7180_v53  ;;  %v7190_v4 = vld [vmem:[#allocation114_spill] sm:$0xff]  ;;  %v7191_v53 = vld [vmem:[#allocation115_spill] sm:$0xff] }
 0x333   :  { %2157 = vmatpush.bf16.msrb.mxu1 %v7181_v35  ;;  %2185 = vmatpush.bf16.msrb.mxu3 %v7182_v38  ;;  %v7192_v35 = vld [vmem:[#allocation116_spill] sm:$0xff]  ;;  %v7193_v38 = vld [vmem:[#allocation117_spill] sm:$0xff] }
 0x336   :  { %2084 = vmatpush.bf16.msra.mxu0 %v7183_v1  ;;  %2112 = vmatpush.bf16.msra.mxu2 %v7184_v37  ;;  %v7194_v1 = vld [vmem:[#allocation118_spill] sm:$0xff]  ;;  %v7195_v37 = vld [vmem:[#allocation119_spill] sm:$0xff] }
 0x337   :  { %2158 = vmatpush.bf16.msrb.mxu1 %v7185_v9  ;;  %2186 = vmatpush.bf16.msrb.mxu3 %v7186_v19  ;;  %v7196_v9 = vld [vmem:[#allocation120_spill] sm:$0xff]  ;;  %v7197_v19 = vld [vmem:[#allocation122_spill] sm:$0xff] }
 0x33a   :  { %2085 = vmatpush.bf16.msra.mxu0 %v7187_v12  ;;  %2113 = vmatpush.bf16.msra.mxu2 %v7188_v21  ;;  %v7198_v12 = vld [vmem:[#allocation123_spill] sm:$0xff]  ;;  %v7199_v21 = vld [vmem:[#allocation124_spill] sm:$0xff] }
 0x33b   :  { %2159 = vmatpush.bf16.msrb.mxu1 %v7189_v41  ;;  %2187 = vmatpush.bf16.msrb.mxu3 %v7190_v4  ;;  %v7200_v41 = vld [vmem:[#allocation125_spill] sm:$0xff]  ;;  %v7201_v4 = vld [vmem:[#allocation126_spill] sm:$0xff] }
 0x33e   :  { %2086 = vmatpush.bf16.msra.mxu0 %v7191_v53  ;;  %2114 = vmatpush.bf16.msra.mxu2 %v7192_v35  ;;  %v7202_v53 = vld [vmem:[#allocation127_spill] sm:$0xff]  ;;  %v7203_v35 = vld [vmem:[#allocation128_spill] sm:$0xff] }
 0x33f   :  { %v1798_v54 = vpop.f32.mrf.mxu3 }
 0x342   :  { %2087 = vmatpush.bf16.msra.mxu0 %v7193_v38  ;;  %2115 = vmatpush.bf16.msra.mxu2 %v7194_v1  ;;  %v7204_v38 = vld [vmem:[#allocation129_spill] sm:$0xff]  ;;  %v7205_v1 = vld [vmem:[#allocation130_spill] sm:$0xff] }
 0x346   :  { %2088 = vmatpush.bf16.msra.mxu0 %v7195_v37  ;;  %2116 = vmatpush.bf16.msra.mxu2 %v7196_v9  ;;  %v7206_v37 = vld [vmem:[#allocation131_spill] sm:$0xff]  ;;  %v7207_v9 = vld [vmem:[#allocation133_spill] sm:$0xff] }
 0x347   :  { %v1800_v15 = vpop.f32.mrf.mxu3 }
 0x34a   :  { %2089 = vmatpush.bf16.msra.mxu0 %v7197_v19  ;;  %2117 = vmatpush.bf16.msra.mxu2 %v7198_v12  ;;  %v7208_v19 = vld [vmem:[#allocation134_spill] sm:$0xff]  ;;  %v7209_v12 = vld [vmem:[#allocation135_spill] sm:$0xff] }
 0x34e   :  { %2138 = vmatpush.bf16.msrb.mxu0 %v7199_v21  ;;  %2166 = vmatpush.bf16.msrb.mxu2 %v7200_v41  ;;  %v7210_v21 = vld [vmem:[#allocation136_spill] sm:$0xff]  ;;  %v7211_v41 = vld [vmem:[#allocation137_spill] sm:$0xff] }
 0x34f   :  { %v1854_v48 = vpop.f32.mrf.mxu3 }
 0x352   :  { %2139 = vmatpush.bf16.msrb.mxu0 %v7201_v4  ;;  %2167 = vmatpush.bf16.msrb.mxu2 %v7202_v53  ;;  %v7212_v4 = vld [vmem:[#allocation138_spill] sm:$0xff]  ;;  %v7213_v53 = vld [vmem:[#allocation139_spill] sm:$0xff] }
 0x356   :  { %2140 = vmatpush.bf16.msrb.mxu0 %v7203_v35  ;;  %2168 = vmatpush.bf16.msrb.mxu2 %v7204_v38  ;;  %v7214_v35 = vld [vmem:[#allocation140_spill] sm:$0xff]  ;;  %v1770_v38 = vpop.f32.mrf.mxu1 }
 0x35a   :  { %2141 = vmatpush.bf16.msrb.mxu0 %v7205_v1  ;;  %2169 = vmatpush.bf16.msrb.mxu2 %v7206_v37 }
 0x35e   :  { %2142 = vmatpush.bf16.msrb.mxu0 %v7207_v9  ;;  %2170 = vmatpush.bf16.msrb.mxu2 %v7208_v19  ;;  %v1772_v57 = vpop.f32.mrf.mxu1 }
 0x362   :  { %2143 = vmatpush.bf16.msrb.mxu0 %v7209_v12  ;;  %2171 = vmatpush.bf16.msrb.mxu2 %v7210_v21 }
 0x366   :  { %2144 = vmatpush.bf16.msrb.mxu0 %v7211_v41  ;;  %2172 = vmatpush.bf16.msrb.mxu2 %v7212_v4  ;;  %v1826_v32 = vpop.f32.mrf.mxu1 }
 0x36a   :  { %2145 = vmatpush.bf16.msrb.mxu0 %v7213_v53  ;;  %2173 = vmatpush.bf16.msrb.mxu2 %v7214_v35  ;;  %v1756_v1 = vpop.f32.mrf.mxu0 }
 0x36b   :  { %v1757_v9 = vadd.f32 %v1756_v1, %v7215_v29 }
 0x36d   :  { %v1771_v21 = vadd.f32 %v1770_v38, %v1757_v9  ;;  %v7217_v38 = vld [vmem:[#allocation143_spill] sm:$0xff] }
 0x36f   :  { %v1859_v53 = vmul.f32 0.5, %v1771_v21 }
 0x370   :  { %v1784_v37 = vpop.f32.mrf.mxu2 }
 0x371   :  { %v1785_v19 = vadd.f32 %v1784_v37, %v7216_v2 }
 0x372   :  { %v1758_v12 = vpop.f32.mrf.mxu0 }
 0x373   :  { %v1799_v20 = vadd.f32 %v1798_v54, %v1785_v19  ;;  %v1759_v4 = vadd.f32 %v1758_v12, %v7215_v29 }
 0x375   :  { %v1860_v41 = vmul.f32 0.5, %v1799_v20  ;;  %v1773_v44 = vadd.f32 %v1772_v57, %v1759_v4 }
 0x377   :  { %4554 = vtanh.f32 %v1860_v41  ;;  %v1862_v19 = vmul.f32 0.5, %v1773_v44 }
 0x378   :  { %v1786_v61 = vpop.f32.mrf.mxu2  ;;  %4556 = vtanh.f32 %v1859_v53 }
 0x379   :  { %v1787_v35 = vadd.f32 %v1786_v61, %v7216_v2 }
 0x37a   :  { %v1812_v63 = vpop.f32.mrf.mxu0 }
 0x37b   :  { %v1801_v27 = vadd.f32 %v1800_v15, %v1787_v35  ;;  %v1813_v1 = vadd.f32 %v1812_v63, %v5547_v42  ;;  %v1828_v63 = vpop.f32.mrf.mxu1 }
 0x37d   :  { %v1863_v37 = vmul.f32 0.5, %v1801_v27  ;;  %v1827_v9 = vadd.f32 %v1826_v32, %v1813_v1  ;;  %v4555_v20 = vpop.eup %4554 }
 0x37e   :  { %v4557_v21 = vpop.eup %4556  ;;  %v1872_v15 = vmul.f32 0.5, %v4555_v20 }
 0x37f   :  { %4558 = vtanh.f32 %v1863_v37  ;;  %v1861_v57 = vmul.f32 0.5, %v1827_v9  ;;  %v1871_v4 = vmul.f32 0.5, %v4557_v21 }
 0x380   :  { %v1840_v54 = vpop.f32.mrf.mxu2  ;;  %4560 = vtanh.f32 %v1862_v19  ;;  %v1878_v53 = vadd.f32 0.5, %v1872_v15 }
 0x381   :  { %v1841_v12 = vadd.f32 %v1840_v54, %v7217_v38  ;;  %v1856_v54 = vpop.f32.mrf.mxu3  ;;  %v1877_v2 = vadd.f32 0.5, %v1871_v4  ;;  %v7218_v4 = vld [vmem:[#allocation121_spill] sm:$0xff] }
 0x382   :  { %v1814_v29 = vpop.f32.mrf.mxu0 }
 0x383   :  { %v1855_v61 = vadd.f32 %v1854_v48, %v1841_v12  ;;  %v1815_v41 = vadd.f32 %v1814_v29, %v5547_v42  ;;  %v1885_v29 = vmul.f32 %v1878_v53, %v5715_v47 }
 0x385   :  { %4562 = vtanh.f32 %v1855_v61  ;;  %v1829_v27 = vadd.f32 %v1828_v63, %v1815_v41  ;;  %v4559_v32 = vpop.eup %4558 }
 0x386   :  { %4564 = vtanh.f32 %v1861_v57  ;;  %v4561_v1 = vpop.eup %4560  ;;  %v1875_v19 = vmul.f32 0.5, %v4559_v32 }
 0x387   :  { %v1864_v48 = vmul.f32 0.5, %v1829_v27  ;;  %v1874_v21 = vmul.f32 0.5, %v4561_v1 }
 0x388   :  { %v1842_v44 = vpop.f32.mrf.mxu2  ;;  %v1881_v41 = vadd.f32 0.5, %v1875_v19 }
 0x389   :  { %v1843_v35 = vadd.f32 %v1842_v44, %v7217_v38  ;;  %v1880_v57 = vadd.f32 0.5, %v1874_v21 }
 0x38a   :  { %v1886_v44 = vmul.f32 %v1881_v41, %v7218_v4  ;;  %v1925_v53 = vpop.f32.mrf.mxu0 }
 0x38b   :  { %v4563_v37 = vpop.eup %4562  ;;  %v1857_v12 = vadd.f32 %v1856_v54, %v1843_v35  ;;  %v1939_v54 = vpop.f32.mrf.mxu1  ;;  %v1926_v21 = vadd.f32 %v1925_v53, %v7021_v3 }
 0x38c   :  { %v1887_v9 = vmul.f32 %v4563_v37, %v1877_v2  ;;  %v4565_v20 = vpop.eup %4564 }
 0x38d   :  { %4566 = vtanh.f32 %v1857_v12  ;;  %v1873_v15 = vmul.f32 0.5, %v4565_v20 }
 0x38e   :  { %v5875_v61 = vadd.f32 %v1887_v9, %v1885_v29  ;;  %4568 = vtanh.f32 %v1864_v48  ;;  %v1967_v48 = vpop.f32.mrf.mxu3 }
 0x38f   :  { %v1879_v47 = vadd.f32 0.5, %v1873_v15 }
 0x390   :  { %4570 = vtanh.f32 %v5875_v61  ;;  %v1953_v37 = vpop.f32.mrf.mxu2 }
 0x391   :  { %v1954_v19 = vadd.f32 %v1953_v37, %v5326_v45 }
 0x393   :  { %v4567_v63 = vpop.eup %4566  ;;  %v1941_v41 = vpop.f32.mrf.mxu1 }
 0x394   :  { %v1888_v27 = vmul.f32 %v4567_v63, %v1880_v57  ;;  %v4569_v35 = vpop.eup %4568  ;;  %v1927_v57 = vpop.f32.mrf.mxu0  ;;  %v1968_v63 = vadd.f32 %v1967_v48, %v1954_v19 }
 0x395   :  { %v1876_v29 = vmul.f32 0.5, %v4569_v35  ;;  %v1928_v35 = vadd.f32 %v1927_v57, %v7021_v3 }
 0x396   :  { %v4571_v2 = vpop.eup %4570  ;;  %v5879_v32 = vadd.f32 %v1888_v27, %v1886_v44  ;;  %v1940_v27 = vadd.f32 %v1939_v54, %v1926_v21 }
 0x397   :  { %v1893_v1 = vmul.f32 %v4571_v2, %v1879_v47  ;;  %v1882_v9 = vadd.f32 0.5, %v1876_v29  ;;  %v1969_v47 = vpop.f32.mrf.mxu3  ;;  %v2029_v2 = vmul.f32 0.5, %v1968_v63  ;;  %v1942_v53 = vadd.f32 %v1941_v41, %v1928_v35 }
 0x398   :  { %7219 = vst [vmem:[#allocation132_spill] sm:$0xff] %v5879_v32  ;;  %4572 = vtanh.f32 %v5879_v32  ;;  %v1955_v44 = vpop.f32.mrf.mxu2 }
 0x399   :  { %v1895_v12 = vpack.c.bf16 %v1893_v1, %v1893_v1  ;;  %v1956_v1 = vadd.f32 %v1955_v44, %v5326_v45  ;;  %4574 = vtanh.f32 %v2029_v2 }
 0x39b   :  { %1897 = vst [vmem:[#allocation3 + $0x4] sm:$0xf] %v1895_v12  ;;  %v2028_v12 = vmul.f32 0.5, %v1940_v27  ;;  %v1970_v29 = vadd.f32 %v1969_v47, %v1956_v1  ;;  %v1995_v32 = vpop.f32.mrf.mxu1  ;;  %v7220_v27 = vld [vmem:[#allocation20_spill] sm:$0xff] }
 0x39d   :  { %4576 = vtanh.f32 %v2028_v12  ;;  %v2032_v54 = vmul.f32 0.5, %v1970_v29 }
 0x39e   :  { %v4573_v20 = vpop.eup %4572 }
 0x39f   :  { %v1894_v15 = vmul.f32 %v4573_v20, %v1882_v9  ;;  %v2023_v21 = vpop.f32.mrf.mxu3  ;;  %v4575_v57 = vpop.eup %4574  ;;  %4578 = vtanh.f32 %v2032_v54 }
 0x3a0   :  { %v2041_v35 = vmul.f32 0.5, %v4575_v57 }
 0x3a1   :  { %v1896_v4 = vpack.c.bf16 %v1894_v15, %v1894_v15  ;;  %v2031_v15 = vmul.f32 0.5, %v1942_v53 }
 0x3a2   :  { %v4420_v48 = vld [vmem:[#allocation3 + $0x4] sm:$0xf] }
 0x3a3   :  { %1898 = vst [vmem:[#allocation3 + $0xc] sm:$0xf] %v1896_v4  ;;  %v4577_v47 = vpop.eup %4576  ;;  %4580 = vtanh.f32 %v2031_v15  ;;  %v1997_v29 = vpop.f32.mrf.mxu1 }
 0x3a4   :  { %v2040_v53 = vmul.f32 0.5, %v4577_v47 }
 0x3a7   :  { %v2025_v15 = vpop.f32.mrf.mxu3 }
 0x3aa   :  { %v1981_v37 = vpop.f32.mrf.mxu0  ;;  %v4210_v19 = vld [vmem:[#allocation3 + $0x8] sm:$0xf0] }
 0x3ab   :  { %v1982_v9 = vadd.f32 %v1981_v37, %v5374_v8  ;;  %v4213_v20 = vor.u32 %v4420_v48, %v4210_v19  ;;  %v7222_v37 = vld [vmem:[#allocation21_spill] sm:$0xff]  ;;  %v2047_v48 = vadd.f32 0.5, %v2041_v35 }
 0x3ad   :  { %v1996_v63 = vadd.f32 %v1995_v32, %v1982_v9  ;;  %2104 = vmatmul.bf16.vlgmr.msra.gmra.mxu1 %v4213_v20  ;;  %2132 = vmatmul.bf16.vlgmr.msra.gmra.mxu3 %v4213_v20  ;;  %v7221_v32 = vld [vmem:[#allocation24_spill] sm:$0xff] }
 0x3ae   :  { %2265 = vmatpush.bf16.msra.mxu1 %v7121_v34  ;;  %2293 = vmatpush.bf16.msra.mxu3 %v7220_v27 }
 0x3af   :  { %v2030_v12 = vmul.f32 0.5, %v1996_v63  ;;  %v2046_v63 = vadd.f32 0.5, %v2040_v53 }
 0x3b0   :  { %v2009_v4 = vpop.f32.mrf.mxu2 }
 0x3b1   :  { %v2010_v44 = vadd.f32 %v2009_v4, %v7022_v43  ;;  %v4579_v4 = vpop.eup %4578 }
 0x3b2   :  { %v1983_v41 = vpop.f32.mrf.mxu0  ;;  %2266 = vmatpush.bf16.msra.mxu1 %v7221_v32  ;;  %2294 = vmatpush.bf16.msra.mxu3 %v7222_v37  ;;  %v2044_v47 = vmul.f32 0.5, %v4579_v4 }
 0x3b3   :  { %v2024_v2 = vadd.f32 %v2023_v21, %v2010_v44  ;;  %v1984_v1 = vadd.f32 %v1983_v41, %v5374_v8  ;;  %v4581_v21 = vpop.eup %4580 }
 0x3b5   :  { %4582 = vtanh.f32 %v2024_v2  ;;  %v1998_v9 = vadd.f32 %v1997_v29, %v1984_v1  ;;  %v2054_v2 = vmul.f32 %v2047_v48, %v5739_v59 }
 0x3b6   :  { %4584 = vtanh.f32 %v2030_v12  ;;  %2267 = vmatpush.bf16.msra.mxu1 %v7125_v17  ;;  %2295 = vmatpush.bf16.msra.mxu3 %v7126_v22  ;;  %v2043_v12 = vmul.f32 0.5, %v4581_v21 }
 0x3b7   :  { %v2033_v44 = vmul.f32 0.5, %v1998_v9 }
 0x3b8   :  { %v2011_v19 = vpop.f32.mrf.mxu2  ;;  %v2049_v59 = vadd.f32 0.5, %v2043_v12 }
 0x3b9   :  { %v2012_v54 = vadd.f32 %v2011_v19, %v7022_v43  ;;  %v2050_v19 = vadd.f32 0.5, %v2044_v47 }
 0x3ba   :  { %2268 = vmatpush.bf16.msra.mxu1 %v7029_v28  ;;  %2296 = vmatpush.bf16.msra.mxu3 %v7030_v58 }
 0x3bb   :  { %v4583_v57 = vpop.eup %4582  ;;  %v2026_v41 = vadd.f32 %v2025_v15, %v2012_v54  ;;  %v2055_v48 = vmul.f32 %v2050_v19, %v5747_v55 }
 0x3bc   :  { %v2056_v1 = vmul.f32 %v4583_v57, %v2046_v63  ;;  %v4585_v35 = vpop.eup %4584 }
 0x3bd   :  { %4586 = vtanh.f32 %v2026_v41  ;;  %2160 = vmatmul.bf16.vlgmr.msrb.gmra.mxu1 %v4213_v20  ;;  %2188 = vmatmul.bf16.vlgmr.msrb.gmra.mxu3 %v4213_v20  ;;  %v2042_v53 = vmul.f32 0.5, %v4585_v35 }
 0x3be   :  { %v5899_v29 = vadd.f32 %v2056_v1, %v2054_v2  ;;  %4588 = vtanh.f32 %v2033_v44  ;;  %2269 = vmatpush.bf16.msra.mxu1 %v7031_v56  ;;  %2297 = vmatpush.bf16.msra.mxu3 %v7032_v62 }
 0x3bf   :  { %v2048_v21 = vadd.f32 0.5, %v2042_v53 }
 0x3c0   :  { %4590 = vtanh.f32 %v5899_v29 }
 0x3c2   :  { %2270 = vmatpush.bf16.msra.mxu1 %v7033_v60  ;;  %2298 = vmatpush.bf16.msra.mxu3 %v7034_v6 }
 0x3c3   :  { %v4587_v9 = vpop.eup %4586 }
 0x3c4   :  { %v2057_v4 = vmul.f32 %v4587_v9, %v2049_v59  ;;  %v4589_v54 = vpop.eup %4588  ;;  %v4216_v9 = vld [vmem:[#allocation2] sm:$0xf] }
 0x3c5   :  { %v2045_v44 = vmul.f32 0.5, %v4589_v54  ;;  %v4423_v54 = vld [vmem:[#allocation2 + $0x4] sm:$0xf0] }
 0x3c6   :  { %v4591_v15 = vpop.eup %4590  ;;  %v5907_v63 = vadd.f32 %v2057_v4, %v2055_v48  ;;  %2271 = vmatpush.bf16.msra.mxu1 %v7035_v13  ;;  %2299 = vmatpush.bf16.msra.mxu3 %v7036_v11  ;;  %v2570_v48 = vld [vmem:[#allocation7 + $0x28] sm:$0xf]  ;;  %v2571_v4 = vld [vmem:[#allocation7 + $0x2c] sm:$0xf] }
 0x3c7   :  { %v2062_v20 = vmul.f32 %v4591_v15, %v2048_v21  ;;  %v2051_v55 = vadd.f32 0.5, %v2045_v44  ;;  %2572 = vst [vmem:[#allocation2] sm:$0xf] %v2570_v48  ;;  %v7223_v21 = vld [vmem:[#allocation30_spill] sm:$0xff]  ;;  %v7224_v15 = vld [vmem:[#allocation28_spill] sm:$0xff]  ;;  %v7236_v48 = vld [vmem:[#allocation79_spill] sm:$0xff] }
 0x3c8   :  { %4592 = vtanh.f32 %v5907_v63  ;;  %2573 = vst [vmem:[#allocation2 + $0x8] sm:$0xf] %v2571_v4  ;;  %v7227_v44 = vld [vmem:[#allocation76_spill] sm:$0xff]  ;;  %v7237_v4 = vld [vmem:[#allocation42_spill] sm:$0xff] }
 0x3c9   :  { %v2064_v57 = vpack.c.bf16 %v2062_v20, %v2062_v20  ;;  %v7225_v20 = vld [vmem:[#allocation75_spill] sm:$0xff] }
 0x3ca   :  { %2272 = vmatpush.bf16.msra.mxu1 %v7037_v18  ;;  %2300 = vmatpush.bf16.msra.mxu3 %v7127_v0 }
 0x3cb   :  { %2066 = vst [vmem:[#allocation2 + $0x4] sm:$0xf] %v2064_v57 }
 0x3cc   :  { %2068 = vst [vmem:[#allocation3] sm:$0xf] %v2064_v57  ;;  %v7226_v57 = vld [vmem:[#allocation72_spill] sm:$0xff] }
 0x3ce   :  { %v4593_v41 = vpop.eup %4592  ;;  %2321 = vmatpush.bf16.msrb.mxu1 %v7128_v24  ;;  %2349 = vmatpush.bf16.msrb.mxu3 %v7129_v46 }
 0x3cf   :  { %v2063_v2 = vmul.f32 %v4593_v41, %v2051_v55  ;;  %v7228_v55 = vld [vmem:[#allocation74_spill] sm:$0xff] }
 0x3d0   :  { %v7229_v41 = vld [vmem:[#allocation34_spill] sm:$0xff] }
 0x3d1   :  { %v2065_v47 = vpack.c.bf16 %v2063_v2, %v2063_v2  ;;  %v7230_v2 = vld [vmem:[#allocation32_spill] sm:$0xff] }
 0x3d2   :  { %2322 = vmatpush.bf16.msrb.mxu1 %v7041_v39  ;;  %2350 = vmatpush.bf16.msrb.mxu3 %v7130_v51  ;;  %v4422_v1 = vld [vmem:[#allocation2 + $0x4] sm:$0xf] }
 0x3d3   :  { %2067 = vst [vmem:[#allocation2 + $0xc] sm:$0xf] %v2065_v47  ;;  %v4208_v12 = vld [vmem:[#allocation3] sm:$0xf] }
 0x3d4   :  { %2069 = vst [vmem:[#allocation3 + $0x8] sm:$0xf] %v2065_v47  ;;  %v7231_v47 = vld [vmem:[#allocation78_spill] sm:$0xff] }
 0x3d6   :  { %2323 = vmatpush.bf16.msrb.mxu1 %v7043_v50  ;;  %2351 = vmatpush.bf16.msrb.mxu3 %v7044_v31 }
 0x3da   :  { %2324 = vmatpush.bf16.msrb.mxu1 %v7131_v49  ;;  %2352 = vmatpush.bf16.msrb.mxu3 %v5119_v33  ;;  %v4218_v35 = vld [vmem:[#allocation2 + $0x8] sm:$0xf0] }
 0x3db   :  { %v4421_v19 = vld [vmem:[#allocation3 + $0x4] sm:$0xf0]  ;;  %v4221_v53 = vor.u32 %v4422_v1, %v4218_v35  ;;  %v7232_v1 = vld [vmem:[#allocation77_spill] sm:$0xff]  ;;  %v7233_v35 = vld [vmem:[#allocation38_spill] sm:$0xff] }
 0x3dc   :  { %v4209_v59 = vor.u32 %v4421_v19, %v4208_v12  ;;  %v7234_v12 = vld [vmem:[#allocation36_spill] sm:$0xff] }
 0x3dd   :  { %2273 = vmatmul.bf16.vlgmr.msra.gmra.mxu1 %v4221_v53  ;;  %2301 = vmatmul.bf16.vlgmr.msra.gmra.mxu3 %v4221_v53  ;;  %v7235_v19 = vld [vmem:[#allocation80_spill] sm:$0xff] }
 0x3de   :  { %2090 = vmatmul.bf16.vlgmr.msra.gmra.mxu0 %v4209_v59  ;;  %2118 = vmatmul.bf16.vlgmr.msra.gmra.mxu2 %v4209_v59 }
 0x3df   :  { %2251 = vmatpush.bf16.msra.mxu0 %v4982_v10  ;;  %2279 = vmatpush.bf16.msra.mxu2 %v4978_v5 }
 0x3e0   :  { %2325 = vmatpush.bf16.msrb.mxu1 %v5137_v7  ;;  %2353 = vmatpush.bf16.msrb.mxu3 %v5131_v16 }
 0x3e3   :  { %2252 = vmatpush.bf16.msra.mxu0 %v4993_v23  ;;  %2280 = vmatpush.bf16.msra.mxu2 %v4985_v14 }
 0x3e4   :  { %2326 = vmatpush.bf16.msrb.mxu1 %v5149_v40  ;;  %2354 = vmatpush.bf16.msrb.mxu3 %v5143_v25 }
 0x3e7   :  { %2253 = vmatpush.bf16.msra.mxu0 %v5005_v36  ;;  %2281 = vmatpush.bf16.msra.mxu2 %v4997_v30 }
 0x3e8   :  { %2327 = vmatpush.bf16.msrb.mxu1 %v5161_v26  ;;  %2355 = vmatpush.bf16.msrb.mxu3 %v5155_v52 }
 0x3eb   :  { %2254 = vmatpush.bf16.msra.mxu0 %v7223_v21  ;;  %2282 = vmatpush.bf16.msra.mxu2 %v7224_v15 }
 0x3ec   :  { %2328 = vmatpush.bf16.msrb.mxu1 %v7225_v20  ;;  %2356 = vmatpush.bf16.msrb.mxu3 %v7226_v57 }
 0x3ee   :  { %2146 = vmatmul.bf16.vlgmr.msrb.gmra.mxu0 %v4209_v59  ;;  %2174 = vmatmul.bf16.vlgmr.msrb.gmra.mxu2 %v4209_v59  ;;  %v7238_v59 = vld [vmem:[#allocation40_spill] sm:$0xff] }
 0x3ef   :  { %2255 = vmatpush.bf16.msra.mxu0 %v7229_v41  ;;  %2283 = vmatpush.bf16.msra.mxu2 %v7230_v2  ;;  %v7240_v2 = vld [vmem:[#allocation81_spill] sm:$0xff] }
 0x3f0   :  { %2431 = vmatpush.bf16.msra.mxu1 %v7227_v44  ;;  %2459 = vmatpush.bf16.msra.mxu3 %v7228_v55  ;;  %v7239_v55 = vld [vmem:[#allocation82_spill] sm:$0xff] }
 0x3f1   :  { %2329 = vmatmul.bf16.vlgmr.msrb.gmra.mxu1 %v4221_v53  ;;  %2357 = vmatmul.bf16.vlgmr.msrb.gmra.mxu3 %v4221_v53  ;;  %v4217_v53 = vor.u32 %v4423_v54, %v4216_v9  ;;  %v7250_v9 = vld [vmem:[#allocation85_spill] sm:$0xff]  ;;  %v7251_v54 = vld [vmem:[#allocation58_spill] sm:$0xff] }
 0x3f2   :  { %v7316_v44 = vld [vmem:[#allocation142_spill] sm:$0xff] }
 0x3f3   :  { %2256 = vmatpush.bf16.msra.mxu0 %v7233_v35  ;;  %2284 = vmatpush.bf16.msra.mxu2 %v7234_v12  ;;  %v7243_v35 = vld [vmem:[#allocation49_spill] sm:$0xff]  ;;  %v7244_v12 = vld [vmem:[#allocation46_spill] sm:$0xff] }
 0x3f4   :  { %2432 = vmatpush.bf16.msra.mxu1 %v7231_v47  ;;  %2460 = vmatpush.bf16.msra.mxu3 %v7232_v1  ;;  %v7241_v47 = vld [vmem:[#allocation48_spill] sm:$0xff] }
 0x3f5   :  { %v7242_v1 = vld [vmem:[#allocation44_spill] sm:$0xff] }
 0x3f7   :  { %2257 = vmatpush.bf16.msra.mxu0 %v7237_v4  ;;  %2285 = vmatpush.bf16.msra.mxu2 %v7238_v59  ;;  %v7247_v59 = vld [vmem:[#allocation54_spill] sm:$0xff]  ;;  %v7315_v4 = vld [vmem:[#allocation141_spill] sm:$0xff] }
 0x3f8   :  { %2433 = vmatpush.bf16.msra.mxu1 %v7235_v19  ;;  %2461 = vmatpush.bf16.msra.mxu3 %v7236_v48  ;;  %v7245_v19 = vld [vmem:[#allocation84_spill] sm:$0xff]  ;;  %v7246_v48 = vld [vmem:[#allocation83_spill] sm:$0xff] }
 0x3fb   :  { %2258 = vmatpush.bf16.msra.mxu0 %v7241_v47  ;;  %2286 = vmatpush.bf16.msra.mxu2 %v7242_v1  ;;  %v7252_v1 = vld [vmem:[#allocation56_spill] sm:$0xff]  ;;  %v7257_v47 = vld [vmem:[#allocation91_spill] sm:$0xff] }
 0x3fc   :  { %2434 = vmatpush.bf16.msra.mxu1 %v7239_v55  ;;  %2462 = vmatpush.bf16.msra.mxu3 %v7240_v2  ;;  %v7248_v55 = vld [vmem:[#allocation52_spill] sm:$0xff]  ;;  %v7249_v2 = vld [vmem:[#allocation86_spill] sm:$0xff] }
 0x3fe   :  { %2259 = vmatmul.bf16.vlgmr.msra.gmra.mxu0 %v4217_v53  ;;  %2287 = vmatmul.bf16.vlgmr.msra.gmra.mxu2 %v4217_v53 }
 0x3ff   :  { %2307 = vmatpush.bf16.msrb.mxu0 %v7243_v35  ;;  %2335 = vmatpush.bf16.msrb.mxu2 %v7244_v12  ;;  %v7253_v35 = vld [vmem:[#allocation88_spill] sm:$0xff]  ;;  %v7254_v12 = vld [vmem:[#allocation87_spill] sm:$0xff] }
 0x400   :  { %2435 = vmatpush.bf16.msra.mxu1 %v7245_v19  ;;  %2463 = vmatpush.bf16.msra.mxu3 %v7246_v48  ;;  %v7255_v19 = vld [vmem:[#allocation61_spill] sm:$0xff]  ;;  %v7256_v48 = vld [vmem:[#allocation60_spill] sm:$0xff] }
 0x403   :  { %2308 = vmatpush.bf16.msrb.mxu0 %v7247_v59  ;;  %2336 = vmatpush.bf16.msrb.mxu2 %v7248_v55  ;;  %v7258_v59 = vld [vmem:[#allocation89_spill] sm:$0xff]  ;;  %v7259_v55 = vld [vmem:[#allocation92_spill] sm:$0xff] }
 0x404   :  { %2436 = vmatpush.bf16.msra.mxu1 %v7249_v2  ;;  %2464 = vmatpush.bf16.msra.mxu3 %v7250_v9  ;;  %v7260_v2 = vld [vmem:[#allocation90_spill] sm:$0xff]  ;;  %v7261_v9 = vld [vmem:[#allocation64_spill] sm:$0xff] }
 0x407   :  { %2309 = vmatpush.bf16.msrb.mxu0 %v7251_v54  ;;  %2337 = vmatpush.bf16.msrb.mxu2 %v7252_v1  ;;  %v7262_v54 = vld [vmem:[#allocation63_spill] sm:$0xff]  ;;  %v7263_v1 = vld [vmem:[#allocation93_spill] sm:$0xff] }
 0x408   :  { %2437 = vmatpush.bf16.msra.mxu1 %v7253_v35  ;;  %2465 = vmatpush.bf16.msra.mxu3 %v7254_v12  ;;  %v7264_v35 = vld [vmem:[#allocation94_spill] sm:$0xff] }
 0x409   :  { %v7265_v12 = vld [vmem:[#allocation66_spill] sm:$0xff] }
 0x40b   :  { %2310 = vmatpush.bf16.msrb.mxu0 %v7255_v19  ;;  %2338 = vmatpush.bf16.msrb.mxu2 %v7256_v48  ;;  %v7266_v19 = vld [vmem:[#allocation65_spill] sm:$0xff]  ;;  %v7267_v48 = vld [vmem:[#allocation95_spill] sm:$0xff] }
 0x40c   :  { %2438 = vmatpush.bf16.msra.mxu1 %v7257_v47  ;;  %2466 = vmatpush.bf16.msra.mxu3 %v7258_v59  ;;  %v7268_v47 = vld [vmem:[#allocation96_spill] sm:$0xff]  ;;  %v7269_v59 = vld [vmem:[#allocation69_spill] sm:$0xff] }
 0x40f   :  { %2311 = vmatpush.bf16.msrb.mxu0 %v7261_v9  ;;  %2339 = vmatpush.bf16.msrb.mxu2 %v7262_v54  ;;  %v7272_v9 = vld [vmem:[#allocation98_spill] sm:$0xff]  ;;  %v7273_v54 = vld [vmem:[#allocation73_spill] sm:$0xff] }
 0x410   :  { %2487 = vmatpush.bf16.msrb.mxu1 %v7259_v55  ;;  %2515 = vmatpush.bf16.msrb.mxu3 %v7260_v2  ;;  %v7270_v55 = vld [vmem:[#allocation67_spill] sm:$0xff]  ;;  %v7271_v2 = vld [vmem:[#allocation97_spill] sm:$0xff] }
 0x413   :  { %2312 = vmatpush.bf16.msrb.mxu0 %v7265_v12  ;;  %2340 = vmatpush.bf16.msrb.mxu2 %v7266_v19  ;;  %v7276_v12 = vld [vmem:[#allocation100_spill] sm:$0xff]  ;;  %v7277_v19 = vld [vmem:[#allocation101_spill] sm:$0xff] }
 0x414   :  { %2488 = vmatpush.bf16.msrb.mxu1 %v7263_v1  ;;  %2516 = vmatpush.bf16.msrb.mxu3 %v7264_v35  ;;  %v7274_v1 = vld [vmem:[#allocation71_spill] sm:$0xff] }
 0x415   :  { %v7275_v35 = vld [vmem:[#allocation99_spill] sm:$0xff] }
 0x417   :  { %2313 = vmatpush.bf16.msrb.mxu0 %v7269_v59  ;;  %2341 = vmatpush.bf16.msrb.mxu2 %v7270_v55  ;;  %v7280_v55 = vld [vmem:[#allocation104_spill] sm:$0xff] }
 0x418   :  { %2489 = vmatpush.bf16.msrb.mxu1 %v7267_v48  ;;  %2517 = vmatpush.bf16.msrb.mxu3 %v7268_v47  ;;  %v7278_v48 = vld [vmem:[#allocation102_spill] sm:$0xff]  ;;  %v7279_v47 = vld [vmem:[#allocation103_spill] sm:$0xff] }
 0x41b   :  { %2314 = vmatpush.bf16.msrb.mxu0 %v7273_v54  ;;  %2342 = vmatpush.bf16.msrb.mxu2 %v7274_v1  ;;  %v7283_v54 = vld [vmem:[#allocation107_spill] sm:$0xff]  ;;  %v7284_v1 = vld [vmem:[#allocation108_spill] sm:$0xff] }
 0x41c   :  { %2490 = vmatpush.bf16.msrb.mxu1 %v7271_v2  ;;  %2518 = vmatpush.bf16.msrb.mxu3 %v7272_v9  ;;  %v7281_v2 = vld [vmem:[#allocation105_spill] sm:$0xff]  ;;  %v7282_v9 = vld [vmem:[#allocation106_spill] sm:$0xff] }
 0x41e   :  { %2315 = vmatmul.bf16.vlgmr.msrb.gmra.mxu0 %v4217_v53  ;;  %2343 = vmatmul.bf16.vlgmr.msrb.gmra.mxu2 %v4217_v53  ;;  %v7289_v53 = vld [vmem:[#allocation113_spill] sm:$0xff] }
 0x41f   :  { %2417 = vmatpush.bf16.msra.mxu0 %v7275_v35  ;;  %2445 = vmatpush.bf16.msra.mxu2 %v7276_v12  ;;  %v7285_v35 = vld [vmem:[#allocation109_spill] sm:$0xff]  ;;  %v7286_v12 = vld [vmem:[#allocation110_spill] sm:$0xff] }
 0x420   :  { %2491 = vmatpush.bf16.msrb.mxu1 %v7277_v19  ;;  %2519 = vmatpush.bf16.msrb.mxu3 %v7278_v48  ;;  %v7287_v19 = vld [vmem:[#allocation111_spill] sm:$0xff]  ;;  %v7288_v48 = vld [vmem:[#allocation112_spill] sm:$0xff] }
 0x423   :  { %2418 = vmatpush.bf16.msra.mxu0 %v7279_v47  ;;  %2446 = vmatpush.bf16.msra.mxu2 %v7280_v55  ;;  %v7290_v47 = vld [vmem:[#allocation114_spill] sm:$0xff]  ;;  %v7291_v55 = vld [vmem:[#allocation115_spill] sm:$0xff] }
 0x424   :  { %2492 = vmatpush.bf16.msrb.mxu1 %v7281_v2  ;;  %2520 = vmatpush.bf16.msrb.mxu3 %v7282_v9  ;;  %v7292_v2 = vld [vmem:[#allocation116_spill] sm:$0xff]  ;;  %v7293_v9 = vld [vmem:[#allocation117_spill] sm:$0xff] }
 0x427   :  { %2419 = vmatpush.bf16.msra.mxu0 %v7283_v54  ;;  %2447 = vmatpush.bf16.msra.mxu2 %v7284_v1  ;;  %v7294_v54 = vld [vmem:[#allocation118_spill] sm:$0xff]  ;;  %v7295_v1 = vld [vmem:[#allocation119_spill] sm:$0xff] }
 0x428   :  { %2493 = vmatpush.bf16.msrb.mxu1 %v7285_v35  ;;  %2521 = vmatpush.bf16.msrb.mxu3 %v7286_v12  ;;  %v7296_v35 = vld [vmem:[#allocation120_spill] sm:$0xff]  ;;  %v7297_v12 = vld [vmem:[#allocation122_spill] sm:$0xff] }
 0x42b   :  { %2420 = vmatpush.bf16.msra.mxu0 %v7287_v19  ;;  %2448 = vmatpush.bf16.msra.mxu2 %v7288_v48  ;;  %v7298_v19 = vld [vmem:[#allocation123_spill] sm:$0xff]  ;;  %v7299_v48 = vld [vmem:[#allocation124_spill] sm:$0xff] }
 0x42c   :  { %2494 = vmatpush.bf16.msrb.mxu1 %v7289_v53  ;;  %2522 = vmatpush.bf16.msrb.mxu3 %v7290_v47  ;;  %v7300_v53 = vld [vmem:[#allocation125_spill] sm:$0xff]  ;;  %v7301_v47 = vld [vmem:[#allocation126_spill] sm:$0xff] }
 0x42f   :  { %2421 = vmatpush.bf16.msra.mxu0 %v7291_v55  ;;  %2449 = vmatpush.bf16.msra.mxu2 %v7292_v2  ;;  %v7302_v55 = vld [vmem:[#allocation127_spill] sm:$0xff]  ;;  %v7303_v2 = vld [vmem:[#allocation128_spill] sm:$0xff] }
 0x430   :  { %v2133_v59 = vpop.f32.mrf.mxu3 }
 0x433   :  { %2422 = vmatpush.bf16.msra.mxu0 %v7293_v9  ;;  %2450 = vmatpush.bf16.msra.mxu2 %v7294_v54  ;;  %v7304_v9 = vld [vmem:[#allocation129_spill] sm:$0xff]  ;;  %v7305_v54 = vld [vmem:[#allocation130_spill] sm:$0xff] }
 0x437   :  { %2423 = vmatpush.bf16.msra.mxu0 %v7295_v1  ;;  %2451 = vmatpush.bf16.msra.mxu2 %v7296_v35  ;;  %v7306_v1 = vld [vmem:[#allocation131_spill] sm:$0xff]  ;;  %v7307_v35 = vld [vmem:[#allocation133_spill] sm:$0xff] }
 0x438   :  { %v2135_v20 = vpop.f32.mrf.mxu3 }
 0x43b   :  { %2424 = vmatpush.bf16.msra.mxu0 %v7297_v12  ;;  %2452 = vmatpush.bf16.msra.mxu2 %v7298_v19  ;;  %v7308_v12 = vld [vmem:[#allocation134_spill] sm:$0xff]  ;;  %v7309_v19 = vld [vmem:[#allocation135_spill] sm:$0xff] }
 0x43f   :  { %2473 = vmatpush.bf16.msrb.mxu0 %v7299_v48  ;;  %2501 = vmatpush.bf16.msrb.mxu2 %v7300_v53  ;;  %v7310_v48 = vld [vmem:[#allocation136_spill] sm:$0xff]  ;;  %v7311_v53 = vld [vmem:[#allocation137_spill] sm:$0xff] }
 0x440   :  { %v2189_v36 = vpop.f32.mrf.mxu3 }
 0x443   :  { %2474 = vmatpush.bf16.msrb.mxu0 %v7301_v47  ;;  %2502 = vmatpush.bf16.msrb.mxu2 %v7302_v55  ;;  %v7312_v47 = vld [vmem:[#allocation138_spill] sm:$0xff]  ;;  %v7313_v55 = vld [vmem:[#allocation139_spill] sm:$0xff] }
 0x447   :  { %2475 = vmatpush.bf16.msrb.mxu0 %v7303_v2  ;;  %2503 = vmatpush.bf16.msrb.mxu2 %v7304_v9  ;;  %v7314_v2 = vld [vmem:[#allocation140_spill] sm:$0xff]  ;;  %v2105_v9 = vpop.f32.mrf.mxu1 }
 0x44b   :  { %2476 = vmatpush.bf16.msrb.mxu0 %v7305_v54  ;;  %2504 = vmatpush.bf16.msrb.mxu2 %v7306_v1 }
 0x44f   :  { %2477 = vmatpush.bf16.msrb.mxu0 %v7307_v35  ;;  %2505 = vmatpush.bf16.msrb.mxu2 %v7308_v12  ;;  %v2107_v41 = vpop.f32.mrf.mxu1 }
 0x453   :  { %2478 = vmatpush.bf16.msrb.mxu0 %v7309_v19  ;;  %2506 = vmatpush.bf16.msrb.mxu2 %v7310_v48 }
 0x457   :  { %2479 = vmatpush.bf16.msrb.mxu0 %v7311_v53  ;;  %2507 = vmatpush.bf16.msrb.mxu2 %v7312_v47  ;;  %v2161_v26 = vpop.f32.mrf.mxu1 }
 0x45b   :  { %2480 = vmatpush.bf16.msrb.mxu0 %v7313_v55  ;;  %2508 = vmatpush.bf16.msrb.mxu2 %v7314_v2  ;;  %v2091_v54 = vpop.f32.mrf.mxu0 }
 0x45c   :  { %v2092_v35 = vadd.f32 %v2091_v54, %v7315_v4 }
 0x45e   :  { %v2106_v48 = vadd.f32 %v2105_v9, %v2092_v35 }
 0x460   :  { %v2194_v55 = vmul.f32 0.5, %v2106_v48 }
 0x461   :  { %v2119_v1 = vpop.f32.mrf.mxu2 }
 0x462   :  { %v2120_v12 = vadd.f32 %v2119_v1, %v7316_v44 }
 0x463   :  { %v2093_v19 = vpop.f32.mrf.mxu0 }
 0x464   :  { %v2134_v57 = vadd.f32 %v2133_v59, %v2120_v12  ;;  %v2094_v47 = vadd.f32 %v2093_v19, %v7315_v4 }
 0x466   :  { %v2195_v53 = vmul.f32 0.5, %v2134_v57  ;;  %v2108_v30 = vadd.f32 %v2107_v41, %v2094_v47 }
 0x468   :  { %4594 = vtanh.f32 %v2195_v53  ;;  %v2197_v12 = vmul.f32 0.5, %v2108_v30 }
 0x469   :  { %v2121_v15 = vpop.f32.mrf.mxu2  ;;  %4596 = vtanh.f32 %v2194_v55 }
 0x46a   :  { %v2122_v2 = vadd.f32 %v2121_v15, %v7316_v44 }
 0x46b   :  { %v2147_v21 = vpop.f32.mrf.mxu0 }
 0x46c   :  { %v2136_v52 = vadd.f32 %v2135_v20, %v2122_v2  ;;  %v2148_v54 = vadd.f32 %v2147_v21, %v5547_v42  ;;  %v2163_v21 = vpop.f32.mrf.mxu1 }
 0x46e   :  { %v2198_v1 = vmul.f32 0.5, %v2136_v52  ;;  %v2162_v35 = vadd.f32 %v2161_v26, %v2148_v54  ;;  %v4595_v57 = vpop.eup %4594 }
 0x46f   :  { %v4597_v48 = vpop.eup %4596  ;;  %v2207_v20 = vmul.f32 0.5, %v4595_v57 }
 0x470   :  { %4598 = vtanh.f32 %v2198_v1  ;;  %v2196_v41 = vmul.f32 0.5, %v2162_v35  ;;  %v2206_v55 = vmul.f32 0.5, %v4597_v48 }
 0x471   :  { %v2175_v59 = vpop.f32.mrf.mxu2  ;;  %4600 = vtanh.f32 %v2197_v12  ;;  %v2213_v2 = vadd.f32 0.5, %v2207_v20 }
 0x472   :  { %v2176_v19 = vadd.f32 %v2175_v59, %v7217_v38  ;;  %v2191_v59 = vpop.f32.mrf.mxu3  ;;  %v2212_v44 = vadd.f32 0.5, %v2206_v55  ;;  %v7317_v55 = vld [vmem:[#allocation132_spill] sm:$0xff] }
 0x473   :  { %v2149_v9 = vpop.f32.mrf.mxu0  ;;  %v2220_v57 = vmul.f32 %v2213_v2, %v5875_v61 }
 0x474   :  { %v2190_v15 = vadd.f32 %v2189_v36, %v2176_v19  ;;  %v2150_v53 = vadd.f32 %v2149_v9, %v5547_v42 }
 0x476   :  { %4602 = vtanh.f32 %v2190_v15  ;;  %v2164_v52 = vadd.f32 %v2163_v21, %v2150_v53  ;;  %v4599_v26 = vpop.eup %4598 }
 0x477   :  { %4604 = vtanh.f32 %v2196_v41  ;;  %v4601_v54 = vpop.eup %4600  ;;  %v2210_v12 = vmul.f32 0.5, %v4599_v26 }
 0x478   :  { %v2199_v36 = vmul.f32 0.5, %v2164_v52  ;;  %v2209_v48 = vmul.f32 0.5, %v4601_v54 }
 0x479   :  { %v2177_v30 = vpop.f32.mrf.mxu2  ;;  %v2216_v53 = vadd.f32 0.5, %v2210_v12 }
 0x47a   :  { %v2178_v47 = vadd.f32 %v2177_v30, %v7217_v38  ;;  %v2215_v41 = vadd.f32 0.5, %v2209_v48 }
 0x47b   :  { %v2221_v30 = vmul.f32 %v2216_v53, %v7317_v55  ;;  %v2260_v2 = vpop.f32.mrf.mxu0 }
 0x47c   :  { %v4603_v1 = vpop.eup %4602  ;;  %v2192_v19 = vadd.f32 %v2191_v59, %v2178_v47  ;;  %v2274_v59 = vpop.f32.mrf.mxu1  ;;  %v2261_v48 = vadd.f32 %v2260_v2, %v7021_v3 }
 0x47d   :  { %v2222_v35 = vmul.f32 %v4603_v1, %v2212_v44  ;;  %v4605_v9 = vpop.eup %4604 }
 0x47e   :  { %4606 = vtanh.f32 %v2192_v19  ;;  %v2208_v20 = vmul.f32 0.5, %v4605_v9 }
 0x47f   :  { %v6035_v15 = vadd.f32 %v2222_v35, %v2220_v57  ;;  %4608 = vtanh.f32 %v2199_v36  ;;  %v2302_v36 = vpop.f32.mrf.mxu3 }
 0x480   :  { %v2214_v61 = vadd.f32 0.5, %v2208_v20 }
 0x481   :  { %4610 = vtanh.f32 %v6035_v15  ;;  %v2288_v1 = vpop.f32.mrf.mxu2 }
 0x482   :  { %v2289_v12 = vadd.f32 %v2288_v1, %v5326_v45 }
 0x484   :  { %v4607_v21 = vpop.eup %4606  ;;  %v2276_v53 = vpop.f32.mrf.mxu1 }
 0x485   :  { %v2223_v52 = vmul.f32 %v4607_v21, %v2215_v41  ;;  %v4609_v47 = vpop.eup %4608  ;;  %v2262_v41 = vpop.f32.mrf.mxu0  ;;  %v2303_v21 = vadd.f32 %v2302_v36, %v2289_v12 }
 0x486   :  { %v2211_v57 = vmul.f32 0.5, %v4609_v47  ;;  %v2263_v47 = vadd.f32 %v2262_v41, %v7021_v3 }
 0x487   :  { %v4611_v44 = vpop.eup %4610  ;;  %v6039_v26 = vadd.f32 %v2223_v52, %v2221_v30  ;;  %v2275_v52 = vadd.f32 %v2274_v59, %v2261_v48 }
 0x488   :  { %v2228_v54 = vmul.f32 %v4611_v44, %v2214_v61  ;;  %v2217_v35 = vadd.f32 0.5, %v2211_v57  ;;  %v2304_v61 = vpop.f32.mrf.mxu3  ;;  %v2364_v44 = vmul.f32 0.5, %v2303_v21  ;;  %v2277_v2 = vadd.f32 %v2276_v53, %v2263_v47 }
 0x489   :  { %7318 = vst [vmem:[#allocation31_spill] sm:$0xff] %v6039_v26  ;;  %4612 = vtanh.f32 %v6039_v26  ;;  %v2290_v30 = vpop.f32.mrf.mxu2 }
 0x48a   :  { %v2230_v19 = vpack.c.bf16 %v2228_v54, %v2228_v54  ;;  %v2291_v54 = vadd.f32 %v2290_v30, %v5326_v45  ;;  %4614 = vtanh.f32 %v2364_v44 }
 0x48c   :  { %2232 = vst [vmem:[#allocation3 + $0x4] sm:$0xf] %v2230_v19  ;;  %v2363_v19 = vmul.f32 0.5, %v2275_v52  ;;  %v2305_v57 = vadd.f32 %v2304_v61, %v2291_v54  ;;  %v2330_v26 = vpop.f32.mrf.mxu1 }
 0x48e   :  { %4616 = vtanh.f32 %v2363_v19  ;;  %v2367_v59 = vmul.f32 0.5, %v2305_v57 }
 0x48f   :  { %v4613_v9 = vpop.eup %4612 }
 0x490   :  { %v2229_v20 = vmul.f32 %v4613_v9, %v2217_v35  ;;  %v2358_v48 = vpop.f32.mrf.mxu3  ;;  %v4615_v41 = vpop.eup %4614  ;;  %4618 = vtanh.f32 %v2367_v59 }
 0x491   :  { %v2376_v54 = vmul.f32 0.5, %v4615_v41 }
 0x492   :  { %v2231_v55 = vpack.c.bf16 %v2229_v20, %v2229_v20  ;;  %v2366_v20 = vmul.f32 0.5, %v2277_v2 }
 0x493   :  { %v4424_v36 = vld [vmem:[#allocation3 + $0x4] sm:$0xf]  ;;  %v2382_v57 = vadd.f32 0.5, %v2376_v54 }
 0x494   :  { %2233 = vst [vmem:[#allocation3 + $0xc] sm:$0xf] %v2231_v55  ;;  %v4617_v52 = vpop.eup %4616  ;;  %4620 = vtanh.f32 %v2366_v20 }
 0x495   :  { %v2375_v19 = vmul.f32 0.5, %v4617_v52  ;;  %v2389_v41 = vmul.f32 %v2382_v57, %v5899_v29 }
 0x498   :  { %v2360_v59 = vpop.f32.mrf.mxu3 }
 0x49b   :  { %v2316_v1 = vpop.f32.mrf.mxu0  ;;  %v4226_v12 = vld [vmem:[#allocation3 + $0x8] sm:$0xf0] }
 0x49c   :  { %v2317_v35 = vadd.f32 %v2316_v1, %v5374_v8  ;;  %v4229_v9 = vor.u32 %v4424_v36, %v4226_v12 }
 0x49e   :  { %v2331_v21 = vadd.f32 %v2330_v26, %v2317_v35  ;;  %2439 = vmatmul.bf16.vlgmr.msra.gmra.mxu1 %v4229_v9  ;;  %2467 = vmatmul.bf16.vlgmr.msra.gmra.mxu3 %v4229_v9  ;;  %v2332_v26 = vpop.f32.mrf.mxu1  ;;  %v4619_v35 = vpop.eup %4618 }
 0x49f   :  { %2600 = vmatpush.bf16.msra.mxu1 %v7121_v34  ;;  %2628 = vmatpush.bf16.msra.mxu3 %v7220_v27  ;;  %v4621_v12 = vpop.eup %4620 }
 0x4a0   :  { %v2365_v47 = vmul.f32 0.5, %v2331_v21 }
 0x4a1   :  { %v2344_v55 = vpop.f32.mrf.mxu2 }
 0x4a2   :  { %v2345_v30 = vadd.f32 %v2344_v55, %v7022_v43 }
 0x4a3   :  { %v2318_v53 = vpop.f32.mrf.mxu0  ;;  %2601 = vmatpush.bf16.msra.mxu1 %v7221_v32  ;;  %2629 = vmatpush.bf16.msra.mxu3 %v7222_v37 }
 0x4a4   :  { %v2359_v61 = vadd.f32 %v2358_v48, %v2345_v30  ;;  %v2319_v44 = vadd.f32 %v2318_v53, %v5374_v8  ;;  %v2381_v48 = vadd.f32 0.5, %v2375_v19  ;;  %v2379_v30 = vmul.f32 0.5, %v4619_v35 }
 0x4a6   :  { %4622 = vtanh.f32 %v2359_v61  ;;  %v2333_v1 = vadd.f32 %v2332_v26, %v2319_v44  ;;  %v2378_v61 = vmul.f32 0.5, %v4621_v12  ;;  %v2385_v54 = vadd.f32 0.5, %v2379_v30 }
 0x4a7   :  { %4624 = vtanh.f32 %v2365_v47  ;;  %2602 = vmatpush.bf16.msra.mxu1 %v7125_v17  ;;  %2630 = vmatpush.bf16.msra.mxu3 %v7126_v22 }
 0x4a8   :  { %v2368_v21 = vmul.f32 0.5, %v2333_v1  ;;  %v2384_v29 = vadd.f32 0.5, %v2378_v61  ;;  %v2390_v19 = vmul.f32 %v2385_v54, %v5907_v63  ;;  %v4232_v54 = vld [vmem:[#allocation2] sm:$0xf] }
 0x4a9   :  { %v2346_v2 = vpop.f32.mrf.mxu2 }
 0x4aa   :  { %v2347_v36 = vadd.f32 %v2346_v2, %v7022_v43 }
 0x4ab   :  { %2603 = vmatpush.bf16.msra.mxu1 %v7029_v28  ;;  %2631 = vmatpush.bf16.msra.mxu3 %v7030_v58 }
 0x4ac   :  { %v4623_v20 = vpop.eup %4622  ;;  %v2361_v55 = vadd.f32 %v2360_v59, %v2347_v36 }
 0x4ad   :  { %v2391_v53 = vmul.f32 %v4623_v20, %v2381_v48  ;;  %v4625_v52 = vpop.eup %4624 }
 0x4ae   :  { %4626 = vtanh.f32 %v2361_v55  ;;  %2495 = vmatmul.bf16.vlgmr.msrb.gmra.mxu1 %v4229_v9  ;;  %2523 = vmatmul.bf16.vlgmr.msrb.gmra.mxu3 %v4229_v9  ;;  %v2377_v47 = vmul.f32 0.5, %v4625_v52 }
 0x4af   :  { %v6059_v44 = vadd.f32 %v2391_v53, %v2389_v41  ;;  %4628 = vtanh.f32 %v2368_v21  ;;  %2604 = vmatpush.bf16.msra.mxu1 %v7031_v56  ;;  %2632 = vmatpush.bf16.msra.mxu3 %v7032_v62 }
 0x4b0   :  { %v2383_v2 = vadd.f32 0.5, %v2377_v47  ;;  %v2905_v47 = vld [vmem:[#allocation7 + $0x30] sm:$0xf] }
 0x4b1   :  { %4630 = vtanh.f32 %v6059_v44  ;;  %2907 = vst [vmem:[#allocation2] sm:$0xf] %v2905_v47  ;;  %v7335_v47 = vld [vmem:[#allocation42_spill] sm:$0xff] }
 0x4b3   :  { %2605 = vmatpush.bf16.msra.mxu1 %v7033_v60  ;;  %2633 = vmatpush.bf16.msra.mxu3 %v7034_v6 }
 0x4b4   :  { %v4627_v26 = vpop.eup %4626 }
 0x4b5   :  { %v2392_v1 = vmul.f32 %v4627_v26, %v2384_v29  ;;  %v4629_v57 = vpop.eup %4628  ;;  %v2906_v29 = vld [vmem:[#allocation7 + $0x34] sm:$0xf]  ;;  %v4427_v26 = vld [vmem:[#allocation2 + $0x4] sm:$0xf0] }
 0x4b6   :  { %v2380_v59 = vmul.f32 0.5, %v4629_v57  ;;  %2908 = vst [vmem:[#allocation2 + $0x8] sm:$0xf] %v2906_v29  ;;  %v7321_v57 = vld [vmem:[#allocation70_spill] sm:$0xff]  ;;  %v7337_v29 = vld [vmem:[#allocation40_spill] sm:$0xff] }
 0x4b7   :  { %v4631_v35 = vpop.eup %4630  ;;  %v6067_v36 = vadd.f32 %v2392_v1, %v2390_v19  ;;  %2606 = vmatpush.bf16.msra.mxu1 %v7035_v13  ;;  %2634 = vmatpush.bf16.msra.mxu3 %v7036_v11  ;;  %v7319_v19 = vld [vmem:[#allocation26_spill] sm:$0xff]  ;;  %v7320_v1 = vld [vmem:[#allocation23_spill] sm:$0xff] }
 0x4b8   :  { %v2397_v9 = vmul.f32 %v4631_v35, %v2383_v2  ;;  %v2386_v63 = vadd.f32 0.5, %v2380_v59  ;;  %v7322_v2 = vld [vmem:[#allocation68_spill] sm:$0xff]  ;;  %v7323_v35 = vld [vmem:[#allocation30_spill] sm:$0xff] }
 0x4b9   :  { %4632 = vtanh.f32 %v6067_v36  ;;  %v7326_v59 = vld [vmem:[#allocation72_spill] sm:$0xff] }
 0x4ba   :  { %v2399_v12 = vpack.c.bf16 %v2397_v9, %v2397_v9  ;;  %v7324_v9 = vld [vmem:[#allocation28_spill] sm:$0xff] }
 0x4bb   :  { %2607 = vmatpush.bf16.msra.mxu1 %v7037_v18  ;;  %2635 = vmatpush.bf16.msra.mxu3 %v7127_v0 }
 0x4bc   :  { %2403 = vst [vmem:[#allocation3] sm:$0xf] %v2399_v12 }
 0x4bd   :  { %2401 = vst [vmem:[#allocation2 + $0x4] sm:$0xf] %v2399_v12  ;;  %v7325_v12 = vld [vmem:[#allocation75_spill] sm:$0xff] }
 0x4bf   :  { %v4633_v48 = vpop.eup %4632  ;;  %2656 = vmatpush.bf16.msrb.mxu1 %v7128_v24  ;;  %2684 = vmatpush.bf16.msrb.mxu3 %v7129_v46 }
 0x4c0   :  { %v2398_v20 = vmul.f32 %v4633_v48, %v2386_v63  ;;  %v7327_v63 = vld [vmem:[#allocation34_spill] sm:$0xff]  ;;  %v7328_v48 = vld [vmem:[#allocation76_spill] sm:$0xff] }
 0x4c2   :  { %v2400_v21 = vpack.c.bf16 %v2398_v20, %v2398_v20  ;;  %v7329_v20 = vld [vmem:[#allocation32_spill] sm:$0xff] }
 0x4c3   :  { %2657 = vmatpush.bf16.msrb.mxu1 %v7041_v39  ;;  %2685 = vmatpush.bf16.msrb.mxu3 %v7130_v51  ;;  %v4224_v55 = vld [vmem:[#allocation3] sm:$0xf] }
 0x4c4   :  { %2404 = vst [vmem:[#allocation3 + $0x8] sm:$0xf] %v2400_v21  ;;  %v4426_v53 = vld [vmem:[#allocation2 + $0x4] sm:$0xf] }
 0x4c5   :  { %2402 = vst [vmem:[#allocation2 + $0xc] sm:$0xf] %v2400_v21  ;;  %v7330_v21 = vld [vmem:[#allocation74_spill] sm:$0xff] }
 0x4c7   :  { %2658 = vmatpush.bf16.msrb.mxu1 %v7043_v50  ;;  %2686 = vmatpush.bf16.msrb.mxu3 %v7044_v31 }
 0x4cb   :  { %2659 = vmatpush.bf16.msrb.mxu1 %v7131_v49  ;;  %2687 = vmatpush.bf16.msrb.mxu3 %v5119_v33  ;;  %v4425_v41 = vld [vmem:[#allocation3 + $0x4] sm:$0xf0] }
 0x4cc   :  { %v4225_v30 = vor.u32 %v4425_v41, %v4224_v55  ;;  %v4234_v52 = vld [vmem:[#allocation2 + $0x8] sm:$0xf0] }
 0x4cd   :  { %v4237_v61 = vor.u32 %v4426_v53, %v4234_v52  ;;  %v7331_v55 = vld [vmem:[#allocation38_spill] sm:$0xff]  ;;  %v7333_v53 = vld [vmem:[#allocation36_spill] sm:$0xff]  ;;  %v7334_v52 = vld [vmem:[#allocation77_spill] sm:$0xff] }
 0x4ce   :  { %2425 = vmatmul.bf16.vlgmr.msra.gmra.mxu0 %v4225_v30  ;;  %2453 = vmatmul.bf16.vlgmr.msra.gmra.mxu2 %v4225_v30  ;;  %v7332_v41 = vld [vmem:[#allocation78_spill] sm:$0xff] }
 0x4cf   :  { %2586 = vmatpush.bf16.msra.mxu0 %v4982_v10  ;;  %2608 = vmatmul.bf16.vlgmr.msra.gmra.mxu1 %v4237_v61 }
 0x4d0   :  { %2614 = vmatpush.bf16.msra.mxu2 %v4978_v5  ;;  %2636 = vmatmul.bf16.vlgmr.msra.gmra.mxu3 %v4237_v61 }
 0x4d1   :  { %2660 = vmatpush.bf16.msrb.mxu1 %v5137_v7  ;;  %2688 = vmatpush.bf16.msrb.mxu3 %v5131_v16 }
 0x4d3   :  { %2587 = vmatpush.bf16.msra.mxu0 %v4993_v23 }
 0x4d4   :  { %2615 = vmatpush.bf16.msra.mxu2 %v4985_v14 }
 0x4d5   :  { %2661 = vmatpush.bf16.msrb.mxu1 %v5149_v40  ;;  %2689 = vmatpush.bf16.msrb.mxu3 %v5143_v25 }
 0x4d7   :  { %2588 = vmatpush.bf16.msra.mxu0 %v7319_v19 }
 0x4d8   :  { %2616 = vmatpush.bf16.msra.mxu2 %v7320_v1 }
 0x4d9   :  { %2662 = vmatpush.bf16.msrb.mxu1 %v7321_v57  ;;  %2690 = vmatpush.bf16.msrb.mxu3 %v7322_v2 }
 0x4db   :  { %2589 = vmatpush.bf16.msra.mxu0 %v7323_v35 }
 0x4dc   :  { %2617 = vmatpush.bf16.msra.mxu2 %v7324_v9 }
 0x4dd   :  { %2663 = vmatpush.bf16.msrb.mxu1 %v7325_v12  ;;  %2691 = vmatpush.bf16.msrb.mxu3 %v7326_v59 }
 0x4de   :  { %2481 = vmatmul.bf16.vlgmr.msrb.gmra.mxu0 %v4225_v30  ;;  %2509 = vmatmul.bf16.vlgmr.msrb.gmra.mxu2 %v4225_v30  ;;  %v7336_v30 = vld [vmem:[#allocation80_spill] sm:$0xff] }
 0x4df   :  { %2590 = vmatpush.bf16.msra.mxu0 %v7327_v63  ;;  %v4233_v63 = vor.u32 %v4427_v26, %v4232_v54  ;;  %v7347_v54 = vld [vmem:[#allocation52_spill] sm:$0xff]  ;;  %v7348_v26 = vld [vmem:[#allocation83_spill] sm:$0xff] }
 0x4e0   :  { %2618 = vmatpush.bf16.msra.mxu2 %v7329_v20  ;;  %2664 = vmatmul.bf16.vlgmr.msrb.gmra.mxu1 %v4237_v61  ;;  %v7338_v20 = vld [vmem:[#allocation79_spill] sm:$0xff] }
 0x4e1   :  { %2766 = vmatpush.bf16.msra.mxu1 %v7328_v48  ;;  %2692 = vmatmul.bf16.vlgmr.msrb.gmra.mxu3 %v4237_v61  ;;  %v7339_v61 = vld [vmem:[#allocation48_spill] sm:$0xff] }
 0x4e2   :  { %2794 = vmatpush.bf16.msra.mxu3 %v7330_v21  ;;  %v7340_v21 = vld [vmem:[#allocation82_spill] sm:$0xff] }
 0x4e3   :  { %2591 = vmatpush.bf16.msra.mxu0 %v7331_v55  ;;  %v7341_v55 = vld [vmem:[#allocation44_spill] sm:$0xff] }
 0x4e4   :  { %2619 = vmatpush.bf16.msra.mxu2 %v7333_v53  ;;  %v7343_v53 = vld [vmem:[#allocation46_spill] sm:$0xff] }
 0x4e5   :  { %2767 = vmatpush.bf16.msra.mxu1 %v7332_v41  ;;  %v7342_v41 = vld [vmem:[#allocation49_spill] sm:$0xff] }
 0x4e6   :  { %2795 = vmatpush.bf16.msra.mxu3 %v7334_v52  ;;  %v7344_v52 = vld [vmem:[#allocation81_spill] sm:$0xff] }
 0x4e7   :  { %2592 = vmatpush.bf16.msra.mxu0 %v7335_v47  ;;  %v7345_v47 = vld [vmem:[#allocation84_spill] sm:$0xff] }
 0x4e8   :  { %2620 = vmatpush.bf16.msra.mxu2 %v7337_v29  ;;  %v7346_v29 = vld [vmem:[#allocation54_spill] sm:$0xff] }
 0x4e9   :  { %2768 = vmatpush.bf16.msra.mxu1 %v7336_v30  ;;  %v7415_v30 = vld [vmem:[#allocation142_spill] sm:$0xff] }
 0x4ea   :  { %2796 = vmatpush.bf16.msra.mxu3 %v7338_v20  ;;  %v7355_v20 = vld [vmem:[#allocation60_spill] sm:$0xff] }
 0x4eb   :  { %2593 = vmatpush.bf16.msra.mxu0 %v7339_v61  ;;  %v7349_v61 = vld [vmem:[#allocation86_spill] sm:$0xff] }
 0x4ec   :  { %2621 = vmatpush.bf16.msra.mxu2 %v7341_v55  ;;  %v7351_v55 = vld [vmem:[#allocation56_spill] sm:$0xff] }
 0x4ed   :  { %2769 = vmatpush.bf16.msra.mxu1 %v7340_v21  ;;  %v7350_v21 = vld [vmem:[#allocation58_spill] sm:$0xff] }
 0x4ee   :  { %2594 = vmatmul.bf16.vlgmr.msra.gmra.mxu0 %v4233_v63  ;;  %2797 = vmatpush.bf16.msra.mxu3 %v7344_v52  ;;  %v7354_v52 = vld [vmem:[#allocation61_spill] sm:$0xff] }
 0x4ef   :  { %2642 = vmatpush.bf16.msrb.mxu0 %v7342_v41  ;;  %2622 = vmatmul.bf16.vlgmr.msra.gmra.mxu2 %v4233_v63  ;;  %v7352_v41 = vld [vmem:[#allocation85_spill] sm:$0xff] }
 0x4f0   :  { %2670 = vmatpush.bf16.msrb.mxu2 %v7343_v53  ;;  %v7353_v53 = vld [vmem:[#allocation88_spill] sm:$0xff] }
 0x4f1   :  { %2770 = vmatpush.bf16.msra.mxu1 %v7345_v47  ;;  %v7356_v47 = vld [vmem:[#allocation87_spill] sm:$0xff] }
 0x4f2   :  { %2798 = vmatpush.bf16.msra.mxu3 %v7348_v26  ;;  %v7359_v26 = vld [vmem:[#allocation92_spill] sm:$0xff] }
 0x4f3   :  { %2643 = vmatpush.bf16.msrb.mxu0 %v7346_v29  ;;  %v7357_v29 = vld [vmem:[#allocation91_spill] sm:$0xff] }
 0x4f4   :  { %2671 = vmatpush.bf16.msrb.mxu2 %v7347_v54  ;;  %v7358_v54 = vld [vmem:[#allocation64_spill] sm:$0xff] }
 0x4f5   :  { %2771 = vmatpush.bf16.msra.mxu1 %v7349_v61  ;;  %v7360_v61 = vld [vmem:[#allocation63_spill] sm:$0xff] }
 0x4f6   :  { %2799 = vmatpush.bf16.msra.mxu3 %v7352_v41  ;;  %v7363_v41 = vld [vmem:[#allocation66_spill] sm:$0xff] }
 0x4f7   :  { %2644 = vmatpush.bf16.msrb.mxu0 %v7350_v21  ;;  %v7361_v21 = vld [vmem:[#allocation89_spill] sm:$0xff] }
 0x4f8   :  { %2672 = vmatpush.bf16.msrb.mxu2 %v7351_v55  ;;  %v7362_v55 = vld [vmem:[#allocation90_spill] sm:$0xff] }
 0x4f9   :  { %2772 = vmatpush.bf16.msra.mxu1 %v7353_v53  ;;  %v7364_v53 = vld [vmem:[#allocation93_spill] sm:$0xff] }
 0x4fa   :  { %2800 = vmatpush.bf16.msra.mxu3 %v7356_v47  ;;  %v7367_v47 = vld [vmem:[#allocation69_spill] sm:$0xff] }
 0x4fb   :  { %2645 = vmatpush.bf16.msrb.mxu0 %v7354_v52  ;;  %v7365_v52 = vld [vmem:[#allocation65_spill] sm:$0xff] }
 0x4fc   :  { %2673 = vmatpush.bf16.msrb.mxu2 %v7355_v20  ;;  %v7366_v20 = vld [vmem:[#allocation94_spill] sm:$0xff] }
 0x4fd   :  { %2773 = vmatpush.bf16.msra.mxu1 %v7357_v29  ;;  %v7368_v29 = vld [vmem:[#allocation95_spill] sm:$0xff] }
 0x4fe   :  { %2801 = vmatpush.bf16.msra.mxu3 %v7361_v21  ;;  %v7372_v21 = vld [vmem:[#allocation97_spill] sm:$0xff] }
 0x4ff   :  { %2646 = vmatpush.bf16.msrb.mxu0 %v7358_v54  ;;  %v7369_v54 = vld [vmem:[#allocation67_spill] sm:$0xff] }
 0x500   :  { %2674 = vmatpush.bf16.msrb.mxu2 %v7360_v61  ;;  %v7371_v61 = vld [vmem:[#allocation73_spill] sm:$0xff] }
 0x501   :  { %2822 = vmatpush.bf16.msrb.mxu1 %v7359_v26  ;;  %v7370_v26 = vld [vmem:[#allocation96_spill] sm:$0xff] }
 0x502   :  { %2850 = vmatpush.bf16.msrb.mxu3 %v7362_v55  ;;  %v7373_v55 = vld [vmem:[#allocation71_spill] sm:$0xff] }
 0x503   :  { %2647 = vmatpush.bf16.msrb.mxu0 %v7363_v41  ;;  %v7374_v41 = vld [vmem:[#allocation99_spill] sm:$0xff] }
 0x504   :  { %2675 = vmatpush.bf16.msrb.mxu2 %v7365_v52  ;;  %v7376_v52 = vld [vmem:[#allocation98_spill] sm:$0xff] }
 0x505   :  { %2823 = vmatpush.bf16.msrb.mxu1 %v7364_v53  ;;  %v7375_v53 = vld [vmem:[#allocation100_spill] sm:$0xff] }
 0x506   :  { %2851 = vmatpush.bf16.msrb.mxu3 %v7366_v20 }
 0x507   :  { %2648 = vmatpush.bf16.msrb.mxu0 %v7367_v47  ;;  %v7377_v47 = vld [vmem:[#allocation101_spill] sm:$0xff] }
 0x508   :  { %2676 = vmatpush.bf16.msrb.mxu2 %v7369_v54  ;;  %v7379_v54 = vld [vmem:[#allocation104_spill] sm:$0xff] }
 0x509   :  { %2824 = vmatpush.bf16.msrb.mxu1 %v7368_v29  ;;  %v7378_v29 = vld [vmem:[#allocation103_spill] sm:$0xff] }
 0x50a   :  { %2852 = vmatpush.bf16.msrb.mxu3 %v7370_v26  ;;  %v7380_v26 = vld [vmem:[#allocation102_spill] sm:$0xff] }
 0x50b   :  { %2649 = vmatpush.bf16.msrb.mxu0 %v7371_v61  ;;  %v7381_v61 = vld [vmem:[#allocation105_spill] sm:$0xff] }
 0x50c   :  { %2677 = vmatpush.bf16.msrb.mxu2 %v7373_v55  ;;  %v7383_v55 = vld [vmem:[#allocation108_spill] sm:$0xff] }
 0x50d   :  { %2825 = vmatpush.bf16.msrb.mxu1 %v7372_v21  ;;  %v7382_v21 = vld [vmem:[#allocation107_spill] sm:$0xff] }
 0x50e   :  { %2650 = vmatmul.bf16.vlgmr.msrb.gmra.mxu0 %v4233_v63  ;;  %2853 = vmatpush.bf16.msrb.mxu3 %v7376_v52  ;;  %v7386_v52 = vld [vmem:[#allocation111_spill] sm:$0xff] }
 0x50f   :  { %2752 = vmatpush.bf16.msra.mxu0 %v7374_v41  ;;  %2678 = vmatmul.bf16.vlgmr.msrb.gmra.mxu2 %v4233_v63  ;;  %v7384_v41 = vld [vmem:[#allocation106_spill] sm:$0xff]  ;;  %v7387_v63 = vld [vmem:[#allocation112_spill] sm:$0xff] }
 0x510   :  { %2780 = vmatpush.bf16.msra.mxu2 %v7375_v53  ;;  %v7385_v53 = vld [vmem:[#allocation109_spill] sm:$0xff] }
 0x511   :  { %2826 = vmatpush.bf16.msrb.mxu1 %v7377_v47  ;;  %v7388_v47 = vld [vmem:[#allocation110_spill] sm:$0xff] }
 0x512   :  { %2854 = vmatpush.bf16.msrb.mxu3 %v7380_v26  ;;  %v7391_v26 = vld [vmem:[#allocation116_spill] sm:$0xff] }
 0x513   :  { %2753 = vmatpush.bf16.msra.mxu0 %v7378_v29  ;;  %v7389_v29 = vld [vmem:[#allocation113_spill] sm:$0xff] }
 0x514   :  { %2781 = vmatpush.bf16.msra.mxu2 %v7379_v54  ;;  %v7390_v54 = vld [vmem:[#allocation115_spill] sm:$0xff] }
 0x515   :  { %2827 = vmatpush.bf16.msrb.mxu1 %v7381_v61  ;;  %v7392_v61 = vld [vmem:[#allocation114_spill] sm:$0xff] }
 0x516   :  { %2855 = vmatpush.bf16.msrb.mxu3 %v7384_v41  ;;  %v7395_v41 = vld [vmem:[#allocation119_spill] sm:$0xff] }
 0x517   :  { %2754 = vmatpush.bf16.msra.mxu0 %v7382_v21  ;;  %v7393_v21 = vld [vmem:[#allocation117_spill] sm:$0xff] }
 0x518   :  { %2782 = vmatpush.bf16.msra.mxu2 %v7383_v55  ;;  %v7394_v55 = vld [vmem:[#allocation118_spill] sm:$0xff] }
 0x519   :  { %2828 = vmatpush.bf16.msrb.mxu1 %v7385_v53  ;;  %v7396_v53 = vld [vmem:[#allocation120_spill] sm:$0xff] }
 0x51a   :  { %2856 = vmatpush.bf16.msrb.mxu3 %v7388_v47  ;;  %v7399_v47 = vld [vmem:[#allocation124_spill] sm:$0xff] }
 0x51b   :  { %2755 = vmatpush.bf16.msra.mxu0 %v7386_v52  ;;  %v7397_v52 = vld [vmem:[#allocation122_spill] sm:$0xff] }
 0x51c   :  { %2783 = vmatpush.bf16.msra.mxu2 %v7387_v63  ;;  %v7398_v63 = vld [vmem:[#allocation123_spill] sm:$0xff] }
 0x51d   :  { %2829 = vmatpush.bf16.msrb.mxu1 %v7389_v29  ;;  %v7400_v29 = vld [vmem:[#allocation125_spill] sm:$0xff] }
 0x51e   :  { %2857 = vmatpush.bf16.msrb.mxu3 %v7392_v61  ;;  %v7403_v61 = vld [vmem:[#allocation128_spill] sm:$0xff] }
 0x51f   :  { %2756 = vmatpush.bf16.msra.mxu0 %v7390_v54  ;;  %v7401_v54 = vld [vmem:[#allocation126_spill] sm:$0xff] }
 0x520   :  { %2784 = vmatpush.bf16.msra.mxu2 %v7391_v26  ;;  %v7402_v26 = vld [vmem:[#allocation127_spill] sm:$0xff] }
 0x521   :  { %v2468_v20 = vpop.f32.mrf.mxu3 }
 0x523   :  { %2757 = vmatpush.bf16.msra.mxu0 %v7393_v21  ;;  %v7404_v21 = vld [vmem:[#allocation129_spill] sm:$0xff] }
 0x524   :  { %2785 = vmatpush.bf16.msra.mxu2 %v7394_v55  ;;  %v7405_v55 = vld [vmem:[#allocation130_spill] sm:$0xff] }
 0x527   :  { %2758 = vmatpush.bf16.msra.mxu0 %v7395_v41  ;;  %v7406_v41 = vld [vmem:[#allocation131_spill] sm:$0xff] }
 0x528   :  { %2786 = vmatpush.bf16.msra.mxu2 %v7396_v53  ;;  %v7407_v53 = vld [vmem:[#allocation133_spill] sm:$0xff] }
 0x529   :  { %v2470_v12 = vpop.f32.mrf.mxu3 }
 0x52b   :  { %2759 = vmatpush.bf16.msra.mxu0 %v7397_v52  ;;  %v7408_v52 = vld [vmem:[#allocation134_spill] sm:$0xff] }
 0x52c   :  { %2787 = vmatpush.bf16.msra.mxu2 %v7398_v63  ;;  %v7409_v63 = vld [vmem:[#allocation135_spill] sm:$0xff] }
 0x52f   :  { %2808 = vmatpush.bf16.msrb.mxu0 %v7399_v47  ;;  %v7410_v47 = vld [vmem:[#allocation136_spill] sm:$0xff] }
 0x530   :  { %2836 = vmatpush.bf16.msrb.mxu2 %v7400_v29  ;;  %v7411_v29 = vld [vmem:[#allocation137_spill] sm:$0xff] }
 0x531   :  { %v2524_v19 = vpop.f32.mrf.mxu3 }
 0x533   :  { %2809 = vmatpush.bf16.msrb.mxu0 %v7401_v54  ;;  %v7412_v54 = vld [vmem:[#allocation138_spill] sm:$0xff] }
 0x534   :  { %2837 = vmatpush.bf16.msrb.mxu2 %v7402_v26  ;;  %v7413_v26 = vld [vmem:[#allocation139_spill] sm:$0xff] }
 0x537   :  { %2810 = vmatpush.bf16.msrb.mxu0 %v7403_v61  ;;  %v7414_v61 = vld [vmem:[#allocation140_spill] sm:$0xff] }
 0x538   :  { %2838 = vmatpush.bf16.msrb.mxu2 %v7404_v21  ;;  %v2440_v21 = vpop.f32.mrf.mxu1 }
 0x53b   :  { %2811 = vmatpush.bf16.msrb.mxu0 %v7405_v55 }
 0x53c   :  { %2839 = vmatpush.bf16.msrb.mxu2 %v7406_v41 }
 0x53f   :  { %2812 = vmatpush.bf16.msrb.mxu0 %v7407_v53 }
 0x540   :  { %2840 = vmatpush.bf16.msrb.mxu2 %v7408_v52  ;;  %v2442_v48 = vpop.f32.mrf.mxu1 }
 0x543   :  { %2813 = vmatpush.bf16.msrb.mxu0 %v7409_v63 }
 0x544   :  { %2841 = vmatpush.bf16.msrb.mxu2 %v7410_v47 }
 0x547   :  { %2814 = vmatpush.bf16.msrb.mxu0 %v7411_v29 }
 0x548   :  { %2842 = vmatpush.bf16.msrb.mxu2 %v7412_v54  ;;  %v2496_v57 = vpop.f32.mrf.mxu1 }
 0x54b   :  { %2815 = vmatpush.bf16.msrb.mxu0 %v7413_v26  ;;  %v2426_v55 = vpop.f32.mrf.mxu0 }
 0x54c   :  { %2843 = vmatpush.bf16.msrb.mxu2 %v7414_v61  ;;  %v2427_v53 = vadd.f32 %v2426_v55, %v7315_v4 }
 0x54e   :  { %v2441_v47 = vadd.f32 %v2440_v21, %v2427_v53 }
 0x550   :  { %v2529_v26 = vmul.f32 0.5, %v2441_v47 }
 0x551   :  { %v2454_v41 = vpop.f32.mrf.mxu2 }
 0x552   :  { %v2455_v52 = vadd.f32 %v2454_v41, %v7415_v30 }
 0x553   :  { %v2428_v63 = vpop.f32.mrf.mxu0 }
 0x554   :  { %v2469_v59 = vadd.f32 %v2468_v20, %v2455_v52  ;;  %v2429_v54 = vadd.f32 %v2428_v63, %v7315_v4 }
 0x556   :  { %v2530_v29 = vmul.f32 0.5, %v2469_v59  ;;  %v2443_v1 = vadd.f32 %v2442_v48, %v2429_v54 }
 0x558   :  { %4634 = vtanh.f32 %v2530_v29  ;;  %v2532_v20 = vmul.f32 0.5, %v2443_v1 }
 0x559   :  { %v2456_v9 = vpop.f32.mrf.mxu2  ;;  %4636 = vtanh.f32 %v2529_v26 }
 0x55a   :  { %v2457_v61 = vadd.f32 %v2456_v9, %v7415_v30 }
 0x55b   :  { %v2482_v35 = vpop.f32.mrf.mxu0 }
 0x55c   :  { %v2471_v2 = vadd.f32 %v2470_v12, %v2457_v61  ;;  %v2483_v55 = vadd.f32 %v2482_v35, %v5547_v42  ;;  %v2498_v35 = vpop.f32.mrf.mxu1 }
 0x55e   :  { %v2533_v41 = vmul.f32 0.5, %v2471_v2  ;;  %v2497_v21 = vadd.f32 %v2496_v57, %v2483_v55  ;;  %v4635_v59 = vpop.eup %4634 }
 0x55f   :  { %v4637_v47 = vpop.eup %4636  ;;  %v2542_v12 = vmul.f32 0.5, %v4635_v59 }
 0x560   :  { %4638 = vtanh.f32 %v2533_v41  ;;  %v2531_v48 = vmul.f32 0.5, %v2497_v21  ;;  %v2541_v61 = vmul.f32 0.5, %v4637_v47 }
 0x561   :  { %v2510_v53 = vpop.f32.mrf.mxu2  ;;  %4640 = vtanh.f32 %v2532_v20  ;;  %v2548_v54 = vadd.f32 0.5, %v2542_v12 }
 0x562   :  { %v2511_v52 = vadd.f32 %v2510_v53, %v7217_v38  ;;  %v2526_v53 = vpop.f32.mrf.mxu3  ;;  %v2547_v30 = vadd.f32 0.5, %v2541_v61  ;;  %v7416_v61 = vld [vmem:[#allocation31_spill] sm:$0xff] }
 0x563   :  { %v2484_v63 = vpop.f32.mrf.mxu0  ;;  %v2555_v59 = vmul.f32 %v2548_v54, %v6035_v15 }
 0x564   :  { %v2525_v9 = vadd.f32 %v2524_v19, %v2511_v52  ;;  %v2485_v29 = vadd.f32 %v2484_v63, %v5547_v42 }
 0x566   :  { %4642 = vtanh.f32 %v2525_v9  ;;  %v2499_v2 = vadd.f32 %v2498_v35, %v2485_v29  ;;  %v4639_v57 = vpop.eup %4638 }
 0x567   :  { %4644 = vtanh.f32 %v2531_v48  ;;  %v4641_v55 = vpop.eup %4640  ;;  %v2545_v20 = vmul.f32 0.5, %v4639_v57 }
 0x568   :  { %v2534_v19 = vmul.f32 0.5, %v2499_v2  ;;  %v2544_v47 = vmul.f32 0.5, %v4641_v55 }
 0x569   :  { %v2512_v1 = vpop.f32.mrf.mxu2  ;;  %v2551_v29 = vadd.f32 0.5, %v2545_v20 }
 0x56a   :  { %v2513_v26 = vadd.f32 %v2512_v1, %v7217_v38  ;;  %v2550_v48 = vadd.f32 0.5, %v2544_v47 }
 0x56b   :  { %v2556_v1 = vmul.f32 %v2551_v29, %v7416_v61  ;;  %v2595_v15 = vpop.f32.mrf.mxu0 }
 0x56c   :  { %v4643_v41 = vpop.eup %4642  ;;  %v2527_v52 = vadd.f32 %v2526_v53, %v2513_v26  ;;  %v2596_v29 = vadd.f32 %v2595_v15, %v7021_v3 }
 0x56d   :  { %v2557_v21 = vmul.f32 %v4643_v41, %v2547_v30  ;;  %v4645_v63 = vpop.eup %4644  ;;  %v2609_v30 = vpop.f32.mrf.mxu1 }
 0x56e   :  { %4646 = vtanh.f32 %v2527_v52  ;;  %v2543_v12 = vmul.f32 0.5, %v4645_v63 }
 0x56f   :  { %v6195_v9 = vadd.f32 %v2557_v21, %v2555_v59  ;;  %4648 = vtanh.f32 %v2534_v19  ;;  %v2637_v59 = vpop.f32.mrf.mxu3 }
 0x570   :  { %v2549_v53 = vadd.f32 0.5, %v2543_v12 }
 0x571   :  { %4650 = vtanh.f32 %v6195_v9 }
 0x572   :  { %v2623_v41 = vpop.f32.mrf.mxu2 }
 0x573   :  { %v2624_v21 = vadd.f32 %v2623_v41, %v5326_v45  ;;  %v2597_v12 = vpop.f32.mrf.mxu0 }
 0x574   :  { %v4647_v35 = vpop.eup %4646 }
 0x575   :  { %v2558_v2 = vmul.f32 %v4647_v35, %v2550_v48  ;;  %v4649_v26 = vpop.eup %4648  ;;  %v2611_v48 = vpop.f32.mrf.mxu1  ;;  %v2638_v61 = vadd.f32 %v2637_v59, %v2624_v21 }
 0x576   :  { %v2546_v52 = vmul.f32 0.5, %v4649_v26 }
 0x577   :  { %v4651_v54 = vpop.eup %4650  ;;  %v6199_v57 = vadd.f32 %v2558_v2, %v2556_v1  ;;  %v2610_v2 = vadd.f32 %v2609_v30, %v2596_v29 }
 0x578   :  { %v2563_v55 = vmul.f32 %v4651_v54, %v2549_v53  ;;  %v2552_v20 = vadd.f32 0.5, %v2546_v52  ;;  %v2639_v53 = vpop.f32.mrf.mxu3  ;;  %v2699_v54 = vmul.f32 0.5, %v2638_v61 }
 0x579   :  { %7417 = vst [vmem:[#allocation29_spill] sm:$0xff] %v6199_v57  ;;  %4652 = vtanh.f32 %v6199_v57 }
 0x57a   :  { %v2565_v19 = vpack.c.bf16 %v2563_v55, %v2563_v55  ;;  %v2625_v1 = vpop.f32.mrf.mxu2  ;;  %v2598_v55 = vadd.f32 %v2597_v12, %v7021_v3  ;;  %4654 = vtanh.f32 %v2699_v54 }
 0x57b   :  { %v2626_v26 = vadd.f32 %v2625_v1, %v5326_v45 }
 0x57c   :  { %2567 = vst [vmem:[#allocation3 + $0x4] sm:$0xf] %v2565_v19  ;;  %v2698_v19 = vmul.f32 0.5, %v2610_v2 }
 0x57d   :  { %v2640_v41 = vadd.f32 %v2639_v53, %v2626_v26 }
 0x57e   :  { %4656 = vtanh.f32 %v2698_v19 }
 0x57f   :  { %v4653_v63 = vpop.eup %4652  ;;  %v2702_v21 = vmul.f32 0.5, %v2640_v41 }
 0x580   :  { %v2564_v47 = vmul.f32 %v4653_v63, %v2552_v20  ;;  %v2665_v20 = vpop.f32.mrf.mxu1  ;;  %v2612_v63 = vadd.f32 %v2611_v48, %v2598_v55  ;;  %v2693_v30 = vpop.f32.mrf.mxu3 }
 0x581   :  { %v4655_v12 = vpop.eup %4654  ;;  %4658 = vtanh.f32 %v2702_v21 }
 0x582   :  { %v2566_v35 = vpack.c.bf16 %v2564_v47, %v2564_v47  ;;  %v2701_v29 = vmul.f32 0.5, %v2612_v63  ;;  %v2711_v54 = vmul.f32 0.5, %v4655_v12 }
 0x583   :  { %v4428_v57 = vld [vmem:[#allocation3 + $0x4] sm:$0xf] }
 0x584   :  { %2568 = vst [vmem:[#allocation3 + $0xc] sm:$0xf] %v2566_v35  ;;  %v4657_v2 = vpop.eup %4656  ;;  %4660 = vtanh.f32 %v2701_v29  ;;  %v2717_v41 = vadd.f32 0.5, %v2711_v54 }
 0x585   :  { %v2710_v19 = vmul.f32 0.5, %v4657_v2 }
 0x586   :  { %v2724_v12 = vmul.f32 %v2717_v41, %v6059_v44 }
 0x587   :  { %v4659_v63 = vpop.eup %4658 }
 0x588   :  { %v2667_v55 = vpop.f32.mrf.mxu1  ;;  %v2695_v21 = vpop.f32.mrf.mxu3 }
 0x58b   :  { %v2651_v52 = vpop.f32.mrf.mxu0  ;;  %v4242_v47 = vld [vmem:[#allocation3 + $0x8] sm:$0xf0] }
 0x58c   :  { %v2652_v15 = vadd.f32 %v2651_v52, %v5374_v8  ;;  %v4245_v59 = vor.u32 %v4428_v57, %v4242_v47  ;;  %v4661_v47 = vpop.eup %4660 }
 0x58e   :  { %2774 = vmatmul.bf16.vlgmr.msra.gmra.mxu1 %v4245_v59  ;;  %2802 = vmatmul.bf16.vlgmr.msra.gmra.mxu3 %v4245_v59  ;;  %v2666_v35 = vadd.f32 %v2665_v20, %v2652_v15 }
 0x58f   :  { %2935 = vmatpush.bf16.msra.mxu1 %v7121_v34  ;;  %2963 = vmatpush.bf16.msra.mxu3 %v7220_v27 }
 0x590   :  { %v2700_v26 = vmul.f32 0.5, %v2666_v35 }
 0x592   :  { %v2679_v61 = vpop.f32.mrf.mxu2 }
 0x593   :  { %v2680_v48 = vadd.f32 %v2679_v61, %v7022_v43  ;;  %v2653_v1 = vpop.f32.mrf.mxu0  ;;  %2936 = vmatpush.bf16.msra.mxu1 %v7221_v32  ;;  %2964 = vmatpush.bf16.msra.mxu3 %v7222_v37 }
 0x594   :  { %v2654_v57 = vadd.f32 %v2653_v1, %v5374_v8 }
 0x595   :  { %v2694_v53 = vadd.f32 %v2693_v30, %v2680_v48  ;;  %v2716_v30 = vadd.f32 0.5, %v2710_v19  ;;  %v2714_v48 = vmul.f32 0.5, %v4659_v63 }
 0x596   :  { %v2668_v52 = vadd.f32 %v2667_v55, %v2654_v57 }
 0x597   :  { %4662 = vtanh.f32 %v2694_v53  ;;  %2937 = vmatpush.bf16.msra.mxu1 %v7125_v17  ;;  %2965 = vmatpush.bf16.msra.mxu3 %v7126_v22  ;;  %v2713_v53 = vmul.f32 0.5, %v4661_v47  ;;  %v2720_v54 = vadd.f32 0.5, %v2714_v48 }
 0x598   :  { %4664 = vtanh.f32 %v2700_v26  ;;  %v2703_v35 = vmul.f32 0.5, %v2668_v52 }
 0x599   :  { %v2719_v26 = vadd.f32 0.5, %v2713_v53  ;;  %v2725_v19 = vmul.f32 %v2720_v54, %v6067_v36  ;;  %v4248_v54 = vld [vmem:[#allocation2] sm:$0xf] }
 0x59a   :  { %v2681_v20 = vpop.f32.mrf.mxu2 }
 0x59b   :  { %v2682_v15 = vadd.f32 %v2681_v20, %v7022_v43  ;;  %2938 = vmatpush.bf16.msra.mxu1 %v7029_v28  ;;  %2966 = vmatpush.bf16.msra.mxu3 %v7030_v58 }
 0x59d   :  { %v4663_v29 = vpop.eup %4662  ;;  %v2696_v61 = vadd.f32 %v2695_v21, %v2682_v15 }
 0x59e   :  { %v2726_v1 = vmul.f32 %v4663_v29, %v2716_v30  ;;  %v4665_v2 = vpop.eup %4664  ;;  %2830 = vmatmul.bf16.vlgmr.msrb.gmra.mxu1 %v4245_v59  ;;  %2858 = vmatmul.bf16.vlgmr.msrb.gmra.mxu3 %v4245_v59 }
 0x59f   :  { %4666 = vtanh.f32 %v2696_v61  ;;  %2939 = vmatpush.bf16.msra.mxu1 %v7031_v56  ;;  %2967 = vmatpush.bf16.msra.mxu3 %v7032_v62  ;;  %v2712_v44 = vmul.f32 0.5, %v4665_v2 }
 0x5a0   :  { %v6219_v57 = vadd.f32 %v2726_v1, %v2724_v12  ;;  %4668 = vtanh.f32 %v2703_v35 }
 0x5a1   :  { %v2718_v20 = vadd.f32 0.5, %v2712_v44  ;;  %v3240_v44 = vld [vmem:[#allocation7 + $0x38] sm:$0xf] }
 0x5a2   :  { %4670 = vtanh.f32 %v6219_v57  ;;  %3242 = vst [vmem:[#allocation2] sm:$0xf] %v3240_v44  ;;  %v7434_v44 = vld [vmem:[#allocation80_spill] sm:$0xff] }
 0x5a3   :  { %2940 = vmatpush.bf16.msra.mxu1 %v7033_v60  ;;  %2968 = vmatpush.bf16.msra.mxu3 %v7034_v6 }
 0x5a5   :  { %v4667_v55 = vpop.eup %4666 }
 0x5a6   :  { %v2727_v52 = vmul.f32 %v4667_v55, %v2719_v26  ;;  %v4669_v41 = vpop.eup %4668  ;;  %v3241_v26 = vld [vmem:[#allocation7 + $0x3c] sm:$0xf]  ;;  %v4431_v55 = vld [vmem:[#allocation2 + $0x4] sm:$0xf0] }
 0x5a7   :  { %2941 = vmatpush.bf16.msra.mxu1 %v7035_v13  ;;  %2969 = vmatpush.bf16.msra.mxu3 %v7036_v11  ;;  %v2715_v21 = vmul.f32 0.5, %v4669_v41  ;;  %3243 = vst [vmem:[#allocation2 + $0x8] sm:$0xf] %v3241_v26  ;;  %v7420_v41 = vld [vmem:[#allocation70_spill] sm:$0xff]  ;;  %v7435_v26 = vld [vmem:[#allocation79_spill] sm:$0xff] }
 0x5a8   :  { %v4671_v59 = vpop.eup %4670  ;;  %v6227_v63 = vadd.f32 %v2727_v52, %v2725_v19  ;;  %v7418_v19 = vld [vmem:[#allocation26_spill] sm:$0xff]  ;;  %v7419_v52 = vld [vmem:[#allocation23_spill] sm:$0xff] }
 0x5a9   :  { %v2732_v15 = vmul.f32 %v4671_v59, %v2718_v20  ;;  %v2721_v36 = vadd.f32 0.5, %v2715_v21  ;;  %v7421_v20 = vld [vmem:[#allocation68_spill] sm:$0xff]  ;;  %v7422_v59 = vld [vmem:[#allocation30_spill] sm:$0xff] }
 0x5aa   :  { %4672 = vtanh.f32 %v6227_v63  ;;  %v7425_v21 = vld [vmem:[#allocation72_spill] sm:$0xff] }
 0x5ab   :  { %v2734_v47 = vpack.c.bf16 %v2732_v15, %v2732_v15  ;;  %2942 = vmatpush.bf16.msra.mxu1 %v7037_v18  ;;  %2970 = vmatpush.bf16.msra.mxu3 %v7127_v0  ;;  %v7423_v15 = vld [vmem:[#allocation28_spill] sm:$0xff] }
 0x5ad   :  { %2736 = vst [vmem:[#allocation2 + $0x4] sm:$0xf] %v2734_v47 }
 0x5ae   :  { %2738 = vst [vmem:[#allocation3] sm:$0xf] %v2734_v47  ;;  %v7424_v47 = vld [vmem:[#allocation75_spill] sm:$0xff] }
 0x5af   :  { %2991 = vmatpush.bf16.msrb.mxu1 %v7128_v24  ;;  %3019 = vmatpush.bf16.msrb.mxu3 %v7129_v46 }
 0x5b0   :  { %v4673_v30 = vpop.eup %4672 }
 0x5b1   :  { %v2733_v29 = vmul.f32 %v4673_v30, %v2721_v36  ;;  %v7426_v36 = vld [vmem:[#allocation76_spill] sm:$0xff]  ;;  %v7427_v30 = vld [vmem:[#allocation74_spill] sm:$0xff] }
 0x5b3   :  { %v2735_v35 = vpack.c.bf16 %v2733_v29, %v2733_v29  ;;  %2992 = vmatpush.bf16.msrb.mxu1 %v7041_v39  ;;  %3020 = vmatpush.bf16.msrb.mxu3 %v7130_v51  ;;  %v7428_v29 = vld [vmem:[#allocation34_spill] sm:$0xff] }
 0x5b4   :  { %v4430_v61 = vld [vmem:[#allocation2 + $0x4] sm:$0xf] }
 0x5b5   :  { %2737 = vst [vmem:[#allocation2 + $0xc] sm:$0xf] %v2735_v35  ;;  %v4240_v48 = vld [vmem:[#allocation3] sm:$0xf] }
 0x5b6   :  { %2739 = vst [vmem:[#allocation3 + $0x8] sm:$0xf] %v2735_v35  ;;  %v7429_v35 = vld [vmem:[#allocation32_spill] sm:$0xff] }
 0x5b7   :  { %2993 = vmatpush.bf16.msrb.mxu1 %v7043_v50  ;;  %3021 = vmatpush.bf16.msrb.mxu3 %v7044_v31 }
 0x5bb   :  { %2994 = vmatpush.bf16.msrb.mxu1 %v7131_v49  ;;  %3022 = vmatpush.bf16.msrb.mxu3 %v5119_v33 }
 0x5bc   :  { %v4250_v12 = vld [vmem:[#allocation2 + $0x8] sm:$0xf0] }
 0x5bd   :  { %v4429_v1 = vld [vmem:[#allocation3 + $0x4] sm:$0xf0]  ;;  %v4253_v2 = vor.u32 %v4430_v61, %v4250_v12  ;;  %v7430_v61 = vld [vmem:[#allocation78_spill] sm:$0xff]  ;;  %v7431_v12 = vld [vmem:[#allocation77_spill] sm:$0xff] }
 0x5be   :  { %v4241_v53 = vor.u32 %v4429_v1, %v4240_v48  ;;  %v7432_v48 = vld [vmem:[#allocation38_spill] sm:$0xff]  ;;  %v7433_v1 = vld [vmem:[#allocation36_spill] sm:$0xff] }
 0x5bf   :  { %2943 = vmatmul.bf16.vlgmr.msra.gmra.mxu1 %v4253_v2  ;;  %2971 = vmatmul.bf16.vlgmr.msra.gmra.mxu3 %v4253_v2 }
 0x5c0   :  { %2760 = vmatmul.bf16.vlgmr.msra.gmra.mxu0 %v4241_v53  ;;  %2788 = vmatmul.bf16.vlgmr.msra.gmra.mxu2 %v4241_v53 }
 0x5c1   :  { %2921 = vmatpush.bf16.msra.mxu0 %v4982_v10  ;;  %2949 = vmatpush.bf16.msra.mxu2 %v4978_v5 }
 0x5c2   :  { %2995 = vmatpush.bf16.msrb.mxu1 %v5137_v7  ;;  %3023 = vmatpush.bf16.msrb.mxu3 %v5131_v16 }
 0x5c5   :  { %2922 = vmatpush.bf16.msra.mxu0 %v4993_v23  ;;  %2950 = vmatpush.bf16.msra.mxu2 %v4985_v14 }
 0x5c6   :  { %2996 = vmatpush.bf16.msrb.mxu1 %v5149_v40  ;;  %3024 = vmatpush.bf16.msrb.mxu3 %v5143_v25 }
 0x5c9   :  { %2923 = vmatpush.bf16.msra.mxu0 %v7418_v19  ;;  %2951 = vmatpush.bf16.msra.mxu2 %v7419_v52 }
 0x5ca   :  { %2997 = vmatpush.bf16.msrb.mxu1 %v7420_v41  ;;  %3025 = vmatpush.bf16.msrb.mxu3 %v7421_v20 }
 0x5cd   :  { %2924 = vmatpush.bf16.msra.mxu0 %v7422_v59  ;;  %2952 = vmatpush.bf16.msra.mxu2 %v7423_v15 }
 0x5ce   :  { %2998 = vmatpush.bf16.msrb.mxu1 %v7424_v47  ;;  %3026 = vmatpush.bf16.msrb.mxu3 %v7425_v21 }
 0x5d0   :  { %2816 = vmatmul.bf16.vlgmr.msrb.gmra.mxu0 %v4241_v53  ;;  %2844 = vmatmul.bf16.vlgmr.msrb.gmra.mxu2 %v4241_v53  ;;  %v7437_v53 = vld [vmem:[#allocation40_spill] sm:$0xff] }
 0x5d1   :  { %2925 = vmatpush.bf16.msra.mxu0 %v7428_v29  ;;  %2953 = vmatpush.bf16.msra.mxu2 %v7429_v35  ;;  %v7438_v29 = vld [vmem:[#allocation82_spill] sm:$0xff]  ;;  %v7439_v35 = vld [vmem:[#allocation81_spill] sm:$0xff] }
 0x5d2   :  { %3101 = vmatpush.bf16.msra.mxu1 %v7426_v36  ;;  %3129 = vmatpush.bf16.msra.mxu3 %v7427_v30  ;;  %v7436_v30 = vld [vmem:[#allocation42_spill] sm:$0xff] }
 0x5d3   :  { %2999 = vmatmul.bf16.vlgmr.msrb.gmra.mxu1 %v4253_v2  ;;  %3027 = vmatmul.bf16.vlgmr.msrb.gmra.mxu3 %v4253_v2  ;;  %v4249_v2 = vor.u32 %v4431_v55, %v4248_v54  ;;  %v7449_v54 = vld [vmem:[#allocation85_spill] sm:$0xff]  ;;  %v7450_v55 = vld [vmem:[#allocation58_spill] sm:$0xff] }
 0x5d5   :  { %2926 = vmatpush.bf16.msra.mxu0 %v7432_v48  ;;  %2954 = vmatpush.bf16.msra.mxu2 %v7433_v1  ;;  %v7442_v48 = vld [vmem:[#allocation49_spill] sm:$0xff]  ;;  %v7443_v1 = vld [vmem:[#allocation46_spill] sm:$0xff] }
 0x5d6   :  { %3102 = vmatpush.bf16.msra.mxu1 %v7430_v61  ;;  %3130 = vmatpush.bf16.msra.mxu3 %v7431_v12  ;;  %v7440_v61 = vld [vmem:[#allocation48_spill] sm:$0xff] }
 0x5d7   :  { %v7441_v12 = vld [vmem:[#allocation44_spill] sm:$0xff] }
 0x5d9   :  { %2927 = vmatpush.bf16.msra.mxu0 %v7436_v30  ;;  %2955 = vmatpush.bf16.msra.mxu2 %v7437_v53  ;;  %v7446_v53 = vld [vmem:[#allocation54_spill] sm:$0xff] }
 0x5da   :  { %3103 = vmatpush.bf16.msra.mxu1 %v7434_v44  ;;  %3131 = vmatpush.bf16.msra.mxu3 %v7435_v26  ;;  %v7444_v44 = vld [vmem:[#allocation84_spill] sm:$0xff]  ;;  %v7445_v26 = vld [vmem:[#allocation83_spill] sm:$0xff]  ;;  %v7514_v30 = vld [vmem:[#allocation142_spill] sm:$0xff] }
 0x5dd   :  { %2928 = vmatpush.bf16.msra.mxu0 %v7440_v61  ;;  %2956 = vmatpush.bf16.msra.mxu2 %v7441_v12  ;;  %v7451_v12 = vld [vmem:[#allocation56_spill] sm:$0xff]  ;;  %v7456_v61 = vld [vmem:[#allocation91_spill] sm:$0xff] }
 0x5de   :  { %3104 = vmatpush.bf16.msra.mxu1 %v7438_v29  ;;  %3132 = vmatpush.bf16.msra.mxu3 %v7439_v35  ;;  %v7447_v29 = vld [vmem:[#allocation52_spill] sm:$0xff]  ;;  %v7448_v35 = vld [vmem:[#allocation86_spill] sm:$0xff] }
 0x5e0   :  { %2929 = vmatmul.bf16.vlgmr.msra.gmra.mxu0 %v4249_v2  ;;  %2957 = vmatmul.bf16.vlgmr.msra.gmra.mxu2 %v4249_v2 }
 0x5e1   :  { %2977 = vmatpush.bf16.msrb.mxu0 %v7442_v48  ;;  %3005 = vmatpush.bf16.msrb.mxu2 %v7443_v1  ;;  %v7452_v48 = vld [vmem:[#allocation88_spill] sm:$0xff]  ;;  %v7453_v1 = vld [vmem:[#allocation87_spill] sm:$0xff] }
 0x5e2   :  { %3105 = vmatpush.bf16.msra.mxu1 %v7444_v44  ;;  %3133 = vmatpush.bf16.msra.mxu3 %v7445_v26  ;;  %v7454_v44 = vld [vmem:[#allocation61_spill] sm:$0xff]  ;;  %v7455_v26 = vld [vmem:[#allocation60_spill] sm:$0xff] }
 0x5e5   :  { %2978 = vmatpush.bf16.msrb.mxu0 %v7446_v53  ;;  %3006 = vmatpush.bf16.msrb.mxu2 %v7447_v29  ;;  %v7457_v53 = vld [vmem:[#allocation89_spill] sm:$0xff]  ;;  %v7458_v29 = vld [vmem:[#allocation92_spill] sm:$0xff] }
 0x5e6   :  { %3106 = vmatpush.bf16.msra.mxu1 %v7448_v35  ;;  %3134 = vmatpush.bf16.msra.mxu3 %v7449_v54  ;;  %v7459_v35 = vld [vmem:[#allocation90_spill] sm:$0xff]  ;;  %v7460_v54 = vld [vmem:[#allocation64_spill] sm:$0xff] }
 0x5e9   :  { %2979 = vmatpush.bf16.msrb.mxu0 %v7450_v55  ;;  %3007 = vmatpush.bf16.msrb.mxu2 %v7451_v12  ;;  %v7461_v55 = vld [vmem:[#allocation63_spill] sm:$0xff]  ;;  %v7462_v12 = vld [vmem:[#allocation93_spill] sm:$0xff] }
 0x5ea   :  { %3107 = vmatpush.bf16.msra.mxu1 %v7452_v48  ;;  %3135 = vmatpush.bf16.msra.mxu3 %v7453_v1  ;;  %v7463_v48 = vld [vmem:[#allocation94_spill] sm:$0xff] }
 0x5eb   :  { %v7464_v1 = vld [vmem:[#allocation66_spill] sm:$0xff] }
 0x5ed   :  { %2980 = vmatpush.bf16.msrb.mxu0 %v7454_v44  ;;  %3008 = vmatpush.bf16.msrb.mxu2 %v7455_v26  ;;  %v7465_v44 = vld [vmem:[#allocation65_spill] sm:$0xff]  ;;  %v7466_v26 = vld [vmem:[#allocation95_spill] sm:$0xff] }
 0x5ee   :  { %3108 = vmatpush.bf16.msra.mxu1 %v7456_v61  ;;  %3136 = vmatpush.bf16.msra.mxu3 %v7457_v53  ;;  %v7467_v61 = vld [vmem:[#allocation96_spill] sm:$0xff]  ;;  %v7468_v53 = vld [vmem:[#allocation69_spill] sm:$0xff] }
 0x5f1   :  { %2981 = vmatpush.bf16.msrb.mxu0 %v7460_v54  ;;  %3009 = vmatpush.bf16.msrb.mxu2 %v7461_v55  ;;  %v7471_v54 = vld [vmem:[#allocation98_spill] sm:$0xff]  ;;  %v7472_v55 = vld [vmem:[#allocation73_spill] sm:$0xff] }
 0x5f2   :  { %3157 = vmatpush.bf16.msrb.mxu1 %v7458_v29  ;;  %3185 = vmatpush.bf16.msrb.mxu3 %v7459_v35  ;;  %v7469_v29 = vld [vmem:[#allocation67_spill] sm:$0xff]  ;;  %v7470_v35 = vld [vmem:[#allocation97_spill] sm:$0xff] }
 0x5f5   :  { %2982 = vmatpush.bf16.msrb.mxu0 %v7464_v1  ;;  %3010 = vmatpush.bf16.msrb.mxu2 %v7465_v44  ;;  %v7475_v1 = vld [vmem:[#allocation100_spill] sm:$0xff]  ;;  %v7476_v44 = vld [vmem:[#allocation101_spill] sm:$0xff] }
 0x5f6   :  { %3158 = vmatpush.bf16.msrb.mxu1 %v7462_v12  ;;  %3186 = vmatpush.bf16.msrb.mxu3 %v7463_v48  ;;  %v7473_v12 = vld [vmem:[#allocation71_spill] sm:$0xff] }
 0x5f7   :  { %v7474_v48 = vld [vmem:[#allocation99_spill] sm:$0xff] }
 0x5f9   :  { %2983 = vmatpush.bf16.msrb.mxu0 %v7468_v53  ;;  %3011 = vmatpush.bf16.msrb.mxu2 %v7469_v29  ;;  %v7478_v53 = vld [vmem:[#allocation103_spill] sm:$0xff]  ;;  %v7479_v29 = vld [vmem:[#allocation104_spill] sm:$0xff] }
 0x5fa   :  { %3159 = vmatpush.bf16.msrb.mxu1 %v7466_v26  ;;  %3187 = vmatpush.bf16.msrb.mxu3 %v7467_v61  ;;  %v7477_v26 = vld [vmem:[#allocation102_spill] sm:$0xff] }
 0x5fd   :  { %2984 = vmatpush.bf16.msrb.mxu0 %v7472_v55  ;;  %3012 = vmatpush.bf16.msrb.mxu2 %v7473_v12  ;;  %v7482_v55 = vld [vmem:[#allocation107_spill] sm:$0xff]  ;;  %v7483_v12 = vld [vmem:[#allocation108_spill] sm:$0xff] }
 0x5fe   :  { %3160 = vmatpush.bf16.msrb.mxu1 %v7470_v35  ;;  %3188 = vmatpush.bf16.msrb.mxu3 %v7471_v54  ;;  %v7480_v35 = vld [vmem:[#allocation105_spill] sm:$0xff]  ;;  %v7481_v54 = vld [vmem:[#allocation106_spill] sm:$0xff] }
 0x600   :  { %2985 = vmatmul.bf16.vlgmr.msrb.gmra.mxu0 %v4249_v2  ;;  %3013 = vmatmul.bf16.vlgmr.msrb.gmra.mxu2 %v4249_v2  ;;  %v7488_v2 = vld [vmem:[#allocation113_spill] sm:$0xff] }
 0x601   :  { %3087 = vmatpush.bf16.msra.mxu0 %v7474_v48  ;;  %3115 = vmatpush.bf16.msra.mxu2 %v7475_v1  ;;  %v7484_v48 = vld [vmem:[#allocation109_spill] sm:$0xff]  ;;  %v7485_v1 = vld [vmem:[#allocation110_spill] sm:$0xff] }
 0x602   :  { %3161 = vmatpush.bf16.msrb.mxu1 %v7476_v44  ;;  %3189 = vmatpush.bf16.msrb.mxu3 %v7477_v26  ;;  %v7486_v44 = vld [vmem:[#allocation111_spill] sm:$0xff]  ;;  %v7487_v26 = vld [vmem:[#allocation112_spill] sm:$0xff] }
 0x605   :  { %3088 = vmatpush.bf16.msra.mxu0 %v7478_v53  ;;  %3116 = vmatpush.bf16.msra.mxu2 %v7479_v29  ;;  %v7489_v53 = vld [vmem:[#allocation114_spill] sm:$0xff]  ;;  %v7490_v29 = vld [vmem:[#allocation115_spill] sm:$0xff] }
 0x606   :  { %3162 = vmatpush.bf16.msrb.mxu1 %v7480_v35  ;;  %3190 = vmatpush.bf16.msrb.mxu3 %v7481_v54  ;;  %v7491_v35 = vld [vmem:[#allocation116_spill] sm:$0xff]  ;;  %v7492_v54 = vld [vmem:[#allocation117_spill] sm:$0xff] }
 0x609   :  { %3089 = vmatpush.bf16.msra.mxu0 %v7482_v55  ;;  %3117 = vmatpush.bf16.msra.mxu2 %v7483_v12  ;;  %v7493_v55 = vld [vmem:[#allocation118_spill] sm:$0xff]  ;;  %v7494_v12 = vld [vmem:[#allocation119_spill] sm:$0xff] }
 0x60a   :  { %3163 = vmatpush.bf16.msrb.mxu1 %v7484_v48  ;;  %3191 = vmatpush.bf16.msrb.mxu3 %v7485_v1  ;;  %v7495_v48 = vld [vmem:[#allocation120_spill] sm:$0xff]  ;;  %v7496_v1 = vld [vmem:[#allocation122_spill] sm:$0xff] }
 0x60d   :  { %3090 = vmatpush.bf16.msra.mxu0 %v7486_v44  ;;  %3118 = vmatpush.bf16.msra.mxu2 %v7487_v26  ;;  %v7497_v44 = vld [vmem:[#allocation123_spill] sm:$0xff]  ;;  %v7498_v26 = vld [vmem:[#allocation124_spill] sm:$0xff] }
 0x60e   :  { %3164 = vmatpush.bf16.msrb.mxu1 %v7488_v2  ;;  %3192 = vmatpush.bf16.msrb.mxu3 %v7489_v53  ;;  %v7499_v2 = vld [vmem:[#allocation125_spill] sm:$0xff]  ;;  %v7500_v53 = vld [vmem:[#allocation126_spill] sm:$0xff] }
 0x611   :  { %3091 = vmatpush.bf16.msra.mxu0 %v7490_v29  ;;  %3119 = vmatpush.bf16.msra.mxu2 %v7491_v35  ;;  %v7501_v29 = vld [vmem:[#allocation127_spill] sm:$0xff]  ;;  %v7502_v35 = vld [vmem:[#allocation128_spill] sm:$0xff]  ;;  %v2803_v61 = vpop.f32.mrf.mxu3 }
 0x615   :  { %3092 = vmatpush.bf16.msra.mxu0 %v7492_v54  ;;  %3120 = vmatpush.bf16.msra.mxu2 %v7493_v55  ;;  %v7503_v54 = vld [vmem:[#allocation129_spill] sm:$0xff]  ;;  %v7504_v55 = vld [vmem:[#allocation130_spill] sm:$0xff] }
 0x619   :  { %3093 = vmatpush.bf16.msra.mxu0 %v7494_v12  ;;  %3121 = vmatpush.bf16.msra.mxu2 %v7495_v48  ;;  %v7505_v12 = vld [vmem:[#allocation131_spill] sm:$0xff]  ;;  %v7506_v48 = vld [vmem:[#allocation133_spill] sm:$0xff]  ;;  %v2805_v47 = vpop.f32.mrf.mxu3 }
 0x61d   :  { %3094 = vmatpush.bf16.msra.mxu0 %v7496_v1  ;;  %3122 = vmatpush.bf16.msra.mxu2 %v7497_v44  ;;  %v7507_v1 = vld [vmem:[#allocation134_spill] sm:$0xff]  ;;  %v7508_v44 = vld [vmem:[#allocation135_spill] sm:$0xff] }
 0x621   :  { %3143 = vmatpush.bf16.msrb.mxu0 %v7498_v26  ;;  %3171 = vmatpush.bf16.msrb.mxu2 %v7499_v2  ;;  %v7509_v26 = vld [vmem:[#allocation136_spill] sm:$0xff]  ;;  %v7510_v2 = vld [vmem:[#allocation137_spill] sm:$0xff]  ;;  %v2859_v19 = vpop.f32.mrf.mxu3 }
 0x625   :  { %3144 = vmatpush.bf16.msrb.mxu0 %v7500_v53  ;;  %3172 = vmatpush.bf16.msrb.mxu2 %v7501_v29  ;;  %v7511_v53 = vld [vmem:[#allocation138_spill] sm:$0xff]  ;;  %v7512_v29 = vld [vmem:[#allocation139_spill] sm:$0xff] }
 0x629   :  { %3145 = vmatpush.bf16.msrb.mxu0 %v7502_v35  ;;  %3173 = vmatpush.bf16.msrb.mxu2 %v7503_v54  ;;  %v7513_v35 = vld [vmem:[#allocation140_spill] sm:$0xff]  ;;  %v2775_v54 = vpop.f32.mrf.mxu1 }
 0x62d   :  { %3146 = vmatpush.bf16.msrb.mxu0 %v7504_v55  ;;  %3174 = vmatpush.bf16.msrb.mxu2 %v7505_v12 }
 0x631   :  { %3147 = vmatpush.bf16.msrb.mxu0 %v7506_v48  ;;  %3175 = vmatpush.bf16.msrb.mxu2 %v7507_v1  ;;  %v2777_v36 = vpop.f32.mrf.mxu1 }
 0x635   :  { %3148 = vmatpush.bf16.msrb.mxu0 %v7508_v44  ;;  %3176 = vmatpush.bf16.msrb.mxu2 %v7509_v26 }
 0x639   :  { %3149 = vmatpush.bf16.msrb.mxu0 %v7510_v2  ;;  %3177 = vmatpush.bf16.msrb.mxu2 %v7511_v53  ;;  %v2831_v41 = vpop.f32.mrf.mxu1 }
 0x63d   :  { %3150 = vmatpush.bf16.msrb.mxu0 %v7512_v29  ;;  %3178 = vmatpush.bf16.msrb.mxu2 %v7513_v35  ;;  %v2761_v55 = vpop.f32.mrf.mxu0 }
 0x63e   :  { %v2762_v48 = vadd.f32 %v2761_v55, %v7315_v4 }
 0x640   :  { %v2776_v26 = vadd.f32 %v2775_v54, %v2762_v48 }
 0x642   :  { %v2864_v29 = vmul.f32 0.5, %v2776_v26 }
 0x643   :  { %v2789_v12 = vpop.f32.mrf.mxu2 }
 0x644   :  { %v2790_v1 = vadd.f32 %v2789_v12, %v7514_v30 }
 0x645   :  { %v2763_v44 = vpop.f32.mrf.mxu0 }
 0x646   :  { %v2804_v21 = vadd.f32 %v2803_v61, %v2790_v1  ;;  %v2764_v53 = vadd.f32 %v2763_v44, %v7315_v4 }
 0x648   :  { %v2865_v2 = vmul.f32 0.5, %v2804_v21  ;;  %v2778_v52 = vadd.f32 %v2777_v36, %v2764_v53 }
 0x64a   :  { %4674 = vtanh.f32 %v2865_v2  ;;  %v2867_v61 = vmul.f32 0.5, %v2778_v52 }
 0x64b   :  { %v2791_v15 = vpop.f32.mrf.mxu2  ;;  %4676 = vtanh.f32 %v2864_v29 }
 0x64c   :  { %v2792_v35 = vadd.f32 %v2791_v15, %v7514_v30 }
 0x64d   :  { %v2817_v59 = vpop.f32.mrf.mxu0 }
 0x64e   :  { %v2806_v20 = vadd.f32 %v2805_v47, %v2792_v35  ;;  %v2818_v55 = vadd.f32 %v2817_v59, %v5547_v42  ;;  %v2833_v59 = vpop.f32.mrf.mxu1 }
 0x650   :  { %v2868_v12 = vmul.f32 0.5, %v2806_v20  ;;  %v2832_v48 = vadd.f32 %v2831_v41, %v2818_v55  ;;  %v4675_v21 = vpop.eup %4674 }
 0x651   :  { %v4677_v26 = vpop.eup %4676  ;;  %v2877_v47 = vmul.f32 0.5, %v4675_v21 }
 0x652   :  { %4678 = vtanh.f32 %v2868_v12  ;;  %v2866_v36 = vmul.f32 0.5, %v2832_v48  ;;  %v2876_v29 = vmul.f32 0.5, %v4677_v26 }
 0x653   :  { %v2845_v1 = vpop.f32.mrf.mxu2  ;;  %4680 = vtanh.f32 %v2867_v61  ;;  %v2883_v35 = vadd.f32 0.5, %v2877_v47 }
 0x654   :  { %v2846_v44 = vadd.f32 %v2845_v1, %v7217_v38  ;;  %v2861_v1 = vpop.f32.mrf.mxu3  ;;  %v2882_v30 = vadd.f32 0.5, %v2876_v29  ;;  %v7515_v29 = vld [vmem:[#allocation29_spill] sm:$0xff] }
 0x655   :  { %v2819_v54 = vpop.f32.mrf.mxu0  ;;  %v2890_v21 = vmul.f32 %v2883_v35, %v6195_v9 }
 0x656   :  { %v2860_v15 = vadd.f32 %v2859_v19, %v2846_v44  ;;  %v2820_v2 = vadd.f32 %v2819_v54, %v5547_v42 }
 0x658   :  { %4682 = vtanh.f32 %v2860_v15  ;;  %v2834_v20 = vadd.f32 %v2833_v59, %v2820_v2  ;;  %v4679_v41 = vpop.eup %4678 }
 0x659   :  { %4684 = vtanh.f32 %v2866_v36  ;;  %v4681_v55 = vpop.eup %4680  ;;  %v2880_v61 = vmul.f32 0.5, %v4679_v41 }
 0x65a   :  { %v2869_v19 = vmul.f32 0.5, %v2834_v20  ;;  %v2879_v26 = vmul.f32 0.5, %v4681_v55 }
 0x65b   :  { %v2847_v52 = vpop.f32.mrf.mxu2  ;;  %v2886_v2 = vadd.f32 0.5, %v2880_v61 }
 0x65c   :  { %v2848_v53 = vadd.f32 %v2847_v52, %v7217_v38  ;;  %v2885_v36 = vadd.f32 0.5, %v2879_v26 }
 0x65d   :  { %v2891_v52 = vmul.f32 %v2886_v2, %v7515_v29  ;;  %v2930_v35 = vpop.f32.mrf.mxu0 }
 0x65e   :  { %v4683_v12 = vpop.eup %4682  ;;  %v2862_v44 = vadd.f32 %v2861_v1, %v2848_v53  ;;  %v2944_v1 = vpop.f32.mrf.mxu1  ;;  %v2931_v26 = vadd.f32 %v2930_v35, %v7021_v3 }
 0x65f   :  { %v2892_v48 = vmul.f32 %v4683_v12, %v2882_v30  ;;  %v4685_v54 = vpop.eup %4684 }
 0x660   :  { %4686 = vtanh.f32 %v2862_v44  ;;  %v2878_v47 = vmul.f32 0.5, %v4685_v54 }
 0x661   :  { %v6355_v15 = vadd.f32 %v2892_v48, %v2890_v21  ;;  %4688 = vtanh.f32 %v2869_v19  ;;  %v2972_v19 = vpop.f32.mrf.mxu3 }
 0x662   :  { %v2884_v9 = vadd.f32 0.5, %v2878_v47 }
 0x663   :  { %4690 = vtanh.f32 %v6355_v15  ;;  %v2958_v12 = vpop.f32.mrf.mxu2 }
 0x664   :  { %v2959_v61 = vadd.f32 %v2958_v12, %v5326_v45 }
 0x666   :  { %v4687_v59 = vpop.eup %4686  ;;  %v2946_v2 = vpop.f32.mrf.mxu1 }
 0x667   :  { %v2893_v20 = vmul.f32 %v4687_v59, %v2885_v36  ;;  %v4689_v53 = vpop.eup %4688  ;;  %v2932_v36 = vpop.f32.mrf.mxu0  ;;  %v2973_v59 = vadd.f32 %v2972_v19, %v2959_v61 }
 0x668   :  { %v2881_v21 = vmul.f32 0.5, %v4689_v53  ;;  %v2933_v53 = vadd.f32 %v2932_v36, %v7021_v3 }
 0x669   :  { %v4691_v30 = vpop.eup %4690  ;;  %v6359_v41 = vadd.f32 %v2893_v20, %v2891_v52  ;;  %v2945_v20 = vadd.f32 %v2944_v1, %v2931_v26 }
 0x66a   :  { %v2898_v55 = vmul.f32 %v4691_v30, %v2884_v9  ;;  %v2887_v48 = vadd.f32 0.5, %v2881_v21  ;;  %v2974_v9 = vpop.f32.mrf.mxu3  ;;  %v3034_v30 = vmul.f32 0.5, %v2973_v59  ;;  %v2947_v35 = vadd.f32 %v2946_v2, %v2933_v53 }
 0x66b   :  { %7516 = vst [vmem:[#allocation35_spill] sm:$0xff] %v6359_v41  ;;  %4692 = vtanh.f32 %v6359_v41  ;;  %v2960_v52 = vpop.f32.mrf.mxu2 }
 0x66c   :  { %v2900_v44 = vpack.c.bf16 %v2898_v55, %v2898_v55  ;;  %v2961_v55 = vadd.f32 %v2960_v52, %v5326_v45  ;;  %4694 = vtanh.f32 %v3034_v30 }
 0x66e   :  { %2902 = vst [vmem:[#allocation3 + $0x4] sm:$0xf] %v2900_v44  ;;  %v3033_v44 = vmul.f32 0.5, %v2945_v20  ;;  %v2975_v21 = vadd.f32 %v2974_v9, %v2961_v55  ;;  %v3000_v41 = vpop.f32.mrf.mxu1 }
 0x670   :  { %4696 = vtanh.f32 %v3033_v44  ;;  %v3037_v1 = vmul.f32 0.5, %v2975_v21 }
 0x671   :  { %v4693_v54 = vpop.eup %4692 }
 0x672   :  { %v2899_v47 = vmul.f32 %v4693_v54, %v2887_v48  ;;  %v3028_v26 = vpop.f32.mrf.mxu3  ;;  %v4695_v36 = vpop.eup %4694  ;;  %4698 = vtanh.f32 %v3037_v1 }
 0x673   :  { %v3046_v55 = vmul.f32 0.5, %v4695_v36 }
 0x674   :  { %v2901_v29 = vpack.c.bf16 %v2899_v47, %v2899_v47  ;;  %v3036_v47 = vmul.f32 0.5, %v2947_v35 }
 0x675   :  { %v4432_v19 = vld [vmem:[#allocation3 + $0x4] sm:$0xf] }
 0x676   :  { %2903 = vst [vmem:[#allocation3 + $0xc] sm:$0xf] %v2901_v29  ;;  %v4697_v20 = vpop.eup %4696  ;;  %4700 = vtanh.f32 %v3036_v47 }
 0x677   :  { %v3045_v44 = vmul.f32 0.5, %v4697_v20 }
 0x678   :  { %v4699_v21 = vpop.eup %4698 }
 0x679   :  { %v3049_v47 = vmul.f32 0.5, %v4699_v21  ;;  %v7536_v21 = vld [vmem:[#allocation40_spill] sm:$0xff] }
 0x67d   :  { %v2986_v12 = vpop.f32.mrf.mxu0  ;;  %v4258_v61 = vld [vmem:[#allocation3 + $0x8] sm:$0xf0] }
 0x67e   :  { %v2987_v48 = vadd.f32 %v2986_v12, %v5374_v8  ;;  %v4261_v54 = vor.u32 %v4432_v19, %v4258_v61  ;;  %v3030_v19 = vpop.f32.mrf.mxu3  ;;  %v3051_v61 = vadd.f32 0.5, %v3045_v44  ;;  %v7532_v44 = vld [vmem:[#allocation36_spill] sm:$0xff] }
 0x680   :  { %v3001_v59 = vadd.f32 %v3000_v41, %v2987_v48  ;;  %3109 = vmatmul.bf16.vlgmr.msra.gmra.mxu1 %v4261_v54  ;;  %3137 = vmatmul.bf16.vlgmr.msra.gmra.mxu3 %v4261_v54  ;;  %v3002_v41 = vpop.f32.mrf.mxu1  ;;  %v4701_v48 = vpop.eup %4700 }
 0x681   :  { %3270 = vmatpush.bf16.msra.mxu1 %v7121_v34  ;;  %3298 = vmatpush.bf16.msra.mxu3 %v7220_v27  ;;  %v3052_v34 = vadd.f32 0.5, %v3046_v55  ;;  %v3048_v36 = vmul.f32 0.5, %v4701_v48  ;;  %v4435_v48 = vld [vmem:[#allocation2 + $0x4] sm:$0xf0] }
 0x682   :  { %v3035_v53 = vmul.f32 0.5, %v3001_v59 }
 0x683   :  { %v3014_v29 = vpop.f32.mrf.mxu2 }
 0x684   :  { %v3015_v52 = vadd.f32 %v3014_v29, %v7022_v43 }
 0x685   :  { %v2988_v2 = vpop.f32.mrf.mxu0  ;;  %3271 = vmatpush.bf16.msra.mxu1 %v7221_v32  ;;  %3299 = vmatpush.bf16.msra.mxu3 %v7222_v37  ;;  %v3059_v37 = vmul.f32 %v3052_v34, %v6219_v57  ;;  %v3054_v57 = vadd.f32 0.5, %v3048_v36  ;;  %v7534_v34 = vld [vmem:[#allocation79_spill] sm:$0xff]  ;;  %v7545_v36 = vld [vmem:[#allocation54_spill] sm:$0xff] }
 0x686   :  { %v3029_v9 = vadd.f32 %v3028_v26, %v3015_v52  ;;  %v2989_v30 = vadd.f32 %v2988_v2, %v5374_v8 }
 0x688   :  { %4702 = vtanh.f32 %v3029_v9  ;;  %v3003_v12 = vadd.f32 %v3002_v41, %v2989_v30  ;;  %v7531_v41 = vld [vmem:[#allocation38_spill] sm:$0xff] }
 0x689   :  { %4704 = vtanh.f32 %v3035_v53  ;;  %3272 = vmatpush.bf16.msra.mxu1 %v7125_v17  ;;  %3300 = vmatpush.bf16.msra.mxu3 %v7126_v22  ;;  %v3055_v22 = vadd.f32 0.5, %v3049_v47  ;;  %v7542_v47 = vld [vmem:[#allocation46_spill] sm:$0xff] }
 0x68a   :  { %v3038_v32 = vmul.f32 0.5, %v3003_v12  ;;  %v7533_v12 = vld [vmem:[#allocation80_spill] sm:$0xff] }
 0x68b   :  { %v3016_v27 = vpop.f32.mrf.mxu2 }
 0x68c   :  { %v3017_v35 = vadd.f32 %v3016_v27, %v7022_v43  ;;  %v7535_v27 = vld [vmem:[#allocation42_spill] sm:$0xff] }
 0x68d   :  { %3273 = vmatpush.bf16.msra.mxu1 %v7029_v28  ;;  %3301 = vmatpush.bf16.msra.mxu3 %v7030_v58  ;;  %v3060_v28 = vmul.f32 %v3055_v22, %v6227_v63  ;;  %v7546_v22 = vld [vmem:[#allocation52_spill] sm:$0xff] }
 0x68e   :  { %v4703_v1 = vpop.eup %4702  ;;  %v3031_v26 = vadd.f32 %v3030_v19, %v3017_v35  ;;  %v4264_v35 = vld [vmem:[#allocation2] sm:$0xf]  ;;  %v7537_v19 = vld [vmem:[#allocation82_spill] sm:$0xff] }
 0x68f   :  { %v3061_v59 = vmul.f32 %v4703_v1, %v3051_v61  ;;  %v4705_v29 = vpop.eup %4704  ;;  %v7538_v61 = vld [vmem:[#allocation81_spill] sm:$0xff]  ;;  %v4265_v1 = vor.u32 %v4435_v48, %v4264_v35  ;;  %v7588_v35 = vld [vmem:[#allocation114_spill] sm:$0xff]  ;;  %v7589_v48 = vld [vmem:[#allocation115_spill] sm:$0xff] }
 0x690   :  { %4706 = vtanh.f32 %v3031_v26  ;;  %3165 = vmatmul.bf16.vlgmr.msrb.gmra.mxu1 %v4261_v54  ;;  %3193 = vmatmul.bf16.vlgmr.msrb.gmra.mxu3 %v4261_v54  ;;  %v3047_v52 = vmul.f32 0.5, %v4705_v29  ;;  %v7540_v26 = vld [vmem:[#allocation44_spill] sm:$0xff]  ;;  %v7544_v29 = vld [vmem:[#allocation83_spill] sm:$0xff] }
 0x691   :  { %v6379_v17 = vadd.f32 %v3061_v59, %v3059_v37  ;;  %4708 = vtanh.f32 %v3038_v32  ;;  %3274 = vmatpush.bf16.msra.mxu1 %v7031_v56  ;;  %3302 = vmatpush.bf16.msra.mxu3 %v7032_v62  ;;  %v7539_v32 = vld [vmem:[#allocation48_spill] sm:$0xff]  ;;  %v7541_v37 = vld [vmem:[#allocation49_spill] sm:$0xff] }
 0x692   :  { %v3053_v9 = vadd.f32 0.5, %v3047_v52  ;;  %v7543_v59 = vld [vmem:[#allocation84_spill] sm:$0xff]  ;;  %v7547_v52 = vld [vmem:[#allocation86_spill] sm:$0xff] }
 0x693   :  { %4710 = vtanh.f32 %v6379_v17 }
 0x695   :  { %3275 = vmatpush.bf16.msra.mxu1 %v7033_v60  ;;  %3303 = vmatpush.bf16.msra.mxu3 %v7034_v6 }
 0x696   :  { %v4707_v2 = vpop.eup %4706 }
 0x697   :  { %v3062_v58 = vmul.f32 %v4707_v2, %v3054_v57  ;;  %v4709_v20 = vpop.eup %4708  ;;  %v7548_v57 = vld [vmem:[#allocation85_spill] sm:$0xff]  ;;  %v7549_v2 = vld [vmem:[#allocation58_spill] sm:$0xff] }
 0x698   :  { %v3050_v53 = vmul.f32 0.5, %v4709_v20  ;;  %v7552_v20 = vld [vmem:[#allocation87_spill] sm:$0xff] }
 0x699   :  { %v4711_v30 = vpop.eup %4710  ;;  %v6387_v55 = vadd.f32 %v3062_v58, %v3060_v28  ;;  %3276 = vmatpush.bf16.msra.mxu1 %v7035_v13  ;;  %3304 = vmatpush.bf16.msra.mxu3 %v7036_v11  ;;  %v7550_v28 = vld [vmem:[#allocation56_spill] sm:$0xff] }
 0x69a   :  { %v3067_v54 = vmul.f32 %v4711_v30, %v3053_v9  ;;  %v3056_v62 = vadd.f32 0.5, %v3050_v53  ;;  %v7551_v58 = vld [vmem:[#allocation88_spill] sm:$0xff]  ;;  %v7553_v9 = vld [vmem:[#allocation61_spill] sm:$0xff] }
 0x69b   :  { %4712 = vtanh.f32 %v6387_v55  ;;  %v7554_v30 = vld [vmem:[#allocation60_spill] sm:$0xff] }
 0x69c   :  { %v3069_v56 = vpack.c.bf16 %v3067_v54, %v3067_v54  ;;  %v7555_v54 = vld [vmem:[#allocation91_spill] sm:$0xff]  ;;  %v7557_v53 = vld [vmem:[#allocation92_spill] sm:$0xff] }
 0x69d   :  { %3277 = vmatpush.bf16.msra.mxu1 %v7037_v18  ;;  %3305 = vmatpush.bf16.msra.mxu3 %v7127_v0 }
 0x69e   :  { %3071 = vst [vmem:[#allocation2 + $0x4] sm:$0xf] %v3069_v56 }
 0x69f   :  { %3073 = vst [vmem:[#allocation3] sm:$0xf] %v3069_v56  ;;  %v7556_v56 = vld [vmem:[#allocation89_spill] sm:$0xff] }
 0x6a1   :  { %v4713_v60 = vpop.eup %4712  ;;  %3326 = vmatpush.bf16.msrb.mxu1 %v7128_v24  ;;  %3354 = vmatpush.bf16.msrb.mxu3 %v7129_v46 }
 0x6a2   :  { %v3068_v6 = vmul.f32 %v4713_v60, %v3056_v62  ;;  %v7558_v62 = vld [vmem:[#allocation90_spill] sm:$0xff]  ;;  %v7559_v60 = vld [vmem:[#allocation64_spill] sm:$0xff] }
 0x6a4   :  { %v3070_v63 = vpack.c.bf16 %v3068_v6, %v3068_v6  ;;  %v7560_v6 = vld [vmem:[#allocation63_spill] sm:$0xff] }
 0x6a5   :  { %3327 = vmatpush.bf16.msrb.mxu1 %v7041_v39  ;;  %3355 = vmatpush.bf16.msrb.mxu3 %v7130_v51  ;;  %v4434_v13 = vld [vmem:[#allocation2 + $0x4] sm:$0xf]  ;;  %v7518_v39 = vld [vmem:[#allocation23_spill] sm:$0xff] }
 0x6a6   :  { %3072 = vst [vmem:[#allocation2 + $0xc] sm:$0xf] %v3070_v63  ;;  %v4256_v18 = vld [vmem:[#allocation3] sm:$0xf]  ;;  %v7529_v51 = vld [vmem:[#allocation78_spill] sm:$0xff] }
 0x6a7   :  { %3074 = vst [vmem:[#allocation3 + $0x8] sm:$0xf] %v3070_v63  ;;  %v7561_v63 = vld [vmem:[#allocation93_spill] sm:$0xff] }
 0x6a9   :  { %3328 = vmatpush.bf16.msrb.mxu1 %v7043_v50  ;;  %3356 = vmatpush.bf16.msrb.mxu3 %v7044_v31  ;;  %v7519_v50 = vld [vmem:[#allocation70_spill] sm:$0xff]  ;;  %v7528_v31 = vld [vmem:[#allocation32_spill] sm:$0xff] }
 0x6ad   :  { %3329 = vmatpush.bf16.msrb.mxu1 %v7131_v49  ;;  %3357 = vmatpush.bf16.msrb.mxu3 %v5119_v33  ;;  %v4266_v11 = vld [vmem:[#allocation2 + $0x8] sm:$0xf0]  ;;  %v7530_v49 = vld [vmem:[#allocation77_spill] sm:$0xff] }
 0x6ae   :  { %v4433_v0 = vld [vmem:[#allocation3 + $0x4] sm:$0xf0]  ;;  %v4269_v24 = vor.u32 %v4434_v13, %v4266_v11  ;;  %v7517_v33 = vld [vmem:[#allocation26_spill] sm:$0xff] }
 0x6af   :  { %v4257_v46 = vor.u32 %v4433_v0, %v4256_v18  ;;  %v7562_v13 = vld [vmem:[#allocation94_spill] sm:$0xff]  ;;  %v7564_v18 = vld [vmem:[#allocation65_spill] sm:$0xff]  ;;  %v7565_v0 = vld [vmem:[#allocation95_spill] sm:$0xff] }
 0x6b0   :  { %3278 = vmatmul.bf16.vlgmr.msra.gmra.mxu1 %v4269_v24  ;;  %3306 = vmatmul.bf16.vlgmr.msra.gmra.mxu3 %v4269_v24  ;;  %v7563_v11 = vld [vmem:[#allocation66_spill] sm:$0xff] }
 0x6b1   :  { %3095 = vmatmul.bf16.vlgmr.msra.gmra.mxu0 %v4257_v46  ;;  %3123 = vmatmul.bf16.vlgmr.msra.gmra.mxu2 %v4257_v46 }
 0x6b2   :  { %3256 = vmatpush.bf16.msra.mxu0 %v4982_v10  ;;  %3284 = vmatpush.bf16.msra.mxu2 %v4978_v5  ;;  %v7520_v10 = vld [vmem:[#allocation68_spill] sm:$0xff]  ;;  %v7521_v5 = vld [vmem:[#allocation30_spill] sm:$0xff] }
 0x6b3   :  { %3330 = vmatpush.bf16.msrb.mxu1 %v5137_v7  ;;  %3358 = vmatpush.bf16.msrb.mxu3 %v5131_v16  ;;  %v7522_v7 = vld [vmem:[#allocation28_spill] sm:$0xff]  ;;  %v7523_v16 = vld [vmem:[#allocation75_spill] sm:$0xff] }
 0x6b6   :  { %3257 = vmatpush.bf16.msra.mxu0 %v4993_v23  ;;  %3285 = vmatpush.bf16.msra.mxu2 %v4985_v14  ;;  %v7524_v23 = vld [vmem:[#allocation72_spill] sm:$0xff] }
 0x6b7   :  { %3331 = vmatpush.bf16.msrb.mxu1 %v5149_v40  ;;  %3359 = vmatpush.bf16.msrb.mxu3 %v5143_v25  ;;  %v7525_v14 = vld [vmem:[#allocation76_spill] sm:$0xff]  ;;  %v7526_v40 = vld [vmem:[#allocation74_spill] sm:$0xff] }
 0x6b8   :  { %v7527_v25 = vld [vmem:[#allocation34_spill] sm:$0xff] }
 0x6ba   :  { %3258 = vmatpush.bf16.msra.mxu0 %v7517_v33  ;;  %3286 = vmatpush.bf16.msra.mxu2 %v7518_v39  ;;  %v7568_v33 = vld [vmem:[#allocation67_spill] sm:$0xff]  ;;  %v7569_v39 = vld [vmem:[#allocation97_spill] sm:$0xff] }
 0x6bb   :  { %3332 = vmatpush.bf16.msrb.mxu1 %v7519_v50  ;;  %3360 = vmatpush.bf16.msrb.mxu3 %v7520_v10  ;;  %v7570_v50 = vld [vmem:[#allocation98_spill] sm:$0xff]  ;;  %v7571_v10 = vld [vmem:[#allocation73_spill] sm:$0xff] }
 0x6be   :  { %3259 = vmatpush.bf16.msra.mxu0 %v7521_v5  ;;  %3287 = vmatpush.bf16.msra.mxu2 %v7522_v7  ;;  %v7572_v5 = vld [vmem:[#allocation71_spill] sm:$0xff] }
 0x6bf   :  { %3333 = vmatpush.bf16.msrb.mxu1 %v7523_v16  ;;  %3361 = vmatpush.bf16.msrb.mxu3 %v7524_v23  ;;  %v7573_v7 = vld [vmem:[#allocation99_spill] sm:$0xff]  ;;  %v7574_v16 = vld [vmem:[#allocation100_spill] sm:$0xff]  ;;  %v7575_v23 = vld [vmem:[#allocation101_spill] sm:$0xff] }
 0x6c1   :  { %3151 = vmatmul.bf16.vlgmr.msrb.gmra.mxu0 %v4257_v46  ;;  %3179 = vmatmul.bf16.vlgmr.msrb.gmra.mxu2 %v4257_v46  ;;  %v7567_v46 = vld [vmem:[#allocation69_spill] sm:$0xff] }
 0x6c2   :  { %3260 = vmatpush.bf16.msra.mxu0 %v7527_v25  ;;  %3288 = vmatpush.bf16.msra.mxu2 %v7528_v31  ;;  %v7578_v25 = vld [vmem:[#allocation104_spill] sm:$0xff]  ;;  %v7579_v31 = vld [vmem:[#allocation105_spill] sm:$0xff] }
 0x6c3   :  { %3436 = vmatpush.bf16.msra.mxu1 %v7525_v14  ;;  %3464 = vmatpush.bf16.msra.mxu3 %v7526_v40  ;;  %v7576_v14 = vld [vmem:[#allocation102_spill] sm:$0xff]  ;;  %v7577_v40 = vld [vmem:[#allocation103_spill] sm:$0xff] }
 0x6c4   :  { %3334 = vmatmul.bf16.vlgmr.msrb.gmra.mxu1 %v4269_v24  ;;  %3362 = vmatmul.bf16.vlgmr.msrb.gmra.mxu3 %v4269_v24  ;;  %v7566_v24 = vld [vmem:[#allocation96_spill] sm:$0xff] }
 0x6c6   :  { %3261 = vmatpush.bf16.msra.mxu0 %v7531_v41  ;;  %3289 = vmatpush.bf16.msra.mxu2 %v7532_v44  ;;  %v7582_v41 = vld [vmem:[#allocation108_spill] sm:$0xff]  ;;  %v7583_v44 = vld [vmem:[#allocation109_spill] sm:$0xff] }
 0x6c7   :  { %3437 = vmatpush.bf16.msra.mxu1 %v7529_v51  ;;  %3465 = vmatpush.bf16.msra.mxu3 %v7530_v49  ;;  %v7580_v51 = vld [vmem:[#allocation106_spill] sm:$0xff]  ;;  %v7581_v49 = vld [vmem:[#allocation107_spill] sm:$0xff] }
 0x6ca   :  { %3262 = vmatpush.bf16.msra.mxu0 %v7535_v27  ;;  %3290 = vmatpush.bf16.msra.mxu2 %v7536_v21  ;;  %v7586_v27 = vld [vmem:[#allocation112_spill] sm:$0xff]  ;;  %v7587_v21 = vld [vmem:[#allocation113_spill] sm:$0xff] }
 0x6cb   :  { %3438 = vmatpush.bf16.msra.mxu1 %v7533_v12  ;;  %3466 = vmatpush.bf16.msra.mxu3 %v7534_v34  ;;  %v7584_v12 = vld [vmem:[#allocation110_spill] sm:$0xff]  ;;  %v7585_v34 = vld [vmem:[#allocation111_spill] sm:$0xff] }
 0x6ce   :  { %3263 = vmatpush.bf16.msra.mxu0 %v7539_v32  ;;  %3291 = vmatpush.bf16.msra.mxu2 %v7540_v26  ;;  %v7593_v32 = vld [vmem:[#allocation119_spill] sm:$0xff]  ;;  %v7594_v26 = vld [vmem:[#allocation120_spill] sm:$0xff] }
 0x6cf   :  { %3439 = vmatpush.bf16.msra.mxu1 %v7537_v19  ;;  %3467 = vmatpush.bf16.msra.mxu3 %v7538_v61  ;;  %v7590_v19 = vld [vmem:[#allocation116_spill] sm:$0xff]  ;;  %v7591_v61 = vld [vmem:[#allocation117_spill] sm:$0xff] }
 0x6d1   :  { %3264 = vmatmul.bf16.vlgmr.msra.gmra.mxu0 %v4265_v1  ;;  %3292 = vmatmul.bf16.vlgmr.msra.gmra.mxu2 %v4265_v1 }
 0x6d2   :  { %3312 = vmatpush.bf16.msrb.mxu0 %v7541_v37  ;;  %3340 = vmatpush.bf16.msrb.mxu2 %v7542_v47  ;;  %v7595_v37 = vld [vmem:[#allocation122_spill] sm:$0xff]  ;;  %v7596_v47 = vld [vmem:[#allocation123_spill] sm:$0xff] }
 0x6d3   :  { %3440 = vmatpush.bf16.msra.mxu1 %v7543_v59  ;;  %3468 = vmatpush.bf16.msra.mxu3 %v7544_v29  ;;  %v7597_v59 = vld [vmem:[#allocation124_spill] sm:$0xff]  ;;  %v7598_v29 = vld [vmem:[#allocation125_spill] sm:$0xff] }
 0x6d6   :  { %3313 = vmatpush.bf16.msrb.mxu0 %v7545_v36  ;;  %3341 = vmatpush.bf16.msrb.mxu2 %v7546_v22  ;;  %v7599_v36 = vld [vmem:[#allocation126_spill] sm:$0xff]  ;;  %v7600_v22 = vld [vmem:[#allocation127_spill] sm:$0xff] }
 0x6d7   :  { %3441 = vmatpush.bf16.msra.mxu1 %v7547_v52  ;;  %3469 = vmatpush.bf16.msra.mxu3 %v7548_v57  ;;  %v7601_v52 = vld [vmem:[#allocation128_spill] sm:$0xff]  ;;  %v7602_v57 = vld [vmem:[#allocation129_spill] sm:$0xff] }
 0x6da   :  { %3314 = vmatpush.bf16.msrb.mxu0 %v7549_v2  ;;  %3342 = vmatpush.bf16.msrb.mxu2 %v7550_v28  ;;  %v7603_v2 = vld [vmem:[#allocation130_spill] sm:$0xff]  ;;  %v7604_v28 = vld [vmem:[#allocation131_spill] sm:$0xff] }
 0x6db   :  { %3442 = vmatpush.bf16.msra.mxu1 %v7551_v58  ;;  %3470 = vmatpush.bf16.msra.mxu3 %v7552_v20  ;;  %v7605_v58 = vld [vmem:[#allocation133_spill] sm:$0xff]  ;;  %v7606_v20 = vld [vmem:[#allocation134_spill] sm:$0xff] }
 0x6de   :  { %3315 = vmatpush.bf16.msrb.mxu0 %v7553_v9  ;;  %3343 = vmatpush.bf16.msrb.mxu2 %v7554_v30  ;;  %v7607_v9 = vld [vmem:[#allocation135_spill] sm:$0xff]  ;;  %v7608_v30 = vld [vmem:[#allocation136_spill] sm:$0xff] }
 0x6df   :  { %3443 = vmatpush.bf16.msra.mxu1 %v7555_v54  ;;  %3471 = vmatpush.bf16.msra.mxu3 %v7556_v56  ;;  %v7609_v54 = vld [vmem:[#allocation137_spill] sm:$0xff]  ;;  %v7610_v56 = vld [vmem:[#allocation138_spill] sm:$0xff] }
 0x6e2   :  { %3316 = vmatpush.bf16.msrb.mxu0 %v7559_v60  ;;  %3344 = vmatpush.bf16.msrb.mxu2 %v7560_v6 }
 0x6e3   :  { %3492 = vmatpush.bf16.msrb.mxu1 %v7557_v53  ;;  %3520 = vmatpush.bf16.msrb.mxu3 %v7558_v62  ;;  %v7611_v53 = vld [vmem:[#allocation139_spill] sm:$0xff]  ;;  %v7612_v62 = vld [vmem:[#allocation140_spill] sm:$0xff] }
 0x6e6   :  { %3317 = vmatpush.bf16.msrb.mxu0 %v7563_v11  ;;  %3345 = vmatpush.bf16.msrb.mxu2 %v7564_v18  ;;  %v7613_v18 = vld [vmem:[#allocation142_spill] sm:$0xff] }
 0x6e7   :  { %3493 = vmatpush.bf16.msrb.mxu1 %v7561_v63  ;;  %3521 = vmatpush.bf16.msrb.mxu3 %v7562_v13 }
 0x6ea   :  { %3318 = vmatpush.bf16.msrb.mxu0 %v7567_v46  ;;  %3346 = vmatpush.bf16.msrb.mxu2 %v7568_v33 }
 0x6eb   :  { %3494 = vmatpush.bf16.msrb.mxu1 %v7565_v0  ;;  %3522 = vmatpush.bf16.msrb.mxu3 %v7566_v24 }
 0x6ee   :  { %3319 = vmatpush.bf16.msrb.mxu0 %v7571_v10  ;;  %3347 = vmatpush.bf16.msrb.mxu2 %v7572_v5 }
 0x6ef   :  { %3495 = vmatpush.bf16.msrb.mxu1 %v7569_v39  ;;  %3523 = vmatpush.bf16.msrb.mxu3 %v7570_v50 }
 0x6f1   :  { %3320 = vmatmul.bf16.vlgmr.msrb.gmra.mxu0 %v4265_v1  ;;  %3348 = vmatmul.bf16.vlgmr.msrb.gmra.mxu2 %v4265_v1  ;;  %v7592_v1 = vld [vmem:[#allocation118_spill] sm:$0xff] }
 0x6f2   :  { %3422 = vmatpush.bf16.msra.mxu0 %v7573_v7  ;;  %3450 = vmatpush.bf16.msra.mxu2 %v7574_v16 }
 0x6f3   :  { %3496 = vmatpush.bf16.msrb.mxu1 %v7575_v23  ;;  %3524 = vmatpush.bf16.msrb.mxu3 %v7576_v14 }
 0x6f6   :  { %3423 = vmatpush.bf16.msra.mxu0 %v7577_v40  ;;  %3451 = vmatpush.bf16.msra.mxu2 %v7578_v25 }
 0x6f7   :  { %3497 = vmatpush.bf16.msrb.mxu1 %v7579_v31  ;;  %3525 = vmatpush.bf16.msrb.mxu3 %v7580_v51 }
 0x6fa   :  { %3424 = vmatpush.bf16.msra.mxu0 %v7581_v49  ;;  %3452 = vmatpush.bf16.msra.mxu2 %v7582_v41 }
 0x6fb   :  { %3498 = vmatpush.bf16.msrb.mxu1 %v7583_v44  ;;  %3526 = vmatpush.bf16.msrb.mxu3 %v7584_v12 }
 0x6fd   :  { %v3110_v60 = vpop.f32.mrf.mxu1 }
 0x6fe   :  { %3425 = vmatpush.bf16.msra.mxu0 %v7585_v34  ;;  %3453 = vmatpush.bf16.msra.mxu2 %v7586_v27 }
 0x6ff   :  { %3499 = vmatpush.bf16.msrb.mxu1 %v7587_v21  ;;  %3527 = vmatpush.bf16.msrb.mxu3 %v7588_v35 }
 0x702   :  { %3426 = vmatpush.bf16.msra.mxu0 %v7589_v48  ;;  %3454 = vmatpush.bf16.msra.mxu2 %v7590_v19 }
 0x703   :  { %v3138_v63 = vpop.f32.mrf.mxu3 }
 0x705   :  { %v3112_v24 = vpop.f32.mrf.mxu1 }
 0x706   :  { %3427 = vmatpush.bf16.msra.mxu0 %v7591_v61  ;;  %3455 = vmatpush.bf16.msra.mxu2 %v7592_v1 }
 0x70a   :  { %3428 = vmatpush.bf16.msra.mxu0 %v7593_v32  ;;  %3456 = vmatpush.bf16.msra.mxu2 %v7594_v26 }
 0x70b   :  { %v3140_v50 = vpop.f32.mrf.mxu3 }
 0x70d   :  { %v3166_v25 = vpop.f32.mrf.mxu1 }
 0x70e   :  { %3429 = vmatpush.bf16.msra.mxu0 %v7595_v37  ;;  %3457 = vmatpush.bf16.msra.mxu2 %v7596_v47 }
 0x712   :  { %3478 = vmatpush.bf16.msrb.mxu0 %v7597_v59  ;;  %3506 = vmatpush.bf16.msrb.mxu2 %v7598_v29 }
 0x713   :  { %v3194_v41 = vpop.f32.mrf.mxu3 }
 0x715   :  { %v3168_v26 = vpop.f32.mrf.mxu1 }
 0x716   :  { %3479 = vmatpush.bf16.msrb.mxu0 %v7599_v36  ;;  %3507 = vmatpush.bf16.msrb.mxu2 %v7600_v22 }
 0x71a   :  { %3480 = vmatpush.bf16.msrb.mxu0 %v7601_v52  ;;  %3508 = vmatpush.bf16.msrb.mxu2 %v7602_v57 }
 0x71b   :  { %v3196_v57 = vpop.f32.mrf.mxu3 }
 0x71e   :  { %3481 = vmatpush.bf16.msrb.mxu0 %v7603_v2  ;;  %3509 = vmatpush.bf16.msrb.mxu2 %v7604_v28 }
 0x722   :  { %3482 = vmatpush.bf16.msrb.mxu0 %v7605_v58  ;;  %3510 = vmatpush.bf16.msrb.mxu2 %v7606_v20 }
 0x726   :  { %3483 = vmatpush.bf16.msrb.mxu0 %v7607_v9  ;;  %3511 = vmatpush.bf16.msrb.mxu2 %v7608_v30 }
 0x72a   :  { %3484 = vmatpush.bf16.msrb.mxu0 %v7609_v54  ;;  %3512 = vmatpush.bf16.msrb.mxu2 %v7610_v56 }
 0x72e   :  { %3485 = vmatpush.bf16.msrb.mxu0 %v7611_v53  ;;  %3513 = vmatpush.bf16.msrb.mxu2 %v7612_v62  ;;  %v3096_v6 = vpop.f32.mrf.mxu0 }
 0x72f   :  { %v3097_v11 = vadd.f32 %v3096_v6, %v7315_v4 }
 0x731   :  { %v3111_v39 = vadd.f32 %v3110_v60, %v3097_v11  ;;  %v7614_v11 = vld [vmem:[#allocation35_spill] sm:$0xff] }
 0x733   :  { %v3199_v16 = vmul.f32 0.5, %v3111_v39 }
 0x734   :  { %v3124_v13 = vpop.f32.mrf.mxu2 }
 0x735   :  { %v3125_v0 = vadd.f32 %v3124_v13, %v7613_v18 }
 0x736   :  { %v3098_v46 = vpop.f32.mrf.mxu0 }
 0x737   :  { %v3139_v33 = vadd.f32 %v3138_v63, %v3125_v0  ;;  %v3099_v5 = vadd.f32 %v3098_v46, %v7315_v4 }
 0x739   :  { %v3200_v10 = vmul.f32 0.5, %v3139_v33  ;;  %v3113_v31 = vadd.f32 %v3112_v24, %v3099_v5  ;;  %v3279_v33 = vpop.f32.mrf.mxu1 }
 0x73b   :  { %4714 = vtanh.f32 %v3200_v10  ;;  %v3202_v44 = vmul.f32 0.5, %v3113_v31 }
 0x73c   :  { %v3126_v7 = vpop.f32.mrf.mxu2  ;;  %4716 = vtanh.f32 %v3199_v16  ;;  %v3307_v16 = vpop.f32.mrf.mxu3 }
 0x73d   :  { %v3127_v23 = vadd.f32 %v3126_v7, %v7613_v18 }
 0x73e   :  { %v3152_v14 = vpop.f32.mrf.mxu0 }
 0x73f   :  { %v3141_v40 = vadd.f32 %v3140_v50, %v3127_v23  ;;  %v3153_v51 = vadd.f32 %v3152_v14, %v5547_v42 }
 0x741   :  { %v3203_v49 = vmul.f32 0.5, %v3141_v40  ;;  %v3167_v12 = vadd.f32 %v3166_v25, %v3153_v51  ;;  %v4715_v27 = vpop.eup %4714 }
 0x742   :  { %v4717_v48 = vpop.eup %4716  ;;  %v3212_v1 = vmul.f32 0.5, %v4715_v27 }
 0x743   :  { %4718 = vtanh.f32 %v3203_v49  ;;  %v3201_v32 = vmul.f32 0.5, %v3167_v12  ;;  %v3211_v37 = vmul.f32 0.5, %v4717_v48  ;;  %v3281_v49 = vpop.f32.mrf.mxu1 }
 0x744   :  { %v3180_v34 = vpop.f32.mrf.mxu2  ;;  %4720 = vtanh.f32 %v3202_v44  ;;  %v3218_v59 = vadd.f32 0.5, %v3212_v1 }
 0x745   :  { %v3181_v21 = vadd.f32 %v3180_v34, %v7217_v38  ;;  %v3217_v2 = vadd.f32 0.5, %v3211_v37 }
 0x746   :  { %v3154_v35 = vpop.f32.mrf.mxu0  ;;  %v3225_v9 = vmul.f32 %v3218_v59, %v6355_v15 }
 0x747   :  { %v3195_v19 = vadd.f32 %v3194_v41, %v3181_v21  ;;  %v3155_v61 = vadd.f32 %v3154_v35, %v5547_v42  ;;  %v3309_v35 = vpop.f32.mrf.mxu3 }
 0x749   :  { %4722 = vtanh.f32 %v3195_v19  ;;  %v3169_v47 = vadd.f32 %v3168_v26, %v3155_v61  ;;  %v4719_v36 = vpop.eup %4718 }
 0x74a   :  { %4724 = vtanh.f32 %v3201_v32  ;;  %v4721_v52 = vpop.eup %4720  ;;  %v3215_v30 = vmul.f32 0.5, %v4719_v36 }
 0x74b   :  { %v3204_v58 = vmul.f32 0.5, %v3169_v47  ;;  %v3214_v53 = vmul.f32 0.5, %v4721_v52  ;;  %v3335_v37 = vpop.f32.mrf.mxu1 }
 0x74c   :  { %v3182_v29 = vpop.f32.mrf.mxu2  ;;  %v3221_v60 = vadd.f32 0.5, %v3215_v30 }
 0x74d   :  { %v3183_v22 = vadd.f32 %v3182_v29, %v7217_v38  ;;  %v3220_v63 = vadd.f32 0.5, %v3214_v53 }
 0x74e   :  { %v3226_v0 = vmul.f32 %v3221_v60, %v7614_v11  ;;  %v3265_v39 = vpop.f32.mrf.mxu0 }
 0x74f   :  { %v4723_v28 = vpop.eup %4722  ;;  %v3197_v20 = vadd.f32 %v3196_v57, %v3183_v22  ;;  %v3266_v51 = vadd.f32 %v3265_v39, %v7021_v3  ;;  %v3363_v57 = vpop.f32.mrf.mxu3 }
 0x750   :  { %v3227_v54 = vmul.f32 %v4723_v28, %v3217_v2  ;;  %v4725_v56 = vpop.eup %4724 }
 0x751   :  { %4726 = vtanh.f32 %v3197_v20  ;;  %v3213_v6 = vmul.f32 0.5, %v4725_v56  ;;  %v3280_v21 = vadd.f32 %v3279_v33, %v3266_v51 }
 0x752   :  { %v6515_v62 = vadd.f32 %v3227_v54, %v3225_v9  ;;  %4728 = vtanh.f32 %v3204_v58 }
 0x753   :  { %v3219_v15 = vadd.f32 0.5, %v3213_v6  ;;  %v3368_v1 = vmul.f32 0.5, %v3280_v21  ;;  %v3337_v60 = vpop.f32.mrf.mxu1 }
 0x754   :  { %4730 = vtanh.f32 %v6515_v62  ;;  %v3293_v7 = vpop.f32.mrf.mxu2 }
 0x755   :  { %v3294_v40 = vadd.f32 %v3293_v7, %v5326_v45 }
 0x756   :  { %v3267_v44 = vpop.f32.mrf.mxu0 }
 0x757   :  { %v4727_v13 = vpop.eup %4726  ;;  %v3308_v12 = vadd.f32 %v3307_v16, %v3294_v40  ;;  %v3268_v61 = vadd.f32 %v3267_v44, %v7021_v3  ;;  %v3365_v33 = vpop.f32.mrf.mxu3 }
 0x758   :  { %v3228_v24 = vmul.f32 %v4727_v13, %v3220_v63  ;;  %v4729_v46 = vpop.eup %4728 }
 0x759   :  { %v3216_v14 = vmul.f32 0.5, %v4729_v46  ;;  %v3369_v48 = vmul.f32 0.5, %v3308_v12  ;;  %v3282_v47 = vadd.f32 %v3281_v49, %v3268_v61 }
 0x75a   :  { %v4731_v50 = vpop.eup %4730  ;;  %v6519_v10 = vadd.f32 %v3228_v24, %v3226_v0 }
 0x75b   :  { %v3233_v5 = vmul.f32 %v4731_v50, %v3219_v15  ;;  %v3222_v25 = vadd.f32 0.5, %v3216_v14  ;;  %v3371_v2 = vmul.f32 0.5, %v3282_v47 }
 0x75c   :  { %4732 = vtanh.f32 %v6519_v10  ;;  %v3295_v27 = vpop.f32.mrf.mxu2 }
 0x75d   :  { %v3235_v23 = vpack.c.bf16 %v3233_v5, %v3233_v5  ;;  %v3296_v19 = vadd.f32 %v3295_v27, %v5326_v45  ;;  %4734 = vtanh.f32 %v3369_v48 }
 0x75e   :  { %4736 = vtanh.f32 %v3368_v1 }
 0x75f   :  { %3237 = vst [vmem:[#allocation3 + $0x4] sm:$0xf] %v3235_v23  ;;  %v3310_v26 = vadd.f32 %v3309_v35, %v3296_v19 }
 0x761   :  { %v3372_v52 = vmul.f32 0.5, %v3310_v26 }
 0x762   :  { %v4733_v31 = vpop.eup %4732 }
 0x763   :  { %v3234_v41 = vmul.f32 %v4733_v31, %v3222_v25  ;;  %v4735_v45 = vpop.eup %4734  ;;  %4738 = vtanh.f32 %v3372_v52 }
 0x764   :  { %v4737_v9 = vpop.eup %4736  ;;  %v3381_v56 = vmul.f32 0.5, %v4735_v45  ;;  %4740 = vtanh.f32 %v3371_v2 }
 0x765   :  { %v3236_v34 = vpack.c.bf16 %v3234_v41, %v3234_v41  ;;  %v3380_v6 = vmul.f32 0.5, %v4737_v9 }
 0x766   :  { %v4436_v29 = vld [vmem:[#allocation3 + $0x4] sm:$0xf]  ;;  %v3387_v13 = vadd.f32 0.5, %v3381_v56 }
 0x767   :  { %3238 = vst [vmem:[#allocation3 + $0xc] sm:$0xf] %v3236_v34  ;;  %v3386_v15 = vadd.f32 0.5, %v3380_v6 }
 0x769   :  { %v4739_v0 = vpop.eup %4738 }
 0x76a   :  { %v4741_v46 = vpop.eup %4740  ;;  %v3384_v7 = vmul.f32 0.5, %v4739_v0 }
 0x76b   :  { %v3383_v14 = vmul.f32 0.5, %v4741_v46 }
 0x76c   :  { %v3390_v25 = vadd.f32 0.5, %v3384_v7 }
 0x76d   :  { %v3389_v31 = vadd.f32 0.5, %v3383_v14 }
 0x76e   :  { %v3321_v32 = vpop.f32.mrf.mxu0  ;;  %v4274_v36 = vld [vmem:[#allocation3 + $0x8] sm:$0xf0]  ;;  %v3395_v49 = vmul.f32 %v3390_v25, %v6387_v55 }
 0x76f   :  { %v3322_v59 = vadd.f32 %v3321_v32, %v5374_v8  ;;  %v4277_v22 = vor.u32 %v4436_v29, %v4274_v36 }
 0x771   :  { %v3336_v28 = vadd.f32 %v3335_v37, %v3322_v59  ;;  %3444 = vmatmul.bf16.vlgmr.msra.gmra.mxu1 %v4277_v22  ;;  %3472 = vmatmul.bf16.vlgmr.msra.gmra.mxu3 %v4277_v22 }
 0x773   :  { %v3370_v53 = vmul.f32 0.5, %v3336_v28 }
 0x774   :  { %v3349_v58 = vpop.f32.mrf.mxu2 }
 0x775   :  { %v3350_v3 = vadd.f32 %v3349_v58, %v7022_v43 }
 0x776   :  { %v3323_v20 = vpop.f32.mrf.mxu0 }
 0x777   :  { %v3364_v30 = vadd.f32 %v3363_v57, %v3350_v3  ;;  %v3324_v54 = vadd.f32 %v3323_v20, %v5374_v8  ;;  %v3394_v8 = vmul.f32 %v3387_v13, %v6379_v17 }
 0x779   :  { %4742 = vtanh.f32 %v3364_v30  ;;  %v3338_v63 = vadd.f32 %v3337_v60, %v3324_v54 }
 0x77a   :  { %4744 = vtanh.f32 %v3370_v53 }
 0x77b   :  { %v3373_v50 = vmul.f32 0.5, %v3338_v63 }
 0x77c   :  { %v3351_v11 = vpop.f32.mrf.mxu2 }
 0x77d   :  { %v3352_v24 = vadd.f32 %v3351_v11, %v7022_v43 }
 0x77f   :  { %v4743_v39 = vpop.eup %4742  ;;  %v3366_v5 = vadd.f32 %v3365_v33, %v3352_v24 }
 0x780   :  { %v3396_v16 = vmul.f32 %v4743_v39, %v3386_v15  ;;  %v4745_v23 = vpop.eup %4744 }
 0x781   :  { %4746 = vtanh.f32 %v3366_v5  ;;  %3500 = vmatmul.bf16.vlgmr.msrb.gmra.mxu1 %v4277_v22  ;;  %3528 = vmatmul.bf16.vlgmr.msrb.gmra.mxu3 %v4277_v22  ;;  %v3382_v43 = vmul.f32 0.5, %v4745_v23 }
 0x782   :  { %v3398_v40 = vadd.f32 %v3396_v16, %v3394_v8  ;;  %4748 = vtanh.f32 %v3373_v50 }
 0x783   :  { %v3388_v12 = vadd.f32 0.5, %v3382_v43 }
 0x784   :  { %4750 = vtanh.f32 %v3398_v40 }
 0x787   :  { %v4747_v51 = vpop.eup %4746 }
 0x788   :  { %v3397_v41 = vmul.f32 %v4747_v51, %v3389_v31  ;;  %v4749_v44 = vpop.eup %4748 }
 0x789   :  { %v3385_v35 = vmul.f32 0.5, %v4749_v44 }
 0x78a   :  { %v4751_v17 = vpop.eup %4750  ;;  %v3399_v34 = vadd.f32 %v3397_v41, %v3395_v49 }
 0x78b   :  { %v3402_v27 = vmul.f32 %v4751_v17, %v3388_v12  ;;  %v3391_v48 = vadd.f32 0.5, %v3385_v35 }
 0x78c   :  { %4752 = vtanh.f32 %v3399_v34 }
 0x78d   :  { %v3404_v21 = vpack.c.bf16 %v3402_v27, %v3402_v27 }
 0x78f   :  { %3406 = vst [vmem:[#allocation2 + $0x4] sm:$0xf] %v3404_v21 }
 0x790   :  { %3408 = vst [vmem:[#allocation3] sm:$0xf] %v3404_v21 }
 0x792   :  { %v4753_v19 = vpop.eup %4752 }
 0x793   :  { %v3403_v61 = vmul.f32 %v4753_v19, %v3391_v48 }
 0x795   :  { %v3405_v1 = vpack.c.bf16 %v3403_v61, %v3403_v61 }
 0x797   :  { %3407 = vst [vmem:[#allocation2 + $0xc] sm:$0xf] %v3405_v1  ;;  %v4272_v32 = vld [vmem:[#allocation3] sm:$0xf] }
 0x798   :  { %3409 = vst [vmem:[#allocation3 + $0x8] sm:$0xf] %v3405_v1 }
 0x79f   :  { %v4437_v26 = vld [vmem:[#allocation3 + $0x4] sm:$0xf0] }
 0x7a0   :  { %v4273_v55 = vor.u32 %v4437_v26, %v4272_v32 }
 0x7a2   :  { %3430 = vmatmul.bf16.vlgmr.msra.gmra.mxu0 %v4273_v55  ;;  %3458 = vmatmul.bf16.vlgmr.msra.gmra.mxu2 %v4273_v55 }
 0x7b2   :  { %3486 = vmatmul.bf16.vlgmr.msrb.gmra.mxu0 %v4273_v55  ;;  %3514 = vmatmul.bf16.vlgmr.msrb.gmra.mxu2 %v4273_v55 }
 0x7ee   :  { %v3445_v37 = vpop.f32.mrf.mxu1 }
 0x7f4   :  { %v3473_v59 = vpop.f32.mrf.mxu3 }
 0x7f6   :  { %v3447_v52 = vpop.f32.mrf.mxu1 }
 0x7fc   :  { %v3475_v58 = vpop.f32.mrf.mxu3 }
 0x7fe   :  { %v3501_v53 = vpop.f32.mrf.mxu1 }
 0x804   :  { %v3529_v13 = vpop.f32.mrf.mxu3 }
 0x806   :  { %v3503_v8 = vpop.f32.mrf.mxu1 }
 0x80c   :  { %v3531_v31 = vpop.f32.mrf.mxu3 }
 0x81f   :  { %v3431_v47 = vpop.f32.mrf.mxu0 }
 0x820   :  { %v3432_v36 = vadd.f32 %v3431_v47, %v7315_v4 }
 0x822   :  { %v3446_v28 = vadd.f32 %v3445_v37, %v3432_v36 }
 0x824   :  { %v3534_v9 = vmul.f32 0.5, %v3446_v28  ;;  %v4453_v28 = vld [vmem:[#allocation6] ss:$0 sm:$0xff] }
 0x825   :  { %v3459_v29 = vpop.f32.mrf.mxu2 }
 0x826   :  { %v3460_v22 = vadd.f32 %v3459_v29, %v7613_v18 }
 0x827   :  { %v3433_v57 = vpop.f32.mrf.mxu0 }
 0x828   :  { %v3474_v2 = vadd.f32 %v3473_v59, %v3460_v22  ;;  %v3434_v3 = vadd.f32 %v3433_v57, %v7315_v4 }
 0x82a   :  { %v3535_v45 = vmul.f32 0.5, %v3474_v2  ;;  %v3448_v60 = vadd.f32 %v3447_v52, %v3434_v3 }
 0x82c   :  { %4754 = vtanh.f32 %v3535_v45  ;;  %v3537_v11 = vmul.f32 0.5, %v3448_v60 }
 0x82d   :  { %v3461_v20 = vpop.f32.mrf.mxu2  ;;  %4756 = vtanh.f32 %v3534_v9 }
 0x82e   :  { %v3462_v30 = vadd.f32 %v3461_v20, %v7613_v18 }
 0x82f   :  { %v3487_v54 = vpop.f32.mrf.mxu0 }
 0x830   :  { %v3476_v56 = vadd.f32 %v3475_v58, %v3462_v30  ;;  %v3488_v6 = vadd.f32 %v3487_v54, %v5547_v42 }
 0x832   :  { %v3538_v63 = vmul.f32 0.5, %v3476_v56  ;;  %v3502_v0 = vadd.f32 %v3501_v53, %v3488_v6  ;;  %v4755_v46 = vpop.eup %4754 }
 0x833   :  { %v4757_v15 = vpop.eup %4756  ;;  %v3547_v50 = vmul.f32 0.5, %v4755_v46 }
 0x834   :  { %4758 = vtanh.f32 %v3538_v63  ;;  %v3536_v5 = vmul.f32 0.5, %v3502_v0  ;;  %v3546_v7 = vmul.f32 0.5, %v4757_v15 }
 0x835   :  { %v3515_v24 = vpop.f32.mrf.mxu2  ;;  %4760 = vtanh.f32 %v3537_v11  ;;  %v3553_v23 = vadd.f32 0.5, %v3547_v50 }
 0x836   :  { %v3516_v4 = vadd.f32 %v3515_v24, %v7217_v38  ;;  %v3552_v51 = vadd.f32 0.5, %v3546_v7 }
 0x837   :  { %v3489_v33 = vpop.f32.mrf.mxu0 }
 0x838   :  { %v3530_v18 = vadd.f32 %v3529_v13, %v3516_v4  ;;  %v3490_v39 = vadd.f32 %v3489_v33, %v5547_v42  ;;  %v3560_v42 = vmul.f32 %v3553_v23, %v6515_v62  ;;  %v4452_v62 = vld [vmem:[%s6553_s5] ss:$0 sm:$0xff]  ;;  %s4915_s5 = smov [#allocation15]  }
 0x839   :  { %s3621_s25 = sshll.u32 %s4915_s5, 4  ;;  %s3622_s25 = int_to_ptr.vmem [resolvable:$true] %s3621_s25 }
 0x83a   :  { %4762 = vtanh.f32 %v3530_v18  ;;  %v3504_v16 = vadd.f32 %v3503_v8, %v3490_v39  ;;  %v4759_v40 = vpop.eup %4758 }
 0x83b   :  { %4764 = vtanh.f32 %v3536_v5  ;;  %v4761_v43 = vpop.eup %4760  ;;  %v3550_v12 = vmul.f32 0.5, %v4759_v40 }
 0x83c   :  { %v3539_v41 = vmul.f32 0.5, %v3504_v16  ;;  %v3549_v27 = vmul.f32 0.5, %v4761_v43 }
 0x83d   :  { %v3517_v14 = vpop.f32.mrf.mxu2  ;;  %v3556_v35 = vadd.f32 0.5, %v3550_v12 }
 0x83e   :  { %v3518_v25 = vadd.f32 %v3517_v14, %v7217_v38  ;;  %v3555_v19 = vadd.f32 0.5, %v3549_v27 }
 0x83f   :  { %v3561_v61 = vmul.f32 %v3556_v35, %v6519_v10 }
 0x840   :  { %v4763_v49 = vpop.eup %4762  ;;  %v3532_v44 = vadd.f32 %v3531_v31, %v3518_v25 }
 0x841   :  { %v3562_v17 = vmul.f32 %v4763_v49, %v3552_v51  ;;  %v4765_v34 = vpop.eup %4764 }
 0x842   :  { %4766 = vtanh.f32 %v3532_v44  ;;  %v3548_v48 = vmul.f32 0.5, %v4765_v34 }
 0x843   :  { %v3564_v21 = vadd.f32 %v3562_v17, %v3560_v42  ;;  %4768 = vtanh.f32 %v3539_v41 }
 0x844   :  { %v3554_v26 = vadd.f32 0.5, %v3548_v48 }
 0x845   :  { %4770 = vtanh.f32 %v3564_v21 }
 0x848   :  { %v4767_v38 = vpop.eup %4766 }
 0x849   :  { %v3563_v1 = vmul.f32 %v4767_v38, %v3555_v19  ;;  %v4769_v32 = vpop.eup %4768 }
 0x84a   :  { %v3551_v59 = vmul.f32 0.5, %v4769_v32 }
 0x84b   :  { %v4771_v55 = vpop.eup %4770  ;;  %v3565_v37 = vadd.f32 %v3563_v1, %v3561_v61 }
 0x84c   :  { %v3568_v47 = vmul.f32 %v4771_v55, %v3554_v26  ;;  %v3557_v22 = vadd.f32 0.5, %v3551_v59 }
 0x84d   :  { %4772 = vtanh.f32 %v3565_v37 }
 0x84e   :  { %v3585_v29 = vmul.f32 %v4452_v62, %v3568_v47  ;;  %v3570_v36 = vpack.c.bf16 %v3568_v47, %v3568_v47 }
 0x850   :  { %3587 = vadd.xlane.f32.xlu0 %v3585_v29  ;;  %3572 = vst [vmem:[#allocation3 + $0x4] sm:$0xf] %v3570_v36 }
 0x853   :  { %v4773_v52 = vpop.eup %4772 }
 0x854   :  { %v3569_v57 = vmul.f32 %v4773_v52, %v3557_v22 }
 0x856   :  { %v3571_v10 = vpack.c.bf16 %v3569_v57, %v3569_v57  ;;  %v3586_v2 = vmul.f32 %v4452_v62, %v3569_v57 }
 0x858   :  { %3573 = vst [vmem:[#allocation3 + $0xc] sm:$0xf] %v3571_v10  ;;  %3589 = vadd.xlane.f32.xlu0 %v3586_v2 }
 0x8c3   :  { %v3588_v58 = vpop.xlane.xlu0 %3587 }
 0x8c4   :  { %v3595_v45 = vadd.f32 %v4453_v28, %v3588_v58 }
 0x8c6   :  { %v3597_v3 = vmul.f32 0.5, %v3595_v45 }
 0x8c8   :  { %4774 = vtanh.f32 %v3597_v3 }
 0x8cb   :  { %v3590_v20 = vpop.xlane.xlu0 %3589 }
 0x8cc   :  { %v3596_v9 = vadd.f32 %v4453_v28, %v3590_v20 }
 0x8ce   :  { %v4775_v30 = vpop.eup %4774  ;;  %v3598_v54 = vmul.f32 0.5, %v3596_v9 }
 0x8cf   :  { %v3601_v56 = vmul.f32 0.5, %v4775_v30 }
 0x8d0   :  { %4776 = vtanh.f32 %v3598_v54 }
 0x8d1   :  { %v3603_v53 = vadd.f32 0.5, %v3601_v56 }
 0x8d3   :  { %3607 = vperm.xlu1 %4450, %v3603_v53  }
 0x8d6   :  { %v4777_v60 = vpop.eup %4776 }
 0x8d7   :  { %v3602_v6 = vmul.f32 0.5, %v4777_v60 }
 0x8d9   :  { %v3604_v63 = vadd.f32 0.5, %v3602_v6 }
 0x8db   :  { %3612 = vperm.xlu1 %4450, %v3604_v63  }
 0x945   :  { %v3608_v13 = vpop.permute.xlu1 %3607 }
 0x946   :  { %3615 = vst [vmem:[#allocation15] sm:$0xff] %v3608_v13 }
 0x94d   :  { %v3613_v11 = vpop.permute.xlu1 %3612 }
 0x94e   :  { %3616 = vst [vmem:[#allocation15 + $0x8] sm:$0xff] %v3613_v11 }
 0x94f   :  { %3629 = dma.vmem_to_hbm [thread:$0]  %s3622_s25, 256, %s3624_s28, [#allocation9], %s4916_s29, %s4916_s29, %s4917_s30  }
 0x950   :  { %4904 = dma.done.wait [#allocation9], 256  }
 0x951   :  { %4905 = vsyncadd [#allocation9], 4294967040 }
 0x952   :  { %3634 = vsyncpa [#allocation8], 1 }
 0x953   :  { %3635 = vsyncpa [#allocation11], 1 }
 0x954   :  { %3636 = vsyncpa [#allocation14], 1 }
 0x955   :  { %3637 = vsyncpa [#allocation9], 1 }

</bundles_post_ra>
